<compile_context>
chip_gen: v5e
topology: v5e:2x2
jax: 0.10.0
libtpu: 0.0.40
codegen_flags: <defaults>
</compile_context>

<pallas_src>
import jax
import jax.numpy as jnp
from jax.experimental import pallas as pl
from jax.experimental.pallas import tpu as pltpu

_KPAD = 128  # the 100-wide "shrink" dim zero-padded to one lane tile


def _round_up(x, m):
    return (x + m - 1) // m * m


# ----------------------------------------------------------------------------
# Device-aware tiling heuristics
# ----------------------------------------------------------------------------
def _vmem_budget_bytes():
    """Generation-aware scoped-VMEM budget (v7x: 64 MiB/TC, v5e/v6e: 128 MiB)."""
    try:
        cap = int(pltpu.get_tpu_info().vmem_capacity_bytes)
    except Exception:
        cap = 64 << 20  # conservative fallback (v7x-sized)
    if cap <= (80 << 20):
        return 40 << 20  # v7x-class part
    return 96 << 20      # v5e / v6e class part


def _is_single_tensorcore():
    """Best-effort: v5e/v6e have 1 TC per chip; v7x (and unknown) -> assume 2."""
    try:
        kind = jax.devices()[0].device_kind.lower()
    except Exception:
        return False
    return any(t in kind for t in ("v5e", "v5 lite", "v5lite", "v6e", "v6 lite", "v6lite"))


def _choose_seq_tile(seq_len, tn, per_buf_target):
    """Pick the S tile ts (multiple of 8).  S is padded up to a multiple of ts,
    so no divisor fall-through can blow the VMEM budget; the cost model trades
    zero-padding bytes against ~0.35us/step grid overhead."""
    bytes_per_row = _KPAD * tn * 2               # one s-row of a w_seq block (bf16)
    s_cap = _round_up(seq_len, 8)
    ts_max = max(8, min(s_cap, (per_buf_target // bytes_per_row) // 8 * 8))
    step_overhead_bytes = 450 * 1024             # ~0.35 us of HBM time per grid step
    best = None
    for ts in range(8, ts_max + 1, 8):
        s_pad = _round_up(seq_len, ts)
        cost = (s_pad - seq_len) * bytes_per_row + (s_pad // ts) * step_overhead_bytes
        if best is None or cost < best[0]:
            best = (cost, ts, s_pad)
    return best[1], best[2]


def _choose_tiling(seq_len, latent):
    vmem_budget = _vmem_budget_bytes()
    if _is_single_tensorcore() or latent <= 128:
        latent_pad = _round_up(latent, 128)      # one latent tile: fewest steps
        num_j = 1
    else:
        latent_pad = _round_up(latent, 256)      # 2 tiles -> shard across 2 TCs (v7x)
        num_j = 2
    tn = latent_pad // num_j

    per_buf_cap = (16 << 20) if vmem_budget >= (64 << 20) else (12 << 20)
    per_buf_target = max(2 << 20, min(per_buf_cap, int(0.35 * vmem_budget)))
    # Guard for very large latent sizes: split latent further if even an 8-row
    # S tile would exceed the per-buffer budget.
    while (8 * _KPAD * tn * 2 > per_buf_target and tn > 128
           and tn % 2 == 0 and (tn // 2) % 128 == 0):
        tn //= 2
        num_j *= 2

    ts, s_pad = _choose_seq_tile(seq_len, tn, per_buf_target)
    return dict(
        vmem_budget=vmem_budget, num_j=num_j, tn=tn, latent_pad=latent_pad,
        ts=ts, s_pad=s_pad, tk=ts * _KPAD, k_pad=s_pad * _KPAD, num_k=s_pad // ts,
    )


# ----------------------------------------------------------------------------
# Kernels
# ----------------------------------------------------------------------------
def _shrink_tokens_kernel(x_ref, w_ref, b_ref, o_ref):
    # x_ref: (B, ts, dim_m) bf16 ; w_ref: (dim_m, 128) bf16 ; b_ref: (1, 128) f32
    # o_ref: (B, ts, 128) bf16
    x = x_ref[...]
    bsz, ts, dim_m = x.shape
    # 2-D matmul; reshapes only merge/split the leading (sublane) dims.
    h = jnp.dot(x.reshape(bsz * ts, dim_m), w_ref[...],
                preferred_element_type=jnp.float32)
    h = (h + b_ref[...]).astype(o_ref.dtype)
    o_ref[...] = h.reshape(bsz, ts, _KPAD)


def _shrink_sequence_kernel(h_ref, w_ref, b_ref, o_ref):
    # h_ref: (B, tk) bf16 ; w_ref: (tk, tn) bf16 ; b_ref: (1, tn) f32
    # o_ref: (B, tn) f32 -- resident across the reduction axis (index fixed in kk),
    # used directly as the accumulator (no VMEM scratch).
    kk = pl.program_id(1)

    @pl.when(kk == 0)
    def _():
        o_ref[...] = jnp.zeros_like(o_ref)

    o_ref[...] += jnp.dot(h_ref[...], w_ref[...], preferred_element_type=jnp.float32)

    @pl.when(kk == pl.num_programs(1) - 1)
    def _():
        o_ref[...] = jnp.tanh(o_ref[...] + b_ref[...]).astype(o_ref.dtype)


# ----------------------------------------------------------------------------
# One-time weight preparation (hoisted out of the forward path)
# ----------------------------------------------------------------------------
def prepare_params(params, seq_len):
    """params: 'w_tok' (100, dim_m), 'b_tok' (100,), 'w_seq' (latent, 100*seq_len),
    'b_seq' (latent,) -- all f32 (PyTorch nn.Linear layout)."""
    w_tok, b_tok = params["w_tok"], params["b_tok"]
    w_seq, b_seq = params["w_seq"], params["b_seq"]
    k_dim, dim_m = w_tok.shape
    latent = b_seq.shape[0]
    assert k_dim <= _KPAD and dim_m > 100
    assert w_seq.shape == (latent, k_dim * seq_len)

    tl = _choose_tiling(seq_len, latent)
    latent_pad, num_j, tn = tl["latent_pad"], tl["num_j"], tl["tn"]
    s_pad, k_pad = tl["s_pad"], tl["k_pad"]

    # shrink_tokens: weight transposed + zero-padded 100 -> 128 (bf16 stream).
    w_tok_p = jnp.zeros((dim_m, _KPAD), jnp.bfloat16)
    w_tok_p = w_tok_p.at[:, :k_dim].set(w_tok.T.astype(jnp.bfloat16))
    b_tok_p = jnp.zeros((1, _KPAD), jnp.float32)
    b_tok_p = b_tok_p.at[0, :k_dim].set(b_tok.astype(jnp.float32))

    # shrink_sequence: (latent, 100*S) -> (S, 100, latent) (row r = s*100 + c,
    # matching PyTorch's row-major .view(B, S*100)), zero-pad to
    # (S_pad, 128, latent_pad), flatten the contraction dim, then lay out
    # block-major over latent tiles: (num_j, K_pad, tn) so every streamed
    # (tk, tn) block is fully contiguous in HBM.  Padding is exact: padded
    # w_seq rows/cols are zero (padded sequence rows contribute nothing even
    # though stage-1 writes b_tok there).
    w_t = w_seq.T.reshape(seq_len, k_dim, latent)
    w_seq_p = jnp.zeros((s_pad, _KPAD, latent_pad), jnp.bfloat16)
    w_seq_p = w_seq_p.at[:seq_len, :k_dim, :latent].set(w_t.astype(jnp.bfloat16))
    w_seq_p = w_seq_p.reshape(k_pad, num_j, tn).transpose(1, 0, 2)

    b_seq_p = jnp.zeros((1, latent_pad), jnp.float32)
    b_seq_p = b_seq_p.at[0, :latent].set(b_seq.astype(jnp.float32))

    prep = dict(w_tok=w_tok_p, b_tok=b_tok_p, w_seq=w_seq_p, b_seq=b_seq_p,
                dim_m=dim_m, seq_len=seq_len, latent=latent)
    prep.update(tl)
    return prep


# ----------------------------------------------------------------------------
# Forward
# ----------------------------------------------------------------------------
def build_forward(prep):
    """Returns forward(encoding, attention_mask) for the 'shrinking' branch."""
    vmem_budget = prep["vmem_budget"]
    ts, tn, tk = prep["ts"], prep["tn"], prep["tk"]
    s_pad, k_pad = prep["s_pad"], prep["k_pad"]
    num_j, num_k = prep["num_j"], prep["num_k"]
    latent, latent_pad = prep["latent"], prep["latent_pad"]
    dim_m, seq_len = prep["dim_m"], prep["seq_len"]

    @jax.jit
    def _fwd(encoding, w_tok, b_tok, w_seq, b_seq):
        bsz = encoding.shape[0]
        x = encoding.astype(jnp.bfloat16)
        if s_pad > seq_len:
            x = jnp.pad(x, ((0, 0), (0, s_pad - seq_len), (0, 0)))

        # ---- stage 1: h = x @ W_tok^T + b_tok  -> (B, S_pad, 128) bf16 ------
        h = pl.pallas_call(
            _shrink_tokens_kernel,
            out_shape=jax.ShapeDtypeStruct((bsz, s_pad, _KPAD), jnp.bfloat16),
            grid_spec=pltpu.PrefetchScalarGridSpec(
                num_scalar_prefetch=0,
                grid=(s_pad // ts,),
                in_specs=[
                    pl.BlockSpec((bsz, ts, dim_m), lambda s: (0, s, 0)),
                    pl.BlockSpec((dim_m, _KPAD), lambda s: (0, 0)),
                    pl.BlockSpec((1, _KPAD), lambda s: (0, 0)),
                ],
                out_specs=pl.BlockSpec((bsz, ts, _KPAD), lambda s: (0, s, 0)),
            ),
            compiler_params=pltpu.CompilerParams(
                dimension_semantics=("parallel",),
                vmem_limit_bytes=vmem_budget,
            ),
            cost_estimate=pl.CostEstimate(
                flops=2 * bsz * s_pad * dim_m * _KPAD,
                transcendentals=0,
                bytes_accessed=int(x.size * 2 + w_tok.size * 2
                                   + bsz * s_pad * _KPAD * 2),
            ),
        )(x, w_tok, b_tok)

        # Row-major contiguous flatten of the contraction dim (tiny array).
        h_flat = h.reshape(bsz, k_pad)

        # ---- stage 2: y = h_flat @ W_seq_flat + b_seq; out = tanh(y) --------
        out = pl.pallas_call(
            _shrink_sequence_kernel,
            out_shape=jax.ShapeDtypeStruct((bsz, latent_pad), jnp.float32),
            grid_spec=pltpu.PrefetchScalarGridSpec(
                num_scalar_prefetch=0,
                grid=(num_j, num_k),  # (latent tiles [parallel], K tiles [reduction, last])
                in_specs=[
                    pl.BlockSpec((bsz, tk), lambda j, kk: (0, kk)),
                    pl.BlockSpec((None, tk, tn), lambda j, kk: (j, kk, 0)),  # contiguous block
                    pl.BlockSpec((1, tn), lambda j, kk: (0, j)),
                ],
                out_specs=pl.BlockSpec((bsz, tn), lambda j, kk: (0, j)),
            ),
            compiler_params=pltpu.CompilerParams(
                dimension_semantics=("parallel", "arbitrary"),
                vmem_limit_bytes=vmem_budget,
            ),
            cost_estimate=pl.CostEstimate(
                flops=2 * bsz * k_pad * latent_pad,
                transcendentals=bsz * latent_pad,
                bytes_accessed=int(w_seq.size * 2 + bsz * k_pad * 2
                                   + bsz * latent_pad * 4 + latent_pad * 4),
            ),
        )(h_flat, w_seq, b_seq)

        return out[:, :latent]

    def forward(encoding, attention_mask):
        del attention_mask  # unused by the 'shrinking' branch, as in PyTorch
        return _fwd(encoding, prep["w_tok"], prep["b_tok"], prep["w_seq"], prep["b_seq"])

    return forward


# ----------------------------------------------------------------------------
# Init + reference + test
# ----------------------------------------------------------------------------
def init_params(key, dim_m, set_input_size, latent_size):
    """Deterministic init mimicking nn.Linear default (U[-1/sqrt(fan_in), +...])."""
    k1, k2, k3, k4 = jax.random.split(key, 4)
    bound1 = 1.0 / jnp.sqrt(dim_m)
    bound2 = 1.0 / jnp.sqrt(100.0 * set_input_size)
    return {
        "w_tok": jax.random.uniform(k1, (100, dim_m), jnp.float32, -bound1, bound1),
        "b_tok": jax.random.uniform(k2, (100,), jnp.float32, -bound1, bound1),
        "w_seq": jax.random.uniform(
            k3, (latent_size, 100 * set_input_size), jnp.float32, -bound2, bound2),
        "b_seq": jax.random.uniform(k4, (latent_size,), jnp.float32, -bound2, bound2),
    }


def reference_forward(encoding, params):
    """Pure-JAX f32 reference matching the PyTorch forward (shrinking branch)."""
    B = encoding.shape[0]
    h = encoding @ params["w_tok"].T + params["b_tok"]
    y = h.reshape(B, -1) @ params["w_seq"].T + params["b_seq"]
    return jnp.tanh(y)


if __name__ == "__main__":
    # Small shapes consistent with the module (dim_m > 100, "1k"-ish latent).
    B, S, dim_m, latent_size = 2, 32, 128, 1000

    key = jax.random.PRNGKey(0)
    k_x, k_p = jax.random.split(key)
    encoding = jax.random.normal(k_x, (B, S, dim_m), jnp.float32)
    attention_mask = jnp.ones((B, S), jnp.float32)  # unused by shrinking branch
    params = init_params(k_p, dim_m, S, latent_size)

    prep = prepare_params(params, S)   # one-time weight prep (hoisted)
    forward = build_forward(prep)

    out = forward(encoding, attention_mask)
    out = jax.block_until_ready(out)

    ref = reference_forward(encoding, params)
    assert out.shape == (B, latent_size), out.shape
    max_err = float(jnp.max(jnp.abs(out - ref)))
    # bf16-streamed operands with f32 accumulation: small mixed-precision drift.
    assert max_err < 2e-2, f"mismatch vs reference: max abs err {max_err}"

    print("KERNEL_OK")
</pallas_src>

<mosaic_0001>
module attributes {stable_mosaic.version = 11 : i64} {
  func.func @_shrink_sequence_kernel(%arg0: i32, %arg1: i32, %arg2: memref<2x4096xbf16, #tpu.memory_space<vmem>>, %arg3: memref<1x4096x512xbf16, #tpu.memory_space<vmem>>, %arg4: memref<1x512xf32, #tpu.memory_space<vmem>>, %arg5: memref<2x512xf32, #tpu.memory_space<vmem>>) attributes {dimension_semantics = [#tpu.dimension_semantics<parallel>, #tpu.dimension_semantics<arbitrary>], iteration_bounds = array<i64: 2, 1>, scalar_prefetch = 0 : i64, scratch_operands = 0 : i64, tpu.core_type = #tpu.core_type<tc>, window_params = [{transform_indices = @transform_0, window_bounds = array<i64: 2, 4096>}, {transform_indices = @transform_1, window_bounds = array<i64: 1, 4096, 512>}, {transform_indices = @transform_2, window_bounds = array<i64: 1, 512>}, {transform_indices = @transform_3, window_bounds = array<i64: 2, 512>}]} {
    %c0_i32 = arith.constant 0 : i32
    %0 = arith.cmpi eq, %arg1, %c0_i32 : i32
    %1 = arith.extui %0 : i1 to i32
    %c0_i32_0 = arith.constant 0 : i32
    %2 = arith.cmpi ne, %1, %c0_i32_0 : i32
    scf.if %2 {
      %cst_11 = arith.constant 0.000000e+00 : f32
      %13 = vector.broadcast %cst_11 : f32 to vector<2x512xf32>
      %c0_12 = arith.constant 0 : index
      %c0_13 = arith.constant 0 : index
      %14 = vector.load %arg5[%c0_12, %c0_13] : memref<2x512xf32, #tpu.memory_space<vmem>>, vector<2x512xf32>
      tpu.vector_store %arg5[%c0_12, %c0_13], %13 {strides = array<i32>} : memref<2x512xf32, #tpu.memory_space<vmem>>, vector<2x512xf32>,
    } else {
    }
    %c0 = arith.constant 0 : index
    %c0_1 = arith.constant 0 : index
    %3 = vector.load %arg5[%c0, %c0_1] : memref<2x512xf32, #tpu.memory_space<vmem>>, vector<2x512xf32>
    %c0_2 = arith.constant 0 : index
    %c0_3 = arith.constant 0 : index
    %4 = vector.load %arg2[%c0_2, %c0_3] : memref<2x4096xbf16, #tpu.memory_space<vmem>>, vector<2x4096xbf16>
    %c0_4 = arith.constant 0 : index
    %c0_5 = arith.constant 0 : index
    %c0_6 = arith.constant 0 : index
    %5 = vector.load %arg3[%c0_4, %c0_5, %c0_6] : memref<1x4096x512xbf16, #tpu.memory_space<vmem>>, vector<1x4096x512xbf16>
    %6 = vector.shape_cast %5 : vector<1x4096x512xbf16> to vector<4096x512xbf16>
    %cst = arith.constant dense<0.000000e+00> : vector<2x512xf32>
    %7 = tpu.matmul %4, %6, %cst {dimension_numbers = #tpu.dot_dimension_numbers<[1], [0], [0], [1], [0, 0, 1, 1], [], []>} : vector<2x4096xbf16>, vector<4096x512xbf16>, vector<2x512xf32> -> vector<2x512xf32>
    %8 = arith.addf %3, %7 : vector<2x512xf32>
    %c0_7 = arith.constant 0 : index
    %c0_8 = arith.constant 0 : index
    %9 = vector.load %arg5[%c0_7, %c0_8] : memref<2x512xf32, #tpu.memory_space<vmem>>, vector<2x512xf32>
    tpu.vector_store %arg5[%c0_7, %c0_8], %8 {strides = array<i32>} : memref<2x512xf32, #tpu.memory_space<vmem>>, vector<2x512xf32>,
    %c0_i32_9 = arith.constant 0 : i32
    %10 = arith.cmpi eq, %arg1, %c0_i32_9 : i32
    %11 = arith.extui %10 : i1 to i32
    %c0_i32_10 = arith.constant 0 : i32
    %12 = arith.cmpi ne, %11, %c0_i32_10 : i32
    scf.if %12 {
      %c0_11 = arith.constant 0 : index
      %c0_12 = arith.constant 0 : index
      %13 = vector.load %arg5[%c0_11, %c0_12] : memref<2x512xf32, #tpu.memory_space<vmem>>, vector<2x512xf32>
      %c0_13 = arith.constant 0 : index
      %c0_14 = arith.constant 0 : index
      %14 = vector.load %arg4[%c0_13, %c0_14] : memref<1x512xf32, #tpu.memory_space<vmem>>, vector<1x512xf32>
      %15 = vector.broadcast %14 : vector<1x512xf32> to vector<2x512xf32>
      %16 = arith.addf %13, %15 : vector<2x512xf32>
      %17 = math.tanh %16 : vector<2x512xf32>
      %c0_15 = arith.constant 0 : index
      %c0_16 = arith.constant 0 : index
      %18 = vector.load %arg5[%c0_15, %c0_16] : memref<2x512xf32, #tpu.memory_space<vmem>>, vector<2x512xf32>
      tpu.vector_store %arg5[%c0_15, %c0_16], %17 {strides = array<i32>} : memref<2x512xf32, #tpu.memory_space<vmem>>, vector<2x512xf32>,
    } else {
    }
    return
  }
  func.func @transform_0(%arg0: i32, %arg1: i32) -> (i32, i32) {
    %c0_i32 = arith.constant 0 : i32
    %c0_i32_0 = arith.constant 0 : i32
    return %c0_i32, %arg1 : i32, i32
  }
  func.func @transform_1(%arg0: i32, %arg1: i32) -> (i32, i32, i32) {
    %c0_i32 = arith.constant 0 : i32
    %c0_i32_0 = arith.constant 0 : i32
    return %arg0, %arg1, %c0_i32 : i32, i32, i32
  }
  func.func @transform_2(%arg0: i32, %arg1: i32) -> (i32, i32) {
    %c0_i32 = arith.constant 0 : i32
    %c0_i32_0 = arith.constant 0 : i32
    return %c0_i32, %arg0 : i32, i32
  }
  func.func @transform_3(%arg0: i32, %arg1: i32) -> (i32, i32) {
    %c0_i32 = arith.constant 0 : i32
    %c0_i32_0 = arith.constant 0 : i32
    return %c0_i32, %arg0 : i32, i32
  }
}

module attributes {stable_mosaic.version = 11 : i64} {
  func.func @_shrink_tokens_kernel(%arg0: i32, %arg1: memref<2x32x128xbf16, #tpu.memory_space<vmem>>, %arg2: memref<128x128xbf16, #tpu.memory_space<vmem>>, %arg3: memref<1x128xf32, #tpu.memory_space<vmem>>, %arg4: memref<2x32x128xbf16, #tpu.memory_space<vmem>>) attributes {dimension_semantics = [#tpu.dimension_semantics<parallel>], iteration_bounds = array<i64: 1>, scalar_prefetch = 0 : i64, scratch_operands = 0 : i64, tpu.core_type = #tpu.core_type<tc>, window_params = [{transform_indices = @transform_0, window_bounds = array<i64: 2, 32, 128>}, {pipeline_mode = #tpu.pipeline_mode<synchronous>, transform_indices = @transform_1, window_bounds = array<i64: 128, 128>}, {pipeline_mode = #tpu.pipeline_mode<synchronous>, transform_indices = @transform_2, window_bounds = array<i64: 1, 128>}, {transform_indices = @transform_3, window_bounds = array<i64: 2, 32, 128>}]} {
    %c0 = arith.constant 0 : index
    %c0_0 = arith.constant 0 : index
    %c0_1 = arith.constant 0 : index
    %0 = vector.load %arg1[%c0, %c0_0, %c0_1] : memref<2x32x128xbf16, #tpu.memory_space<vmem>>, vector<2x32x128xbf16>
    %1 = vector.shape_cast %0 : vector<2x32x128xbf16> to vector<64x128xbf16>
    %c0_2 = arith.constant 0 : index
    %c0_3 = arith.constant 0 : index
    %2 = vector.load %arg2[%c0_2, %c0_3] : memref<128x128xbf16, #tpu.memory_space<vmem>>, vector<128x128xbf16>
    %cst = arith.constant dense<0.000000e+00> : vector<64x128xf32>
    %3 = tpu.matmul %1, %2, %cst {dimension_numbers = #tpu.dot_dimension_numbers<[1], [0], [0], [1], [0, 0, 1, 1], [], []>} : vector<64x128xbf16>, vector<128x128xbf16>, vector<64x128xf32> -> vector<64x128xf32>
    %c0_4 = arith.constant 0 : index
    %c0_5 = arith.constant 0 : index
    %4 = vector.load %arg3[%c0_4, %c0_5] : memref<1x128xf32, #tpu.memory_space<vmem>>, vector<1x128xf32>
    %5 = vector.broadcast %4 : vector<1x128xf32> to vector<64x128xf32>
    %6 = arith.addf %3, %5 : vector<64x128xf32>
    %7 = arith.truncf %6 : vector<64x128xf32> to vector<64x128xbf16>
    %8 = vector.shape_cast %7 : vector<64x128xbf16> to vector<2x32x128xbf16>
    %c0_6 = arith.constant 0 : index
    %c0_7 = arith.constant 0 : index
    %c0_8 = arith.constant 0 : index
    %9 = vector.load %arg4[%c0_6, %c0_7, %c0_8] : memref<2x32x128xbf16, #tpu.memory_space<vmem>>, vector<2x32x128xbf16>
    tpu.vector_store %arg4[%c0_6, %c0_7, %c0_8], %8 {strides = array<i32>} : memref<2x32x128xbf16, #tpu.memory_space<vmem>>, vector<2x32x128xbf16>,
    return
  }
  func.func @transform_0(%arg0: i32) -> (i32, i32, i32) {
    %c0_i32 = arith.constant 0 : i32
    %c0_i32_0 = arith.constant 0 : i32
    %c0_i32_1 = arith.constant 0 : i32
    return %c0_i32, %arg0, %c0_i32_0 : i32, i32, i32
  }
  func.func @transform_1(%arg0: i32) -> (i32, i32) {
    %c0_i32 = arith.constant 0 : i32
    %c0_i32_0 = arith.constant 0 : i32
    %c0_i32_1 = arith.constant 0 : i32
    return %c0_i32, %c0_i32_0 : i32, i32
  }
  func.func @transform_2(%arg0: i32) -> (i32, i32) {
    %c0_i32 = arith.constant 0 : i32
    %c0_i32_0 = arith.constant 0 : i32
    %c0_i32_1 = arith.constant 0 : i32
    return %c0_i32, %c0_i32_0 : i32, i32
  }
  func.func @transform_3(%arg0: i32) -> (i32, i32, i32) {
    %c0_i32 = arith.constant 0 : i32
    %c0_i32_0 = arith.constant 0 : i32
    %c0_i32_1 = arith.constant 0 : i32
    return %c0_i32, %arg0, %c0_i32_0 : i32, i32, i32
  }
}

</mosaic_0001>

<bundles_post_ra>
// kernel: _fwd.2
= control target key start
LH: loop header
LB: loop body
LE: loop exit
PB: predicated region body
PF: predicated region fallthrough
CT: control target
= control target key end

     0   :  { %8 = vsyncpa [#allocation3], 0  ;;  %s413_s0 = inlined_call_operand.vmem [shape: bf16[2,32,128], index: 0, kind: input, shape index: {}]   ;;  %s414_s1 = inlined_call_operand.hbm [shape: bf16[128,128], index: 1, kind: input, shape index: {}]   ;;  %s415_s2 = inlined_call_operand.hbm [shape: f32[1,128], index: 2, kind: input, shape index: {}]   ;;  %s416_s3 = inlined_call_operand.vmem [shape: bf16[2,32,128], index: 3, kind: output, shape index: {}]  }
   0x1   :  { %s16_s14 = sshll.u32 %s414_s1, 4  ;;  %s17_s14 = int_to_ptr.hbm [resolvable:$true] %s16_s14 }
   0x2   :  { %9 = vsyncpa [#allocation5], 0  ;;  %s359_s15 = smov [#allocation2]   ;;  %s30_s19 = sshll.u32 %s415_s2, 4  ;;  %s31_s19 = int_to_ptr.hbm [resolvable:$true] %s30_s19 }
   0x3   :  { %s18_s16 = sshll.u32 %s359_s15, 4  ;;  %s360_s20 = smov 64   ;;  %s19_s16 = int_to_ptr.vmem [resolvable:$true] %s18_s16 }
   0x4   :  { %s361_s21 = smov 4   ;;  %s362_s22 = smov [#allocation4]  }
   0x5   :  { %24 = dma.hbm_to_vmem [thread:$0]  %s17_s14, 1024, %s19_s16, [#allocation3], %s360_s20, %s360_s20, %s361_s21  }
   0x6   :  { %s32_s23 = sshll.u32 %s362_s22, 4  ;;  %s33_s23 = int_to_ptr.vmem [resolvable:$true] %s32_s23 }
   0x7   :  { %35 = dma.hbm_to_vmem [thread:$0]  %s31_s19, 16, %s33_s23, [#allocation5]  }
   0x8   :  { %355 = dma.done.wait [#allocation3], 1024  }
   0x9   :  { %356 = vsyncadd [#allocation3], 4294966272 }
   0xa   :  { %357 = dma.done.wait [#allocation5], 16  }
   0xb   :  { %358 = vsyncadd [#allocation5], 4294967280  ;;  %v254_v0 = vld [vmem:[#allocation2 + $0x38] sm:$0xff]  ;;  %v253_v1 = vld [vmem:[#allocation2 + $0x30] sm:$0xff] }
   0xc   :  { %144 = vmatpush.bf16.msra.mxu0 %v254_v0  ;;  %278 = vmatpush.bf16.msra.mxu1 %v254_v0  ;;  %v252_v2 = vld [vmem:[#allocation2 + $0x28] sm:$0xff]  ;;  %v251_v3 = vld [vmem:[#allocation2 + $0x20] sm:$0xff]  ;;  %v250_v4 = vld [vmem:[#allocation2 + $0x18] sm:$0xff] }
   0xd   :  { %279 = vmatpush.bf16.msra.mxu2 %v254_v0  ;;  %280 = vmatpush.bf16.msra.mxu3 %v254_v0  ;;  %v249_v5 = vld [vmem:[#allocation2 + $0x10] sm:$0xff]  ;;  %v248_v6 = vld [vmem:[#allocation2 + $0x8] sm:$0xff]  ;;  %v247_v7 = vld [vmem:[#allocation2] sm:$0xff] }
   0xe   :  { %v243_v8 = vld [vmem:[%s413_s0] sm:$0xff]  ;;  %v244_v9 = vld [vmem:[%s413_s0 + $0x8] sm:$0xff]  ;;  %v245_v10 = vld [vmem:[%s413_s0 + $0x10] sm:$0xff] }
   0xf   :  { %v246_v11 = vld [vmem:[%s413_s0 + $0x18] sm:$0xff]  ;;  %v306_v14 = vld [vmem:[#allocation4] ss:$0 sm:$0xff] }
  0x10   :  { %145 = vmatpush.bf16.msra.mxu0 %v253_v1  ;;  %281 = vmatpush.bf16.msra.mxu1 %v253_v1 }
  0x11   :  { %282 = vmatpush.bf16.msra.mxu2 %v253_v1  ;;  %283 = vmatpush.bf16.msra.mxu3 %v253_v1 }
  0x14   :  { %146 = vmatpush.bf16.msra.mxu0 %v252_v2  ;;  %284 = vmatpush.bf16.msra.mxu1 %v252_v2 }
  0x15   :  { %285 = vmatpush.bf16.msra.mxu2 %v252_v2  ;;  %286 = vmatpush.bf16.msra.mxu3 %v252_v2 }
  0x18   :  { %147 = vmatpush.bf16.msra.mxu0 %v251_v3  ;;  %287 = vmatpush.bf16.msra.mxu1 %v251_v3 }
  0x19   :  { %288 = vmatpush.bf16.msra.mxu2 %v251_v3  ;;  %289 = vmatpush.bf16.msra.mxu3 %v251_v3 }
  0x1c   :  { %148 = vmatpush.bf16.msra.mxu0 %v250_v4  ;;  %290 = vmatpush.bf16.msra.mxu1 %v250_v4 }
  0x1d   :  { %291 = vmatpush.bf16.msra.mxu2 %v250_v4  ;;  %292 = vmatpush.bf16.msra.mxu3 %v250_v4 }
  0x20   :  { %149 = vmatpush.bf16.msra.mxu0 %v249_v5  ;;  %293 = vmatpush.bf16.msra.mxu1 %v249_v5 }
  0x21   :  { %294 = vmatpush.bf16.msra.mxu2 %v249_v5  ;;  %295 = vmatpush.bf16.msra.mxu3 %v249_v5 }
  0x24   :  { %150 = vmatpush.bf16.msra.mxu0 %v248_v6  ;;  %296 = vmatpush.bf16.msra.mxu1 %v248_v6 }
  0x25   :  { %297 = vmatpush.bf16.msra.mxu2 %v248_v6  ;;  %298 = vmatpush.bf16.msra.mxu3 %v248_v6 }
  0x28   :  { %151 = vmatpush.bf16.msra.mxu0 %v247_v7  ;;  %299 = vmatpush.bf16.msra.mxu1 %v247_v7 }
  0x29   :  { %300 = vmatpush.bf16.msra.mxu2 %v247_v7  ;;  %301 = vmatpush.bf16.msra.mxu3 %v247_v7 }
  0x2b   :  { %152 = vmatmul.bf16.vlgmr.msra.gmra.mxu0 %v243_v8  ;;  %157 = vmatmul.bf16.vlgmr.msra.gmra.mxu1 %v244_v9 }
  0x2c   :  { %162 = vmatmul.bf16.vlgmr.msra.gmra.mxu2 %v245_v10  ;;  %167 = vmatmul.bf16.vlgmr.msra.gmra.mxu3 %v246_v11 }
  0xa8   :  { %v153_v12 = vpop.f32.mrf.mxu0  ;;  %v158_v13 = vpop.f32.mrf.mxu1 }
  0xa9   :  { %v154_v19 = vadd.f32 %v306_v14, %v153_v12  ;;  %v159_v20 = vadd.f32 %v306_v14, %v158_v13 }
  0xaf   :  { %v163_v15 = vpop.f32.mrf.mxu2  ;;  %v168_v16 = vpop.f32.mrf.mxu3 }
  0xb0   :  { %v155_v17 = vpop.f32.mrf.mxu0  ;;  %v160_v18 = vpop.f32.mrf.mxu1  ;;  %v164_v27 = vadd.f32 %v306_v14, %v163_v15  ;;  %v169_v28 = vadd.f32 %v306_v14, %v168_v16 }
  0xb1   :  { %v156_v21 = vadd.f32 %v306_v14, %v155_v17  ;;  %v161_v22 = vadd.f32 %v306_v14, %v160_v18 }
  0xb3   :  { %v258_v23 = vpack.c.bf16 %v156_v21, %v154_v19  ;;  %v263_v24 = vpack.c.bf16 %v161_v22, %v159_v20 }
  0xb5   :  { %259 = vst [vmem:[%s416_s3] sm:$0xff] %v258_v23  }
  0xb6   :  { %275 = vst [vmem:[%s416_s3 + $0x8] sm:$0xff] %v263_v24  }
  0xb7   :  { %v165_v25 = vpop.f32.mrf.mxu2  ;;  %v170_v26 = vpop.f32.mrf.mxu3 }
  0xb8   :  { %v166_v29 = vadd.f32 %v306_v14, %v165_v25  ;;  %v171_v30 = vadd.f32 %v306_v14, %v170_v26 }
  0xba   :  { %v268_v31 = vpack.c.bf16 %v166_v29, %v164_v27  ;;  %v273_v32 = vpack.c.bf16 %v171_v30, %v169_v28 }
  0xbc   :  { %276 = vst [vmem:[%s416_s3 + $0x10] sm:$0xff] %v268_v31  }
  0xbd   :  { %277 = vst [vmem:[%s416_s3 + $0x18] sm:$0xff] %v273_v32  }
  0xbe   :  { %193 = vsyncpa [#allocation3], 1 }
  0xbf   :  { %194 = vsyncpa [#allocation5], 1 }

// kernel: _fwd.3
= control target key start
LH: loop header
LB: loop body
LE: loop exit
PB: predicated region body
PF: predicated region fallthrough
CT: control target
= control target key end

     0   :  { %8 = vsyncpa [#allocation3], 0  ;;  %s16163_s0 = inlined_call_operand.vmem [shape: bf16[2,4096], index: 0, kind: input, shape index: {}]   ;;  %s16164_s1 = inlined_call_operand.hbm [shape: bf16[2,4096,512], index: 1, kind: input, shape index: {}]   ;;  %s16165_s2 = inlined_call_operand.hbm [shape: f32[1,1024], index: 2, kind: input, shape index: {}]   ;;  %s16166_s3 = inlined_call_operand.hbm [shape: f32[2,1024], index: 3, kind: output, shape index: {}]  }
   0x1   :  { %10 = vsyncpa [#allocation3 + $0x1], 0 }
   0x2   :  { %11 = vsyncpa [#allocation6], 0 }
   0x3   :  { %13 = vsyncpa [#allocation6 + $0x1], 0 }
   0x4   :  { %14 = vsyncpa [#allocation4], 0 }
   0x5   :  { %16 = vsyncpa [#allocation4 + $0x1], 0  ;;  %s13735_s12 = smov 0   ;;  %s13737_s13 = smov 0  }
   0x6   :  { %s13739_s14 = smov 0   ;;  %s13741_s15 = smov 0  }
   0x7   :  { %s13743_s16 = smov 0   ;;  %s13745_s17 = smov 0  }
   0x8 LB: > { %s8328_s18 = sadd.s32 4294967295, %s13711_s17   ;;  %s8329_s19 = sadd.s32 4294967294, %s13711_s17   ;;  %s13711_s17 = sphi %s13745_s17, %s22_s17   ;;  %s13707_s16 = sphi %s13743_s16, %s16176_s16   ;;  %s13703_s15 = sphi %s13741_s15, %s16175_s15   ;;  %s13699_s14 = sphi %s13739_s14, %s16174_s14   ;;  %s13695_s13 = sphi %s13737_s13, %s16173_s13   ;;  %s13691_s12 = sphi %s13735_s12, %s16172_s12  }
   0x9   : > { %s34_s20 = sadd.s32 1, %s13707_s16  ;;  %s69_s21 = sadd.s32 1, %s13699_s14 }
   0xa   : > { %p36_p0 = scmp.ge.s32.totalorder %s34_s20, 2  ;;  %p76_p1 = scmp.ne.s32.totalorder %s13699_s14, %s13695_s13 }
   0xb   : > { %p77_p2 = scmp.eq.s32.totalorder %s13711_s17, 0  ;;  %p82_p3 = scmp.ne.s32.totalorder %s13695_s13, %s13691_s12 }
   0xc   : > { %s16178_s20 = smov (%p36_p0, %s34_s20), 0  ;;  %p83_p5 = scmp.eq.s32.totalorder %s8328_s18, 0 }
   0xd   : > { %p13776_p4 = por %p77_p2, %p76_p1  ;;  %s64_s23 = ssub.s32 %s13707_s16, %s16178_s20 }
   0xe   : > { %p132_p6 = scmp.eq.s32.totalorder %s8328_s18, 1  ;;  %p67_p7 = scmp.eq.s32.totalorder %s64_s23, 0 }
   0xf   : > { %p13782_p8 = por %p83_p5, %p82_p3  ;;  %p138_p10 = scmp.eq.s32.totalorder %s8329_s19, 1 }
  0x10   : > { %p13786_p9 = por %p132_p6, %p76_p1  ;;  %p8332_p12 = scmp.ge.s32.totalorder %s13711_s17, 2 }
  0x11   : > { %s13791_s26 = scalar_select %p67_p7, %s13699_s14, %s69_s21  }
  0x12   : > { %p13793_p11 = por %p138_p10, %p82_p3  ;;  %p13486_p13 = scmp.lt.s32.totalorder %s13711_s17, 2 }
  0x13   : > { %s166_s28 = sand.u32 1, %s13699_s14   ;;  %s12443_s30 = sshll.u32 %s13707_s16, 13 }
  0x14   : > { %s8333_s29 = sshll.u32 %s166_s28, 13  ;;  %s178_s6 = scalar_lea.hbm %s16164_s1, %s12443_s30 }
  0x15   : > { %s170_s7 = scalar_lea.vmem [#allocation2], %s8333_s29  ;;  %s179_s9 = sshll.u32 %s178_s6, 4  ;;  %s180_s9 = int_to_ptr.hbm [resolvable:$true] %s179_s9 }
  0x16   : > { %s181_s8 = sshll.u32 %s170_s7, 4  ;;  %p13806_p0 = pnand %p13486_p13, %p13776_p4  ;;  %s182_s8 = int_to_ptr.vmem [resolvable:$true] %s181_s8 }
  0x17   : > { %p8338_p1 = scmp.ge.s32.totalorder %s13711_s17, 1  ;;  %s167_s11 = scalar_lea.sflag [#allocation3], %s166_s28 }
  0x18   : > { %s13713_s18 = smov 256   ;;  %s13714_s19 = smov 16  }
  0x19   : > { %13478 = dma.hbm_to_vmem [thread:$0]  (!%p13806_p0), %s180_s9, 131072, %s182_s8, %s167_s11, %s13713_s18, %s13713_s18, %s13714_s19  }
  0x1a   : > { %p208_p2 = scmp.lt.s32.totalorder %s13711_s17, 3  ;;  %s8336_s21 = sshll.u32 %s166_s28, 2 }
  0x1b   : > { %s8337_s23 = sshll.u32 %s13707_s16, 2  ;;  %s195_s4 = scalar_lea.vmem [#allocation5], %s8336_s21 }
  0x1c   : > { %p209_p3 = pnand %p8338_p1, %p208_p2  ;;  %s199_s22 = scalar_lea.hbm %s16165_s2, %s8337_s23 }
  0x1d   : > { %s203_s5 = sshll.u32 %s195_s4, 4  ;;  %s201_s6 = sshll.u32 %s199_s22, 4  ;;  %s204_s5 = int_to_ptr.vmem [resolvable:$true] %s203_s5  ;;  %s202_s6 = int_to_ptr.hbm [resolvable:$true] %s201_s6 }
  0x1e   : > { %s192_s7 = scalar_lea.sflag [#allocation6], %s166_s28  ;;  %212 = sbr.rel (%p209_p3) target bundleno = 1227 (0x4cb), region = 32 }
  0x1f   : > { %13481 = dma.hbm_to_vmem [thread:$0]  (!%p13806_p0), %s202_s6, 64, %s204_s5, %s192_s7  }
  0x20   : > { %s13821_s8 = sand.u32 (!%p209_p3), 1, %s13695_s13  }
  0x21   : > { %s8339_s9 = sshll.u32 (!%p209_p3), %s13821_s8, 13  ;;  %s215_s11 = scalar_lea.sflag (!%p209_p3), [#allocation3], %s13821_s8 }
  0x22   : > { %s13825_s18 = scalar_lea.vmem (!%p209_p3), [#allocation2], %s8339_s9 }
  0x23   : > { %13678 = dma.done.wait (%p13782_p8), %s215_s11, 131072  }
  0x24   : > { %13680 = vsyncadd (%p13782_p8), %s215_s11, 4294836224  ;;  %s8340_s28 = sshll.u32 %s13821_s8, 2  ;;  %s225_s10 = scalar_lea.sflag [#allocation6], %s13821_s8 }
  0x25   : > { %s13833_s19 = scalar_lea.vmem [#allocation5], %s8340_s28 }
  0x26   : > { %13682 = dma.done.wait (%p13782_p8), %s225_s10, 64  }
  0x27   : > { %13684 = vsyncadd (%p13782_p8), %s225_s10, 4294967232  ;;  %v8456_v0 = vld [vmem:[%s13825_s18 + $0xe0] sm:$0xf]  ;;  %v12474_v1 = vld [vmem:[%s13825_s18 + $0xec] sm:$0xf0]  ;;  %vm8166_vm0 = vcmask 1041408  }
  0x28   : > { %v8584_v2 = vld [vmem:[%s13825_s18 + $0x1e0] sm:$0xf]  ;;  %v8457_v3 = vor.u32 %v12474_v1, %v8456_v0  ;;  %v12506_v4 = vld [vmem:[%s13825_s18 + $0x1ec] sm:$0xf0]  ;;  %vm8168_vm1 = vcmask 1045508   ;;  %vm8170_vm2 = vcmask 1043456  }
  0x29   : > { %v8712_v5 = vld [vmem:[%s13825_s18 + $0x2e0] sm:$0xf]  ;;  %v12538_v6 = vld [vmem:[%s13825_s18 + $0x2ec] sm:$0xf0]  ;;  %v8585_v7 = vor.u32 %v12506_v4, %v8584_v2  ;;  %s8341_s6 = sshll.u32 %s13821_s8, 3  ;;  %s13468_s7 = sshll.u32 %s13703_s15, 3 }
  0x2a   : > { %v8713_v8 = vor.u32 %v12538_v6, %v8712_v5  ;;  %v8840_v9 = vld [vmem:[%s13825_s18 + $0x3e0] sm:$0xf]  ;;  %v12570_v10 = vld [vmem:[%s13825_s18 + $0x3ec] sm:$0xf0]  ;;  %6495 = vmatpush.bf16.msra.mxu0 %v8457_v3  ;;  %s260_s28 = scalar_lea.vmem [#allocation7], %s8341_s6  ;;  %s8196_s24 = scalar_lea.sflag [#allocation4], %s13821_s8 }
  0x2b   : > { %v8440_v11 = vld [vmem:[%s13825_s18 + $0xc0] sm:$0xf]  ;;  %v8841_v12 = vor.u32 %v12570_v10, %v8840_v9  ;;  %v12470_v13 = vld [vmem:[%s13825_s18 + $0xcc] sm:$0xf0]  ;;  %6508 = vmatpush.bf16.msra.mxu1 %v8585_v7  ;;  %s8209_s10 = sshll.u32 %s260_s28, 4  ;;  %s13645_s30 = scalar_lea.hbm %s16166_s3, 16  ;;  %s8210_s10 = int_to_ptr.vmem [resolvable:$true] %s8209_s10 }
  0x2c   : > { %v8568_v14 = vld [vmem:[%s13825_s18 + $0x1c0] sm:$0xf]  ;;  %v12502_v15 = vld [vmem:[%s13825_s18 + $0x1cc] sm:$0xf0]  ;;  %6521 = vmatpush.bf16.msra.mxu2 %v8713_v8  ;;  %v8441_v16 = vor.u32 %v12470_v13, %v8440_v11 }
  0x2d   : > { %v8569_v17 = vor.u32 %v12502_v15, %v8568_v14  ;;  %v8696_v18 = vld [vmem:[%s13825_s18 + $0x2c0] sm:$0xf]  ;;  %v12534_v19 = vld [vmem:[%s13825_s18 + $0x2cc] sm:$0xf0]  ;;  %6534 = vmatpush.bf16.msra.mxu3 %v8841_v12 }
  0x2e   : > { %v8824_v20 = vld [vmem:[%s13825_s18 + $0x3c0] sm:$0xf]  ;;  %v8697_v21 = vor.u32 %v12534_v19, %v8696_v18  ;;  %v12566_v22 = vld [vmem:[%s13825_s18 + $0x3cc] sm:$0xf0]  ;;  %6496 = vmatpush.bf16.msra.mxu0 %v8441_v16 }
  0x2f   : > { %v8424_v23 = vld [vmem:[%s13825_s18 + $0xa0] sm:$0xf]  ;;  %v12466_v24 = vld [vmem:[%s13825_s18 + $0xac] sm:$0xf0]  ;;  %v8825_v25 = vor.u32 %v12566_v22, %v8824_v20  ;;  %6509 = vmatpush.bf16.msra.mxu1 %v8569_v17 }
  0x30   : > { %v8552_v26 = vld [vmem:[%s13825_s18 + $0x1a0] sm:$0xf]  ;;  %v12498_v27 = vld [vmem:[%s13825_s18 + $0x1ac] sm:$0xf0]  ;;  %v8425_v29 = vor.u32 %v12466_v24, %v8424_v23  ;;  %6522 = vmatpush.bf16.msra.mxu2 %v8697_v21 }
  0x31   : > { %v8680_v28 = vld [vmem:[%s13825_s18 + $0x2a0] sm:$0xf]  ;;  %v12530_v30 = vld [vmem:[%s13825_s18 + $0x2ac] sm:$0xf0]  ;;  %v8553_v33 = vor.u32 %v12498_v27, %v8552_v26  ;;  %6535 = vmatpush.bf16.msra.mxu3 %v8825_v25 }
  0x32   : > { %v8808_v31 = vld [vmem:[%s13825_s18 + $0x3a0] sm:$0xf]  ;;  %v12562_v32 = vld [vmem:[%s13825_s18 + $0x3ac] sm:$0xf0]  ;;  %v8681_v34 = vor.u32 %v12530_v30, %v8680_v28  ;;  %6497 = vmatpush.bf16.msra.mxu0 %v8425_v29 }
  0x33   : > { %v8408_v35 = vld [vmem:[%s13825_s18 + $0x80] sm:$0xf]  ;;  %v12462_v36 = vld [vmem:[%s13825_s18 + $0x8c] sm:$0xf0]  ;;  %v8809_v38 = vor.u32 %v12562_v32, %v8808_v31  ;;  %6510 = vmatpush.bf16.msra.mxu1 %v8553_v33 }
  0x34   : > { %v8536_v37 = vld [vmem:[%s13825_s18 + $0x180] sm:$0xf]  ;;  %v12494_v39 = vld [vmem:[%s13825_s18 + $0x18c] sm:$0xf0]  ;;  %v8409_v44 = vor.u32 %v12462_v36, %v8408_v35  ;;  %6523 = vmatpush.bf16.msra.mxu2 %v8681_v34 }
  0x35   : > { %v8664_v40 = vld [vmem:[%s13825_s18 + $0x280] sm:$0xf]  ;;  %v12526_v41 = vld [vmem:[%s13825_s18 + $0x28c] sm:$0xf0]  ;;  %v8537_v45 = vor.u32 %v12494_v39, %v8536_v37  ;;  %6536 = vmatpush.bf16.msra.mxu3 %v8809_v38 }
  0x36   : > { %v8792_v42 = vld [vmem:[%s13825_s18 + $0x380] sm:$0xf]  ;;  %v12558_v43 = vld [vmem:[%s13825_s18 + $0x38c] sm:$0xf0]  ;;  %v8665_v46 = vor.u32 %v12526_v41, %v8664_v40  ;;  %6498 = vmatpush.bf16.msra.mxu0 %v8409_v44 }
  0x37   : > { %v8392_v47 = vld [vmem:[%s13825_s18 + $0x60] sm:$0xf]  ;;  %v12458_v48 = vld [vmem:[%s13825_s18 + $0x6c] sm:$0xf0]  ;;  %v8793_v50 = vor.u32 %v12558_v43, %v8792_v42  ;;  %6511 = vmatpush.bf16.msra.mxu1 %v8537_v45 }
  0x38   : > { %v8520_v49 = vld [vmem:[%s13825_s18 + $0x160] sm:$0xf]  ;;  %v12490_v51 = vld [vmem:[%s13825_s18 + $0x16c] sm:$0xf0]  ;;  %v8393_v56 = vor.u32 %v12458_v48, %v8392_v47  ;;  %6524 = vmatpush.bf16.msra.mxu2 %v8665_v46 }
  0x39   : > { %v8648_v52 = vld [vmem:[%s13825_s18 + $0x260] sm:$0xf]  ;;  %v12522_v53 = vld [vmem:[%s13825_s18 + $0x26c] sm:$0xf0]  ;;  %v8521_v57 = vor.u32 %v12490_v51, %v8520_v49  ;;  %6537 = vmatpush.bf16.msra.mxu3 %v8793_v50 }
  0x3a   : > { %v8776_v54 = vld [vmem:[%s13825_s18 + $0x360] sm:$0xf]  ;;  %v12554_v55 = vld [vmem:[%s13825_s18 + $0x36c] sm:$0xf0]  ;;  %v8649_v58 = vor.u32 %v12522_v53, %v8648_v52  ;;  %6499 = vmatpush.bf16.msra.mxu0 %v8393_v56 }
  0x3b   : > { %v8376_v59 = vld [vmem:[%s13825_s18 + $0x40] sm:$0xf]  ;;  %v12454_v60 = vld [vmem:[%s13825_s18 + $0x4c] sm:$0xf0]  ;;  %v8777_v62 = vor.u32 %v12554_v55, %v8776_v54  ;;  %6512 = vmatpush.bf16.msra.mxu1 %v8521_v57 }
  0x3c   : > { %v8504_v61 = vld [vmem:[%s13825_s18 + $0x140] sm:$0xf]  ;;  %v12486_v63 = vld [vmem:[%s13825_s18 + $0x14c] sm:$0xf0]  ;;  %v8377_v4 = vor.u32 %v12454_v60, %v8376_v59  ;;  %6525 = vmatpush.bf16.msra.mxu2 %v8649_v58  ;;  %v275_v59 = vld [vmem:[%s16163_s0] sm:$0xff] }
  0x3d   : > { %v8632_v0 = vld [vmem:[%s13825_s18 + $0x240] sm:$0xf]  ;;  %v12518_v1 = vld [vmem:[%s13825_s18 + $0x24c] sm:$0xf0]  ;;  %v8505_v5 = vor.u32 %v12486_v63, %v8504_v61  ;;  %6538 = vmatpush.bf16.msra.mxu3 %v8777_v62  ;;  %1304 = vst [vmem:[#allocation1] ss:$9 sm:$0xff] %v275_v59 }
  0x3e   : > { %v8760_v2 = vld [vmem:[%s13825_s18 + $0x340] sm:$0xf]  ;;  %v12550_v3 = vld [vmem:[%s13825_s18 + $0x34c] sm:$0xf0]  ;;  %v8633_v6 = vor.u32 %v12518_v1, %v8632_v0  ;;  %6500 = vmatpush.bf16.msra.mxu0 %v8377_v4 }
  0x3f   : > { %v8360_v7 = vld [vmem:[%s13825_s18 + $0x20] sm:$0xf]  ;;  %v12450_v8 = vld [vmem:[%s13825_s18 + $0x2c] sm:$0xf0]  ;;  %v8761_v10 = vor.u32 %v12550_v3, %v8760_v2  ;;  %6513 = vmatpush.bf16.msra.mxu1 %v8505_v5 }
  0x40   : > { %v8488_v9 = vld [vmem:[%s13825_s18 + $0x120] sm:$0xf]  ;;  %v12482_v11 = vld [vmem:[%s13825_s18 + $0x12c] sm:$0xf0]  ;;  %v8361_v16 = vor.u32 %v12450_v8, %v8360_v7  ;;  %6526 = vmatpush.bf16.msra.mxu2 %v8633_v6 }
  0x41   : > { %v8616_v12 = vld [vmem:[%s13825_s18 + $0x220] sm:$0xf]  ;;  %v12514_v13 = vld [vmem:[%s13825_s18 + $0x22c] sm:$0xf0]  ;;  %v8489_v19 = vor.u32 %v12482_v11, %v8488_v9  ;;  %6539 = vmatpush.bf16.msra.mxu3 %v8761_v10 }
  0x42   : > { %v8744_v14 = vld [vmem:[%s13825_s18 + $0x320] sm:$0xf]  ;;  %v12546_v15 = vld [vmem:[%s13825_s18 + $0x32c] sm:$0xf0]  ;;  %v8617_v20 = vor.u32 %v12514_v13, %v8616_v12  ;;  %6501 = vmatpush.bf16.msra.mxu0 %v8361_v16 }
  0x43   : > { %v8344_v17 = vld [vmem:[%s13825_s18] sm:$0xf]  ;;  %v12446_v18 = vld [vmem:[%s13825_s18 + $0xc] sm:$0xf0]  ;;  %v8745_v24 = vor.u32 %v12546_v15, %v8744_v14  ;;  %6514 = vmatpush.bf16.msra.mxu1 %v8489_v19 }
  0x44   : > { %v8472_v21 = vld [vmem:[%s13825_s18 + $0x100] sm:$0xf]  ;;  %v12478_v22 = vld [vmem:[%s13825_s18 + $0x10c] sm:$0xf0]  ;;  %v8345_v31 = vor.u32 %v12446_v18, %v8344_v17  ;;  %6527 = vmatpush.bf16.msra.mxu2 %v8617_v20 }
  0x45   : > { %v8600_v23 = vld [vmem:[%s13825_s18 + $0x200] sm:$0xf]  ;;  %v12510_v25 = vld [vmem:[%s13825_s18 + $0x20c] sm:$0xf0]  ;;  %v8473_v35 = vor.u32 %v12478_v22, %v8472_v21  ;;  %6540 = vmatpush.bf16.msra.mxu3 %v8745_v24  ;;  %v13944_v21 = vld [vmem:[#allocation1] sm:$0xff] }
  0x46   : > { %v8728_v26 = vld [vmem:[%s13825_s18 + $0x300] sm:$0xf]  ;;  %v12542_v27 = vld [vmem:[%s13825_s18 + $0x30c] sm:$0xf0]  ;;  %v8601_v36 = vor.u32 %v12510_v25, %v8600_v23  ;;  %6502 = vmatpush.bf16.msra.mxu0 %v8345_v31 }
  0x47   : > { %v8968_v28 = vld [vmem:[%s13825_s18 + $0x4e0] sm:$0xf]  ;;  %v12602_v29 = vld [vmem:[%s13825_s18 + $0x4ec] sm:$0xf0]  ;;  %v8729_v39 = vor.u32 %v12542_v27, %v8728_v26  ;;  %6515 = vmatpush.bf16.msra.mxu1 %v8473_v35 }
  0x48   : > { %v9096_v30 = vld [vmem:[%s13825_s18 + $0x5e0] sm:$0xf]  ;;  %v12634_v32 = vld [vmem:[%s13825_s18 + $0x5ec] sm:$0xf0]  ;;  %v8969_v40 = vor.u32 %v12602_v29, %v8968_v28  ;;  %6528 = vmatpush.bf16.msra.mxu2 %v8601_v36 }
  0x49   : > { %v9224_v33 = vld [vmem:[%s13825_s18 + $0x6e0] sm:$0xf]  ;;  %v12666_v34 = vld [vmem:[%s13825_s18 + $0x6ec] sm:$0xf0]  ;;  %v9097_v41 = vor.u32 %v12634_v32, %v9096_v30  ;;  %6541 = vmatpush.bf16.msra.mxu3 %v8729_v39  ;;  %6503 = vmatmul.bf16.vlgmr.msra.gmra.mxu0 %v13944_v21 }
  0x4a   : > { %v9352_v37 = vld [vmem:[%s13825_s18 + $0x7e0] sm:$0xf]  ;;  %v12698_v38 = vld [vmem:[%s13825_s18 + $0x7ec] sm:$0xf0]  ;;  %v9225_v42 = vor.u32 %v12666_v34, %v9224_v33  ;;  %6547 = vmatpush.bf16.msrb.mxu0 %v8969_v40 }
  0x4b   : > { %v8952_v43 = vld [vmem:[%s13825_s18 + $0x4c0] sm:$0xf]  ;;  %v12598_v44 = vld [vmem:[%s13825_s18 + $0x4cc] sm:$0xf0]  ;;  %v9353_v46 = vor.u32 %v12698_v38, %v9352_v37  ;;  %6560 = vmatpush.bf16.msrb.mxu1 %v9097_v41 }
  0x4c   : > { %v9080_v45 = vld [vmem:[%s13825_s18 + $0x5c0] sm:$0xf]  ;;  %v12630_v47 = vld [vmem:[%s13825_s18 + $0x5cc] sm:$0xf0]  ;;  %v8953_v52 = vor.u32 %v12598_v44, %v8952_v43  ;;  %6573 = vmatpush.bf16.msrb.mxu2 %v9225_v42 }
  0x4d   : > { %v9208_v48 = vld [vmem:[%s13825_s18 + $0x6c0] sm:$0xf]  ;;  %v12662_v49 = vld [vmem:[%s13825_s18 + $0x6cc] sm:$0xf0]  ;;  %v9081_v55 = vor.u32 %v12630_v47, %v9080_v45  ;;  %6586 = vmatpush.bf16.msrb.mxu3 %v9353_v46 }
  0x4e   : > { %v9336_v50 = vld [vmem:[%s13825_s18 + $0x7c0] sm:$0xf]  ;;  %v12694_v51 = vld [vmem:[%s13825_s18 + $0x7cc] sm:$0xf0]  ;;  %v9209_v56 = vor.u32 %v12662_v49, %v9208_v48  ;;  %6548 = vmatpush.bf16.msrb.mxu0 %v8953_v52 }
  0x4f   : > { %v8936_v53 = vld [vmem:[%s13825_s18 + $0x4a0] sm:$0xf]  ;;  %v12594_v54 = vld [vmem:[%s13825_s18 + $0x4ac] sm:$0xf0]  ;;  %v9337_v60 = vor.u32 %v12694_v51, %v9336_v50  ;;  %6561 = vmatpush.bf16.msrb.mxu1 %v9081_v55 }
  0x50   : > { %v9064_v57 = vld [vmem:[%s13825_s18 + $0x5a0] sm:$0xf]  ;;  %v12626_v58 = vld [vmem:[%s13825_s18 + $0x5ac] sm:$0xf0]  ;;  %v8937_v1 = vor.u32 %v12594_v54, %v8936_v53  ;;  %6574 = vmatpush.bf16.msrb.mxu2 %v9209_v56 }
  0x51   : > { %v9192_v61 = vld [vmem:[%s13825_s18 + $0x6a0] sm:$0xf]  ;;  %v12658_v62 = vld [vmem:[%s13825_s18 + $0x6ac] sm:$0xf0]  ;;  %v9065_v2 = vor.u32 %v12626_v58, %v9064_v57  ;;  %6587 = vmatpush.bf16.msrb.mxu3 %v9337_v60 }
  0x52   : > { %v9320_v63 = vld [vmem:[%s13825_s18 + $0x7a0] sm:$0xf]  ;;  %v12690_v0 = vld [vmem:[%s13825_s18 + $0x7ac] sm:$0xf0]  ;;  %v9193_v3 = vor.u32 %v12658_v62, %v9192_v61  ;;  %6549 = vmatpush.bf16.msrb.mxu0 %v8937_v1 }
  0x53   : > { %v8920_v4 = vld [vmem:[%s13825_s18 + $0x480] sm:$0xf]  ;;  %v12590_v5 = vld [vmem:[%s13825_s18 + $0x48c] sm:$0xf0]  ;;  %v9321_v7 = vor.u32 %v12690_v0, %v9320_v63  ;;  %6562 = vmatpush.bf16.msrb.mxu1 %v9065_v2 }
  0x54   : > { %v9048_v6 = vld [vmem:[%s13825_s18 + $0x580] sm:$0xf]  ;;  %v12622_v8 = vld [vmem:[%s13825_s18 + $0x58c] sm:$0xf0]  ;;  %v8921_v14 = vor.u32 %v12590_v5, %v8920_v4  ;;  %6575 = vmatpush.bf16.msrb.mxu2 %v9193_v3 }
  0x55   : > { %v9176_v9 = vld [vmem:[%s13825_s18 + $0x680] sm:$0xf]  ;;  %v12654_v10 = vld [vmem:[%s13825_s18 + $0x68c] sm:$0xf0]  ;;  %v9049_v18 = vor.u32 %v12622_v8, %v9048_v6  ;;  %6588 = vmatpush.bf16.msrb.mxu3 %v9321_v7 }
  0x56   : > { %v9304_v11 = vld [vmem:[%s13825_s18 + $0x780] sm:$0xf]  ;;  %v12686_v12 = vld [vmem:[%s13825_s18 + $0x78c] sm:$0xf0]  ;;  %v9177_v19 = vor.u32 %v12654_v10, %v9176_v9  ;;  %6550 = vmatpush.bf16.msrb.mxu0 %v8921_v14 }
  0x57   : > { %v8904_v13 = vld [vmem:[%s13825_s18 + $0x460] sm:$0xf]  ;;  %v12586_v15 = vld [vmem:[%s13825_s18 + $0x46c] sm:$0xf0]  ;;  %v9305_v23 = vor.u32 %v12686_v12, %v9304_v11  ;;  %6563 = vmatpush.bf16.msrb.mxu1 %v9049_v18 }
  0x58   : > { %v9032_v16 = vld [vmem:[%s13825_s18 + $0x560] sm:$0xf]  ;;  %v12618_v17 = vld [vmem:[%s13825_s18 + $0x56c] sm:$0xf0]  ;;  %v8905_v29 = vor.u32 %v12586_v15, %v8904_v13  ;;  %6576 = vmatpush.bf16.msrb.mxu2 %v9177_v19 }
  0x59   : > { %v13942_v20 = vld [vmem:[#allocation1 + $0x12] sm:$0xff]  ;;  %v13946_v22 = vld [vmem:[#allocation1 + $0x1b] sm:$0xff]  ;;  %v9160_v24 = vld [vmem:[%s13825_s18 + $0x660] sm:$0xf]  ;;  %v9033_v30 = vor.u32 %v12618_v17, %v9032_v16  ;;  %6589 = vmatpush.bf16.msrb.mxu3 %v9305_v23 }
  0x5a   : > { %v12650_v25 = vld [vmem:[%s13825_s18 + $0x66c] sm:$0xf0]  ;;  %6529 = vmatmul.bf16.vlgmr.msra.gmra.mxu2 %v13942_v20  ;;  %v13951_v26 = vld [vmem:[#allocation1 + $0x9] sm:$0xff]  ;;  %6542 = vmatmul.bf16.vlgmr.msra.gmra.mxu3 %v13946_v22 }
  0x5b   : > { %v9288_v27 = vld [vmem:[%s13825_s18 + $0x760] sm:$0xf]  ;;  %v12682_v28 = vld [vmem:[%s13825_s18 + $0x76c] sm:$0xf0]  ;;  %6516 = vmatmul.bf16.vlgmr.msra.gmra.mxu1 %v13951_v26  ;;  %v9161_v31 = vor.u32 %v12650_v25, %v9160_v24  ;;  %6551 = vmatpush.bf16.msrb.mxu0 %v8905_v29 }
  0x5c   : > { %v8888_v32 = vld [vmem:[%s13825_s18 + $0x440] sm:$0xf]  ;;  %v12582_v33 = vld [vmem:[%s13825_s18 + $0x44c] sm:$0xf0]  ;;  %v9289_v35 = vor.u32 %v12682_v28, %v9288_v27  ;;  %6564 = vmatpush.bf16.msrb.mxu1 %v9033_v30 }
  0x5d   : > { %v9016_v34 = vld [vmem:[%s13825_s18 + $0x540] sm:$0xf]  ;;  %v12614_v36 = vld [vmem:[%s13825_s18 + $0x54c] sm:$0xf0]  ;;  %v8889_v41 = vor.u32 %v12582_v33, %v8888_v32  ;;  %6577 = vmatpush.bf16.msrb.mxu2 %v9161_v31  ;;  %v14002_v32 = vld [vmem:[#allocation1 + $0x3f] sm:$0xff] }
  0x5e   : > { %v9144_v37 = vld [vmem:[%s13825_s18 + $0x640] sm:$0xf]  ;;  %v12646_v38 = vld [vmem:[%s13825_s18 + $0x64c] sm:$0xf0]  ;;  %v9017_v42 = vor.u32 %v12614_v36, %v9016_v34  ;;  %6590 = vmatpush.bf16.msrb.mxu3 %v9289_v35 }
  0x5f   : > { %v9272_v39 = vld [vmem:[%s13825_s18 + $0x740] sm:$0xf]  ;;  %v12678_v40 = vld [vmem:[%s13825_s18 + $0x74c] sm:$0xf0]  ;;  %v9145_v43 = vor.u32 %v12646_v38, %v9144_v37  ;;  %6552 = vmatpush.bf16.msrb.mxu0 %v8889_v41  ;;  %v14007_v38 = vld [vmem:[#allocation1 + $0x2d] sm:$0xff] }
  0x60   : > { %v8872_v44 = vld [vmem:[%s13825_s18 + $0x420] sm:$0xf]  ;;  %v12578_v45 = vld [vmem:[%s13825_s18 + $0x42c] sm:$0xf0]  ;;  %v9273_v47 = vor.u32 %v12678_v40, %v9272_v39  ;;  %6565 = vmatpush.bf16.msrb.mxu1 %v9017_v42 }
  0x61   : > { %v9000_v46 = vld [vmem:[%s13825_s18 + $0x520] sm:$0xf]  ;;  %v12610_v48 = vld [vmem:[%s13825_s18 + $0x52c] sm:$0xf0]  ;;  %v8873_v53 = vor.u32 %v12578_v45, %v8872_v44  ;;  %6578 = vmatpush.bf16.msrb.mxu2 %v9145_v43 }
  0x62   : > { %v9128_v49 = vld [vmem:[%s13825_s18 + $0x620] sm:$0xf]  ;;  %v12642_v50 = vld [vmem:[%s13825_s18 + $0x62c] sm:$0xf0]  ;;  %v9001_v56 = vor.u32 %v12610_v48, %v9000_v46  ;;  %6591 = vmatpush.bf16.msrb.mxu3 %v9273_v47 }
  0x63   : > { %v9256_v51 = vld [vmem:[%s13825_s18 + $0x720] sm:$0xf]  ;;  %v12674_v52 = vld [vmem:[%s13825_s18 + $0x72c] sm:$0xf0]  ;;  %v9129_v57 = vor.u32 %v12642_v50, %v9128_v49  ;;  %6553 = vmatpush.bf16.msrb.mxu0 %v8873_v53 }
  0x64   : > { %v8856_v54 = vld [vmem:[%s13825_s18 + $0x400] sm:$0xf]  ;;  %v12574_v55 = vld [vmem:[%s13825_s18 + $0x40c] sm:$0xf0]  ;;  %v9257_v61 = vor.u32 %v12674_v52, %v9256_v51  ;;  %6566 = vmatpush.bf16.msrb.mxu1 %v9001_v56 }
  0x65   : > { %v8984_v58 = vld [vmem:[%s13825_s18 + $0x500] sm:$0xf]  ;;  %v12606_v59 = vld [vmem:[%s13825_s18 + $0x50c] sm:$0xf0]  ;;  %v8857_v4 = vor.u32 %v12574_v55, %v8856_v54  ;;  %6579 = vmatpush.bf16.msrb.mxu2 %v9129_v57 }
  0x66   : > { %v9112_v60 = vld [vmem:[%s13825_s18 + $0x600] sm:$0xf]  ;;  %v12638_v62 = vld [vmem:[%s13825_s18 + $0x60c] sm:$0xf0]  ;;  %v8985_v8 = vor.u32 %v12606_v59, %v8984_v58  ;;  %6592 = vmatpush.bf16.msrb.mxu3 %v9257_v61 }
  0x67   : > { %v9240_v63 = vld [vmem:[%s13825_s18 + $0x700] sm:$0xf]  ;;  %v12670_v0 = vld [vmem:[%s13825_s18 + $0x70c] sm:$0xf0]  ;;  %v9113_v9 = vor.u32 %v12638_v62, %v9112_v60  ;;  %6554 = vmatpush.bf16.msrb.mxu0 %v8857_v4 }
  0x68   : > { %v9480_v1 = vld [vmem:[%s13825_s18 + $0x8e0] sm:$0xf]  ;;  %v12730_v2 = vld [vmem:[%s13825_s18 + $0x8ec] sm:$0xf0]  ;;  %v9241_v12 = vor.u32 %v12670_v0, %v9240_v63  ;;  %6567 = vmatpush.bf16.msrb.mxu1 %v8985_v8 }
  0x69   : > { %v9608_v3 = vld [vmem:[%s13825_s18 + $0x9e0] sm:$0xf]  ;;  %v12762_v5 = vld [vmem:[%s13825_s18 + $0x9ec] sm:$0xf0]  ;;  %v9481_v13 = vor.u32 %v12730_v2, %v9480_v1  ;;  %6580 = vmatpush.bf16.msrb.mxu2 %v9113_v9 }
  0x6a   : > { %v9736_v6 = vld [vmem:[%s13825_s18 + $0xae0] sm:$0xf]  ;;  %v12794_v7 = vld [vmem:[%s13825_s18 + $0xaec] sm:$0xf0]  ;;  %v9609_v14 = vor.u32 %v12762_v5, %v9608_v3  ;;  %6593 = vmatpush.bf16.msrb.mxu3 %v9241_v12 }
  0x6b   : > { %v9864_v10 = vld [vmem:[%s13825_s18 + $0xbe0] sm:$0xf]  ;;  %v12826_v11 = vld [vmem:[%s13825_s18 + $0xbec] sm:$0xf0]  ;;  %v9737_v15 = vor.u32 %v12794_v7, %v9736_v6  ;;  %6599 = vmatpush.bf16.msra.mxu0 %v9481_v13  ;;  %6568 = vmatmul.bf16.vlgmr.msrb.gmra.mxu1 %v14007_v38 }
  0x6c   : > { %v9464_v16 = vld [vmem:[%s13825_s18 + $0x8c0] sm:$0xf]  ;;  %v12726_v17 = vld [vmem:[%s13825_s18 + $0x8cc] sm:$0xf0]  ;;  %v9865_v19 = vor.u32 %v12826_v11, %v9864_v10  ;;  %6612 = vmatpush.bf16.msra.mxu1 %v9609_v14 }
  0x6d   : > { %v9592_v18 = vld [vmem:[%s13825_s18 + $0x9c0] sm:$0xf]  ;;  %v12758_v23 = vld [vmem:[%s13825_s18 + $0x9cc] sm:$0xf0]  ;;  %v9465_v30 = vor.u32 %v12726_v17, %v9464_v16  ;;  %6625 = vmatpush.bf16.msra.mxu2 %v9737_v15  ;;  %6594 = vmatmul.bf16.vlgmr.msrb.gmra.mxu3 %v14002_v32 }
  0x6e   : > { %v9720_v24 = vld [vmem:[%s13825_s18 + $0xac0] sm:$0xf]  ;;  %v12790_v25 = vld [vmem:[%s13825_s18 + $0xacc] sm:$0xf0]  ;;  %v9593_v34 = vor.u32 %v12758_v23, %v9592_v18  ;;  %6638 = vmatpush.bf16.msra.mxu3 %v9865_v19 }
  0x6f   : > { %v9848_v27 = vld [vmem:[%s13825_s18 + $0xbc0] sm:$0xf]  ;;  %v12822_v28 = vld [vmem:[%s13825_s18 + $0xbcc] sm:$0xf0]  ;;  %v9721_v35 = vor.u32 %v12790_v25, %v9720_v24  ;;  %6600 = vmatpush.bf16.msra.mxu0 %v9465_v30 }
  0x70   : > { %v13998_v29 = vld [vmem:[#allocation1 + $0x36] sm:$0xff]  ;;  %v14000_v31 = vld [vmem:[#allocation1 + $0x24] sm:$0xff]  ;;  %v9849_v39 = vor.u32 %v12822_v28, %v9848_v27  ;;  %6613 = vmatpush.bf16.msra.mxu1 %v9593_v34 }
  0x71   : > { %v9448_v33 = vld [vmem:[%s13825_s18 + $0x8a0] sm:$0xf]  ;;  %v12722_v36 = vld [vmem:[%s13825_s18 + $0x8ac] sm:$0xf0]  ;;  %6581 = vmatmul.bf16.vlgmr.msrb.gmra.mxu2 %v13998_v29  ;;  %6555 = vmatmul.bf16.vlgmr.msrb.gmra.mxu0 %v14000_v31 }
  0x72   : > { %v9576_v37 = vld [vmem:[%s13825_s18 + $0x9a0] sm:$0xf]  ;;  %v12754_v40 = vld [vmem:[%s13825_s18 + $0x9ac] sm:$0xf0]  ;;  %v9449_v45 = vor.u32 %v12722_v36, %v9448_v33  ;;  %6626 = vmatpush.bf16.msra.mxu2 %v9721_v35  ;;  %6639 = vmatpush.bf16.msra.mxu3 %v9849_v39 }
  0x73   : > { %v9704_v41 = vld [vmem:[%s13825_s18 + $0xaa0] sm:$0xf]  ;;  %v12786_v42 = vld [vmem:[%s13825_s18 + $0xaac] sm:$0xf0]  ;;  %v9577_v46 = vor.u32 %v12754_v40, %v9576_v37 }
  0x74   : > { %v9832_v43 = vld [vmem:[%s13825_s18 + $0xba0] sm:$0xf]  ;;  %v12818_v44 = vld [vmem:[%s13825_s18 + $0xbac] sm:$0xf0]  ;;  %v9705_v47 = vor.u32 %v12786_v42, %v9704_v41  ;;  %6601 = vmatpush.bf16.msra.mxu0 %v9449_v45 }
  0x75   : > { %v9432_v48 = vld [vmem:[%s13825_s18 + $0x880] sm:$0xf]  ;;  %v12718_v49 = vld [vmem:[%s13825_s18 + $0x88c] sm:$0xf0]  ;;  %v9833_v51 = vor.u32 %v12818_v44, %v9832_v43  ;;  %6614 = vmatpush.bf16.msra.mxu1 %v9577_v46 }
  0x76   : > { %v9560_v50 = vld [vmem:[%s13825_s18 + $0x980] sm:$0xf]  ;;  %v12750_v52 = vld [vmem:[%s13825_s18 + $0x98c] sm:$0xf0]  ;;  %v9433_v58 = vor.u32 %v12718_v49, %v9432_v48  ;;  %6627 = vmatpush.bf16.msra.mxu2 %v9705_v47 }
  0x77   : > { %v9688_v53 = vld [vmem:[%s13825_s18 + $0xa80] sm:$0xf]  ;;  %v12782_v54 = vld [vmem:[%s13825_s18 + $0xa8c] sm:$0xf0]  ;;  %v9561_v59 = vor.u32 %v12750_v52, %v9560_v50  ;;  %6640 = vmatpush.bf16.msra.mxu3 %v9833_v51 }
  0x78   : > { %v9816_v55 = vld [vmem:[%s13825_s18 + $0xb80] sm:$0xf]  ;;  %v12814_v56 = vld [vmem:[%s13825_s18 + $0xb8c] sm:$0xf0]  ;;  %v9689_v60 = vor.u32 %v12782_v54, %v9688_v53  ;;  %6602 = vmatpush.bf16.msra.mxu0 %v9433_v58 }
  0x79   : > { %v276_v57 = vld [vmem:[%s16163_s0 + $0x8] sm:$0xff]  ;;  %v12714_v62 = vld [vmem:[%s13825_s18 + $0x86c] sm:$0xf0]  ;;  %v9817_v0 = vor.u32 %v12814_v56, %v9816_v55  ;;  %6615 = vmatpush.bf16.msra.mxu1 %v9561_v59 }
  0x7a   : > { %1314 = vst [vmem:[#allocation1] ss:$9 sm:$0xff] %v276_v57  ;;  %v9416_v61 = vld [vmem:[%s13825_s18 + $0x860] sm:$0xf]  ;;  %v12746_v1 = vld [vmem:[%s13825_s18 + $0x96c] sm:$0xf0]  ;;  %6628 = vmatpush.bf16.msra.mxu2 %v9689_v60 }
  0x7b   : > { %v9544_v63 = vld [vmem:[%s13825_s18 + $0x960] sm:$0xf]  ;;  %v12778_v3 = vld [vmem:[%s13825_s18 + $0xa6c] sm:$0xf0]  ;;  %v9417_v6 = vor.u32 %v12714_v62, %v9416_v61  ;;  %6641 = vmatpush.bf16.msra.mxu3 %v9817_v0 }
  0x7c   : > { %v9672_v2 = vld [vmem:[%s13825_s18 + $0xa60] sm:$0xf]  ;;  %v12810_v5 = vld [vmem:[%s13825_s18 + $0xb6c] sm:$0xf0]  ;;  %v9545_v7 = vor.u32 %v12746_v1, %v9544_v63 }
  0x7d   : > { %v9800_v4 = vld [vmem:[%s13825_s18 + $0xb60] sm:$0xf]  ;;  %v9673_v8 = vor.u32 %v12778_v3, %v9672_v2  ;;  %v12710_v10 = vld [vmem:[%s13825_s18 + $0x84c] sm:$0xf0]  ;;  %6603 = vmatpush.bf16.msra.mxu0 %v9417_v6 }
  0x7e   : > { %v9400_v9 = vld [vmem:[%s13825_s18 + $0x840] sm:$0xf]  ;;  %v9801_v12 = vor.u32 %v12810_v5, %v9800_v4  ;;  %v12742_v13 = vld [vmem:[%s13825_s18 + $0x94c] sm:$0xf0]  ;;  %6616 = vmatpush.bf16.msra.mxu1 %v9545_v7 }
  0x7f   : > { %v9528_v11 = vld [vmem:[%s13825_s18 + $0x940] sm:$0xf]  ;;  %v12774_v15 = vld [vmem:[%s13825_s18 + $0xa4c] sm:$0xf0]  ;;  %v9401_v18 = vor.u32 %v12710_v10, %v9400_v9  ;;  %6629 = vmatpush.bf16.msra.mxu2 %v9673_v8 }
  0x80   : > { %v9656_v14 = vld [vmem:[%s13825_s18 + $0xa40] sm:$0xf]  ;;  %v12806_v17 = vld [vmem:[%s13825_s18 + $0xb4c] sm:$0xf0]  ;;  %v9529_v19 = vor.u32 %v12742_v13, %v9528_v11  ;;  %6642 = vmatpush.bf16.msra.mxu3 %v9801_v12 }
  0x81   : > { %v9784_v16 = vld [vmem:[%s13825_s18 + $0xb40] sm:$0xf]  ;;  %v9657_v23 = vor.u32 %v12774_v15, %v9656_v14  ;;  %v12706_v25 = vld [vmem:[%s13825_s18 + $0x82c] sm:$0xf0]  ;;  %6604 = vmatpush.bf16.msra.mxu0 %v9401_v18  ;;  %v14075_v8 = vld [vmem:[#allocation1] sm:$0xff] }
  0x82   : > { %v9384_v24 = vld [vmem:[%s13825_s18 + $0x820] sm:$0xf]  ;;  %v9785_v28 = vor.u32 %v12806_v17, %v9784_v16  ;;  %v12738_v30 = vld [vmem:[%s13825_s18 + $0x92c] sm:$0xf0]  ;;  %6617 = vmatpush.bf16.msra.mxu1 %v9529_v19 }
  0x83   : > { %v9512_v27 = vld [vmem:[%s13825_s18 + $0x920] sm:$0xf]  ;;  %v12770_v34 = vld [vmem:[%s13825_s18 + $0xa2c] sm:$0xf0]  ;;  %v9385_v37 = vor.u32 %v12706_v25, %v9384_v24  ;;  %6630 = vmatpush.bf16.msra.mxu2 %v9657_v23 }
  0x84   : > { %v9640_v33 = vld [vmem:[%s13825_s18 + $0xa20] sm:$0xf]  ;;  %v12802_v36 = vld [vmem:[%s13825_s18 + $0xb2c] sm:$0xf0]  ;;  %v9513_v41 = vor.u32 %v12738_v30, %v9512_v27  ;;  %6643 = vmatpush.bf16.msra.mxu3 %v9785_v28 }
  0x85   : > { %v9768_v35 = vld [vmem:[%s13825_s18 + $0xb20] sm:$0xf]  ;;  %v12702_v40 = vld [vmem:[%s13825_s18 + $0x80c] sm:$0xf0]  ;;  %v9641_v42 = vor.u32 %v12770_v34, %v9640_v33  ;;  %6605 = vmatpush.bf16.msra.mxu0 %v9385_v37 }
  0x86   : > { %v9368_v39 = vld [vmem:[%s13825_s18 + $0x800] sm:$0xf]  ;;  %v12734_v44 = vld [vmem:[%s13825_s18 + $0x90c] sm:$0xf0]  ;;  %v9769_v46 = vor.u32 %v12802_v36, %v9768_v35  ;;  %6618 = vmatpush.bf16.msra.mxu1 %v9513_v41 }
  0x87   : > { %v9496_v43 = vld [vmem:[%s13825_s18 + $0x900] sm:$0xf]  ;;  %v12766_v47 = vld [vmem:[%s13825_s18 + $0xa0c] sm:$0xf0]  ;;  %v9369_v53 = vor.u32 %v12702_v40, %v9368_v39  ;;  %6631 = vmatpush.bf16.msra.mxu2 %v9641_v42 }
  0x88   : > { %v9624_v45 = vld [vmem:[%s13825_s18 + $0xa00] sm:$0xf]  ;;  %v12798_v49 = vld [vmem:[%s13825_s18 + $0xb0c] sm:$0xf0]  ;;  %v9497_v57 = vor.u32 %v12734_v44, %v9496_v43  ;;  %6644 = vmatpush.bf16.msra.mxu3 %v9769_v46 }
  0x89   : > { %v9752_v48 = vld [vmem:[%s13825_s18 + $0xb00] sm:$0xf]  ;;  %v12858_v51 = vld [vmem:[%s13825_s18 + $0xcec] sm:$0xf0]  ;;  %v9625_v58 = vor.u32 %v12766_v47, %v9624_v45  ;;  %6606 = vmatpush.bf16.msra.mxu0 %v9369_v53 }
  0x8a   : > { %v9992_v50 = vld [vmem:[%s13825_s18 + $0xce0] sm:$0xf]  ;;  %v12890_v54 = vld [vmem:[%s13825_s18 + $0xdec] sm:$0xf0]  ;;  %v9753_v61 = vor.u32 %v12798_v49, %v9752_v48  ;;  %6619 = vmatpush.bf16.msra.mxu1 %v9497_v57 }
  0x8b   : > { %v10120_v52 = vld [vmem:[%s13825_s18 + $0xde0] sm:$0xf]  ;;  %v12922_v56 = vld [vmem:[%s13825_s18 + $0xeec] sm:$0xf0]  ;;  %v9993_v62 = vor.u32 %v12858_v51, %v9992_v50  ;;  %6632 = vmatpush.bf16.msra.mxu2 %v9625_v58 }
  0x8c   : > { %v10248_v55 = vld [vmem:[%s13825_s18 + $0xee0] sm:$0xf]  ;;  %v12954_v60 = vld [vmem:[%s13825_s18 + $0xfec] sm:$0xf0]  ;;  %v10121_v63 = vor.u32 %v12890_v54, %v10120_v52  ;;  %6645 = vmatpush.bf16.msra.mxu3 %v9753_v61  ;;  %6607 = vmatmul.bf16.vlgmr.msra.gmra.mxu0 %v14075_v8 }
  0x8d   : > { %v10376_v59 = vld [vmem:[%s13825_s18 + $0xfe0] sm:$0xf]  ;;  %v10249_v0 = vor.u32 %v12922_v56, %v10248_v55  ;;  %v12854_v2 = vld [vmem:[%s13825_s18 + $0xccc] sm:$0xf0]  ;;  %6651 = vmatpush.bf16.msrb.mxu0 %v9993_v62 }
  0x8e   : > { %v9976_v1 = vld [vmem:[%s13825_s18 + $0xcc0] sm:$0xf]  ;;  %v10377_v4 = vor.u32 %v12954_v60, %v10376_v59  ;;  %v12886_v5 = vld [vmem:[%s13825_s18 + $0xdcc] sm:$0xf0]  ;;  %6664 = vmatpush.bf16.msrb.mxu1 %v10121_v63 }
  0x8f   : > { %v10104_v3 = vld [vmem:[%s13825_s18 + $0xdc0] sm:$0xf]  ;;  %v12918_v7 = vld [vmem:[%s13825_s18 + $0xecc] sm:$0xf0]  ;;  %v9977_v13 = vor.u32 %v12854_v2, %v9976_v1  ;;  %6677 = vmatpush.bf16.msrb.mxu2 %v10249_v0 }
  0x90   : > { %v10232_v6 = vld [vmem:[%s13825_s18 + $0xec0] sm:$0xf]  ;;  %v12950_v10 = vld [vmem:[%s13825_s18 + $0xfcc] sm:$0xf0]  ;;  %v10105_v16 = vor.u32 %v12886_v5, %v10104_v3  ;;  %6690 = vmatpush.bf16.msrb.mxu3 %v10377_v4 }
  0x91   : > { %v10360_v9 = vld [vmem:[%s13825_s18 + $0xfc0] sm:$0xf]  ;;  %v14079_v11 = vld [vmem:[#allocation1 + $0x12] sm:$0xff]  ;;  %v14084_v15 = vld [vmem:[#allocation1 + $0x1b] sm:$0xff]  ;;  %v10233_v17 = vor.u32 %v12918_v7, %v10232_v6  ;;  %6652 = vmatpush.bf16.msrb.mxu0 %v9977_v13 }
  0x92   : > { %v14081_v12 = vld [vmem:[#allocation1 + $0x9] sm:$0xff]  ;;  %v12850_v18 = vld [vmem:[%s13825_s18 + $0xcac] sm:$0xf0]  ;;  %v10361_v23 = vor.u32 %v12950_v10, %v10360_v9  ;;  %6633 = vmatmul.bf16.vlgmr.msra.gmra.mxu2 %v14079_v11  ;;  %6646 = vmatmul.bf16.vlgmr.msra.gmra.mxu3 %v14084_v15 }
  0x93   : > { %v9960_v14 = vld [vmem:[%s13825_s18 + $0xca0] sm:$0xf]  ;;  %v12882_v24 = vld [vmem:[%s13825_s18 + $0xdac] sm:$0xf0]  ;;  %6620 = vmatmul.bf16.vlgmr.msra.gmra.mxu1 %v14081_v12  ;;  %6678 = vmatpush.bf16.msrb.mxu2 %v10233_v17 }
  0x94   : > { %v10088_v19 = vld [vmem:[%s13825_s18 + $0xda0] sm:$0xf]  ;;  %v12914_v27 = vld [vmem:[%s13825_s18 + $0xeac] sm:$0xf0]  ;;  %v9961_v33 = vor.u32 %v12850_v18, %v9960_v14  ;;  %6665 = vmatpush.bf16.msrb.mxu1 %v10105_v16  ;;  %6691 = vmatpush.bf16.msrb.mxu3 %v10361_v23 }
  0x95   : > { %v10216_v25 = vld [vmem:[%s13825_s18 + $0xea0] sm:$0xf]  ;;  %v12946_v30 = vld [vmem:[%s13825_s18 + $0xfac] sm:$0xf0]  ;;  %v10089_v34 = vor.u32 %v12882_v24, %v10088_v19 }
  0x96   : > { %v10344_v28 = vld [vmem:[%s13825_s18 + $0xfa0] sm:$0xf]  ;;  %v10217_v35 = vor.u32 %v12914_v27, %v10216_v25  ;;  %v12846_v37 = vld [vmem:[%s13825_s18 + $0xc8c] sm:$0xf0]  ;;  %6653 = vmatpush.bf16.msrb.mxu0 %v9961_v33 }
  0x97   : > { %v9944_v36 = vld [vmem:[%s13825_s18 + $0xc80] sm:$0xf]  ;;  %v10345_v40 = vor.u32 %v12946_v30, %v10344_v28  ;;  %v12878_v41 = vld [vmem:[%s13825_s18 + $0xd8c] sm:$0xf0] }
  0x98   : > { %v10072_v39 = vld [vmem:[%s13825_s18 + $0xd80] sm:$0xf]  ;;  %v12910_v43 = vld [vmem:[%s13825_s18 + $0xe8c] sm:$0xf0]  ;;  %v9945_v46 = vor.u32 %v12846_v37, %v9944_v36  ;;  %6666 = vmatpush.bf16.msrb.mxu1 %v10089_v34  ;;  %6679 = vmatpush.bf16.msrb.mxu2 %v10217_v35 }
  0x99   : > { %v10200_v42 = vld [vmem:[%s13825_s18 + $0xe80] sm:$0xf]  ;;  %v12942_v45 = vld [vmem:[%s13825_s18 + $0xf8c] sm:$0xf0]  ;;  %v10073_v47 = vor.u32 %v12878_v41, %v10072_v39  ;;  %6692 = vmatpush.bf16.msrb.mxu3 %v10345_v40 }
  0x9a   : > { %v10328_v44 = vld [vmem:[%s13825_s18 + $0xf80] sm:$0xf]  ;;  %v10201_v48 = vor.u32 %v12910_v43, %v10200_v42  ;;  %v12842_v50 = vld [vmem:[%s13825_s18 + $0xc6c] sm:$0xf0]  ;;  %6654 = vmatpush.bf16.msrb.mxu0 %v9945_v46 }
  0x9b   : > { %v9928_v49 = vld [vmem:[%s13825_s18 + $0xc60] sm:$0xf]  ;;  %v10329_v52 = vor.u32 %v12942_v45, %v10328_v44  ;;  %v12874_v53 = vld [vmem:[%s13825_s18 + $0xd6c] sm:$0xf0] }
  0x9c   : > { %v10056_v51 = vld [vmem:[%s13825_s18 + $0xd60] sm:$0xf]  ;;  %v12906_v55 = vld [vmem:[%s13825_s18 + $0xe6c] sm:$0xf0]  ;;  %v9929_v58 = vor.u32 %v12842_v50, %v9928_v49  ;;  %6667 = vmatpush.bf16.msrb.mxu1 %v10073_v47  ;;  %6680 = vmatpush.bf16.msrb.mxu2 %v10201_v48  ;;  %v14145_v48 = vld [vmem:[#allocation1 + $0x2d] sm:$0xff] }
  0x9d   : > { %v10184_v54 = vld [vmem:[%s13825_s18 + $0xe60] sm:$0xf]  ;;  %v12938_v57 = vld [vmem:[%s13825_s18 + $0xf6c] sm:$0xf0]  ;;  %v10057_v59 = vor.u32 %v12874_v53, %v10056_v51  ;;  %6693 = vmatpush.bf16.msrb.mxu3 %v10329_v52  ;;  %v14147_v49 = vld [vmem:[#allocation1 + $0x3f] sm:$0xff] }
  0x9e   : > { %v10312_v56 = vld [vmem:[%s13825_s18 + $0xf60] sm:$0xf]  ;;  %v10185_v60 = vor.u32 %v12906_v55, %v10184_v54  ;;  %v12838_v62 = vld [vmem:[%s13825_s18 + $0xc4c] sm:$0xf0]  ;;  %6655 = vmatpush.bf16.msrb.mxu0 %v9929_v58  ;;  %v277_v50 = vld [vmem:[%s16163_s0 + $0x10] sm:$0xff] }
  0x9f   : > { %v9912_v61 = vld [vmem:[%s13825_s18 + $0xc40] sm:$0xf]  ;;  %v10313_v0 = vor.u32 %v12938_v57, %v10312_v56  ;;  %v12870_v1 = vld [vmem:[%s13825_s18 + $0xd4c] sm:$0xf0] }
  0xa0   : > { %v10040_v63 = vld [vmem:[%s13825_s18 + $0xd40] sm:$0xf]  ;;  %v12902_v3 = vld [vmem:[%s13825_s18 + $0xe4c] sm:$0xf0]  ;;  %v9913_v6 = vor.u32 %v12838_v62, %v9912_v61  ;;  %6668 = vmatpush.bf16.msrb.mxu1 %v10057_v59  ;;  %6681 = vmatpush.bf16.msrb.mxu2 %v10185_v60 }
  0xa1   : > { %v10168_v2 = vld [vmem:[%s13825_s18 + $0xe40] sm:$0xf]  ;;  %v12934_v5 = vld [vmem:[%s13825_s18 + $0xf4c] sm:$0xf0]  ;;  %v10041_v9 = vor.u32 %v12870_v1, %v10040_v63  ;;  %6694 = vmatpush.bf16.msrb.mxu3 %v10313_v0 }
  0xa2   : > { %v10296_v4 = vld [vmem:[%s13825_s18 + $0xf40] sm:$0xf]  ;;  %v10169_v10 = vor.u32 %v12902_v3, %v10168_v2  ;;  %v12834_v13 = vld [vmem:[%s13825_s18 + $0xc2c] sm:$0xf0]  ;;  %6656 = vmatpush.bf16.msrb.mxu0 %v9913_v6 }
  0xa3   : > { %v9896_v7 = vld [vmem:[%s13825_s18 + $0xc20] sm:$0xf]  ;;  %v12866_v16 = vld [vmem:[%s13825_s18 + $0xd2c] sm:$0xf0]  ;;  %v10297_v17 = vor.u32 %v12934_v5, %v10296_v4 }
  0xa4   : > { %v10024_v14 = vld [vmem:[%s13825_s18 + $0xd20] sm:$0xf]  ;;  %v12898_v19 = vld [vmem:[%s13825_s18 + $0xe2c] sm:$0xf0]  ;;  %v9897_v28 = vor.u32 %v12834_v13, %v9896_v7  ;;  %6669 = vmatpush.bf16.msrb.mxu1 %v10041_v9  ;;  %6682 = vmatpush.bf16.msrb.mxu2 %v10169_v10 }
  0xa5   : > { %v10152_v18 = vld [vmem:[%s13825_s18 + $0xe20] sm:$0xf]  ;;  %v12930_v24 = vld [vmem:[%s13825_s18 + $0xf2c] sm:$0xf0]  ;;  %v10025_v36 = vor.u32 %v12866_v16, %v10024_v14  ;;  %6695 = vmatpush.bf16.msrb.mxu3 %v10297_v17 }
  0xa6   : > { %v10280_v23 = vld [vmem:[%s13825_s18 + $0xf20] sm:$0xf]  ;;  %v12830_v27 = vld [vmem:[%s13825_s18 + $0xc0c] sm:$0xf0]  ;;  %v10153_v37 = vor.u32 %v12898_v19, %v10152_v18  ;;  %6657 = vmatpush.bf16.msrb.mxu0 %v9897_v28 }
  0xa7   : > { %v9880_v25 = vld [vmem:[%s13825_s18 + $0xc00] sm:$0xf]  ;;  %v12862_v33 = vld [vmem:[%s13825_s18 + $0xd0c] sm:$0xf0]  ;;  %v10281_v43 = vor.u32 %v12930_v24, %v10280_v23 }
  0xa8   : > { %v10008_v30 = vld [vmem:[%s13825_s18 + $0xd00] sm:$0xf]  ;;  %v12894_v35 = vld [vmem:[%s13825_s18 + $0xe0c] sm:$0xf0]  ;;  %v9881_v51 = vor.u32 %v12830_v27, %v9880_v25  ;;  %6670 = vmatpush.bf16.msrb.mxu1 %v10025_v36  ;;  %6683 = vmatpush.bf16.msrb.mxu2 %v10153_v37 }
  0xa9   : > { %v10136_v34 = vld [vmem:[%s13825_s18 + $0xe00] sm:$0xf]  ;;  %v12926_v40 = vld [vmem:[%s13825_s18 + $0xf0c] sm:$0xf0]  ;;  %v10009_v54 = vor.u32 %v12862_v33, %v10008_v30  ;;  %6696 = vmatpush.bf16.msrb.mxu3 %v10281_v43 }
  0xaa   : > { %v10264_v39 = vld [vmem:[%s13825_s18 + $0xf00] sm:$0xf]  ;;  %v12986_v42 = vld [vmem:[%s13825_s18 + $0x10ec] sm:$0xf0]  ;;  %v10137_v55 = vor.u32 %v12894_v35, %v10136_v34  ;;  %6658 = vmatpush.bf16.msrb.mxu0 %v9881_v51 }
  0xab   : > { %v10504_v41 = vld [vmem:[%s13825_s18 + $0x10e0] sm:$0xf]  ;;  %v13018_v45 = vld [vmem:[%s13825_s18 + $0x11ec] sm:$0xf0]  ;;  %v10265_v58 = vor.u32 %v12926_v40, %v10264_v39 }
  0xac   : > { %v10632_v44 = vld [vmem:[%s13825_s18 + $0x11e0] sm:$0xf]  ;;  %v14143_v47 = vld [vmem:[#allocation1 + $0x36] sm:$0xff]  ;;  %v10505_v59 = vor.u32 %v12986_v42, %v10504_v41  ;;  %6671 = vmatpush.bf16.msrb.mxu1 %v10009_v54  ;;  %6684 = vmatpush.bf16.msrb.mxu2 %v10137_v55 }
  0xad   : > { %v14141_v46 = vld [vmem:[#allocation1 + $0x24] sm:$0xff]  ;;  %v13050_v53 = vld [vmem:[%s13825_s18 + $0x12ec] sm:$0xf0]  ;;  %v10633_v60 = vor.u32 %v13018_v45, %v10632_v44  ;;  %6697 = vmatpush.bf16.msrb.mxu3 %v10265_v58 }
  0xae   : > { %v10760_v52 = vld [vmem:[%s13825_s18 + $0x12e0] sm:$0xf]  ;;  %1324 = vst [vmem:[#allocation1] ss:$9 sm:$0xff] %v277_v50  ;;  %v13082_v57 = vld [vmem:[%s13825_s18 + $0x13ec] sm:$0xf0]  ;;  %6703 = vmatpush.bf16.msra.mxu0 %v10505_v59 }
  0xaf   : > { %v10888_v56 = vld [vmem:[%s13825_s18 + $0x13e0] sm:$0xf]  ;;  %v10761_v61 = vor.u32 %v13050_v53, %v10760_v52  ;;  %v12982_v63 = vld [vmem:[%s13825_s18 + $0x10cc] sm:$0xf0]  ;;  %6659 = vmatmul.bf16.vlgmr.msrb.gmra.mxu0 %v14141_v46  ;;  %6685 = vmatmul.bf16.vlgmr.msrb.gmra.mxu2 %v14143_v47 }
  0xb0   : > { %v10488_v62 = vld [vmem:[%s13825_s18 + $0x10c0] sm:$0xf]  ;;  %v10889_v1 = vor.u32 %v13082_v57, %v10888_v56  ;;  %v13014_v2 = vld [vmem:[%s13825_s18 + $0x11cc] sm:$0xf0]  ;;  %6716 = vmatpush.bf16.msra.mxu1 %v10633_v60  ;;  %6698 = vmatmul.bf16.vlgmr.msrb.gmra.mxu3 %v14147_v49 }
  0xb1   : > { %v10616_v0 = vld [vmem:[%s13825_s18 + $0x11c0] sm:$0xf]  ;;  %v13046_v4 = vld [vmem:[%s13825_s18 + $0x12cc] sm:$0xf0]  ;;  %v10489_v7 = vor.u32 %v12982_v63, %v10488_v62  ;;  %6729 = vmatpush.bf16.msra.mxu2 %v10761_v61  ;;  %6672 = vmatmul.bf16.vlgmr.msrb.gmra.mxu1 %v14145_v48 }
  0xb2   : > { %v10744_v3 = vld [vmem:[%s13825_s18 + $0x12c0] sm:$0xf]  ;;  %v13078_v6 = vld [vmem:[%s13825_s18 + $0x13cc] sm:$0xf0]  ;;  %v10617_v9 = vor.u32 %v13014_v2, %v10616_v0  ;;  %6742 = vmatpush.bf16.msra.mxu3 %v10889_v1 }
  0xb3   : > { %v10872_v5 = vld [vmem:[%s13825_s18 + $0x13c0] sm:$0xf]  ;;  %v10745_v10 = vor.u32 %v13046_v4, %v10744_v3  ;;  %v12978_v14 = vld [vmem:[%s13825_s18 + $0x10ac] sm:$0xf0]  ;;  %6704 = vmatpush.bf16.msra.mxu0 %v10489_v7 }
  0xb4   : > { %v10472_v13 = vld [vmem:[%s13825_s18 + $0x10a0] sm:$0xf]  ;;  %v10873_v17 = vor.u32 %v13078_v6, %v10872_v5  ;;  %v13010_v18 = vld [vmem:[%s13825_s18 + $0x11ac] sm:$0xf0]  ;;  %6717 = vmatpush.bf16.msra.mxu1 %v10617_v9 }
  0xb5   : > { %v10600_v16 = vld [vmem:[%s13825_s18 + $0x11a0] sm:$0xf]  ;;  %v13042_v23 = vld [vmem:[%s13825_s18 + $0x12ac] sm:$0xf0]  ;;  %v10473_v27 = vor.u32 %v12978_v14, %v10472_v13  ;;  %6730 = vmatpush.bf16.msra.mxu2 %v10745_v10 }
  0xb6   : > { %v10728_v19 = vld [vmem:[%s13825_s18 + $0x12a0] sm:$0xf]  ;;  %v13074_v25 = vld [vmem:[%s13825_s18 + $0x13ac] sm:$0xf0]  ;;  %v10601_v28 = vor.u32 %v13010_v18, %v10600_v16  ;;  %6743 = vmatpush.bf16.msra.mxu3 %v10873_v17 }
  0xb7   : > { %v10856_v24 = vld [vmem:[%s13825_s18 + $0x13a0] sm:$0xf]  ;;  %v10729_v30 = vor.u32 %v13042_v23, %v10728_v19  ;;  %v12974_v34 = vld [vmem:[%s13825_s18 + $0x108c] sm:$0xf0]  ;;  %6705 = vmatpush.bf16.msra.mxu0 %v10473_v27 }
  0xb8   : > { %v10456_v33 = vld [vmem:[%s13825_s18 + $0x1080] sm:$0xf]  ;;  %v10857_v36 = vor.u32 %v13074_v25, %v10856_v24  ;;  %v13006_v37 = vld [vmem:[%s13825_s18 + $0x118c] sm:$0xf0]  ;;  %6718 = vmatpush.bf16.msra.mxu1 %v10601_v28 }
  0xb9   : > { %v10584_v35 = vld [vmem:[%s13825_s18 + $0x1180] sm:$0xf]  ;;  %v13038_v40 = vld [vmem:[%s13825_s18 + $0x128c] sm:$0xf0]  ;;  %v10457_v43 = vor.u32 %v12974_v34, %v10456_v33  ;;  %6731 = vmatpush.bf16.msra.mxu2 %v10729_v30 }
  0xba   : > { %v10712_v39 = vld [vmem:[%s13825_s18 + $0x1280] sm:$0xf]  ;;  %v13070_v42 = vld [vmem:[%s13825_s18 + $0x138c] sm:$0xf0]  ;;  %v10585_v44 = vor.u32 %v13006_v37, %v10584_v35  ;;  %6744 = vmatpush.bf16.msra.mxu3 %v10857_v36 }
  0xbb   : > { %v10840_v41 = vld [vmem:[%s13825_s18 + $0x1380] sm:$0xf]  ;;  %v10713_v45 = vor.u32 %v13038_v40, %v10712_v39  ;;  %v12970_v51 = vld [vmem:[%s13825_s18 + $0x106c] sm:$0xf0]  ;;  %6706 = vmatpush.bf16.msra.mxu0 %v10457_v43 }
  0xbc   : > { %v10440_v50 = vld [vmem:[%s13825_s18 + $0x1060] sm:$0xf]  ;;  %v10841_v53 = vor.u32 %v13070_v42, %v10840_v41  ;;  %v13002_v54 = vld [vmem:[%s13825_s18 + $0x116c] sm:$0xf0]  ;;  %6719 = vmatpush.bf16.msra.mxu1 %v10585_v44 }
  0xbd   : > { %v10568_v52 = vld [vmem:[%s13825_s18 + $0x1160] sm:$0xf]  ;;  %v13034_v56 = vld [vmem:[%s13825_s18 + $0x126c] sm:$0xf0]  ;;  %v10441_v59 = vor.u32 %v12970_v51, %v10440_v50  ;;  %6732 = vmatpush.bf16.msra.mxu2 %v10713_v45 }
  0xbe   : > { %v10696_v55 = vld [vmem:[%s13825_s18 + $0x1260] sm:$0xf]  ;;  %v13066_v58 = vld [vmem:[%s13825_s18 + $0x136c] sm:$0xf0]  ;;  %v10569_v60 = vor.u32 %v13002_v54, %v10568_v52  ;;  %6745 = vmatpush.bf16.msra.mxu3 %v10841_v53 }
  0xbf   : > { %v10824_v57 = vld [vmem:[%s13825_s18 + $0x1360] sm:$0xf]  ;;  %v10697_v61 = vor.u32 %v13034_v56, %v10696_v55  ;;  %v12966_v63 = vld [vmem:[%s13825_s18 + $0x104c] sm:$0xf0]  ;;  %6707 = vmatpush.bf16.msra.mxu0 %v10441_v59 }
  0xc0   : > { %v10424_v62 = vld [vmem:[%s13825_s18 + $0x1040] sm:$0xf]  ;;  %v10825_v1 = vor.u32 %v13066_v58, %v10824_v57  ;;  %v12998_v2 = vld [vmem:[%s13825_s18 + $0x114c] sm:$0xf0]  ;;  %6720 = vmatpush.bf16.msra.mxu1 %v10569_v60 }
  0xc1   : > { %v10552_v0 = vld [vmem:[%s13825_s18 + $0x1140] sm:$0xf]  ;;  %v13030_v4 = vld [vmem:[%s13825_s18 + $0x124c] sm:$0xf0]  ;;  %v10425_v7 = vor.u32 %v12966_v63, %v10424_v62  ;;  %6733 = vmatpush.bf16.msra.mxu2 %v10697_v61 }
  0xc2   : > { %v10680_v3 = vld [vmem:[%s13825_s18 + $0x1240] sm:$0xf]  ;;  %v13062_v6 = vld [vmem:[%s13825_s18 + $0x134c] sm:$0xf0]  ;;  %v10553_v9 = vor.u32 %v12998_v2, %v10552_v0  ;;  %6746 = vmatpush.bf16.msra.mxu3 %v10825_v1 }
  0xc3   : > { %v10808_v5 = vld [vmem:[%s13825_s18 + $0x1340] sm:$0xf]  ;;  %v10681_v10 = vor.u32 %v13030_v4, %v10680_v3  ;;  %v12962_v14 = vld [vmem:[%s13825_s18 + $0x102c] sm:$0xf0]  ;;  %6708 = vmatpush.bf16.msra.mxu0 %v10425_v7 }
  0xc4   : > { %v10408_v13 = vld [vmem:[%s13825_s18 + $0x1020] sm:$0xf]  ;;  %v10809_v17 = vor.u32 %v13062_v6, %v10808_v5  ;;  %v12994_v18 = vld [vmem:[%s13825_s18 + $0x112c] sm:$0xf0]  ;;  %6721 = vmatpush.bf16.msra.mxu1 %v10553_v9  ;;  %v14230_v5 = vld [vmem:[#allocation1] sm:$0xff] }
  0xc5   : > { %v10536_v16 = vld [vmem:[%s13825_s18 + $0x1120] sm:$0xf]  ;;  %v13026_v23 = vld [vmem:[%s13825_s18 + $0x122c] sm:$0xf0]  ;;  %v10409_v27 = vor.u32 %v12962_v14, %v10408_v13  ;;  %6734 = vmatpush.bf16.msra.mxu2 %v10681_v10 }
  0xc6   : > { %v10664_v19 = vld [vmem:[%s13825_s18 + $0x1220] sm:$0xf]  ;;  %v13058_v25 = vld [vmem:[%s13825_s18 + $0x132c] sm:$0xf0]  ;;  %v10537_v33 = vor.u32 %v12994_v18, %v10536_v16  ;;  %6747 = vmatpush.bf16.msra.mxu3 %v10809_v17 }
  0xc7   : > { %v10792_v24 = vld [vmem:[%s13825_s18 + $0x1320] sm:$0xf]  ;;  %v12958_v30 = vld [vmem:[%s13825_s18 + $0x100c] sm:$0xf0]  ;;  %v10665_v34 = vor.u32 %v13026_v23, %v10664_v19  ;;  %6709 = vmatpush.bf16.msra.mxu0 %v10409_v27 }
  0xc8   : > { %v10392_v28 = vld [vmem:[%s13825_s18 + $0x1000] sm:$0xf]  ;;  %v12990_v36 = vld [vmem:[%s13825_s18 + $0x110c] sm:$0xf0]  ;;  %v10793_v39 = vor.u32 %v13058_v25, %v10792_v24  ;;  %6722 = vmatpush.bf16.msra.mxu1 %v10537_v33 }
  0xc9   : > { %v10520_v35 = vld [vmem:[%s13825_s18 + $0x1100] sm:$0xf]  ;;  %v13022_v40 = vld [vmem:[%s13825_s18 + $0x120c] sm:$0xf0]  ;;  %v10393_v50 = vor.u32 %v12958_v30, %v10392_v28  ;;  %6735 = vmatpush.bf16.msra.mxu2 %v10665_v34 }
  0xca   : > { %v10648_v37 = vld [vmem:[%s13825_s18 + $0x1200] sm:$0xf]  ;;  %v13054_v42 = vld [vmem:[%s13825_s18 + $0x130c] sm:$0xf0]  ;;  %v10521_v54 = vor.u32 %v12990_v36, %v10520_v35  ;;  %6748 = vmatpush.bf16.msra.mxu3 %v10793_v39 }
  0xcb   : > { %v10776_v41 = vld [vmem:[%s13825_s18 + $0x1300] sm:$0xf]  ;;  %v13114_v44 = vld [vmem:[%s13825_s18 + $0x14ec] sm:$0xf0]  ;;  %v10649_v55 = vor.u32 %v13022_v40, %v10648_v37  ;;  %6710 = vmatpush.bf16.msra.mxu0 %v10393_v50 }
  0xcc   : > { %v11016_v43 = vld [vmem:[%s13825_s18 + $0x14e0] sm:$0xf]  ;;  %v13146_v51 = vld [vmem:[%s13825_s18 + $0x15ec] sm:$0xf0]  ;;  %v10777_v58 = vor.u32 %v13054_v42, %v10776_v41  ;;  %6723 = vmatpush.bf16.msra.mxu1 %v10521_v54 }
  0xcd   : > { %v11144_v45 = vld [vmem:[%s13825_s18 + $0x15e0] sm:$0xf]  ;;  %v13178_v53 = vld [vmem:[%s13825_s18 + $0x16ec] sm:$0xf0]  ;;  %v11017_v59 = vor.u32 %v13114_v44, %v11016_v43  ;;  %6736 = vmatpush.bf16.msra.mxu2 %v10649_v55 }
  0xce   : > { %v11272_v52 = vld [vmem:[%s13825_s18 + $0x16e0] sm:$0xf]  ;;  %v13210_v57 = vld [vmem:[%s13825_s18 + $0x17ec] sm:$0xf0]  ;;  %v11145_v60 = vor.u32 %v13146_v51, %v11144_v45  ;;  %6749 = vmatpush.bf16.msra.mxu3 %v10777_v58  ;;  %6711 = vmatmul.bf16.vlgmr.msra.gmra.mxu0 %v14230_v5 }
  0xcf   : > { %v11400_v56 = vld [vmem:[%s13825_s18 + $0x17e0] sm:$0xf]  ;;  %v11273_v61 = vor.u32 %v13178_v53, %v11272_v52  ;;  %v13110_v63 = vld [vmem:[%s13825_s18 + $0x14cc] sm:$0xf0]  ;;  %6755 = vmatpush.bf16.msrb.mxu0 %v11017_v59 }
  0xd0   : > { %v11000_v62 = vld [vmem:[%s13825_s18 + $0x14c0] sm:$0xf]  ;;  %v11401_v1 = vor.u32 %v13210_v57, %v11400_v56  ;;  %v13142_v2 = vld [vmem:[%s13825_s18 + $0x15cc] sm:$0xf0]  ;;  %6768 = vmatpush.bf16.msrb.mxu1 %v11145_v60 }
  0xd1   : > { %v11128_v0 = vld [vmem:[%s13825_s18 + $0x15c0] sm:$0xf]  ;;  %v13174_v4 = vld [vmem:[%s13825_s18 + $0x16cc] sm:$0xf0]  ;;  %v11001_v14 = vor.u32 %v13110_v63, %v11000_v62  ;;  %6781 = vmatpush.bf16.msrb.mxu2 %v11273_v61 }
  0xd2   : > { %v11256_v3 = vld [vmem:[%s13825_s18 + $0x16c0] sm:$0xf]  ;;  %v13206_v7 = vld [vmem:[%s13825_s18 + $0x17cc] sm:$0xf0]  ;;  %v11129_v16 = vor.u32 %v13142_v2, %v11128_v0  ;;  %6794 = vmatpush.bf16.msrb.mxu3 %v11401_v1 }
  0xd3   : > { %v11384_v6 = vld [vmem:[%s13825_s18 + $0x17c0] sm:$0xf]  ;;  %v14234_v9 = vld [vmem:[#allocation1 + $0x12] sm:$0xff]  ;;  %v14238_v13 = vld [vmem:[#allocation1 + $0x1b] sm:$0xff]  ;;  %v11257_v17 = vor.u32 %v13174_v4, %v11256_v3  ;;  %6756 = vmatpush.bf16.msrb.mxu0 %v11001_v14 }
  0xd4   : > { %v14236_v10 = vld [vmem:[#allocation1 + $0x9] sm:$0xff]  ;;  %v13106_v19 = vld [vmem:[%s13825_s18 + $0x14ac] sm:$0xf0]  ;;  %v11385_v24 = vor.u32 %v13206_v7, %v11384_v6  ;;  %6737 = vmatmul.bf16.vlgmr.msra.gmra.mxu2 %v14234_v9  ;;  %6750 = vmatmul.bf16.vlgmr.msra.gmra.mxu3 %v14238_v13 }
  0xd5   : > { %v10984_v18 = vld [vmem:[%s13825_s18 + $0x14a0] sm:$0xf]  ;;  %v13138_v25 = vld [vmem:[%s13825_s18 + $0x15ac] sm:$0xf0]  ;;  %6724 = vmatmul.bf16.vlgmr.msra.gmra.mxu1 %v14236_v10  ;;  %6782 = vmatpush.bf16.msrb.mxu2 %v11257_v17 }
  0xd6   : > { %v11112_v23 = vld [vmem:[%s13825_s18 + $0x15a0] sm:$0xf]  ;;  %v13170_v28 = vld [vmem:[%s13825_s18 + $0x16ac] sm:$0xf0]  ;;  %v10985_v34 = vor.u32 %v13106_v19, %v10984_v18  ;;  %6769 = vmatpush.bf16.msrb.mxu1 %v11129_v16  ;;  %6795 = vmatpush.bf16.msrb.mxu3 %v11385_v24  ;;  %v6504_v24 = vpop.f32.mrf.mxu0 }
  0xd7   : > { %v11240_v27 = vld [vmem:[%s13825_s18 + $0x16a0] sm:$0xf]  ;;  %v13202_v33 = vld [vmem:[%s13825_s18 + $0x17ac] sm:$0xf0]  ;;  %v11113_v35 = vor.u32 %v13138_v25, %v11112_v23 }
  0xd8   : > { %v11368_v30 = vld [vmem:[%s13825_s18 + $0x17a0] sm:$0xf]  ;;  %v11241_v36 = vor.u32 %v13170_v28, %v11240_v27  ;;  %v13102_v39 = vld [vmem:[%s13825_s18 + $0x148c] sm:$0xf0]  ;;  %6757 = vmatpush.bf16.msrb.mxu0 %v10985_v34  ;;  %v6517_v34 = vpop.f32.mrf.mxu1 }
  0xd9   : > { %v10968_v37 = vld [vmem:[%s13825_s18 + $0x1480] sm:$0xf]  ;;  %v11369_v41 = vor.u32 %v13202_v33, %v11368_v30  ;;  %v13134_v42 = vld [vmem:[%s13825_s18 + $0x158c] sm:$0xf0] }
  0xda   : > { %v11096_v40 = vld [vmem:[%s13825_s18 + $0x1580] sm:$0xf]  ;;  %v13166_v44 = vld [vmem:[%s13825_s18 + $0x168c] sm:$0xf0]  ;;  %v10969_v51 = vor.u32 %v13102_v39, %v10968_v37  ;;  %6770 = vmatpush.bf16.msrb.mxu1 %v11113_v35  ;;  %6783 = vmatpush.bf16.msrb.mxu2 %v11241_v36 }
  0xdb   : > { %v11224_v43 = vld [vmem:[%s13825_s18 + $0x1680] sm:$0xf]  ;;  %v13198_v50 = vld [vmem:[%s13825_s18 + $0x178c] sm:$0xf0]  ;;  %v11097_v52 = vor.u32 %v13134_v42, %v11096_v40  ;;  %6796 = vmatpush.bf16.msrb.mxu3 %v11369_v41  ;;  %v6518_v40 = vadd.f32 %v6517_v34, %v6504_v24 }
  0xdc   : > { %v11352_v45 = vld [vmem:[%s13825_s18 + $0x1780] sm:$0xf]  ;;  %v11225_v53 = vor.u32 %v13166_v44, %v11224_v43  ;;  %v13098_v55 = vld [vmem:[%s13825_s18 + $0x146c] sm:$0xf0]  ;;  %6758 = vmatpush.bf16.msrb.mxu0 %v10969_v51 }
  0xdd   : > { %v10952_v54 = vld [vmem:[%s13825_s18 + $0x1460] sm:$0xf]  ;;  %v11353_v57 = vor.u32 %v13198_v50, %v11352_v45  ;;  %v13130_v58 = vld [vmem:[%s13825_s18 + $0x156c] sm:$0xf0] }
  0xde   : > { %v11080_v56 = vld [vmem:[%s13825_s18 + $0x1560] sm:$0xf]  ;;  %v13162_v60 = vld [vmem:[%s13825_s18 + $0x166c] sm:$0xf0]  ;;  %v10953_v63 = vor.u32 %v13098_v55, %v10952_v54  ;;  %6771 = vmatpush.bf16.msrb.mxu1 %v11097_v52  ;;  %6784 = vmatpush.bf16.msrb.mxu2 %v11225_v53 }
  0xdf   : > { %v11208_v59 = vld [vmem:[%s13825_s18 + $0x1660] sm:$0xf]  ;;  %v13194_v62 = vld [vmem:[%s13825_s18 + $0x176c] sm:$0xf0]  ;;  %v11081_v0 = vor.u32 %v13130_v58, %v11080_v56  ;;  %6797 = vmatpush.bf16.msrb.mxu3 %v11353_v57 }
  0xe0   : > { %v11336_v61 = vld [vmem:[%s13825_s18 + $0x1760] sm:$0xf]  ;;  %v11209_v1 = vor.u32 %v13162_v60, %v11208_v59  ;;  %v13094_v3 = vld [vmem:[%s13825_s18 + $0x144c] sm:$0xf0]  ;;  %6759 = vmatpush.bf16.msrb.mxu0 %v10953_v63  ;;  %v6530_v59 = vpop.f32.mrf.mxu2 }
  0xe1   : > { %v10936_v2 = vld [vmem:[%s13825_s18 + $0x1440] sm:$0xf]  ;;  %v11337_v6 = vor.u32 %v13194_v62, %v11336_v61  ;;  %v13126_v7 = vld [vmem:[%s13825_s18 + $0x154c] sm:$0xf0] }
  0xe2   : > { %v11064_v4 = vld [vmem:[%s13825_s18 + $0x1540] sm:$0xf]  ;;  %v13158_v16 = vld [vmem:[%s13825_s18 + $0x164c] sm:$0xf0]  ;;  %v10937_v19 = vor.u32 %v13094_v3, %v10936_v2  ;;  %6772 = vmatpush.bf16.msrb.mxu1 %v11081_v0  ;;  %6785 = vmatpush.bf16.msrb.mxu2 %v11209_v1  ;;  %v6531_v1 = vadd.f32 %v6530_v59, %v6518_v40  ;;  %v6543_v2 = vpop.f32.mrf.mxu3  ;;  %v14300_v3 = vld [vmem:[#allocation1 + $0x2d] sm:$0xff] }
  0xe3   : > { %v11192_v14 = vld [vmem:[%s13825_s18 + $0x1640] sm:$0xf]  ;;  %v13190_v18 = vld [vmem:[%s13825_s18 + $0x174c] sm:$0xf0]  ;;  %v11065_v25 = vor.u32 %v13126_v7, %v11064_v4  ;;  %6798 = vmatpush.bf16.msrb.mxu3 %v11337_v6  ;;  %v14302_v4 = vld [vmem:[#allocation1 + $0x3f] sm:$0xff] }
  0xe4   : > { %v11320_v17 = vld [vmem:[%s13825_s18 + $0x1740] sm:$0xf]  ;;  %v11193_v27 = vor.u32 %v13158_v16, %v11192_v14  ;;  %v13090_v28 = vld [vmem:[%s13825_s18 + $0x142c] sm:$0xf0]  ;;  %6760 = vmatpush.bf16.msrb.mxu0 %v10937_v19 }
  0xe5   : > { %v10920_v23 = vld [vmem:[%s13825_s18 + $0x1420] sm:$0xf]  ;;  %v13122_v33 = vld [vmem:[%s13825_s18 + $0x152c] sm:$0xf0]  ;;  %v11321_v35 = vor.u32 %v13190_v18, %v11320_v17  ;;  %v14309_v17 = vadd.f32 %v6543_v2, %v6531_v1  ;;  %v6506_v18 = vpop.f32.mrf.mxu0 }
  0xe6   : > { %v11048_v30 = vld [vmem:[%s13825_s18 + $0x1520] sm:$0xf]  ;;  %v13154_v37 = vld [vmem:[%s13825_s18 + $0x162c] sm:$0xf0]  ;;  %v10921_v44 = vor.u32 %v13090_v28, %v10920_v23  ;;  %6773 = vmatpush.bf16.msrb.mxu1 %v11065_v25  ;;  %6786 = vmatpush.bf16.msrb.mxu2 %v11193_v27  ;;  %v6519_v27 = vpop.f32.mrf.mxu1 }
  0xe7   : > { %v11176_v36 = vld [vmem:[%s13825_s18 + $0x1620] sm:$0xf]  ;;  %v13186_v41 = vld [vmem:[%s13825_s18 + $0x172c] sm:$0xf0]  ;;  %v11049_v53 = vor.u32 %v13122_v33, %v11048_v30  ;;  %6799 = vmatpush.bf16.msrb.mxu3 %v11321_v35 }
  0xe8   : > { %v11304_v39 = vld [vmem:[%s13825_s18 + $0x1720] sm:$0xf]  ;;  %v13086_v43 = vld [vmem:[%s13825_s18 + $0x140c] sm:$0xf0]  ;;  %v11177_v54 = vor.u32 %v13154_v37, %v11176_v36  ;;  %6761 = vmatpush.bf16.msrb.mxu0 %v10921_v44 }
  0xe9   : > { %v10904_v42 = vld [vmem:[%s13825_s18 + $0x1400] sm:$0xf]  ;;  %v13118_v50 = vld [vmem:[%s13825_s18 + $0x150c] sm:$0xf0]  ;;  %v11305_v60 = vor.u32 %v13186_v41, %v11304_v39 }
  0xea   : > { %v11032_v45 = vld [vmem:[%s13825_s18 + $0x1500] sm:$0xf]  ;;  %v13150_v52 = vld [vmem:[%s13825_s18 + $0x160c] sm:$0xf0]  ;;  %v10905_v7 = vor.u32 %v13086_v43, %v10904_v42  ;;  %6774 = vmatpush.bf16.msrb.mxu1 %v11049_v53  ;;  %6787 = vmatpush.bf16.msrb.mxu2 %v11177_v54 }
  0xeb   : > { %v11160_v51 = vld [vmem:[%s13825_s18 + $0x1600] sm:$0xf]  ;;  %v13182_v56 = vld [vmem:[%s13825_s18 + $0x170c] sm:$0xf0]  ;;  %v11033_v19 = vor.u32 %v13118_v50, %v11032_v45  ;;  %6800 = vmatpush.bf16.msrb.mxu3 %v11305_v60  ;;  %v6532_v45 = vpop.f32.mrf.mxu2 }
  0xec   : > { %v11288_v55 = vld [vmem:[%s13825_s18 + $0x1700] sm:$0xf]  ;;  %v13242_v58 = vld [vmem:[%s13825_s18 + $0x18ec] sm:$0xf0]  ;;  %v11161_v23 = vor.u32 %v13150_v52, %v11160_v51  ;;  %6762 = vmatpush.bf16.msrb.mxu0 %v10905_v7  ;;  %v6545_v51 = vpop.f32.mrf.mxu3 }
  0xed   : > { %v11528_v57 = vld [vmem:[%s13825_s18 + $0x18e0] sm:$0xf]  ;;  %v13274_v62 = vld [vmem:[%s13825_s18 + $0x19ec] sm:$0xf0]  ;;  %v11289_v28 = vor.u32 %v13182_v56, %v11288_v55 }
  0xee   : > { %v11656_v61 = vld [vmem:[%s13825_s18 + $0x19e0] sm:$0xf]  ;;  %v14298_v0 = vld [vmem:[#allocation1 + $0x36] sm:$0xff]  ;;  %v11529_v30 = vor.u32 %v13242_v58, %v11528_v57  ;;  %6775 = vmatpush.bf16.msrb.mxu1 %v11033_v19  ;;  %6788 = vmatpush.bf16.msrb.mxu2 %v11161_v23 }
  0xef   : > { %v14296_v63 = vld [vmem:[#allocation1 + $0x24] sm:$0xff]  ;;  %v278_v6 = vld [vmem:[%s16163_s0 + $0x18] sm:$0xff]  ;;  %v11657_v33 = vor.u32 %v13274_v62, %v11656_v61  ;;  %6801 = vmatpush.bf16.msrb.mxu3 %v11289_v28 }
  0xf0   : > { %v11784_v14 = vld [vmem:[%s13825_s18 + $0x1ae0] sm:$0xf]  ;;  %v13306_v16 = vld [vmem:[%s13825_s18 + $0x1aec] sm:$0xf0]  ;;  %1334 = vst [vmem:[#allocation1] ss:$9 sm:$0xff] %v278_v6  ;;  %6807 = vmatpush.bf16.msra.mxu0 %v11529_v30  ;;  %v6556_v30 = vpop.f32.mrf.mxu0 }
  0xf1   : > { %v11912_v24 = vld [vmem:[%s13825_s18 + $0x1be0] sm:$0xf]  ;;  %v13338_v25 = vld [vmem:[%s13825_s18 + $0x1bec] sm:$0xf0]  ;;  %v11785_v34 = vor.u32 %v13306_v16, %v11784_v14  ;;  %6763 = vmatmul.bf16.vlgmr.msrb.gmra.mxu0 %v14296_v63  ;;  %6789 = vmatmul.bf16.vlgmr.msrb.gmra.mxu2 %v14298_v0 }
  0xf2   : > { %v11512_v35 = vld [vmem:[%s13825_s18 + $0x18c0] sm:$0xf]  ;;  %v13238_v36 = vld [vmem:[%s13825_s18 + $0x18cc] sm:$0xf0]  ;;  %v11913_v39 = vor.u32 %v13338_v25, %v11912_v24  ;;  %6820 = vmatpush.bf16.msra.mxu1 %v11657_v33  ;;  %6802 = vmatmul.bf16.vlgmr.msrb.gmra.mxu3 %v14302_v4 }
  0xf3   : > { %v11640_v37 = vld [vmem:[%s13825_s18 + $0x19c0] sm:$0xf]  ;;  %v13270_v40 = vld [vmem:[%s13825_s18 + $0x19cc] sm:$0xf0]  ;;  %v11513_v50 = vor.u32 %v13238_v36, %v11512_v35  ;;  %6833 = vmatpush.bf16.msra.mxu2 %v11785_v34  ;;  %6776 = vmatmul.bf16.vlgmr.msrb.gmra.mxu1 %v14300_v3 }
  0xf4   : > { %v11768_v41 = vld [vmem:[%s13825_s18 + $0x1ac0] sm:$0xf]  ;;  %v13302_v42 = vld [vmem:[%s13825_s18 + $0x1acc] sm:$0xf0]  ;;  %v11641_v52 = vor.u32 %v13270_v40, %v11640_v37  ;;  %6846 = vmatpush.bf16.msra.mxu3 %v11913_v39  ;;  %v6557_v39 = vadd.f32 %v6556_v30, %v14309_v17  ;;  %v6569_v40 = vpop.f32.mrf.mxu1 }
  0xf5   : > { %v11896_v43 = vld [vmem:[%s13825_s18 + $0x1bc0] sm:$0xf]  ;;  %v13334_v44 = vld [vmem:[%s13825_s18 + $0x1bcc] sm:$0xf0]  ;;  %v11769_v53 = vor.u32 %v13302_v42, %v11768_v41  ;;  %6808 = vmatpush.bf16.msra.mxu0 %v11513_v50 }
  0xf6   : > { %v11496_v54 = vld [vmem:[%s13825_s18 + $0x18a0] sm:$0xf]  ;;  %v13234_v55 = vld [vmem:[%s13825_s18 + $0x18ac] sm:$0xf0]  ;;  %v11897_v57 = vor.u32 %v13334_v44, %v11896_v43  ;;  %6821 = vmatpush.bf16.msra.mxu1 %v11641_v52  ;;  %v6570_v51 = vadd.f32 %v6569_v40, %v6557_v39 }
  0xf7   : > { %v11624_v56 = vld [vmem:[%s13825_s18 + $0x19a0] sm:$0xf]  ;;  %v13266_v58 = vld [vmem:[%s13825_s18 + $0x19ac] sm:$0xf0]  ;;  %v11497_v1 = vor.u32 %v13234_v55, %v11496_v54  ;;  %6834 = vmatpush.bf16.msra.mxu2 %v11769_v53 }
  0xf8   : > { %v11752_v59 = vld [vmem:[%s13825_s18 + $0x1aa0] sm:$0xf]  ;;  %v13298_v60 = vld [vmem:[%s13825_s18 + $0x1aac] sm:$0xf0]  ;;  %v11625_v2 = vor.u32 %v13266_v58, %v11624_v56  ;;  %6847 = vmatpush.bf16.msra.mxu3 %v11897_v57  ;;  %v6582_v57 = vpop.f32.mrf.mxu2 }
  0xf9   : > { %v11880_v61 = vld [vmem:[%s13825_s18 + $0x1ba0] sm:$0xf]  ;;  %v13330_v62 = vld [vmem:[%s13825_s18 + $0x1bac] sm:$0xf0]  ;;  %v11753_v6 = vor.u32 %v13298_v60, %v11752_v59  ;;  %6809 = vmatpush.bf16.msra.mxu0 %v11497_v1  ;;  %v6595_v1 = vpop.f32.mrf.mxu3 }
  0xfa   : > { %v11480_v7 = vld [vmem:[%s13825_s18 + $0x1880] sm:$0xf]  ;;  %v13230_v14 = vld [vmem:[%s13825_s18 + $0x188c] sm:$0xf0]  ;;  %v11881_v18 = vor.u32 %v13330_v62, %v11880_v61  ;;  %6822 = vmatpush.bf16.msra.mxu1 %v11625_v2  ;;  %v6583_v62 = vadd.f32 %v6582_v57, %v6570_v51 }
  0xfb   : > { %v11608_v16 = vld [vmem:[%s13825_s18 + $0x1980] sm:$0xf]  ;;  %v13262_v19 = vld [vmem:[%s13825_s18 + $0x198c] sm:$0xf0]  ;;  %v11481_v28 = vor.u32 %v13230_v14, %v11480_v7  ;;  %6835 = vmatpush.bf16.msra.mxu2 %v11753_v6 }
  0xfc   : > { %v11736_v23 = vld [vmem:[%s13825_s18 + $0x1a80] sm:$0xf]  ;;  %v13294_v24 = vld [vmem:[%s13825_s18 + $0x1a8c] sm:$0xf0]  ;;  %v11609_v33 = vor.u32 %v13262_v19, %v11608_v16  ;;  %6848 = vmatpush.bf16.msra.mxu3 %v11881_v18  ;;  %v14358_v14 = vadd.f32 %v6595_v1, %v6583_v62  ;;  %v6558_v16 = vpop.f32.mrf.mxu0 }
  0xfd   : > { %v11864_v25 = vld [vmem:[%s13825_s18 + $0x1b80] sm:$0xf]  ;;  %v13326_v27 = vld [vmem:[%s13825_s18 + $0x1b8c] sm:$0xf0]  ;;  %v11737_v34 = vor.u32 %v13294_v24, %v11736_v23  ;;  %6810 = vmatpush.bf16.msra.mxu0 %v11481_v28 }
  0xfe   : > { %v11464_v35 = vld [vmem:[%s13825_s18 + $0x1860] sm:$0xf]  ;;  %v13226_v36 = vld [vmem:[%s13825_s18 + $0x186c] sm:$0xf0]  ;;  %v11865_v41 = vor.u32 %v13326_v27, %v11864_v25  ;;  %6823 = vmatpush.bf16.msra.mxu1 %v11609_v33  ;;  %v6571_v27 = vpop.f32.mrf.mxu1 }
  0xff   : > { %v11592_v37 = vld [vmem:[%s13825_s18 + $0x1960] sm:$0xf]  ;;  %v13258_v42 = vld [vmem:[%s13825_s18 + $0x196c] sm:$0xf0]  ;;  %v11465_v52 = vor.u32 %v13226_v36, %v11464_v35  ;;  %6836 = vmatpush.bf16.msra.mxu2 %v11737_v34 }
 0x100   : > { %v11720_v43 = vld [vmem:[%s13825_s18 + $0x1a60] sm:$0xf]  ;;  %v13290_v44 = vld [vmem:[%s13825_s18 + $0x1a6c] sm:$0xf0]  ;;  %v11593_v17 = vor.u32 %v13258_v42, %v11592_v37  ;;  %6849 = vmatpush.bf16.msra.mxu3 %v11865_v41 }
 0x101   : > { %v11848_v45 = vld [vmem:[%s13825_s18 + $0x1b60] sm:$0xf]  ;;  %v13322_v50 = vld [vmem:[%s13825_s18 + $0x1b6c] sm:$0xf0]  ;;  %v11721_v53 = vor.u32 %v13290_v44, %v11720_v43  ;;  %6811 = vmatpush.bf16.msra.mxu0 %v11465_v52 }
 0x102   : > { %v11448_v54 = vld [vmem:[%s13825_s18 + $0x1840] sm:$0xf]  ;;  %v13222_v55 = vld [vmem:[%s13825_s18 + $0x184c] sm:$0xf0]  ;;  %v11849_v58 = vor.u32 %v13322_v50, %v11848_v45  ;;  %6824 = vmatpush.bf16.msra.mxu1 %v11593_v17  ;;  %v6584_v50 = vpop.f32.mrf.mxu2 }
 0x103   : > { %v11576_v56 = vld [vmem:[%s13825_s18 + $0x1940] sm:$0xf]  ;;  %v13254_v59 = vld [vmem:[%s13825_s18 + $0x194c] sm:$0xf0]  ;;  %v11449_v7 = vor.u32 %v13222_v55, %v11448_v54  ;;  %6837 = vmatpush.bf16.msra.mxu2 %v11721_v53  ;;  %v6597_v54 = vpop.f32.mrf.mxu3 }
 0x104   : > { %v11704_v60 = vld [vmem:[%s13825_s18 + $0x1a40] sm:$0xf]  ;;  %v13286_v61 = vld [vmem:[%s13825_s18 + $0x1a4c] sm:$0xf0]  ;;  %v11577_v18 = vor.u32 %v13254_v59, %v11576_v56  ;;  %6850 = vmatpush.bf16.msra.mxu3 %v11849_v58 }
 0x105   : > { %v11832_v2 = vld [vmem:[%s13825_s18 + $0x1b40] sm:$0xf]  ;;  %v13318_v6 = vld [vmem:[%s13825_s18 + $0x1b4c] sm:$0xf0]  ;;  %v11705_v19 = vor.u32 %v13286_v61, %v11704_v60  ;;  %6812 = vmatpush.bf16.msra.mxu0 %v11449_v7 }
 0x106   : > { %v11432_v23 = vld [vmem:[%s13825_s18 + $0x1820] sm:$0xf]  ;;  %v13218_v24 = vld [vmem:[%s13825_s18 + $0x182c] sm:$0xf0]  ;;  %v11833_v28 = vor.u32 %v13318_v6, %v11832_v2  ;;  %6825 = vmatpush.bf16.msra.mxu1 %v11577_v18 }
 0x107   : > { %v11560_v25 = vld [vmem:[%s13825_s18 + $0x1920] sm:$0xf]  ;;  %v13250_v30 = vld [vmem:[%s13825_s18 + $0x192c] sm:$0xf0]  ;;  %v11433_v37 = vor.u32 %v13218_v24, %v11432_v23  ;;  %6838 = vmatpush.bf16.msra.mxu2 %v11705_v19 }
 0x108   : > { %v11688_v33 = vld [vmem:[%s13825_s18 + $0x1a20] sm:$0xf]  ;;  %v13282_v34 = vld [vmem:[%s13825_s18 + $0x1a2c] sm:$0xf0]  ;;  %v11561_v41 = vor.u32 %v13250_v30, %v11560_v25  ;;  %6851 = vmatpush.bf16.msra.mxu3 %v11833_v28 }
 0x109   : > { %v11816_v35 = vld [vmem:[%s13825_s18 + $0x1b20] sm:$0xf]  ;;  %v13314_v36 = vld [vmem:[%s13825_s18 + $0x1b2c] sm:$0xf0]  ;;  %v11689_v42 = vor.u32 %v13282_v34, %v11688_v33  ;;  %6813 = vmatpush.bf16.msra.mxu0 %v11433_v37  ;;  %v1335_v34 = vld [vmem:[#allocation1] sm:$0xff] }
 0x10a   : > { %v11416_v39 = vld [vmem:[%s13825_s18 + $0x1800] sm:$0xf]  ;;  %v13214_v40 = vld [vmem:[%s13825_s18 + $0x180c] sm:$0xf0]  ;;  %v11817_v51 = vor.u32 %v13314_v36, %v11816_v35  ;;  %6826 = vmatpush.bf16.msra.mxu1 %v11561_v41 }
 0x10b   : > { %v11544_v43 = vld [vmem:[%s13825_s18 + $0x1900] sm:$0xf]  ;;  %v13246_v44 = vld [vmem:[%s13825_s18 + $0x190c] sm:$0xf0]  ;;  %v11417_v58 = vor.u32 %v13214_v40, %v11416_v39  ;;  %6839 = vmatpush.bf16.msra.mxu2 %v11689_v42 }
 0x10c   : > { %v11672_v45 = vld [vmem:[%s13825_s18 + $0x1a00] sm:$0xf]  ;;  %v13278_v52 = vld [vmem:[%s13825_s18 + $0x1a0c] sm:$0xf0]  ;;  %v11545_v62 = vor.u32 %v13246_v44, %v11544_v43  ;;  %6852 = vmatpush.bf16.msra.mxu3 %v11817_v51 }
 0x10d   : > { %v11800_v17 = vld [vmem:[%s13825_s18 + $0x1b00] sm:$0xf]  ;;  %v13310_v53 = vld [vmem:[%s13825_s18 + $0x1b0c] sm:$0xf0]  ;;  %v11673_v1 = vor.u32 %v13278_v52, %v11672_v45  ;;  %6814 = vmatpush.bf16.msra.mxu0 %v11417_v58 }
 0x10e   : > { %v12040_v55 = vld [vmem:[%s13825_s18 + $0x1ce0] sm:$0xf]  ;;  %v13370_v56 = vld [vmem:[%s13825_s18 + $0x1cec] sm:$0xf0]  ;;  %v11801_v7 = vor.u32 %v13310_v53, %v11800_v17  ;;  %6827 = vmatpush.bf16.msra.mxu1 %v11545_v62 }
 0x10f   : > { %v12168_v57 = vld [vmem:[%s13825_s18 + $0x1de0] sm:$0xf]  ;;  %v13402_v59 = vld [vmem:[%s13825_s18 + $0x1dec] sm:$0xf0]  ;;  %v12041_v16 = vor.u32 %v13370_v56, %v12040_v55  ;;  %6840 = vmatpush.bf16.msra.mxu2 %v11673_v1 }
 0x110   : > { %v12296_v60 = vld [vmem:[%s13825_s18 + $0x1ee0] sm:$0xf]  ;;  %v13434_v61 = vld [vmem:[%s13825_s18 + $0x1eec] sm:$0xf0]  ;;  %v12169_v18 = vor.u32 %v13402_v59, %v12168_v57  ;;  %6853 = vmatpush.bf16.msra.mxu3 %v11801_v7  ;;  %6815 = vmatmul.bf16.vlgmr.msra.gmra.mxu0 %v1335_v34  ;;  %v6608_v7 = vpop.f32.mrf.mxu0 }
 0x111   : > { %v12424_v2 = vld [vmem:[%s13825_s18 + $0x1fe0] sm:$0xf]  ;;  %v13466_v6 = vld [vmem:[%s13825_s18 + $0x1fec] sm:$0xf0]  ;;  %v12297_v19 = vor.u32 %v13434_v61, %v12296_v60  ;;  %6859 = vmatpush.bf16.msrb.mxu0 %v12041_v16 }
 0x112   : > { %v12024_v23 = vld [vmem:[%s13825_s18 + $0x1cc0] sm:$0xf]  ;;  %v13366_v24 = vld [vmem:[%s13825_s18 + $0x1ccc] sm:$0xf0]  ;;  %v12425_v27 = vor.u32 %v13466_v6, %v12424_v2  ;;  %6872 = vmatpush.bf16.msrb.mxu1 %v12169_v18 }
 0x113   : > { %v12152_v25 = vld [vmem:[%s13825_s18 + $0x1dc0] sm:$0xf]  ;;  %v13398_v28 = vld [vmem:[%s13825_s18 + $0x1dcc] sm:$0xf0]  ;;  %v12025_v41 = vor.u32 %v13366_v24, %v12024_v23  ;;  %6885 = vmatpush.bf16.msrb.mxu2 %v12297_v19  ;;  %v6609_v19 = vadd.f32 %v6608_v7, %v14358_v14  ;;  %v6621_v24 = vpop.f32.mrf.mxu1 }
 0x114   : > { %v12280_v30 = vld [vmem:[%s13825_s18 + $0x1ec0] sm:$0xf]  ;;  %v13430_v33 = vld [vmem:[%s13825_s18 + $0x1ecc] sm:$0xf0]  ;;  %v12153_v42 = vor.u32 %v13398_v28, %v12152_v25  ;;  %6898 = vmatpush.bf16.msrb.mxu3 %v12425_v27 }
 0x115   : > { %v12408_v35 = vld [vmem:[%s13825_s18 + $0x1fc0] sm:$0xf]  ;;  %v13462_v36 = vld [vmem:[%s13825_s18 + $0x1fcc] sm:$0xf0]  ;;  %v12281_v43 = vor.u32 %v13430_v33, %v12280_v30  ;;  %6860 = vmatpush.bf16.msrb.mxu0 %v12025_v41 }
 0x116   : > { %v1337_v37 = vld [vmem:[#allocation1 + $0x12] sm:$0xff]  ;;  %v1336_v39 = vld [vmem:[#allocation1 + $0x9] sm:$0xff]  ;;  %v1338_v40 = vld [vmem:[#allocation1 + $0x1b] sm:$0xff]  ;;  %v12409_v51 = vor.u32 %v13462_v36, %v12408_v35  ;;  %6873 = vmatpush.bf16.msrb.mxu1 %v12153_v42  ;;  %v6622_v35 = vadd.f32 %v6621_v24, %v6609_v19 }
 0x117   : > { %v12008_v44 = vld [vmem:[%s13825_s18 + $0x1ca0] sm:$0xf]  ;;  %v13362_v45 = vld [vmem:[%s13825_s18 + $0x1cac] sm:$0xf0]  ;;  %6841 = vmatmul.bf16.vlgmr.msra.gmra.mxu2 %v1337_v37  ;;  %6828 = vmatmul.bf16.vlgmr.msra.gmra.mxu1 %v1336_v39 }
 0x118   : > { %v12136_v50 = vld [vmem:[%s13825_s18 + $0x1da0] sm:$0xf]  ;;  %v13394_v52 = vld [vmem:[%s13825_s18 + $0x1dac] sm:$0xf0]  ;;  %6854 = vmatmul.bf16.vlgmr.msra.gmra.mxu3 %v1338_v40  ;;  %v12009_v56 = vor.u32 %v13362_v45, %v12008_v44  ;;  %6886 = vmatpush.bf16.msrb.mxu2 %v12281_v43 }
 0x119   : > { %v12264_v17 = vld [vmem:[%s13825_s18 + $0x1ea0] sm:$0xf]  ;;  %v13426_v53 = vld [vmem:[%s13825_s18 + $0x1eac] sm:$0xf0]  ;;  %v12137_v57 = vor.u32 %v13394_v52, %v12136_v50  ;;  %6899 = vmatpush.bf16.msrb.mxu3 %v12409_v51  ;;  %v6634_v52 = vpop.f32.mrf.mxu2 }
 0x11a   : > { %v12392_v54 = vld [vmem:[%s13825_s18 + $0x1fa0] sm:$0xf]  ;;  %v13458_v55 = vld [vmem:[%s13825_s18 + $0x1fac] sm:$0xf0]  ;;  %v12265_v58 = vor.u32 %v13426_v53, %v12264_v17  ;;  %6861 = vmatpush.bf16.msrb.mxu0 %v12009_v56  ;;  %v6647_v56 = vpop.f32.mrf.mxu3 }
 0x11b   : > { %v11992_v59 = vld [vmem:[%s13825_s18 + $0x1c80] sm:$0xf]  ;;  %v13358_v60 = vld [vmem:[%s13825_s18 + $0x1c8c] sm:$0xf0]  ;;  %v12393_v62 = vor.u32 %v13458_v55, %v12392_v54  ;;  %6874 = vmatpush.bf16.msrb.mxu1 %v12137_v57  ;;  %v6635_v55 = vadd.f32 %v6634_v52, %v6622_v35 }
 0x11c   : > { %v12120_v61 = vld [vmem:[%s13825_s18 + $0x1d80] sm:$0xf]  ;;  %v13390_v1 = vld [vmem:[%s13825_s18 + $0x1d8c] sm:$0xf0]  ;;  %v11993_v23 = vor.u32 %v13358_v60, %v11992_v59  ;;  %6887 = vmatpush.bf16.msrb.mxu2 %v12265_v58  ;;  %v6610_v59 = vpop.f32.mrf.mxu0 }
 0x11d   : > { %v12248_v2 = vld [vmem:[%s13825_s18 + $0x1e80] sm:$0xf]  ;;  %v13422_v6 = vld [vmem:[%s13825_s18 + $0x1e8c] sm:$0xf0]  ;;  %v12121_v25 = vor.u32 %v13390_v1, %v12120_v61  ;;  %6900 = vmatpush.bf16.msrb.mxu3 %v12393_v62  ;;  %v6623_v61 = vpop.f32.mrf.mxu1  ;;  %v14425_v62 = vadd.f32 %v6647_v56, %v6635_v55 }
 0x11e   : > { %v12376_v16 = vld [vmem:[%s13825_s18 + $0x1f80] sm:$0xf]  ;;  %v13454_v18 = vld [vmem:[%s13825_s18 + $0x1f8c] sm:$0xf0]  ;;  %v12249_v27 = vor.u32 %v13422_v6, %v12248_v2  ;;  %6862 = vmatpush.bf16.msrb.mxu0 %v11993_v23 }
 0x11f   : > { %v11976_v28 = vld [vmem:[%s13825_s18 + $0x1c60] sm:$0xf]  ;;  %v13354_v30 = vld [vmem:[%s13825_s18 + $0x1c6c] sm:$0xf0]  ;;  %v12377_v34 = vor.u32 %v13454_v18, %v12376_v16  ;;  %6875 = vmatpush.bf16.msrb.mxu1 %v12121_v25 }
 0x120   : > { %v12104_v33 = vld [vmem:[%s13825_s18 + $0x1d60] sm:$0xf]  ;;  %v13386_v36 = vld [vmem:[%s13825_s18 + $0x1d6c] sm:$0xf0]  ;;  %v11977_v41 = vor.u32 %v13354_v30, %v11976_v28  ;;  %6888 = vmatpush.bf16.msrb.mxu2 %v12249_v27 }
 0x121   : > { %v12232_v37 = vld [vmem:[%s13825_s18 + $0x1e60] sm:$0xf]  ;;  %v13418_v14 = vld [vmem:[%s13825_s18 + $0x1e6c] sm:$0xf0]  ;;  %v12105_v42 = vor.u32 %v13386_v36, %v12104_v33  ;;  %6901 = vmatpush.bf16.msrb.mxu3 %v12377_v34 }
 0x122   : > { %v12360_v39 = vld [vmem:[%s13825_s18 + $0x1f60] sm:$0xf]  ;;  %v13450_v40 = vld [vmem:[%s13825_s18 + $0x1f6c] sm:$0xf0]  ;;  %v12233_v43 = vor.u32 %v13418_v14, %v12232_v37  ;;  %6863 = vmatpush.bf16.msrb.mxu0 %v11977_v41 }
 0x123   : > { %v11960_v44 = vld [vmem:[%s13825_s18 + $0x1c40] sm:$0xf]  ;;  %v13350_v45 = vld [vmem:[%s13825_s18 + $0x1c4c] sm:$0xf0]  ;;  %v12361_v51 = vor.u32 %v13450_v40, %v12360_v39  ;;  %6876 = vmatpush.bf16.msrb.mxu1 %v12105_v42 }
 0x124   : > { %v12088_v50 = vld [vmem:[%s13825_s18 + $0x1d40] sm:$0xf]  ;;  %v13382_v17 = vld [vmem:[%s13825_s18 + $0x1d4c] sm:$0xf0]  ;;  %v11961_v60 = vor.u32 %v13350_v45, %v11960_v44  ;;  %6889 = vmatpush.bf16.msrb.mxu2 %v12233_v43  ;;  %v6636_v43 = vpop.f32.mrf.mxu2  ;;  %v12472_v44 = vld [vmem:[%s13825_s18 + $0xe4] sm:$0xf] }
 0x125   : > { %v12216_v53 = vld [vmem:[%s13825_s18 + $0x1e40] sm:$0xf]  ;;  %v13414_v54 = vld [vmem:[%s13825_s18 + $0x1e4c] sm:$0xf0]  ;;  %v12089_v1 = vor.u32 %v13382_v17, %v12088_v50  ;;  %6902 = vmatpush.bf16.msrb.mxu3 %v12361_v51  ;;  %v8458_v45 = vld [vmem:[%s13825_s18 + $0xf0] sm:$0xf0]  ;;  %v6649_v51 = vpop.f32.mrf.mxu3 }
 0x126   : > { %v12344_v57 = vld [vmem:[%s13825_s18 + $0x1f40] sm:$0xf]  ;;  %v13446_v58 = vld [vmem:[%s13825_s18 + $0x1f4c] sm:$0xf0]  ;;  %v12217_v2 = vor.u32 %v13414_v54, %v12216_v53  ;;  %6864 = vmatpush.bf16.msrb.mxu0 %v11961_v60  ;;  %v12504_v50 = vld [vmem:[%s13825_s18 + $0x1e4] sm:$0xf]  ;;  %v8461_v60 = vor.u32 %v12472_v44, %v8458_v45 }
 0x127   : > { %v11944_v6 = vld [vmem:[%s13825_s18 + $0x1c20] sm:$0xf]  ;;  %v13346_v7 = vld [vmem:[%s13825_s18 + $0x1c2c] sm:$0xf0]  ;;  %v12345_v18 = vor.u32 %v13446_v58, %v12344_v57  ;;  %6877 = vmatpush.bf16.msrb.mxu1 %v12089_v1  ;;  %v8586_v17 = vld [vmem:[%s13825_s18 + $0x1f0] sm:$0xf0] }
 0x128   : > { %v12072_v16 = vld [vmem:[%s13825_s18 + $0x1d20] sm:$0xf]  ;;  %v13378_v19 = vld [vmem:[%s13825_s18 + $0x1d2c] sm:$0xf0]  ;;  %v11945_v28 = vor.u32 %v13346_v7, %v11944_v6  ;;  %6890 = vmatpush.bf16.msrb.mxu2 %v12217_v2  ;;  %v12536_v53 = vld [vmem:[%s13825_s18 + $0x2e4] sm:$0xf]  ;;  %v8589_v61 = vor.u32 %v12504_v50, %v8586_v17 }
 0x129   : > { %v12200_v23 = vld [vmem:[%s13825_s18 + $0x1e20] sm:$0xf]  ;;  %v13410_v24 = vld [vmem:[%s13825_s18 + $0x1e2c] sm:$0xf0]  ;;  %v12073_v34 = vor.u32 %v13378_v19, %v12072_v16  ;;  %6903 = vmatpush.bf16.msrb.mxu3 %v12345_v18  ;;  %v8714_v54 = vld [vmem:[%s13825_s18 + $0x2f0] sm:$0xf0] }
 0x12a   : > { %v12328_v25 = vld [vmem:[%s13825_s18 + $0x1f20] sm:$0xf]  ;;  %v13442_v27 = vld [vmem:[%s13825_s18 + $0x1f2c] sm:$0xf0]  ;;  %v12201_v35 = vor.u32 %v13410_v24, %v12200_v23  ;;  %6865 = vmatpush.bf16.msrb.mxu0 %v11945_v28  ;;  %v12568_v57 = vld [vmem:[%s13825_s18 + $0x3e4] sm:$0xf]  ;;  %v8717_v1 = vor.u32 %v12536_v53, %v8714_v54 }
 0x12b   : > { %v11928_v30 = vld [vmem:[%s13825_s18 + $0x1c00] sm:$0xf]  ;;  %v13342_v33 = vld [vmem:[%s13825_s18 + $0x1c0c] sm:$0xf0]  ;;  %v12329_v39 = vor.u32 %v13442_v27, %v12328_v25  ;;  %6878 = vmatpush.bf16.msrb.mxu1 %v12073_v34  ;;  %v8842_v58 = vld [vmem:[%s13825_s18 + $0x3f0] sm:$0xf0] }
 0x12c   : > { %v12056_v36 = vld [vmem:[%s13825_s18 + $0x1d00] sm:$0xf]  ;;  %v13374_v37 = vld [vmem:[%s13825_s18 + $0x1d0c] sm:$0xf0]  ;;  %v11929_v52 = vor.u32 %v13342_v33, %v11928_v30  ;;  %6891 = vmatpush.bf16.msrb.mxu2 %v12201_v35  ;;  %v12468_v2 = vld [vmem:[%s13825_s18 + $0xc4] sm:$0xf]  ;;  %v8845_v16 = vor.u32 %v12568_v57, %v8842_v58 }
 0x12d   : > { %v12184_v14 = vld [vmem:[%s13825_s18 + $0x1e00] sm:$0xf]  ;;  %v13406_v40 = vld [vmem:[%s13825_s18 + $0x1e0c] sm:$0xf0]  ;;  %v12057_v55 = vor.u32 %v13374_v37, %v12056_v36  ;;  %6904 = vmatpush.bf16.msrb.mxu3 %v12329_v39  ;;  %v8442_v6 = vld [vmem:[%s13825_s18 + $0xd0] sm:$0xf0] }
 0x12e   : > { %v12312_v41 = vld [vmem:[%s13825_s18 + $0x1f00] sm:$0xf]  ;;  %v13438_v42 = vld [vmem:[%s13825_s18 + $0x1f0c] sm:$0xf0]  ;;  %v12185_v56 = vor.u32 %v13406_v40, %v12184_v14  ;;  %v12500_v7 = vld [vmem:[%s13825_s18 + $0x1c4] sm:$0xf]  ;;  %6866 = vmatpush.bf16.msrb.mxu0 %v11929_v52  ;;  %v8445_v34 = vor.u32 %v12468_v2, %v8442_v6  ;;  %v6673_v6 = vpop.f32.mrf.mxu1 }
 0x12f   : > { %v12313_v59 = vor.u32 %v13438_v42, %v12312_v41  ;;  %v8570_v18 = vld [vmem:[%s13825_s18 + $0x1d0] sm:$0xf0]  ;;  %v12532_v19 = vld [vmem:[%s13825_s18 + $0x2c4] sm:$0xf]  ;;  %6879 = vmatpush.bf16.msrb.mxu1 %v12057_v55  ;;  %v1339_v24 = vld [vmem:[#allocation1 + $0x24] sm:$0xff] }
 0x130   : > { %v8698_v23 = vld [vmem:[%s13825_s18 + $0x2d0] sm:$0xf0]  ;;  %6892 = vmatpush.bf16.msrb.mxu2 %v12185_v56  ;;  %v12564_v25 = vld [vmem:[%s13825_s18 + $0x3c4] sm:$0xf]  ;;  %v8573_v35 = vor.u32 %v12500_v7, %v8570_v18 }
 0x131   : > { %v8826_v27 = vld [vmem:[%s13825_s18 + $0x3d0] sm:$0xf0]  ;;  %6905 = vmatpush.bf16.msrb.mxu3 %v12313_v59  ;;  %v1340_v30 = vld [vmem:[#allocation1 + $0x2d] sm:$0xff]  ;;  %v8701_v36 = vor.u32 %v12532_v19, %v8698_v23  ;;  %6867 = vmatmul.bf16.vlgmr.msrb.gmra.mxu0 %v1339_v24  ;;  %v6660_v59 = vpop.f32.mrf.mxu0 }
 0x132   : > { %6911 = vmatpush.bf16.msra.mxu0 %v8461_v60  ;;  %v1341_v28 = vld [vmem:[#allocation1 + $0x36] sm:$0xff]  ;;  %v1342_v33 = vld [vmem:[#allocation1 + $0x3f] sm:$0xff]  ;;  %v12464_v37 = vld [vmem:[%s13825_s18 + $0xa4] sm:$0xf]  ;;  %v8829_v40 = vor.u32 %v12564_v25, %v8826_v27  ;;  %6880 = vmatmul.bf16.vlgmr.msrb.gmra.mxu1 %v1340_v30 }
 0x133   : > { %6924 = vmatpush.bf16.msra.mxu1 %v8589_v61  ;;  %v8426_v14 = vld [vmem:[%s13825_s18 + $0xb0] sm:$0xf0]  ;;  %v12496_v39 = vld [vmem:[%s13825_s18 + $0x1a4] sm:$0xf]  ;;  %6893 = vmatmul.bf16.vlgmr.msrb.gmra.mxu2 %v1341_v28 }
 0x134   : > { %6937 = vmatpush.bf16.msra.mxu2 %v8717_v1  ;;  %v8554_v41 = vld [vmem:[%s13825_s18 + $0x1b0] sm:$0xf0]  ;;  %v12528_v42 = vld [vmem:[%s13825_s18 + $0x2a4] sm:$0xf]  ;;  %6906 = vmatmul.bf16.vlgmr.msrb.gmra.mxu3 %v1342_v33  ;;  %v8429_v50 = vor.u32 %v12464_v37, %v8426_v14  ;;  %v6661_v1 = vadd.f32 %v6660_v59, %v14425_v62 }
 0x135   : > { %6950 = vmatpush.bf16.msra.mxu3 %v8845_v16  ;;  %v8682_v43 = vld [vmem:[%s13825_s18 + $0x2b0] sm:$0xf0]  ;;  %v12560_v44 = vld [vmem:[%s13825_s18 + $0x3a4] sm:$0xf]  ;;  %v8557_v51 = vor.u32 %v12496_v39, %v8554_v41  ;;  %v6686_v41 = vpop.f32.mrf.mxu2 }
 0x136   : > { %v8810_v45 = vld [vmem:[%s13825_s18 + $0x3b0] sm:$0xf0]  ;;  %6912 = vmatpush.bf16.msra.mxu0 %v8445_v34  ;;  %v8685_v52 = vor.u32 %v12528_v42, %v8682_v43  ;;  %v12460_v17 = vld [vmem:[%s13825_s18 + $0x84] sm:$0xf]  ;;  %v6674_v25 = vadd.f32 %v6673_v6, %v6661_v1 }
 0x137   : > { %6925 = vmatpush.bf16.msra.mxu1 %v8573_v35  ;;  %v8410_v53 = vld [vmem:[%s13825_s18 + $0x90] sm:$0xf0]  ;;  %v12492_v54 = vld [vmem:[%s13825_s18 + $0x184] sm:$0xf]  ;;  %v8813_v55 = vor.u32 %v12560_v44, %v8810_v45 }
 0x138   : > { %6938 = vmatpush.bf16.msra.mxu2 %v8701_v36  ;;  %v8538_v56 = vld [vmem:[%s13825_s18 + $0x190] sm:$0xf0]  ;;  %v12524_v57 = vld [vmem:[%s13825_s18 + $0x284] sm:$0xf]  ;;  %v8413_v2 = vor.u32 %v12460_v17, %v8410_v53  ;;  %v6687_v45 = vadd.f32 %v6686_v41, %v6674_v25 }
 0x139   : > { %6951 = vmatpush.bf16.msra.mxu3 %v8829_v40  ;;  %v8666_v58 = vld [vmem:[%s13825_s18 + $0x290] sm:$0xf0]  ;;  %v12556_v60 = vld [vmem:[%s13825_s18 + $0x384] sm:$0xf]  ;;  %v8541_v7 = vor.u32 %v12492_v54, %v8538_v56  ;;  %v6662_v17 = vpop.f32.mrf.mxu0  ;;  %v6675_v54 = vpop.f32.mrf.mxu1 }
 0x13a   : > { %v8794_v61 = vld [vmem:[%s13825_s18 + $0x390] sm:$0xf0]  ;;  %6913 = vmatpush.bf16.msra.mxu0 %v8429_v50  ;;  %v8669_v16 = vor.u32 %v12524_v57, %v8666_v58  ;;  %v12456_v18 = vld [vmem:[%s13825_s18 + $0x64] sm:$0xf]  ;;  %v6699_v50 = vpop.f32.mrf.mxu3 }
 0x13b   : > { %6926 = vmatpush.bf16.msra.mxu1 %v8557_v51  ;;  %v8394_v19 = vld [vmem:[%s13825_s18 + $0x70] sm:$0xf0]  ;;  %v12488_v23 = vld [vmem:[%s13825_s18 + $0x164] sm:$0xf]  ;;  %v8797_v24 = vor.u32 %v12556_v60, %v8794_v61 }
 0x13c   : > { %6939 = vmatpush.bf16.msra.mxu2 %v8685_v52  ;;  %v8522_v27 = vld [vmem:[%s13825_s18 + $0x170] sm:$0xf0]  ;;  %v12520_v28 = vld [vmem:[%s13825_s18 + $0x264] sm:$0xf]  ;;  %v8397_v34 = vor.u32 %v12456_v18, %v8394_v19 }
 0x13d   : > { %6952 = vmatpush.bf16.msra.mxu3 %v8813_v55  ;;  %v8650_v62 = vld [vmem:[%s13825_s18 + $0x270] sm:$0xf0]  ;;  %v12552_v30 = vld [vmem:[%s13825_s18 + $0x364] sm:$0xf]  ;;  %v8525_v35 = vor.u32 %v12488_v23, %v8522_v27  ;;  %v14492_v55 = vadd.f32 %v6699_v50, %v6687_v45 }
 0x13e   : > { %v8778_v33 = vld [vmem:[%s13825_s18 + $0x370] sm:$0xf0]  ;;  %6914 = vmatpush.bf16.msra.mxu0 %v8413_v2  ;;  %v8653_v36 = vor.u32 %v12520_v28, %v8650_v62  ;;  %v12452_v37 = vld [vmem:[%s13825_s18 + $0x44] sm:$0xf] }
 0x13f   : > { %6927 = vmatpush.bf16.msra.mxu1 %v8541_v7  ;;  %v8378_v14 = vld [vmem:[%s13825_s18 + $0x50] sm:$0xf0]  ;;  %v12484_v39 = vld [vmem:[%s13825_s18 + $0x144] sm:$0xf]  ;;  %v8781_v40 = vor.u32 %v12552_v30, %v8778_v33 }
 0x140   : > { %6940 = vmatpush.bf16.msra.mxu2 %v8669_v16  ;;  %v8506_v42 = vld [vmem:[%s13825_s18 + $0x150] sm:$0xf0]  ;;  %v12516_v43 = vld [vmem:[%s13825_s18 + $0x244] sm:$0xf]  ;;  %v8381_v53 = vor.u32 %v12452_v37, %v8378_v14 }
 0x141   : > { %6953 = vmatpush.bf16.msra.mxu3 %v8797_v24  ;;  %v8634_v44 = vld [vmem:[%s13825_s18 + $0x250] sm:$0xf0]  ;;  %v12548_v51 = vld [vmem:[%s13825_s18 + $0x344] sm:$0xf]  ;;  %v8509_v56 = vor.u32 %v12484_v39, %v8506_v42 }
 0x142   : > { %v8762_v52 = vld [vmem:[%s13825_s18 + $0x350] sm:$0xf0]  ;;  %6915 = vmatpush.bf16.msra.mxu0 %v8397_v34  ;;  %v8637_v57 = vor.u32 %v12516_v43, %v8634_v44  ;;  %v12448_v58 = vld [vmem:[%s13825_s18 + $0x24] sm:$0xf] }
 0x143   : > { %6928 = vmatpush.bf16.msra.mxu1 %v8525_v35  ;;  %v8362_v59 = vld [vmem:[%s13825_s18 + $0x30] sm:$0xf0]  ;;  %v12480_v60 = vld [vmem:[%s13825_s18 + $0x124] sm:$0xf]  ;;  %v8765_v61 = vor.u32 %v12548_v51, %v8762_v52 }
 0x144   : > { %6941 = vmatpush.bf16.msra.mxu2 %v8653_v36  ;;  %v8490_v1 = vld [vmem:[%s13825_s18 + $0x130] sm:$0xf0]  ;;  %v12512_v2 = vld [vmem:[%s13825_s18 + $0x224] sm:$0xf]  ;;  %v8365_v18 = vor.u32 %v12448_v58, %v8362_v59  ;;  %v6688_v36 = vpop.f32.mrf.mxu2 }
 0x145   : > { %6954 = vmatpush.bf16.msra.mxu3 %v8781_v40  ;;  %v8618_v6 = vld [vmem:[%s13825_s18 + $0x230] sm:$0xf0]  ;;  %v12544_v7 = vld [vmem:[%s13825_s18 + $0x324] sm:$0xf]  ;;  %v8493_v24 = vor.u32 %v12480_v60, %v8490_v1  ;;  %v6701_v40 = vpop.f32.mrf.mxu3 }
 0x146   : > { %v8746_v16 = vld [vmem:[%s13825_s18 + $0x330] sm:$0xf0]  ;;  %6916 = vmatpush.bf16.msra.mxu0 %v8381_v53  ;;  %v12444_v19 = vld [vmem:[%s13825_s18 + $0x4] sm:$0xf]  ;;  %v8621_v25 = vor.u32 %v12512_v2, %v8618_v6 }
 0x147   : > { %v8346_v23 = vld [vmem:[%s13825_s18 + $0x10] sm:$0xf0]  ;;  %6929 = vmatpush.bf16.msra.mxu1 %v8509_v56  ;;  %v12476_v27 = vld [vmem:[%s13825_s18 + $0x104] sm:$0xf]  ;;  %v8749_v30 = vor.u32 %v12544_v7, %v8746_v16 }
 0x148   : > { %6942 = vmatpush.bf16.msra.mxu2 %v8637_v57  ;;  %v8474_v28 = vld [vmem:[%s13825_s18 + $0x110] sm:$0xf0]  ;;  %v12508_v62 = vld [vmem:[%s13825_s18 + $0x204] sm:$0xf]  ;;  %v8349_v41 = vor.u32 %v12444_v19, %v8346_v23 }
 0x149   : > { %6955 = vmatpush.bf16.msra.mxu3 %v8765_v61  ;;  %v8602_v33 = vld [vmem:[%s13825_s18 + $0x210] sm:$0xf0]  ;;  %v12540_v34 = vld [vmem:[%s13825_s18 + $0x304] sm:$0xf]  ;;  %v8477_v45 = vor.u32 %v12476_v27, %v8474_v28 }
 0x14a   : > { %v8730_v35 = vld [vmem:[%s13825_s18 + $0x310] sm:$0xf0]  ;;  %v12600_v37 = vld [vmem:[%s13825_s18 + $0x4e4] sm:$0xf]  ;;  %6917 = vmatpush.bf16.msra.mxu0 %v8365_v18  ;;  %v8605_v50 = vor.u32 %v12508_v62, %v8602_v33 }
 0x14b   : > { %v8970_v14 = vld [vmem:[%s13825_s18 + $0x4f0] sm:$0xf0]  ;;  %v12632_v39 = vld [vmem:[%s13825_s18 + $0x5e4] sm:$0xf]  ;;  %6930 = vmatpush.bf16.msra.mxu1 %v8493_v24  ;;  %v8733_v17 = vor.u32 %v12540_v34, %v8730_v35 }
 0x14c   : > { %v9098_v42 = vld [vmem:[%s13825_s18 + $0x5f0] sm:$0xf0]  ;;  %v12664_v43 = vld [vmem:[%s13825_s18 + $0x6e4] sm:$0xf]  ;;  %6943 = vmatpush.bf16.msra.mxu2 %v8621_v25  ;;  %v8973_v53 = vor.u32 %v12600_v37, %v8970_v14 }
 0x14d   : > { %v9226_v44 = vld [vmem:[%s13825_s18 + $0x6f0] sm:$0xf0]  ;;  %v12696_v51 = vld [vmem:[%s13825_s18 + $0x7e4] sm:$0xf]  ;;  %6956 = vmatpush.bf16.msra.mxu3 %v8749_v30  ;;  %v9101_v54 = vor.u32 %v12632_v39, %v9098_v42 }
 0x14e   : > { %v9354_v52 = vld [vmem:[%s13825_s18 + $0x7f0] sm:$0xf0]  ;;  %v9229_v56 = vor.u32 %v12664_v43, %v9226_v44  ;;  %v12596_v57 = vld [vmem:[%s13825_s18 + $0x4c4] sm:$0xf]  ;;  %6918 = vmatpush.bf16.msra.mxu0 %v8349_v41 }
 0x14f   : > { %v8954_v58 = vld [vmem:[%s13825_s18 + $0x4d0] sm:$0xf0]  ;;  %v12628_v59 = vld [vmem:[%s13825_s18 + $0x5c4] sm:$0xf]  ;;  %v9357_v60 = vor.u32 %v12696_v51, %v9354_v52  ;;  %6931 = vmatpush.bf16.msra.mxu1 %v8477_v45  ;;  %v6712_v45 = vpop.f32.mrf.mxu0 }
 0x150   : > { %v9082_v61 = vld [vmem:[%s13825_s18 + $0x5d0] sm:$0xf0]  ;;  %v12660_v1 = vld [vmem:[%s13825_s18 + $0x6c4] sm:$0xf]  ;;  %6944 = vmatpush.bf16.msra.mxu2 %v8605_v50  ;;  %v8957_v16 = vor.u32 %v12596_v57, %v8954_v58  ;;  %v6713_v52 = vadd.f32 %v6712_v45, %v14492_v55 }
 0x151   : > { %v9210_v2 = vld [vmem:[%s13825_s18 + $0x6d0] sm:$0xf0]  ;;  %v12692_v6 = vld [vmem:[%s13825_s18 + $0x7c4] sm:$0xf]  ;;  %6957 = vmatpush.bf16.msra.mxu3 %v8733_v17  ;;  %v9085_v18 = vor.u32 %v12628_v59, %v9082_v61  ;;  %6919 = vmatmul.bf16.vlgmr.msra.gmra.mxu0 %v13944_v21 }
 0x152   : > { %v9338_v7 = vld [vmem:[%s13825_s18 + $0x7d0] sm:$0xf0]  ;;  %6963 = vmatpush.bf16.msrb.mxu0 %v8973_v53  ;;  %v9213_v19 = vor.u32 %v12660_v1, %v9210_v2  ;;  %v12592_v23 = vld [vmem:[%s13825_s18 + $0x4a4] sm:$0xf]  ;;  %6932 = vmatmul.bf16.vlgmr.msra.gmra.mxu1 %v13951_v26  ;;  %v6725_v53 = vpop.f32.mrf.mxu1 }
 0x153   : > { %6976 = vmatpush.bf16.msrb.mxu1 %v9101_v54  ;;  %v8938_v24 = vld [vmem:[%s13825_s18 + $0x4b0] sm:$0xf0]  ;;  %v12624_v25 = vld [vmem:[%s13825_s18 + $0x5a4] sm:$0xf]  ;;  %v9341_v27 = vor.u32 %v12692_v6, %v9338_v7  ;;  %6945 = vmatmul.bf16.vlgmr.msra.gmra.mxu2 %v13942_v20  ;;  %v6726_v61 = vadd.f32 %v6725_v53, %v6713_v52 }
 0x154   : > { %6989 = vmatpush.bf16.msrb.mxu2 %v9229_v56  ;;  %v9066_v28 = vld [vmem:[%s13825_s18 + $0x5b0] sm:$0xf0]  ;;  %v12656_v62 = vld [vmem:[%s13825_s18 + $0x6a4] sm:$0xf]  ;;  %6958 = vmatmul.bf16.vlgmr.msra.gmra.mxu3 %v13946_v22  ;;  %v8941_v35 = vor.u32 %v12592_v23, %v8938_v24 }
 0x155   : > { %7002 = vmatpush.bf16.msrb.mxu3 %v9357_v60  ;;  %v9194_v30 = vld [vmem:[%s13825_s18 + $0x6b0] sm:$0xf0]  ;;  %v12688_v33 = vld [vmem:[%s13825_s18 + $0x7a4] sm:$0xf]  ;;  %v9069_v36 = vor.u32 %v12624_v25, %v9066_v28 }
 0x156   : > { %v9322_v34 = vld [vmem:[%s13825_s18 + $0x7b0] sm:$0xf0]  ;;  %6964 = vmatpush.bf16.msrb.mxu0 %v8957_v16  ;;  %v9197_v37 = vor.u32 %v12656_v62, %v9194_v30  ;;  %v12588_v14 = vld [vmem:[%s13825_s18 + $0x484] sm:$0xf] }
 0x157   : > { %6977 = vmatpush.bf16.msrb.mxu1 %v9085_v18  ;;  %v8922_v39 = vld [vmem:[%s13825_s18 + $0x490] sm:$0xf0]  ;;  %v12620_v40 = vld [vmem:[%s13825_s18 + $0x584] sm:$0xf]  ;;  %v9325_v41 = vor.u32 %v12688_v33, %v9322_v34  ;;  %v6738_v28 = vpop.f32.mrf.mxu2 }
 0x158   : > { %6990 = vmatpush.bf16.msrb.mxu2 %v9213_v19  ;;  %v9050_v42 = vld [vmem:[%s13825_s18 + $0x590] sm:$0xf0]  ;;  %v12652_v43 = vld [vmem:[%s13825_s18 + $0x684] sm:$0xf]  ;;  %v8925_v17 = vor.u32 %v12588_v14, %v8922_v39  ;;  %v6739_v34 = vadd.f32 %v6738_v28, %v6726_v61  ;;  %v6714_v14 = vpop.f32.mrf.mxu0 }
 0x159   : > { %7003 = vmatpush.bf16.msrb.mxu3 %v9341_v27  ;;  %v9178_v44 = vld [vmem:[%s13825_s18 + $0x690] sm:$0xf0]  ;;  %v12684_v50 = vld [vmem:[%s13825_s18 + $0x784] sm:$0xf]  ;;  %v9053_v54 = vor.u32 %v12620_v40, %v9050_v42 }
 0x15a   : > { %v9306_v51 = vld [vmem:[%s13825_s18 + $0x790] sm:$0xf0]  ;;  %6965 = vmatpush.bf16.msrb.mxu0 %v8941_v35  ;;  %v9181_v56 = vor.u32 %v12652_v43, %v9178_v44  ;;  %v12584_v57 = vld [vmem:[%s13825_s18 + $0x464] sm:$0xf]  ;;  %v6751_v35 = vpop.f32.mrf.mxu3  ;;  %v6727_v40 = vpop.f32.mrf.mxu1 }
 0x15b   : > { %6978 = vmatpush.bf16.msrb.mxu1 %v9069_v36  ;;  %v8906_v58 = vld [vmem:[%s13825_s18 + $0x470] sm:$0xf0]  ;;  %v12616_v59 = vld [vmem:[%s13825_s18 + $0x564] sm:$0xf]  ;;  %v9309_v60 = vor.u32 %v12684_v50, %v9306_v51 }
 0x15c   : > { %6991 = vmatpush.bf16.msrb.mxu2 %v9197_v37  ;;  %v9034_v1 = vld [vmem:[%s13825_s18 + $0x570] sm:$0xf0]  ;;  %v12648_v2 = vld [vmem:[%s13825_s18 + $0x664] sm:$0xf]  ;;  %v8909_v16 = vor.u32 %v12584_v57, %v8906_v58 }
 0x15d   : > { %7004 = vmatpush.bf16.msrb.mxu3 %v9325_v41  ;;  %v9162_v55 = vld [vmem:[%s13825_s18 + $0x670] sm:$0xf0]  ;;  %v12680_v6 = vld [vmem:[%s13825_s18 + $0x764] sm:$0xf]  ;;  %v9037_v18 = vor.u32 %v12616_v59, %v9034_v1  ;;  %v14563_v41 = vadd.f32 %v6751_v35, %v6739_v34 }
 0x15e   : > { %v9290_v7 = vld [vmem:[%s13825_s18 + $0x770] sm:$0xf0]  ;;  %6966 = vmatpush.bf16.msrb.mxu0 %v8925_v17  ;;  %v9165_v19 = vor.u32 %v12648_v2, %v9162_v55  ;;  %v12580_v23 = vld [vmem:[%s13825_s18 + $0x444] sm:$0xf] }
 0x15f   : > { %6979 = vmatpush.bf16.msrb.mxu1 %v9053_v54  ;;  %v8890_v24 = vld [vmem:[%s13825_s18 + $0x450] sm:$0xf0]  ;;  %v12612_v25 = vld [vmem:[%s13825_s18 + $0x544] sm:$0xf]  ;;  %v9293_v27 = vor.u32 %v12680_v6, %v9290_v7 }
 0x160   : > { %6992 = vmatpush.bf16.msrb.mxu2 %v9181_v56  ;;  %v9018_v62 = vld [vmem:[%s13825_s18 + $0x550] sm:$0xf0]  ;;  %v12644_v30 = vld [vmem:[%s13825_s18 + $0x644] sm:$0xf]  ;;  %v8893_v39 = vor.u32 %v12580_v23, %v8890_v24 }
 0x161   : > { %7005 = vmatpush.bf16.msrb.mxu3 %v9309_v60  ;;  %v9146_v33 = vld [vmem:[%s13825_s18 + $0x650] sm:$0xf0]  ;;  %v12676_v36 = vld [vmem:[%s13825_s18 + $0x744] sm:$0xf]  ;;  %v9021_v42 = vor.u32 %v12612_v25, %v9018_v62 }
 0x162   : > { %v9274_v37 = vld [vmem:[%s13825_s18 + $0x750] sm:$0xf0]  ;;  %6967 = vmatpush.bf16.msrb.mxu0 %v8909_v16  ;;  %v9149_v43 = vor.u32 %v12644_v30, %v9146_v33  ;;  %v12576_v44 = vld [vmem:[%s13825_s18 + $0x424] sm:$0xf] }
 0x163   : > { %6980 = vmatpush.bf16.msrb.mxu1 %v9037_v18  ;;  %v8874_v45 = vld [vmem:[%s13825_s18 + $0x430] sm:$0xf0]  ;;  %v12608_v50 = vld [vmem:[%s13825_s18 + $0x524] sm:$0xf]  ;;  %v9277_v51 = vor.u32 %v12676_v36, %v9274_v37 }
 0x164   : > { %6993 = vmatpush.bf16.msrb.mxu2 %v9165_v19  ;;  %v9002_v52 = vld [vmem:[%s13825_s18 + $0x530] sm:$0xf0]  ;;  %v12640_v17 = vld [vmem:[%s13825_s18 + $0x624] sm:$0xf]  ;;  %v8877_v57 = vor.u32 %v12576_v44, %v8874_v45  ;;  %v6740_v19 = vpop.f32.mrf.mxu2 }
 0x165   : > { %7006 = vmatpush.bf16.msrb.mxu3 %v9293_v27  ;;  %v9130_v53 = vld [vmem:[%s13825_s18 + $0x630] sm:$0xf0]  ;;  %v12672_v54 = vld [vmem:[%s13825_s18 + $0x724] sm:$0xf]  ;;  %v9005_v60 = vor.u32 %v12608_v50, %v9002_v52  ;;  %v6753_v27 = vpop.f32.mrf.mxu3 }
 0x166   : > { %v9258_v56 = vld [vmem:[%s13825_s18 + $0x730] sm:$0xf0]  ;;  %6968 = vmatpush.bf16.msrb.mxu0 %v8893_v39  ;;  %v12572_v58 = vld [vmem:[%s13825_s18 + $0x404] sm:$0xf]  ;;  %v9133_v61 = vor.u32 %v12640_v17, %v9130_v53 }
 0x167   : > { %v8858_v59 = vld [vmem:[%s13825_s18 + $0x410] sm:$0xf0]  ;;  %6981 = vmatpush.bf16.msrb.mxu1 %v9021_v42  ;;  %v12604_v1 = vld [vmem:[%s13825_s18 + $0x504] sm:$0xf]  ;;  %v9261_v6 = vor.u32 %v12672_v54, %v9258_v56 }
 0x168   : > { %6994 = vmatpush.bf16.msrb.mxu2 %v9149_v43  ;;  %v8986_v2 = vld [vmem:[%s13825_s18 + $0x510] sm:$0xf0]  ;;  %v12636_v55 = vld [vmem:[%s13825_s18 + $0x604] sm:$0xf]  ;;  %v8861_v28 = vor.u32 %v12572_v58, %v8858_v59 }
 0x169   : > { %7007 = vmatpush.bf16.msrb.mxu3 %v9277_v51  ;;  %v9114_v7 = vld [vmem:[%s13825_s18 + $0x610] sm:$0xf0]  ;;  %v12668_v16 = vld [vmem:[%s13825_s18 + $0x704] sm:$0xf]  ;;  %v8989_v34 = vor.u32 %v12604_v1, %v8986_v2 }
 0x16a   : > { %v9242_v18 = vld [vmem:[%s13825_s18 + $0x710] sm:$0xf0]  ;;  %v12728_v23 = vld [vmem:[%s13825_s18 + $0x8e4] sm:$0xf]  ;;  %6969 = vmatpush.bf16.msrb.mxu0 %v8877_v57  ;;  %v9117_v35 = vor.u32 %v12636_v55, %v9114_v7 }
 0x16b   : > { %v9482_v24 = vld [vmem:[%s13825_s18 + $0x8f0] sm:$0xf0]  ;;  %v12760_v25 = vld [vmem:[%s13825_s18 + $0x9e4] sm:$0xf]  ;;  %6982 = vmatpush.bf16.msrb.mxu1 %v9005_v60  ;;  %v9245_v14 = vor.u32 %v12668_v16, %v9242_v18 }
 0x16c   : > { %v9610_v62 = vld [vmem:[%s13825_s18 + $0x9f0] sm:$0xf0]  ;;  %v12792_v30 = vld [vmem:[%s13825_s18 + $0xae4] sm:$0xf]  ;;  %6995 = vmatpush.bf16.msrb.mxu2 %v9133_v61  ;;  %v9485_v39 = vor.u32 %v12728_v23, %v9482_v24 }
 0x16d   : > { %v9738_v33 = vld [vmem:[%s13825_s18 + $0xaf0] sm:$0xf0]  ;;  %v12824_v36 = vld [vmem:[%s13825_s18 + $0xbe4] sm:$0xf]  ;;  %7008 = vmatpush.bf16.msrb.mxu3 %v9261_v6  ;;  %v9613_v40 = vor.u32 %v12760_v25, %v9610_v62 }
 0x16e   : > { %v9866_v37 = vld [vmem:[%s13825_s18 + $0xbf0] sm:$0xf0]  ;;  %v9741_v42 = vor.u32 %v12792_v30, %v9738_v33  ;;  %v12724_v43 = vld [vmem:[%s13825_s18 + $0x8c4] sm:$0xf]  ;;  %6970 = vmatpush.bf16.msrb.mxu0 %v8861_v28 }
 0x16f   : > { %v9466_v44 = vld [vmem:[%s13825_s18 + $0x8d0] sm:$0xf0]  ;;  %v12756_v45 = vld [vmem:[%s13825_s18 + $0x9c4] sm:$0xf]  ;;  %v9869_v50 = vor.u32 %v12824_v36, %v9866_v37  ;;  %6983 = vmatpush.bf16.msrb.mxu1 %v8989_v34  ;;  %v6764_v34 = vpop.f32.mrf.mxu0 }
 0x170   : > { %v9594_v51 = vld [vmem:[%s13825_s18 + $0x9d0] sm:$0xf0]  ;;  %v12788_v52 = vld [vmem:[%s13825_s18 + $0xac4] sm:$0xf]  ;;  %6996 = vmatpush.bf16.msrb.mxu2 %v9117_v35  ;;  %v9469_v56 = vor.u32 %v12724_v43, %v9466_v44  ;;  %v6765_v37 = vadd.f32 %v6764_v34, %v14563_v41 }
 0x171   : > { %v9722_v17 = vld [vmem:[%s13825_s18 + $0xad0] sm:$0xf0]  ;;  %v12820_v53 = vld [vmem:[%s13825_s18 + $0xbc4] sm:$0xf]  ;;  %7009 = vmatpush.bf16.msrb.mxu3 %v9245_v14  ;;  %v9597_v57 = vor.u32 %v12756_v45, %v9594_v51  ;;  %6971 = vmatmul.bf16.vlgmr.msrb.gmra.mxu0 %v14000_v31 }
 0x172   : > { %v9850_v54 = vld [vmem:[%s13825_s18 + $0xbd0] sm:$0xf0]  ;;  %7015 = vmatpush.bf16.msra.mxu0 %v9485_v39  ;;  %v9725_v58 = vor.u32 %v12788_v52, %v9722_v17  ;;  %v12720_v59 = vld [vmem:[%s13825_s18 + $0x8a4] sm:$0xf]  ;;  %6984 = vmatmul.bf16.vlgmr.msrb.gmra.mxu1 %v14007_v38  ;;  %v6777_v39 = vpop.f32.mrf.mxu1 }
 0x173   : > { %7028 = vmatpush.bf16.msra.mxu1 %v9613_v40  ;;  %v9450_v60 = vld [vmem:[%s13825_s18 + $0x8b0] sm:$0xf0]  ;;  %v12752_v61 = vld [vmem:[%s13825_s18 + $0x9a4] sm:$0xf]  ;;  %v9853_v1 = vor.u32 %v12820_v53, %v9850_v54  ;;  %6997 = vmatmul.bf16.vlgmr.msrb.gmra.mxu2 %v13998_v29  ;;  %v6778_v51 = vadd.f32 %v6777_v39, %v6765_v37 }
 0x174   : > { %7041 = vmatpush.bf16.msra.mxu2 %v9741_v42  ;;  %v9578_v2 = vld [vmem:[%s13825_s18 + $0x9b0] sm:$0xf0]  ;;  %v12784_v55 = vld [vmem:[%s13825_s18 + $0xaa4] sm:$0xf]  ;;  %7010 = vmatmul.bf16.vlgmr.msrb.gmra.mxu3 %v14002_v32  ;;  %v9453_v18 = vor.u32 %v12720_v59, %v9450_v60 }
 0x175   : > { %7054 = vmatpush.bf16.msra.mxu3 %v9869_v50  ;;  %v9706_v6 = vld [vmem:[%s13825_s18 + $0xab0] sm:$0xf0]  ;;  %v12816_v7 = vld [vmem:[%s13825_s18 + $0xba4] sm:$0xf]  ;;  %v9581_v19 = vor.u32 %v12752_v61, %v9578_v2  ;;  %v6790_v2 = vpop.f32.mrf.mxu2 }
 0x176   : > { %v9834_v16 = vld [vmem:[%s13825_s18 + $0xbb0] sm:$0xf0]  ;;  %7016 = vmatpush.bf16.msra.mxu0 %v9469_v56  ;;  %v9709_v23 = vor.u32 %v12784_v55, %v9706_v6  ;;  %v12716_v24 = vld [vmem:[%s13825_s18 + $0x884] sm:$0xf] }
 0x177   : > { %7029 = vmatpush.bf16.msra.mxu1 %v9597_v57  ;;  %v9434_v25 = vld [vmem:[%s13825_s18 + $0x890] sm:$0xf0]  ;;  %v12748_v27 = vld [vmem:[%s13825_s18 + $0x984] sm:$0xf]  ;;  %v9837_v28 = vor.u32 %v12816_v7, %v9834_v16  ;;  %v6791_v16 = vadd.f32 %v6790_v2, %v6778_v51 }
 0x178   : > { %7042 = vmatpush.bf16.msra.mxu2 %v9725_v58  ;;  %v9562_v62 = vld [vmem:[%s13825_s18 + $0x990] sm:$0xf0]  ;;  %v12780_v30 = vld [vmem:[%s13825_s18 + $0xa84] sm:$0xf]  ;;  %v9437_v14 = vor.u32 %v12716_v24, %v9434_v25  ;;  %v6766_v24 = vpop.f32.mrf.mxu0 }
 0x179   : > { %7055 = vmatpush.bf16.msra.mxu3 %v9853_v1  ;;  %v9690_v33 = vld [vmem:[%s13825_s18 + $0xa90] sm:$0xf0]  ;;  %v12812_v35 = vld [vmem:[%s13825_s18 + $0xb84] sm:$0xf]  ;;  %v9565_v40 = vor.u32 %v12748_v27, %v9562_v62 }
 0x17a   : > { %v9818_v36 = vld [vmem:[%s13825_s18 + $0xb90] sm:$0xf0]  ;;  %7017 = vmatpush.bf16.msra.mxu0 %v9453_v18  ;;  %v9693_v42 = vor.u32 %v12780_v30, %v9690_v33  ;;  %v12712_v43 = vld [vmem:[%s13825_s18 + $0x864] sm:$0xf]  ;;  %v6803_v18 = vpop.f32.mrf.mxu3  ;;  %v6779_v27 = vpop.f32.mrf.mxu1 }
 0x17b   : > { %7030 = vmatpush.bf16.msra.mxu1 %v9581_v19  ;;  %v9418_v44 = vld [vmem:[%s13825_s18 + $0x870] sm:$0xf0]  ;;  %v12744_v45 = vld [vmem:[%s13825_s18 + $0x964] sm:$0xf]  ;;  %v9821_v50 = vor.u32 %v12812_v35, %v9818_v36 }
 0x17c   : > { %7043 = vmatpush.bf16.msra.mxu2 %v9709_v23  ;;  %v9546_v52 = vld [vmem:[%s13825_s18 + $0x970] sm:$0xf0]  ;;  %v12776_v17 = vld [vmem:[%s13825_s18 + $0xa64] sm:$0xf]  ;;  %v9421_v56 = vor.u32 %v12712_v43, %v9418_v44 }
 0x17d   : > { %7056 = vmatpush.bf16.msra.mxu3 %v9837_v28  ;;  %v9674_v41 = vld [vmem:[%s13825_s18 + $0xa70] sm:$0xf0]  ;;  %v12808_v53 = vld [vmem:[%s13825_s18 + $0xb64] sm:$0xf]  ;;  %v9549_v57 = vor.u32 %v12744_v45, %v9546_v52  ;;  %v14634_v28 = vadd.f32 %v6803_v18, %v6791_v16 }
 0x17e   : > { %v9802_v54 = vld [vmem:[%s13825_s18 + $0xb70] sm:$0xf0]  ;;  %7018 = vmatpush.bf16.msra.mxu0 %v9437_v14  ;;  %v9677_v58 = vor.u32 %v12776_v17, %v9674_v41  ;;  %v12708_v59 = vld [vmem:[%s13825_s18 + $0x844] sm:$0xf] }
 0x17f   : > { %7031 = vmatpush.bf16.msra.mxu1 %v9565_v40  ;;  %v9402_v60 = vld [vmem:[%s13825_s18 + $0x850] sm:$0xf0]  ;;  %v12740_v61 = vld [vmem:[%s13825_s18 + $0x944] sm:$0xf]  ;;  %v9805_v1 = vor.u32 %v12808_v53, %v9802_v54 }
 0x180   : > { %7044 = vmatpush.bf16.msra.mxu2 %v9693_v42  ;;  %v9530_v55 = vld [vmem:[%s13825_s18 + $0x950] sm:$0xf0]  ;;  %v12772_v6 = vld [vmem:[%s13825_s18 + $0xa44] sm:$0xf]  ;;  %v9405_v25 = vor.u32 %v12708_v59, %v9402_v60 }
 0x181   : > { %7057 = vmatpush.bf16.msra.mxu3 %v9821_v50  ;;  %v9658_v7 = vld [vmem:[%s13825_s18 + $0xa50] sm:$0xf0]  ;;  %v12804_v19 = vld [vmem:[%s13825_s18 + $0xb44] sm:$0xf]  ;;  %v9533_v62 = vor.u32 %v12740_v61, %v9530_v55 }
 0x182   : > { %v9786_v23 = vld [vmem:[%s13825_s18 + $0xb50] sm:$0xf0]  ;;  %7019 = vmatpush.bf16.msra.mxu0 %v9421_v56  ;;  %v9661_v30 = vor.u32 %v12772_v6, %v9658_v7  ;;  %v12704_v33 = vld [vmem:[%s13825_s18 + $0x824] sm:$0xf] }
 0x183   : > { %7032 = vmatpush.bf16.msra.mxu1 %v9549_v57  ;;  %v9386_v34 = vld [vmem:[%s13825_s18 + $0x830] sm:$0xf0]  ;;  %v12736_v35 = vld [vmem:[%s13825_s18 + $0x924] sm:$0xf]  ;;  %v9789_v36 = vor.u32 %v12804_v19, %v9786_v23 }
 0x184   : > { %7045 = vmatpush.bf16.msra.mxu2 %v9677_v58  ;;  %v9514_v37 = vld [vmem:[%s13825_s18 + $0x930] sm:$0xf0]  ;;  %v12768_v14 = vld [vmem:[%s13825_s18 + $0xa24] sm:$0xf]  ;;  %v9389_v43 = vor.u32 %v12704_v33, %v9386_v34  ;;  %v6792_v58 = vpop.f32.mrf.mxu2 }
 0x185   : > { %7058 = vmatpush.bf16.msra.mxu3 %v9805_v1  ;;  %v9642_v39 = vld [vmem:[%s13825_s18 + $0xa30] sm:$0xf0]  ;;  %v12800_v40 = vld [vmem:[%s13825_s18 + $0xb24] sm:$0xf]  ;;  %v9517_v50 = vor.u32 %v12736_v35, %v9514_v37  ;;  %v6805_v1 = vpop.f32.mrf.mxu3 }
 0x186   : > { %v9770_v42 = vld [vmem:[%s13825_s18 + $0xb30] sm:$0xf0]  ;;  %7020 = vmatpush.bf16.msra.mxu0 %v9405_v25  ;;  %v12700_v44 = vld [vmem:[%s13825_s18 + $0x804] sm:$0xf]  ;;  %v9645_v51 = vor.u32 %v12768_v14, %v9642_v39 }
 0x187   : > { %v9370_v45 = vld [vmem:[%s13825_s18 + $0x810] sm:$0xf0]  ;;  %7033 = vmatpush.bf16.msra.mxu1 %v9533_v62  ;;  %v12732_v52 = vld [vmem:[%s13825_s18 + $0x904] sm:$0xf]  ;;  %v9773_v53 = vor.u32 %v12800_v40, %v9770_v42 }
 0x188   : > { %7046 = vmatpush.bf16.msra.mxu2 %v9661_v30  ;;  %v9498_v17 = vld [vmem:[%s13825_s18 + $0x910] sm:$0xf0]  ;;  %v12764_v41 = vld [vmem:[%s13825_s18 + $0xa04] sm:$0xf]  ;;  %v9373_v2 = vor.u32 %v12700_v44, %v9370_v45 }
 0x189   : > { %7059 = vmatpush.bf16.msra.mxu3 %v9789_v36  ;;  %v9626_v54 = vld [vmem:[%s13825_s18 + $0xa10] sm:$0xf0]  ;;  %v12796_v56 = vld [vmem:[%s13825_s18 + $0xb04] sm:$0xf]  ;;  %v9501_v16 = vor.u32 %v12732_v52, %v9498_v17 }
 0x18a   : > { %v9754_v57 = vld [vmem:[%s13825_s18 + $0xb10] sm:$0xf0]  ;;  %v12856_v59 = vld [vmem:[%s13825_s18 + $0xce4] sm:$0xf]  ;;  %7021 = vmatpush.bf16.msra.mxu0 %v9389_v43  ;;  %v9629_v18 = vor.u32 %v12764_v41, %v9626_v54 }
 0x18b   : > { %v9994_v60 = vld [vmem:[%s13825_s18 + $0xcf0] sm:$0xf0]  ;;  %v12888_v61 = vld [vmem:[%s13825_s18 + $0xde4] sm:$0xf]  ;;  %7034 = vmatpush.bf16.msra.mxu1 %v9517_v50  ;;  %v9757_v24 = vor.u32 %v12796_v56, %v9754_v57 }
 0x18c   : > { %v10122_v55 = vld [vmem:[%s13825_s18 + $0xdf0] sm:$0xf0]  ;;  %v12920_v6 = vld [vmem:[%s13825_s18 + $0xee4] sm:$0xf]  ;;  %7047 = vmatpush.bf16.msra.mxu2 %v9645_v51  ;;  %v9997_v25 = vor.u32 %v12856_v59, %v9994_v60 }
 0x18d   : > { %v10250_v7 = vld [vmem:[%s13825_s18 + $0xef0] sm:$0xf0]  ;;  %v12952_v19 = vld [vmem:[%s13825_s18 + $0xfe4] sm:$0xf]  ;;  %7060 = vmatpush.bf16.msra.mxu3 %v9773_v53  ;;  %v10125_v27 = vor.u32 %v12888_v61, %v10122_v55 }
 0x18e   : > { %v10378_v23 = vld [vmem:[%s13825_s18 + $0xff0] sm:$0xf0]  ;;  %v10253_v62 = vor.u32 %v12920_v6, %v10250_v7  ;;  %v12852_v30 = vld [vmem:[%s13825_s18 + $0xcc4] sm:$0xf]  ;;  %7022 = vmatpush.bf16.msra.mxu0 %v9373_v2 }
 0x18f   : > { %v9978_v33 = vld [vmem:[%s13825_s18 + $0xcd0] sm:$0xf0]  ;;  %v12884_v34 = vld [vmem:[%s13825_s18 + $0xdc4] sm:$0xf]  ;;  %v10381_v35 = vor.u32 %v12952_v19, %v10378_v23  ;;  %7035 = vmatpush.bf16.msra.mxu1 %v9501_v16  ;;  %v6816_v16 = vpop.f32.mrf.mxu0 }
 0x190   : > { %v10106_v36 = vld [vmem:[%s13825_s18 + $0xdd0] sm:$0xf0]  ;;  %v12916_v37 = vld [vmem:[%s13825_s18 + $0xec4] sm:$0xf]  ;;  %7048 = vmatpush.bf16.msra.mxu2 %v9629_v18  ;;  %v9981_v42 = vor.u32 %v12852_v30, %v9978_v33  ;;  %v6817_v23 = vadd.f32 %v6816_v16, %v14634_v28 }
 0x191   : > { %v10234_v14 = vld [vmem:[%s13825_s18 + $0xed0] sm:$0xf0]  ;;  %v12948_v39 = vld [vmem:[%s13825_s18 + $0xfc4] sm:$0xf]  ;;  %7061 = vmatpush.bf16.msra.mxu3 %v9757_v24  ;;  %v10109_v43 = vor.u32 %v12884_v34, %v10106_v36  ;;  %7023 = vmatmul.bf16.vlgmr.msra.gmra.mxu0 %v14075_v8 }
 0x192   : > { %v10362_v40 = vld [vmem:[%s13825_s18 + $0xfd0] sm:$0xf0]  ;;  %7067 = vmatpush.bf16.msrb.mxu0 %v9997_v25  ;;  %v10237_v44 = vor.u32 %v12916_v37, %v10234_v14  ;;  %v12848_v45 = vld [vmem:[%s13825_s18 + $0xca4] sm:$0xf]  ;;  %7036 = vmatmul.bf16.vlgmr.msra.gmra.mxu1 %v14081_v12 }
 0x193   : > { %7080 = vmatpush.bf16.msrb.mxu1 %v10125_v27  ;;  %v9962_v50 = vld [vmem:[%s13825_s18 + $0xcb0] sm:$0xf0]  ;;  %v12880_v51 = vld [vmem:[%s13825_s18 + $0xda4] sm:$0xf]  ;;  %v10365_v52 = vor.u32 %v12948_v39, %v10362_v40  ;;  %7049 = vmatmul.bf16.vlgmr.msra.gmra.mxu2 %v14079_v11 }
 0x194   : > { %7093 = vmatpush.bf16.msrb.mxu2 %v10253_v62  ;;  %v10090_v17 = vld [vmem:[%s13825_s18 + $0xdb0] sm:$0xf0]  ;;  %v12912_v41 = vld [vmem:[%s13825_s18 + $0xea4] sm:$0xf]  ;;  %7062 = vmatmul.bf16.vlgmr.msra.gmra.mxu3 %v14084_v15  ;;  %v9965_v57 = vor.u32 %v12848_v45, %v9962_v50  ;;  %v6829_v25 = vpop.f32.mrf.mxu1 }
 0x195   : > { %7106 = vmatpush.bf16.msrb.mxu3 %v10381_v35  ;;  %v10218_v53 = vld [vmem:[%s13825_s18 + $0xeb0] sm:$0xf0]  ;;  %v12944_v54 = vld [vmem:[%s13825_s18 + $0xfa4] sm:$0xf]  ;;  %v10093_v58 = vor.u32 %v12880_v51, %v10090_v17  ;;  %v6830_v36 = vadd.f32 %v6829_v25, %v6817_v23 }
 0x196   : > { %v10346_v56 = vld [vmem:[%s13825_s18 + $0xfb0] sm:$0xf0]  ;;  %7068 = vmatpush.bf16.msrb.mxu0 %v9981_v42  ;;  %v10221_v59 = vor.u32 %v12912_v41, %v10218_v53  ;;  %v12844_v60 = vld [vmem:[%s13825_s18 + $0xc84] sm:$0xf] }
 0x197   : > { %7081 = vmatpush.bf16.msrb.mxu1 %v10109_v43  ;;  %v9946_v61 = vld [vmem:[%s13825_s18 + $0xc90] sm:$0xf0]  ;;  %v12876_v1 = vld [vmem:[%s13825_s18 + $0xd84] sm:$0xf]  ;;  %v10349_v2 = vor.u32 %v12944_v54, %v10346_v56 }
 0x198   : > { %7094 = vmatpush.bf16.msrb.mxu2 %v10237_v44  ;;  %v10074_v55 = vld [vmem:[%s13825_s18 + $0xd90] sm:$0xf0]  ;;  %v12908_v6 = vld [vmem:[%s13825_s18 + $0xe84] sm:$0xf]  ;;  %v9949_v24 = vor.u32 %v12844_v60, %v9946_v61  ;;  %v6818_v60 = vpop.f32.mrf.mxu0 }
 0x199   : > { %7107 = vmatpush.bf16.msrb.mxu3 %v10365_v52  ;;  %v10202_v7 = vld [vmem:[%s13825_s18 + $0xe90] sm:$0xf0]  ;;  %v12940_v18 = vld [vmem:[%s13825_s18 + $0xf84] sm:$0xf]  ;;  %v10077_v27 = vor.u32 %v12876_v1, %v10074_v55 }
 0x19a   : > { %v10330_v19 = vld [vmem:[%s13825_s18 + $0xf90] sm:$0xf0]  ;;  %7069 = vmatpush.bf16.msrb.mxu0 %v9965_v57  ;;  %v10205_v62 = vor.u32 %v12908_v6, %v10202_v7  ;;  %v12840_v30 = vld [vmem:[%s13825_s18 + $0xc64] sm:$0xf]  ;;  %v6842_v17 = vpop.f32.mrf.mxu2 }
 0x19b   : > { %7082 = vmatpush.bf16.msrb.mxu1 %v10093_v58  ;;  %v9930_v33 = vld [vmem:[%s13825_s18 + $0xc70] sm:$0xf0]  ;;  %v12872_v34 = vld [vmem:[%s13825_s18 + $0xd64] sm:$0xf]  ;;  %v10333_v35 = vor.u32 %v12940_v18, %v10330_v19  ;;  %v6843_v56 = vadd.f32 %v6842_v17, %v6830_v36  ;;  %v6855_v57 = vpop.f32.mrf.mxu3 }
 0x19c   : > { %7095 = vmatpush.bf16.msrb.mxu2 %v10221_v59  ;;  %v10058_v37 = vld [vmem:[%s13825_s18 + $0xd70] sm:$0xf0]  ;;  %v12904_v14 = vld [vmem:[%s13825_s18 + $0xe64] sm:$0xf]  ;;  %v9933_v42 = vor.u32 %v12840_v30, %v9930_v33  ;;  %v6831_v1 = vpop.f32.mrf.mxu1 }
 0x19d   : > { %7108 = vmatpush.bf16.msrb.mxu3 %v10349_v2  ;;  %v10186_v28 = vld [vmem:[%s13825_s18 + $0xe70] sm:$0xf0]  ;;  %v12936_v39 = vld [vmem:[%s13825_s18 + $0xf64] sm:$0xf]  ;;  %v10061_v43 = vor.u32 %v12872_v34, %v10058_v37  ;;  %v14705_v2 = vadd.f32 %v6855_v57, %v6843_v56 }
 0x19e   : > { %v10314_v40 = vld [vmem:[%s13825_s18 + $0xf70] sm:$0xf0]  ;;  %7070 = vmatpush.bf16.msrb.mxu0 %v9949_v24  ;;  %v10189_v44 = vor.u32 %v12904_v14, %v10186_v28  ;;  %v12836_v45 = vld [vmem:[%s13825_s18 + $0xc44] sm:$0xf] }
 0x19f   : > { %7083 = vmatpush.bf16.msrb.mxu1 %v10077_v27  ;;  %v9914_v50 = vld [vmem:[%s13825_s18 + $0xc50] sm:$0xf0]  ;;  %v12868_v51 = vld [vmem:[%s13825_s18 + $0xd44] sm:$0xf]  ;;  %v10317_v52 = vor.u32 %v12936_v39, %v10314_v40 }
 0x1a0   : > { %7096 = vmatpush.bf16.msrb.mxu2 %v10205_v62  ;;  %v10042_v41 = vld [vmem:[%s13825_s18 + $0xd50] sm:$0xf0]  ;;  %v12900_v53 = vld [vmem:[%s13825_s18 + $0xe44] sm:$0xf]  ;;  %v9917_v61 = vor.u32 %v12836_v45, %v9914_v50 }
 0x1a1   : > { %7109 = vmatpush.bf16.msrb.mxu3 %v10333_v35  ;;  %v10170_v54 = vld [vmem:[%s13825_s18 + $0xe50] sm:$0xf0]  ;;  %v12932_v58 = vld [vmem:[%s13825_s18 + $0xf44] sm:$0xf]  ;;  %v10045_v55 = vor.u32 %v12868_v51, %v10042_v41 }
 0x1a2   : > { %v10298_v59 = vld [vmem:[%s13825_s18 + $0xf50] sm:$0xf0]  ;;  %7071 = vmatpush.bf16.msrb.mxu0 %v9933_v42  ;;  %v10173_v6 = vor.u32 %v12900_v53, %v10170_v54  ;;  %v12832_v7 = vld [vmem:[%s13825_s18 + $0xc24] sm:$0xf] }
 0x1a3   : > { %7084 = vmatpush.bf16.msrb.mxu1 %v10061_v43  ;;  %v9898_v16 = vld [vmem:[%s13825_s18 + $0xc30] sm:$0xf0]  ;;  %v12864_v18 = vld [vmem:[%s13825_s18 + $0xd24] sm:$0xf]  ;;  %v10301_v19 = vor.u32 %v12932_v58, %v10298_v59 }
 0x1a4   : > { %7097 = vmatpush.bf16.msrb.mxu2 %v10189_v44  ;;  %v10026_v23 = vld [vmem:[%s13825_s18 + $0xd30] sm:$0xf0]  ;;  %v12896_v24 = vld [vmem:[%s13825_s18 + $0xe24] sm:$0xf]  ;;  %v9901_v30 = vor.u32 %v12832_v7, %v9898_v16  ;;  %v6844_v44 = vpop.f32.mrf.mxu2 }
 0x1a5   : > { %7110 = vmatpush.bf16.msrb.mxu3 %v10317_v52  ;;  %v10154_v25 = vld [vmem:[%s13825_s18 + $0xe30] sm:$0xf0]  ;;  %v12928_v27 = vld [vmem:[%s13825_s18 + $0xf24] sm:$0xf]  ;;  %v10029_v35 = vor.u32 %v12864_v18, %v10026_v23  ;;  %v6857_v52 = vpop.f32.mrf.mxu3 }
 0x1a6   : > { %v10282_v62 = vld [vmem:[%s13825_s18 + $0xf30] sm:$0xf0]  ;;  %7072 = vmatpush.bf16.msrb.mxu0 %v9917_v61  ;;  %v12828_v33 = vld [vmem:[%s13825_s18 + $0xc04] sm:$0xf]  ;;  %v10157_v36 = vor.u32 %v12896_v24, %v10154_v25 }
 0x1a7   : > { %v9882_v34 = vld [vmem:[%s13825_s18 + $0xc10] sm:$0xf0]  ;;  %7085 = vmatpush.bf16.msrb.mxu1 %v10045_v55  ;;  %v12860_v37 = vld [vmem:[%s13825_s18 + $0xd04] sm:$0xf]  ;;  %v10285_v39 = vor.u32 %v12928_v27, %v10282_v62 }
 0x1a8   : > { %7098 = vmatpush.bf16.msrb.mxu2 %v10173_v6  ;;  %v10010_v14 = vld [vmem:[%s13825_s18 + $0xd10] sm:$0xf0]  ;;  %v12892_v28 = vld [vmem:[%s13825_s18 + $0xe04] sm:$0xf]  ;;  %v9885_v17 = vor.u32 %v12828_v33, %v9882_v34 }
 0x1a9   : > { %7111 = vmatpush.bf16.msrb.mxu3 %v10301_v19  ;;  %v10138_v40 = vld [vmem:[%s13825_s18 + $0xe10] sm:$0xf0]  ;;  %v12924_v42 = vld [vmem:[%s13825_s18 + $0xf04] sm:$0xf]  ;;  %v10013_v56 = vor.u32 %v12860_v37, %v10010_v14 }
 0x1aa   : > { %v10266_v43 = vld [vmem:[%s13825_s18 + $0xf10] sm:$0xf0]  ;;  %v12984_v45 = vld [vmem:[%s13825_s18 + $0x10e4] sm:$0xf]  ;;  %7073 = vmatpush.bf16.msrb.mxu0 %v9901_v30  ;;  %v10141_v57 = vor.u32 %v12892_v28, %v10138_v40 }
 0x1ab   : > { %v10506_v50 = vld [vmem:[%s13825_s18 + $0x10f0] sm:$0xf0]  ;;  %v13016_v51 = vld [vmem:[%s13825_s18 + $0x11e4] sm:$0xf]  ;;  %7086 = vmatpush.bf16.msrb.mxu1 %v10029_v35  ;;  %v10269_v60 = vor.u32 %v12924_v42, %v10266_v43 }
 0x1ac   : > { %v10634_v41 = vld [vmem:[%s13825_s18 + $0x11f0] sm:$0xf0]  ;;  %v13048_v53 = vld [vmem:[%s13825_s18 + $0x12e4] sm:$0xf]  ;;  %7099 = vmatpush.bf16.msrb.mxu2 %v10157_v36  ;;  %v10509_v61 = vor.u32 %v12984_v45, %v10506_v50 }
 0x1ad   : > { %v10762_v54 = vld [vmem:[%s13825_s18 + $0x12f0] sm:$0xf0]  ;;  %v13080_v58 = vld [vmem:[%s13825_s18 + $0x13e4] sm:$0xf]  ;;  %7112 = vmatpush.bf16.msrb.mxu3 %v10285_v39  ;;  %v10637_v1 = vor.u32 %v13016_v51, %v10634_v41 }
 0x1ae   : > { %v10890_v59 = vld [vmem:[%s13825_s18 + $0x13f0] sm:$0xf0]  ;;  %v10765_v55 = vor.u32 %v13048_v53, %v10762_v54  ;;  %v12980_v6 = vld [vmem:[%s13825_s18 + $0x10c4] sm:$0xf]  ;;  %7074 = vmatpush.bf16.msrb.mxu0 %v9885_v17 }
 0x1af   : > { %v10490_v7 = vld [vmem:[%s13825_s18 + $0x10d0] sm:$0xf0]  ;;  %v13012_v16 = vld [vmem:[%s13825_s18 + $0x11c4] sm:$0xf]  ;;  %v10893_v18 = vor.u32 %v13080_v58, %v10890_v59  ;;  %7087 = vmatpush.bf16.msrb.mxu1 %v10013_v56  ;;  %v6868_v56 = vpop.f32.mrf.mxu0 }
 0x1b0   : > { %v10618_v19 = vld [vmem:[%s13825_s18 + $0x11d0] sm:$0xf0]  ;;  %v13044_v23 = vld [vmem:[%s13825_s18 + $0x12c4] sm:$0xf]  ;;  %7100 = vmatpush.bf16.msrb.mxu2 %v10141_v57  ;;  %v10493_v62 = vor.u32 %v12980_v6, %v10490_v7  ;;  %v6869_v59 = vadd.f32 %v6868_v56, %v14705_v2 }
 0x1b1   : > { %v10746_v24 = vld [vmem:[%s13825_s18 + $0x12d0] sm:$0xf0]  ;;  %v13076_v25 = vld [vmem:[%s13825_s18 + $0x13c4] sm:$0xf]  ;;  %7113 = vmatpush.bf16.msrb.mxu3 %v10269_v60  ;;  %v10621_v30 = vor.u32 %v13012_v16, %v10618_v19  ;;  %7075 = vmatmul.bf16.vlgmr.msrb.gmra.mxu0 %v14141_v46 }
 0x1b2   : > { %v10874_v27 = vld [vmem:[%s13825_s18 + $0x13d0] sm:$0xf0]  ;;  %7119 = vmatpush.bf16.msra.mxu0 %v10509_v61  ;;  %v10749_v33 = vor.u32 %v13044_v23, %v10746_v24  ;;  %v12976_v34 = vld [vmem:[%s13825_s18 + $0x10a4] sm:$0xf]  ;;  %7088 = vmatmul.bf16.vlgmr.msrb.gmra.mxu1 %v14145_v48  ;;  %v6881_v61 = vpop.f32.mrf.mxu1 }
 0x1b3   : > { %7132 = vmatpush.bf16.msra.mxu1 %v10637_v1  ;;  %v10474_v35 = vld [vmem:[%s13825_s18 + $0x10b0] sm:$0xf0]  ;;  %v13008_v36 = vld [vmem:[%s13825_s18 + $0x11a4] sm:$0xf]  ;;  %v10877_v37 = vor.u32 %v13076_v25, %v10874_v27  ;;  %7101 = vmatmul.bf16.vlgmr.msrb.gmra.mxu2 %v14143_v47  ;;  %v6882_v19 = vadd.f32 %v6881_v61, %v6869_v59 }
 0x1b4   : > { %7145 = vmatpush.bf16.msra.mxu2 %v10765_v55  ;;  %v10602_v14 = vld [vmem:[%s13825_s18 + $0x11b0] sm:$0xf0]  ;;  %v13040_v28 = vld [vmem:[%s13825_s18 + $0x12a4] sm:$0xf]  ;;  %7114 = vmatmul.bf16.vlgmr.msrb.gmra.mxu3 %v14147_v49  ;;  %v10477_v43 = vor.u32 %v12976_v34, %v10474_v35 }
 0x1b5   : > { %7158 = vmatpush.bf16.msra.mxu3 %v10893_v18  ;;  %v10730_v39 = vld [vmem:[%s13825_s18 + $0x12b0] sm:$0xf0]  ;;  %v13072_v40 = vld [vmem:[%s13825_s18 + $0x13a4] sm:$0xf]  ;;  %v10605_v44 = vor.u32 %v13008_v36, %v10602_v14 }
 0x1b6   : > { %v10858_v42 = vld [vmem:[%s13825_s18 + $0x13b0] sm:$0xf0]  ;;  %7120 = vmatpush.bf16.msra.mxu0 %v10493_v62  ;;  %v10733_v45 = vor.u32 %v13040_v28, %v10730_v39  ;;  %v12972_v50 = vld [vmem:[%s13825_s18 + $0x1084] sm:$0xf]  ;;  %v6894_v14 = vpop.f32.mrf.mxu2 }
 0x1b7   : > { %7133 = vmatpush.bf16.msra.mxu1 %v10621_v30  ;;  %v10458_v51 = vld [vmem:[%s13825_s18 + $0x1090] sm:$0xf0]  ;;  %v13004_v52 = vld [vmem:[%s13825_s18 + $0x1184] sm:$0xf]  ;;  %v10861_v17 = vor.u32 %v13072_v40, %v10858_v42  ;;  %v6895_v42 = vadd.f32 %v6894_v14, %v6882_v19 }
 0x1b8   : > { %7146 = vmatpush.bf16.msra.mxu2 %v10749_v33  ;;  %v10586_v41 = vld [vmem:[%s13825_s18 + $0x1190] sm:$0xf0]  ;;  %v13036_v53 = vld [vmem:[%s13825_s18 + $0x1284] sm:$0xf]  ;;  %v10461_v60 = vor.u32 %v12972_v50, %v10458_v51  ;;  %v6870_v50 = vpop.f32.mrf.mxu0 }
 0x1b9   : > { %7159 = vmatpush.bf16.msra.mxu3 %v10877_v37  ;;  %v10714_v54 = vld [vmem:[%s13825_s18 + $0x1290] sm:$0xf0]  ;;  %v13068_v57 = vld [vmem:[%s13825_s18 + $0x1384] sm:$0xf]  ;;  %v10589_v1 = vor.u32 %v13004_v52, %v10586_v41 }
 0x1ba   : > { %v10842_v58 = vld [vmem:[%s13825_s18 + $0x1390] sm:$0xf0]  ;;  %7121 = vmatpush.bf16.msra.mxu0 %v10477_v43  ;;  %v10717_v55 = vor.u32 %v13036_v53, %v10714_v54  ;;  %v12968_v6 = vld [vmem:[%s13825_s18 + $0x1064] sm:$0xf]  ;;  %v6907_v43 = vpop.f32.mrf.mxu3  ;;  %v6883_v52 = vpop.f32.mrf.mxu1 }
 0x1bb   : > { %7134 = vmatpush.bf16.msra.mxu1 %v10605_v44  ;;  %v10442_v7 = vld [vmem:[%s13825_s18 + $0x1070] sm:$0xf0]  ;;  %v13000_v16 = vld [vmem:[%s13825_s18 + $0x1164] sm:$0xf]  ;;  %v10845_v18 = vor.u32 %v13068_v57, %v10842_v58 }
 0x1bc   : > { %7147 = vmatpush.bf16.msra.mxu2 %v10733_v45  ;;  %v10570_v23 = vld [vmem:[%s13825_s18 + $0x1170] sm:$0xf0]  ;;  %v13032_v24 = vld [vmem:[%s13825_s18 + $0x1264] sm:$0xf]  ;;  %v10445_v62 = vor.u32 %v12968_v6, %v10442_v7 }
 0x1bd   : > { %7160 = vmatpush.bf16.msra.mxu3 %v10861_v17  ;;  %v10698_v2 = vld [vmem:[%s13825_s18 + $0x1270] sm:$0xf0]  ;;  %v13064_v25 = vld [vmem:[%s13825_s18 + $0x1364] sm:$0xf]  ;;  %v10573_v30 = vor.u32 %v13000_v16, %v10570_v23  ;;  %v14776_v17 = vadd.f32 %v6907_v43, %v6895_v42 }
 0x1be   : > { %v10826_v27 = vld [vmem:[%s13825_s18 + $0x1370] sm:$0xf0]  ;;  %7122 = vmatpush.bf16.msra.mxu0 %v10461_v60  ;;  %v10701_v33 = vor.u32 %v13032_v24, %v10698_v2  ;;  %v12964_v34 = vld [vmem:[%s13825_s18 + $0x1044] sm:$0xf] }
 0x1bf   : > { %7135 = vmatpush.bf16.msra.mxu1 %v10589_v1  ;;  %v10426_v35 = vld [vmem:[%s13825_s18 + $0x1050] sm:$0xf0]  ;;  %v12996_v36 = vld [vmem:[%s13825_s18 + $0x1144] sm:$0xf]  ;;  %v10829_v37 = vor.u32 %v13064_v25, %v10826_v27 }
 0x1c0   : > { %7148 = vmatpush.bf16.msra.mxu2 %v10717_v55  ;;  %v10554_v28 = vld [vmem:[%s13825_s18 + $0x1150] sm:$0xf0]  ;;  %v13028_v39 = vld [vmem:[%s13825_s18 + $0x1244] sm:$0xf]  ;;  %v10429_v51 = vor.u32 %v12964_v34, %v10426_v35 }
 0x1c1   : > { %7161 = vmatpush.bf16.msra.mxu3 %v10845_v18  ;;  %v10682_v40 = vld [vmem:[%s13825_s18 + $0x1250] sm:$0xf0]  ;;  %v13060_v44 = vld [vmem:[%s13825_s18 + $0x1344] sm:$0xf]  ;;  %v10557_v41 = vor.u32 %v12996_v36, %v10554_v28 }
 0x1c2   : > { %v10810_v45 = vld [vmem:[%s13825_s18 + $0x1350] sm:$0xf0]  ;;  %7123 = vmatpush.bf16.msra.mxu0 %v10445_v62  ;;  %v10685_v53 = vor.u32 %v13028_v39, %v10682_v40  ;;  %v12960_v54 = vld [vmem:[%s13825_s18 + $0x1024] sm:$0xf] }
 0x1c3   : > { %7136 = vmatpush.bf16.msra.mxu1 %v10573_v30  ;;  %v10410_v56 = vld [vmem:[%s13825_s18 + $0x1030] sm:$0xf0]  ;;  %v12992_v57 = vld [vmem:[%s13825_s18 + $0x1124] sm:$0xf]  ;;  %v10813_v58 = vor.u32 %v13060_v44, %v10810_v45 }
 0x1c4   : > { %7149 = vmatpush.bf16.msra.mxu2 %v10701_v33  ;;  %v10538_v59 = vld [vmem:[%s13825_s18 + $0x1130] sm:$0xf0]  ;;  %v13024_v60 = vld [vmem:[%s13825_s18 + $0x1224] sm:$0xf]  ;;  %v10413_v6 = vor.u32 %v12960_v54, %v10410_v56  ;;  %v6896_v33 = vpop.f32.mrf.mxu2 }
 0x1c5   : > { %7162 = vmatpush.bf16.msra.mxu3 %v10829_v37  ;;  %v10666_v61 = vld [vmem:[%s13825_s18 + $0x1230] sm:$0xf0]  ;;  %v13056_v1 = vld [vmem:[%s13825_s18 + $0x1324] sm:$0xf]  ;;  %v10541_v18 = vor.u32 %v12992_v57, %v10538_v59  ;;  %v6909_v37 = vpop.f32.mrf.mxu3 }
 0x1c6   : > { %v10794_v55 = vld [vmem:[%s13825_s18 + $0x1330] sm:$0xf0]  ;;  %7124 = vmatpush.bf16.msra.mxu0 %v10429_v51  ;;  %v12956_v7 = vld [vmem:[%s13825_s18 + $0x1004] sm:$0xf]  ;;  %v10669_v19 = vor.u32 %v13024_v60, %v10666_v61 }
 0x1c7   : > { %v10394_v16 = vld [vmem:[%s13825_s18 + $0x1010] sm:$0xf0]  ;;  %7137 = vmatpush.bf16.msra.mxu1 %v10557_v41  ;;  %v12988_v23 = vld [vmem:[%s13825_s18 + $0x1104] sm:$0xf]  ;;  %v10797_v25 = vor.u32 %v13056_v1, %v10794_v55 }
 0x1c8   : > { %7150 = vmatpush.bf16.msra.mxu2 %v10685_v53  ;;  %v10522_v24 = vld [vmem:[%s13825_s18 + $0x1110] sm:$0xf0]  ;;  %v13020_v2 = vld [vmem:[%s13825_s18 + $0x1204] sm:$0xf]  ;;  %v10397_v14 = vor.u32 %v12956_v7, %v10394_v16 }
 0x1c9   : > { %7163 = vmatpush.bf16.msra.mxu3 %v10813_v58  ;;  %v10650_v27 = vld [vmem:[%s13825_s18 + $0x1210] sm:$0xf0]  ;;  %v13052_v62 = vld [vmem:[%s13825_s18 + $0x1304] sm:$0xf]  ;;  %v10525_v42 = vor.u32 %v12988_v23, %v10522_v24 }
 0x1ca   : > { %v10778_v30 = vld [vmem:[%s13825_s18 + $0x1310] sm:$0xf0]  ;;  %v13112_v34 = vld [vmem:[%s13825_s18 + $0x14e4] sm:$0xf]  ;;  %7125 = vmatpush.bf16.msra.mxu0 %v10413_v6  ;;  %v10653_v43 = vor.u32 %v13020_v2, %v10650_v27 }
 0x1cb   : > { %v11018_v35 = vld [vmem:[%s13825_s18 + $0x14f0] sm:$0xf0]  ;;  %v13144_v36 = vld [vmem:[%s13825_s18 + $0x15e4] sm:$0xf]  ;;  %7138 = vmatpush.bf16.msra.mxu1 %v10541_v18  ;;  %v10781_v50 = vor.u32 %v13052_v62, %v10778_v30 }
 0x1cc   : > { %v11146_v28 = vld [vmem:[%s13825_s18 + $0x15f0] sm:$0xf0]  ;;  %v13176_v39 = vld [vmem:[%s13825_s18 + $0x16e4] sm:$0xf]  ;;  %7151 = vmatpush.bf16.msra.mxu2 %v10669_v19  ;;  %v11021_v51 = vor.u32 %v13112_v34, %v11018_v35 }
 0x1cd   : > { %v11274_v40 = vld [vmem:[%s13825_s18 + $0x16f0] sm:$0xf0]  ;;  %v13208_v44 = vld [vmem:[%s13825_s18 + $0x17e4] sm:$0xf]  ;;  %7164 = vmatpush.bf16.msra.mxu3 %v10797_v25  ;;  %v11149_v52 = vor.u32 %v13144_v36, %v11146_v28 }
 0x1ce   : > { %v11402_v45 = vld [vmem:[%s13825_s18 + $0x17f0] sm:$0xf0]  ;;  %v11277_v41 = vor.u32 %v13176_v39, %v11274_v40  ;;  %v13108_v53 = vld [vmem:[%s13825_s18 + $0x14c4] sm:$0xf]  ;;  %7126 = vmatpush.bf16.msra.mxu0 %v10397_v14 }
 0x1cf   : > { %v11002_v54 = vld [vmem:[%s13825_s18 + $0x14d0] sm:$0xf0]  ;;  %v13140_v56 = vld [vmem:[%s13825_s18 + $0x15c4] sm:$0xf]  ;;  %v11405_v57 = vor.u32 %v13208_v44, %v11402_v45  ;;  %7139 = vmatpush.bf16.msra.mxu1 %v10525_v42  ;;  %v6920_v45 = vpop.f32.mrf.mxu0 }
 0x1d0   : > { %v11130_v58 = vld [vmem:[%s13825_s18 + $0x15d0] sm:$0xf0]  ;;  %v13172_v59 = vld [vmem:[%s13825_s18 + $0x16c4] sm:$0xf]  ;;  %7152 = vmatpush.bf16.msra.mxu2 %v10653_v43  ;;  %v11005_v55 = vor.u32 %v13108_v53, %v11002_v54  ;;  %v6933_v54 = vpop.f32.mrf.mxu1 }
 0x1d1   : > { %v11258_v60 = vld [vmem:[%s13825_s18 + $0x16d0] sm:$0xf0]  ;;  %v13204_v61 = vld [vmem:[%s13825_s18 + $0x17c4] sm:$0xf]  ;;  %7165 = vmatpush.bf16.msra.mxu3 %v10781_v50  ;;  %v11133_v6 = vor.u32 %v13140_v56, %v11130_v58  ;;  %7127 = vmatmul.bf16.vlgmr.msra.gmra.mxu0 %v14230_v5 }
 0x1d2   : > { %v11386_v1 = vld [vmem:[%s13825_s18 + $0x17d0] sm:$0xf0]  ;;  %7171 = vmatpush.bf16.msrb.mxu0 %v11021_v51  ;;  %v11261_v7 = vor.u32 %v13172_v59, %v11258_v60  ;;  %v13104_v16 = vld [vmem:[%s13825_s18 + $0x14a4] sm:$0xf]  ;;  %7140 = vmatmul.bf16.vlgmr.msra.gmra.mxu1 %v14236_v10  ;;  %v6934_v60 = vadd.f32 %v6933_v54, %v6920_v45 }
 0x1d3   : > { %7184 = vmatpush.bf16.msrb.mxu1 %v11149_v52  ;;  %v10986_v18 = vld [vmem:[%s13825_s18 + $0x14b0] sm:$0xf0]  ;;  %v13136_v19 = vld [vmem:[%s13825_s18 + $0x15a4] sm:$0xf]  ;;  %v11389_v23 = vor.u32 %v13204_v61, %v11386_v1  ;;  %7153 = vmatmul.bf16.vlgmr.msra.gmra.mxu2 %v14234_v9 }
 0x1d4   : > { %7197 = vmatpush.bf16.msrb.mxu2 %v11277_v41  ;;  %v11114_v24 = vld [vmem:[%s13825_s18 + $0x15b0] sm:$0xf0]  ;;  %v13168_v2 = vld [vmem:[%s13825_s18 + $0x16a4] sm:$0xf]  ;;  %7166 = vmatmul.bf16.vlgmr.msra.gmra.mxu3 %v14238_v13  ;;  %v10989_v30 = vor.u32 %v13104_v16, %v10986_v18 }
 0x1d5   : > { %7210 = vmatpush.bf16.msrb.mxu3 %v11405_v57  ;;  %v11242_v25 = vld [vmem:[%s13825_s18 + $0x16b0] sm:$0xf0]  ;;  %v13200_v27 = vld [vmem:[%s13825_s18 + $0x17a4] sm:$0xf]  ;;  %v11117_v33 = vor.u32 %v13136_v19, %v11114_v24 }
 0x1d6   : > { %v11370_v62 = vld [vmem:[%s13825_s18 + $0x17b0] sm:$0xf0]  ;;  %7172 = vmatpush.bf16.msrb.mxu0 %v11005_v55  ;;  %v11245_v34 = vor.u32 %v13168_v2, %v11242_v25  ;;  %v13100_v35 = vld [vmem:[%s13825_s18 + $0x1484] sm:$0xf] }
 0x1d7   : > { %7185 = vmatpush.bf16.msrb.mxu1 %v11133_v6  ;;  %v10970_v36 = vld [vmem:[%s13825_s18 + $0x1490] sm:$0xf0]  ;;  %v13132_v37 = vld [vmem:[%s13825_s18 + $0x1584] sm:$0xf]  ;;  %v11373_v14 = vor.u32 %v13200_v27, %v11370_v62 }
 0x1d8   : > { %7198 = vmatpush.bf16.msrb.mxu2 %v11261_v7  ;;  %v11098_v28 = vld [vmem:[%s13825_s18 + $0x1590] sm:$0xf0]  ;;  %v13164_v39 = vld [vmem:[%s13825_s18 + $0x1684] sm:$0xf]  ;;  %v10973_v44 = vor.u32 %v13100_v35, %v10970_v36 }
 0x1d9   : > { %7211 = vmatpush.bf16.msrb.mxu3 %v11389_v23  ;;  %v11226_v40 = vld [vmem:[%s13825_s18 + $0x1690] sm:$0xf0]  ;;  %v13196_v42 = vld [vmem:[%s13825_s18 + $0x1784] sm:$0xf]  ;;  %v11101_v50 = vor.u32 %v13132_v37, %v11098_v28  ;;  %v6946_v23 = vpop.f32.mrf.mxu2  ;;  %v6922_v37 = vpop.f32.mrf.mxu0 }
 0x1da   : > { %v11354_v43 = vld [vmem:[%s13825_s18 + $0x1790] sm:$0xf0]  ;;  %7173 = vmatpush.bf16.msrb.mxu0 %v10989_v30  ;;  %v11229_v51 = vor.u32 %v13164_v39, %v11226_v40  ;;  %v13096_v52 = vld [vmem:[%s13825_s18 + $0x1464] sm:$0xf]  ;;  %v6947_v62 = vadd.f32 %v6946_v23, %v6934_v60  ;;  %v6959_v30 = vpop.f32.mrf.mxu3 }
 0x1db   : > { %7186 = vmatpush.bf16.msrb.mxu1 %v11117_v33  ;;  %v10954_v41 = vld [vmem:[%s13825_s18 + $0x1470] sm:$0xf0]  ;;  %v13128_v53 = vld [vmem:[%s13825_s18 + $0x1564] sm:$0xf]  ;;  %v11357_v56 = vor.u32 %v13196_v42, %v11354_v43  ;;  %v6935_v43 = vpop.f32.mrf.mxu1 }
 0x1dc   : > { %7199 = vmatpush.bf16.msrb.mxu2 %v11245_v34  ;;  %v11082_v57 = vld [vmem:[%s13825_s18 + $0x1570] sm:$0xf0]  ;;  %v13160_v58 = vld [vmem:[%s13825_s18 + $0x1664] sm:$0xf]  ;;  %v10957_v55 = vor.u32 %v13096_v52, %v10954_v41  ;;  %v14846_v36 = vadd.f32 %v6959_v30, %v6947_v62 }
 0x1dd   : > { %7212 = vmatpush.bf16.msrb.mxu3 %v11373_v14  ;;  %v11210_v59 = vld [vmem:[%s13825_s18 + $0x1670] sm:$0xf0]  ;;  %v13192_v61 = vld [vmem:[%s13825_s18 + $0x1764] sm:$0xf]  ;;  %v11085_v6 = vor.u32 %v13128_v53, %v11082_v57 }
 0x1de   : > { %v11338_v1 = vld [vmem:[%s13825_s18 + $0x1770] sm:$0xf0]  ;;  %7174 = vmatpush.bf16.msrb.mxu0 %v10973_v44  ;;  %v11213_v7 = vor.u32 %v13160_v58, %v11210_v59  ;;  %v13092_v16 = vld [vmem:[%s13825_s18 + $0x1444] sm:$0xf] }
 0x1df   : > { %7187 = vmatpush.bf16.msrb.mxu1 %v11101_v50  ;;  %v10938_v18 = vld [vmem:[%s13825_s18 + $0x1450] sm:$0xf0]  ;;  %v13124_v19 = vld [vmem:[%s13825_s18 + $0x1544] sm:$0xf]  ;;  %v11341_v24 = vor.u32 %v13192_v61, %v11338_v1 }
 0x1e0   : > { %7200 = vmatpush.bf16.msrb.mxu2 %v11229_v51  ;;  %v11066_v2 = vld [vmem:[%s13825_s18 + $0x1550] sm:$0xf0]  ;;  %v13156_v25 = vld [vmem:[%s13825_s18 + $0x1644] sm:$0xf]  ;;  %v10941_v35 = vor.u32 %v13092_v16, %v10938_v18 }
 0x1e1   : > { %7213 = vmatpush.bf16.msrb.mxu3 %v11357_v56  ;;  %v11194_v27 = vld [vmem:[%s13825_s18 + $0x1650] sm:$0xf0]  ;;  %v13188_v33 = vld [vmem:[%s13825_s18 + $0x1744] sm:$0xf]  ;;  %v11069_v14 = vor.u32 %v13124_v19, %v11066_v2  ;;  %v6948_v1 = vpop.f32.mrf.mxu2 }
 0x1e2   : > { %v11322_v34 = vld [vmem:[%s13825_s18 + $0x1750] sm:$0xf0]  ;;  %7175 = vmatpush.bf16.msrb.mxu0 %v10957_v55  ;;  %v11197_v28 = vor.u32 %v13156_v25, %v11194_v27  ;;  %v13088_v39 = vld [vmem:[%s13825_s18 + $0x1424] sm:$0xf]  ;;  %v6961_v18 = vpop.f32.mrf.mxu3 }
 0x1e3   : > { %7188 = vmatpush.bf16.msrb.mxu1 %v11085_v6  ;;  %v10922_v40 = vld [vmem:[%s13825_s18 + $0x1430] sm:$0xf0]  ;;  %v13120_v42 = vld [vmem:[%s13825_s18 + $0x1524] sm:$0xf]  ;;  %v11325_v44 = vor.u32 %v13188_v33, %v11322_v34 }
 0x1e4   : > { %7201 = vmatpush.bf16.msrb.mxu2 %v11213_v7  ;;  %v11050_v45 = vld [vmem:[%s13825_s18 + $0x1530] sm:$0xf0]  ;;  %v13152_v50 = vld [vmem:[%s13825_s18 + $0x1624] sm:$0xf]  ;;  %v10925_v53 = vor.u32 %v13088_v39, %v10922_v40 }
 0x1e5   : > { %7214 = vmatpush.bf16.msrb.mxu3 %v11341_v24  ;;  %v11178_v51 = vld [vmem:[%s13825_s18 + $0x1630] sm:$0xf0]  ;;  %v13184_v52 = vld [vmem:[%s13825_s18 + $0x1724] sm:$0xf]  ;;  %v11053_v57 = vor.u32 %v13120_v42, %v11050_v45 }
 0x1e6   : > { %v11306_v41 = vld [vmem:[%s13825_s18 + $0x1730] sm:$0xf0]  ;;  %7176 = vmatpush.bf16.msrb.mxu0 %v10941_v35  ;;  %v13084_v54 = vld [vmem:[%s13825_s18 + $0x1404] sm:$0xf]  ;;  %v11181_v58 = vor.u32 %v13152_v50, %v11178_v51 }
 0x1e7   : > { %v10906_v56 = vld [vmem:[%s13825_s18 + $0x1410] sm:$0xf0]  ;;  %7189 = vmatpush.bf16.msrb.mxu1 %v11069_v14  ;;  %v13116_v59 = vld [vmem:[%s13825_s18 + $0x1504] sm:$0xf]  ;;  %v11309_v55 = vor.u32 %v13184_v52, %v11306_v41 }
 0x1e8   : > { %7202 = vmatpush.bf16.msrb.mxu2 %v11197_v28  ;;  %v11034_v60 = vld [vmem:[%s13825_s18 + $0x1510] sm:$0xf0]  ;;  %v13148_v61 = vld [vmem:[%s13825_s18 + $0x1604] sm:$0xf]  ;;  %v10909_v2 = vor.u32 %v13084_v54, %v10906_v56 }
 0x1e9   : > { %7215 = vmatpush.bf16.msrb.mxu3 %v11325_v44  ;;  %v11162_v6 = vld [vmem:[%s13825_s18 + $0x1610] sm:$0xf0]  ;;  %v13180_v7 = vld [vmem:[%s13825_s18 + $0x1704] sm:$0xf]  ;;  %v11037_v30 = vor.u32 %v13116_v59, %v11034_v60 }
 0x1ea   : > { %v11290_v16 = vld [vmem:[%s13825_s18 + $0x1710] sm:$0xf0]  ;;  %v13240_v19 = vld [vmem:[%s13825_s18 + $0x18e4] sm:$0xf]  ;;  %7177 = vmatpush.bf16.msrb.mxu0 %v10925_v53  ;;  %v11165_v33 = vor.u32 %v13148_v61, %v11162_v6 }
 0x1eb   : > { %v11530_v23 = vld [vmem:[%s13825_s18 + $0x18f0] sm:$0xf0]  ;;  %v13272_v24 = vld [vmem:[%s13825_s18 + $0x19e4] sm:$0xf]  ;;  %7190 = vmatpush.bf16.msrb.mxu1 %v11053_v57  ;;  %v11293_v37 = vor.u32 %v13180_v7, %v11290_v16 }
 0x1ec   : > { %v11658_v25 = vld [vmem:[%s13825_s18 + $0x19f0] sm:$0xf0]  ;;  %v13304_v27 = vld [vmem:[%s13825_s18 + $0x1ae4] sm:$0xf]  ;;  %7203 = vmatpush.bf16.msrb.mxu2 %v11181_v58  ;;  %v11533_v14 = vor.u32 %v13240_v19, %v11530_v23 }
 0x1ed   : > { %v11786_v62 = vld [vmem:[%s13825_s18 + $0x1af0] sm:$0xf0]  ;;  %v13336_v34 = vld [vmem:[%s13825_s18 + $0x1be4] sm:$0xf]  ;;  %7216 = vmatpush.bf16.msrb.mxu3 %v11309_v55  ;;  %v11661_v28 = vor.u32 %v13272_v24, %v11658_v25 }
 0x1ee   : > { %v11914_v35 = vld [vmem:[%s13825_s18 + $0x1bf0] sm:$0xf0]  ;;  %v11789_v39 = vor.u32 %v13304_v27, %v11786_v62  ;;  %v13236_v40 = vld [vmem:[%s13825_s18 + $0x18c4] sm:$0xf]  ;;  %7178 = vmatpush.bf16.msrb.mxu0 %v10909_v2 }
 0x1ef   : > { %v11514_v42 = vld [vmem:[%s13825_s18 + $0x18d0] sm:$0xf0]  ;;  %v13268_v43 = vld [vmem:[%s13825_s18 + $0x19c4] sm:$0xf]  ;;  %v11917_v44 = vor.u32 %v13336_v34, %v11914_v35  ;;  %7191 = vmatpush.bf16.msrb.mxu1 %v11037_v30 }
 0x1f0   : > { %v11642_v45 = vld [vmem:[%s13825_s18 + $0x19d0] sm:$0xf0]  ;;  %v13300_v50 = vld [vmem:[%s13825_s18 + $0x1ac4] sm:$0xf]  ;;  %7204 = vmatpush.bf16.msrb.mxu2 %v11165_v33  ;;  %v11517_v53 = vor.u32 %v13236_v40, %v11514_v42 }
 0x1f1   : > { %v11770_v51 = vld [vmem:[%s13825_s18 + $0x1ad0] sm:$0xf0]  ;;  %v13332_v52 = vld [vmem:[%s13825_s18 + $0x1bc4] sm:$0xf]  ;;  %7217 = vmatpush.bf16.msrb.mxu3 %v11293_v37  ;;  %v11645_v54 = vor.u32 %v13268_v43, %v11642_v45  ;;  %7179 = vmatmul.bf16.vlgmr.msrb.gmra.mxu0 %v14296_v63  ;;  %v6972_v37 = vpop.f32.mrf.mxu0 }
 0x1f2   : > { %v11898_v41 = vld [vmem:[%s13825_s18 + $0x1bd0] sm:$0xf0]  ;;  %7223 = vmatpush.bf16.msra.mxu0 %v11533_v14  ;;  %v11773_v56 = vor.u32 %v13300_v50, %v11770_v51  ;;  %v13232_v57 = vld [vmem:[%s13825_s18 + $0x18a4] sm:$0xf]  ;;  %7192 = vmatmul.bf16.vlgmr.msrb.gmra.mxu1 %v14300_v3  ;;  %v6973_v43 = vadd.f32 %v6972_v37, %v14846_v36 }
 0x1f3   : > { %7236 = vmatpush.bf16.msra.mxu1 %v11661_v28  ;;  %v11498_v58 = vld [vmem:[%s13825_s18 + $0x18b0] sm:$0xf0]  ;;  %v13264_v59 = vld [vmem:[%s13825_s18 + $0x19a4] sm:$0xf]  ;;  %v11901_v60 = vor.u32 %v13332_v52, %v11898_v41  ;;  %7205 = vmatmul.bf16.vlgmr.msrb.gmra.mxu2 %v14298_v0 }
 0x1f4   : > { %7249 = vmatpush.bf16.msra.mxu2 %v11789_v39  ;;  %v11626_v61 = vld [vmem:[%s13825_s18 + $0x19b0] sm:$0xf0]  ;;  %v13296_v1 = vld [vmem:[%s13825_s18 + $0x1aa4] sm:$0xf]  ;;  %7218 = vmatmul.bf16.vlgmr.msrb.gmra.mxu3 %v14302_v4  ;;  %v11501_v16 = vor.u32 %v13232_v57, %v11498_v58 }
 0x1f5   : > { %7262 = vmatpush.bf16.msra.mxu3 %v11917_v44  ;;  %v11754_v55 = vld [vmem:[%s13825_s18 + $0x1ab0] sm:$0xf0]  ;;  %v13328_v6 = vld [vmem:[%s13825_s18 + $0x1ba4] sm:$0xf]  ;;  %v11629_v18 = vor.u32 %v13264_v59, %v11626_v61  ;;  %v6985_v44 = vpop.f32.mrf.mxu1 }
 0x1f6   : > { %v11882_v7 = vld [vmem:[%s13825_s18 + $0x1bb0] sm:$0xf0]  ;;  %7224 = vmatpush.bf16.msra.mxu0 %v11517_v53  ;;  %v11757_v19 = vor.u32 %v13296_v1, %v11754_v55  ;;  %v13228_v23 = vld [vmem:[%s13825_s18 + $0x1884] sm:$0xf]  ;;  %v6998_v61 = vpop.f32.mrf.mxu2 }
 0x1f7   : > { %7237 = vmatpush.bf16.msra.mxu1 %v11645_v54  ;;  %v11482_v24 = vld [vmem:[%s13825_s18 + $0x1890] sm:$0xf0]  ;;  %v13260_v2 = vld [vmem:[%s13825_s18 + $0x1984] sm:$0xf]  ;;  %v11885_v25 = vor.u32 %v13328_v6, %v11882_v7  ;;  %v6986_v54 = vadd.f32 %v6985_v44, %v6973_v43 }
 0x1f8   : > { %7250 = vmatpush.bf16.msra.mxu2 %v11773_v56  ;;  %v11610_v27 = vld [vmem:[%s13825_s18 + $0x1990] sm:$0xf0]  ;;  %v13292_v62 = vld [vmem:[%s13825_s18 + $0x1a84] sm:$0xf]  ;;  %v11485_v35 = vor.u32 %v13228_v23, %v11482_v24 }
 0x1f9   : > { %7263 = vmatpush.bf16.msra.mxu3 %v11901_v60  ;;  %v11738_v30 = vld [vmem:[%s13825_s18 + $0x1a90] sm:$0xf0]  ;;  %v13324_v33 = vld [vmem:[%s13825_s18 + $0x1b84] sm:$0xf]  ;;  %v11613_v14 = vor.u32 %v13260_v2, %v11610_v27 }
 0x1fa   : > { %v11866_v34 = vld [vmem:[%s13825_s18 + $0x1b90] sm:$0xf0]  ;;  %7225 = vmatpush.bf16.msra.mxu0 %v11501_v16  ;;  %v11741_v28 = vor.u32 %v13292_v62, %v11738_v30  ;;  %v13224_v39 = vld [vmem:[%s13825_s18 + $0x1864] sm:$0xf]  ;;  %v6999_v16 = vadd.f32 %v6998_v61, %v6986_v54 }
 0x1fb   : > { %7238 = vmatpush.bf16.msra.mxu1 %v11629_v18  ;;  %v11466_v40 = vld [vmem:[%s13825_s18 + $0x1870] sm:$0xf0]  ;;  %v13256_v42 = vld [vmem:[%s13825_s18 + $0x1964] sm:$0xf]  ;;  %v11869_v45 = vor.u32 %v13324_v33, %v11866_v34  ;;  %v7011_v18 = vpop.f32.mrf.mxu3 }
 0x1fc   : > { %7251 = vmatpush.bf16.msra.mxu2 %v11757_v19  ;;  %v11594_v50 = vld [vmem:[%s13825_s18 + $0x1970] sm:$0xf0]  ;;  %v13288_v51 = vld [vmem:[%s13825_s18 + $0x1a64] sm:$0xf]  ;;  %v11469_v56 = vor.u32 %v13224_v39, %v11466_v40  ;;  %v14917_v2 = vadd.f32 %v7011_v18, %v6999_v16 }
 0x1fd   : > { %7264 = vmatpush.bf16.msra.mxu3 %v11885_v25  ;;  %v11722_v52 = vld [vmem:[%s13825_s18 + $0x1a70] sm:$0xf0]  ;;  %v13320_v41 = vld [vmem:[%s13825_s18 + $0x1b64] sm:$0xf]  ;;  %v11597_v36 = vor.u32 %v13256_v42, %v11594_v50  ;;  %v6974_v25 = vpop.f32.mrf.mxu0 }
 0x1fe   : > { %v11850_v53 = vld [vmem:[%s13825_s18 + $0x1b70] sm:$0xf0]  ;;  %7226 = vmatpush.bf16.msra.mxu0 %v11485_v35  ;;  %v11725_v57 = vor.u32 %v13288_v51, %v11722_v52  ;;  %v13220_v58 = vld [vmem:[%s13825_s18 + $0x1844] sm:$0xf]  ;;  %v6987_v35 = vpop.f32.mrf.mxu1  ;;  %v7000_v54 = vpop.f32.mrf.mxu2 }
 0x1ff   : > { %7239 = vmatpush.bf16.msra.mxu1 %v11613_v14  ;;  %v11450_v59 = vld [vmem:[%s13825_s18 + $0x1850] sm:$0xf0]  ;;  %v13252_v60 = vld [vmem:[%s13825_s18 + $0x1944] sm:$0xf]  ;;  %v11853_v1 = vor.u32 %v13320_v41, %v11850_v53 }
 0x200   : > { %7252 = vmatpush.bf16.msra.mxu2 %v11741_v28  ;;  %v11578_v55 = vld [vmem:[%s13825_s18 + $0x1950] sm:$0xf0]  ;;  %v13284_v6 = vld [vmem:[%s13825_s18 + $0x1a44] sm:$0xf]  ;;  %v11453_v24 = vor.u32 %v13220_v58, %v11450_v59 }
 0x201   : > { %7265 = vmatpush.bf16.msra.mxu3 %v11869_v45  ;;  %v11706_v7 = vld [vmem:[%s13825_s18 + $0x1a50] sm:$0xf0]  ;;  %v13316_v19 = vld [vmem:[%s13825_s18 + $0x1b44] sm:$0xf]  ;;  %v11581_v27 = vor.u32 %v13252_v60, %v11578_v55 }
 0x202   : > { %v11834_v23 = vld [vmem:[%s13825_s18 + $0x1b50] sm:$0xf0]  ;;  %7227 = vmatpush.bf16.msra.mxu0 %v11469_v56  ;;  %v11709_v62 = vor.u32 %v13284_v6, %v11706_v7  ;;  %v13216_v30 = vld [vmem:[%s13825_s18 + $0x1824] sm:$0xf] }
 0x203   : > { %7240 = vmatpush.bf16.msra.mxu1 %v11597_v36  ;;  %v11434_v33 = vld [vmem:[%s13825_s18 + $0x1830] sm:$0xf0]  ;;  %v13248_v34 = vld [vmem:[%s13825_s18 + $0x1924] sm:$0xf]  ;;  %v11837_v37 = vor.u32 %v13316_v19, %v11834_v23  ;;  %v7013_v59 = vpop.f32.mrf.mxu3 }
 0x204   : > { %7253 = vmatpush.bf16.msra.mxu2 %v11725_v57  ;;  %v11562_v14 = vld [vmem:[%s13825_s18 + $0x1930] sm:$0xf0]  ;;  %v13280_v28 = vld [vmem:[%s13825_s18 + $0x1a24] sm:$0xf]  ;;  %v11437_v43 = vor.u32 %v13216_v30, %v11434_v33 }
 0x205   : > { %7266 = vmatpush.bf16.msra.mxu3 %v11853_v1  ;;  %v11690_v39 = vld [vmem:[%s13825_s18 + $0x1a30] sm:$0xf0]  ;;  %v13312_v40 = vld [vmem:[%s13825_s18 + $0x1b24] sm:$0xf]  ;;  %v11565_v50 = vor.u32 %v13248_v34, %v11562_v14 }
 0x206   : > { %v11818_v42 = vld [vmem:[%s13825_s18 + $0x1b30] sm:$0xf0]  ;;  %7228 = vmatpush.bf16.msra.mxu0 %v11453_v24  ;;  %v13212_v44 = vld [vmem:[%s13825_s18 + $0x1804] sm:$0xf]  ;;  %v11693_v51 = vor.u32 %v13280_v28, %v11690_v39 }
 0x207   : > { %v11418_v45 = vld [vmem:[%s13825_s18 + $0x1810] sm:$0xf0]  ;;  %7241 = vmatpush.bf16.msra.mxu1 %v11581_v27  ;;  %v13244_v52 = vld [vmem:[%s13825_s18 + $0x1904] sm:$0xf]  ;;  %v11821_v56 = vor.u32 %v13312_v40, %v11818_v42 }
 0x208   : > { %7254 = vmatpush.bf16.msra.mxu2 %v11709_v62  ;;  %v11546_v41 = vld [vmem:[%s13825_s18 + $0x1910] sm:$0xf0]  ;;  %v13276_v53 = vld [vmem:[%s13825_s18 + $0x1a04] sm:$0xf]  ;;  %v11421_v55 = vor.u32 %v13212_v44, %v11418_v45 }
 0x209   : > { %7267 = vmatpush.bf16.msra.mxu3 %v11837_v37  ;;  %v11674_v36 = vld [vmem:[%s13825_s18 + $0x1a10] sm:$0xf0]  ;;  %v13308_v57 = vld [vmem:[%s13825_s18 + $0x1b04] sm:$0xf]  ;;  %v11549_v18 = vor.u32 %v13244_v52, %v11546_v41  ;;  %v13541_v41 = vld [vmem:[#allocation1] sm:$0xff] }
 0x20a   : > { %v11802_v58 = vld [vmem:[%s13825_s18 + $0x1b10] sm:$0xf0]  ;;  %v13368_v60 = vld [vmem:[%s13825_s18 + $0x1ce4] sm:$0xf]  ;;  %7229 = vmatpush.bf16.msra.mxu0 %v11437_v43  ;;  %v11677_v19 = vor.u32 %v13276_v53, %v11674_v36 }
 0x20b   : > { %v12042_v61 = vld [vmem:[%s13825_s18 + $0x1cf0] sm:$0xf0]  ;;  %v13400_v1 = vld [vmem:[%s13825_s18 + $0x1de4] sm:$0xf]  ;;  %7242 = vmatpush.bf16.msra.mxu1 %v11565_v50  ;;  %v11805_v25 = vor.u32 %v13308_v57, %v11802_v58  ;;  %v13542_v57 = vld [vmem:[#allocation1 + $0x12] sm:$0xff] }
 0x20c   : > { %v12170_v6 = vld [vmem:[%s13825_s18 + $0x1df0] sm:$0xf0]  ;;  %v13432_v7 = vld [vmem:[%s13825_s18 + $0x1ee4] sm:$0xf]  ;;  %7255 = vmatpush.bf16.msra.mxu2 %v11693_v51  ;;  %v12045_v27 = vor.u32 %v13368_v60, %v12042_v61 }
 0x20d   : > { %v12298_v16 = vld [vmem:[%s13825_s18 + $0x1ef0] sm:$0xf0]  ;;  %v13464_v23 = vld [vmem:[%s13825_s18 + $0x1fe4] sm:$0xf]  ;;  %7268 = vmatpush.bf16.msra.mxu3 %v11821_v56  ;;  %v12173_v62 = vor.u32 %v13400_v1, %v12170_v6 }
 0x20e   : > { %v12426_v24 = vld [vmem:[%s13825_s18 + $0x1ff0] sm:$0xf0]  ;;  %v12301_v30 = vor.u32 %v13432_v7, %v12298_v16  ;;  %v13364_v33 = vld [vmem:[%s13825_s18 + $0x1cc4] sm:$0xf]  ;;  %7230 = vmatpush.bf16.msra.mxu0 %v11421_v55 }
 0x20f   : > { %v12026_v34 = vld [vmem:[%s13825_s18 + $0x1cd0] sm:$0xf0]  ;;  %v13396_v35 = vld [vmem:[%s13825_s18 + $0x1dc4] sm:$0xf]  ;;  %v12429_v37 = vor.u32 %v13464_v23, %v12426_v24  ;;  %7243 = vmatpush.bf16.msra.mxu1 %v11549_v18 }
 0x210   : > { %v12154_v14 = vld [vmem:[%s13825_s18 + $0x1dd0] sm:$0xf0]  ;;  %v13428_v28 = vld [vmem:[%s13825_s18 + $0x1ec4] sm:$0xf]  ;;  %7256 = vmatpush.bf16.msra.mxu2 %v11677_v19  ;;  %v12029_v43 = vor.u32 %v13364_v33, %v12026_v34 }
 0x211   : > { %v12282_v39 = vld [vmem:[%s13825_s18 + $0x1ed0] sm:$0xf0]  ;;  %v13460_v40 = vld [vmem:[%s13825_s18 + $0x1fc4] sm:$0xf]  ;;  %7269 = vmatpush.bf16.msra.mxu3 %v11805_v25  ;;  %v12157_v44 = vor.u32 %v13396_v35, %v12154_v14  ;;  %7231 = vmatmul.bf16.vlgmr.msra.gmra.mxu0 %v13541_v41  ;;  %v7037_v35 = vpop.f32.mrf.mxu1 }
 0x212   : > { %v12410_v42 = vld [vmem:[%s13825_s18 + $0x1fd0] sm:$0xf0]  ;;  %7275 = vmatpush.bf16.msrb.mxu0 %v12045_v27  ;;  %v12285_v45 = vor.u32 %v13428_v28, %v12282_v39  ;;  %v13360_v50 = vld [vmem:[%s13825_s18 + $0x1ca4] sm:$0xf]  ;;  %v7024_v27 = vpop.f32.mrf.mxu0 }
 0x213   : > { %7288 = vmatpush.bf16.msrb.mxu1 %v12173_v62  ;;  %v12010_v51 = vld [vmem:[%s13825_s18 + $0x1cb0] sm:$0xf0]  ;;  %v13392_v52 = vld [vmem:[%s13825_s18 + $0x1da4] sm:$0xf]  ;;  %v12413_v53 = vor.u32 %v13460_v40, %v12410_v42  ;;  %7257 = vmatmul.bf16.vlgmr.msra.gmra.mxu2 %v13542_v57  ;;  %v7025_v33 = vadd.f32 %v7024_v27, %v14917_v2 }
 0x214   : > { %7301 = vmatpush.bf16.msrb.mxu2 %v12301_v30  ;;  %v12138_v54 = vld [vmem:[%s13825_s18 + $0x1db0] sm:$0xf0]  ;;  %v13424_v56 = vld [vmem:[%s13825_s18 + $0x1ea4] sm:$0xf]  ;;  %v12013_v1 = vor.u32 %v13360_v50, %v12010_v51 }
 0x215   : > { %7314 = vmatpush.bf16.msrb.mxu3 %v12429_v37  ;;  %v12266_v36 = vld [vmem:[%s13825_s18 + $0x1eb0] sm:$0xf0]  ;;  %v13543_v58 = vld [vmem:[#allocation1 + $0x9] sm:$0xff]  ;;  %v12141_v55 = vor.u32 %v13392_v52, %v12138_v54 }
 0x216   : > { %7244 = vmatmul.bf16.vlgmr.msra.gmra.mxu1 %v13543_v58  ;;  %v13456_v59 = vld [vmem:[%s13825_s18 + $0x1fa4] sm:$0xf]  ;;  %v12394_v60 = vld [vmem:[%s13825_s18 + $0x1fb0] sm:$0xf0]  ;;  %7276 = vmatpush.bf16.msrb.mxu0 %v12029_v43  ;;  %v12269_v6 = vor.u32 %v13424_v56, %v12266_v36  ;;  %v7038_v43 = vadd.f32 %v7037_v35, %v7025_v33  ;;  %v7050_v58 = vpop.f32.mrf.mxu2 }
 0x217   : > { %v13544_v61 = vld [vmem:[#allocation1 + $0x1b] sm:$0xff]  ;;  %7289 = vmatpush.bf16.msrb.mxu1 %v12157_v44  ;;  %v13356_v7 = vld [vmem:[%s13825_s18 + $0x1c84] sm:$0xf]  ;;  %v12397_v19 = vor.u32 %v13456_v59, %v12394_v60 }
 0x218   : > { %7270 = vmatmul.bf16.vlgmr.msra.gmra.mxu3 %v13544_v61  ;;  %7302 = vmatpush.bf16.msrb.mxu2 %v12285_v45  ;;  %v11994_v16 = vld [vmem:[%s13825_s18 + $0x1c90] sm:$0xf0]  ;;  %v13388_v18 = vld [vmem:[%s13825_s18 + $0x1d84] sm:$0xf] }
 0x219   : > { %7315 = vmatpush.bf16.msrb.mxu3 %v12413_v53  ;;  %v12122_v23 = vld [vmem:[%s13825_s18 + $0x1d90] sm:$0xf0]  ;;  %v13420_v24 = vld [vmem:[%s13825_s18 + $0x1e84] sm:$0xf]  ;;  %v11997_v34 = vor.u32 %v13356_v7, %v11994_v16 }
 0x21a   : > { %v12250_v25 = vld [vmem:[%s13825_s18 + $0x1e90] sm:$0xf0]  ;;  %v13452_v62 = vld [vmem:[%s13825_s18 + $0x1f84] sm:$0xf]  ;;  %7277 = vmatpush.bf16.msrb.mxu0 %v12013_v1  ;;  %v12125_v37 = vor.u32 %v13388_v18, %v12122_v23  ;;  %v7051_v1 = vadd.f32 %v7050_v58, %v7038_v43  ;;  %v7026_v16 = vpop.f32.mrf.mxu0 }
 0x21b   : > { %v12378_v30 = vld [vmem:[%s13825_s18 + $0x1f90] sm:$0xf0]  ;;  %7290 = vmatpush.bf16.msrb.mxu1 %v12141_v55  ;;  %v12253_v14 = vor.u32 %v13420_v24, %v12250_v25  ;;  %v13352_v28 = vld [vmem:[%s13825_s18 + $0x1c64] sm:$0xf]  ;;  %v7063_v55 = vpop.f32.mrf.mxu3  ;;  %v12571_v16 = vld [vmem:[%s13825_s18 + $0x3f4] sm:$0xf0] }
 0x21c   : > { %7303 = vmatpush.bf16.msrb.mxu2 %v12269_v6  ;;  %v11978_v39 = vld [vmem:[%s13825_s18 + $0x1c70] sm:$0xf0]  ;;  %v13384_v40 = vld [vmem:[%s13825_s18 + $0x1d64] sm:$0xf]  ;;  %v12381_v42 = vor.u32 %v13452_v62, %v12378_v30  ;;  %v14984_v23 = vadd.f32 %v7063_v55, %v7051_v1  ;;  %v12539_v1 = vld [vmem:[%s13825_s18 + $0x2f4] sm:$0xf0] }
 0x21d   : > { %7316 = vmatpush.bf16.msrb.mxu3 %v12397_v19  ;;  %v12106_v44 = vld [vmem:[%s13825_s18 + $0x1d70] sm:$0xf0]  ;;  %v13416_v45 = vld [vmem:[%s13825_s18 + $0x1e64] sm:$0xf]  ;;  %v11981_v52 = vor.u32 %v13352_v28, %v11978_v39  ;;  %v7039_v19 = vpop.f32.mrf.mxu1 }
 0x21e   : > { %v12234_v2 = vld [vmem:[%s13825_s18 + $0x1e70] sm:$0xf0]  ;;  %v13448_v50 = vld [vmem:[%s13825_s18 + $0x1f64] sm:$0xf]  ;;  %7278 = vmatpush.bf16.msrb.mxu0 %v11997_v34  ;;  %v12109_v41 = vor.u32 %v13384_v40, %v12106_v44 }
 0x21f   : > { %v12362_v51 = vld [vmem:[%s13825_s18 + $0x1f70] sm:$0xf0]  ;;  %7291 = vmatpush.bf16.msrb.mxu1 %v12125_v37  ;;  %v12237_v53 = vor.u32 %v13416_v45, %v12234_v2  ;;  %v13348_v54 = vld [vmem:[%s13825_s18 + $0x1c44] sm:$0xf] }
 0x220   : > { %7304 = vmatpush.bf16.msrb.mxu2 %v12253_v14  ;;  %v11962_v56 = vld [vmem:[%s13825_s18 + $0x1c50] sm:$0xf0]  ;;  %v13380_v36 = vld [vmem:[%s13825_s18 + $0x1d44] sm:$0xf]  ;;  %v12365_v57 = vor.u32 %v13448_v50, %v12362_v51 }
 0x221   : > { %7317 = vmatpush.bf16.msrb.mxu3 %v12381_v42  ;;  %v12090_v59 = vld [vmem:[%s13825_s18 + $0x1d50] sm:$0xf0]  ;;  %v13412_v60 = vld [vmem:[%s13825_s18 + $0x1e44] sm:$0xf]  ;;  %v11965_v18 = vor.u32 %v13348_v54, %v11962_v56  ;;  %v7052_v54 = vpop.f32.mrf.mxu2  ;;  %v8464_v56 = vld [vmem:[%s13825_s18 + $0xe8] sm:$0xf] }
 0x222   : > { %v12218_v61 = vld [vmem:[%s13825_s18 + $0x1e50] sm:$0xf0]  ;;  %v13444_v6 = vld [vmem:[%s13825_s18 + $0x1f44] sm:$0xf]  ;;  %7279 = vmatpush.bf16.msrb.mxu0 %v11981_v52  ;;  %v12093_v24 = vor.u32 %v13380_v36, %v12090_v59  ;;  %v12475_v36 = vld [vmem:[%s13825_s18 + $0xf4] sm:$0xf0] }
 0x223   : > { %v12346_v7 = vld [vmem:[%s13825_s18 + $0x1f50] sm:$0xf0]  ;;  %7292 = vmatpush.bf16.msrb.mxu1 %v12109_v41  ;;  %v12221_v25 = vor.u32 %v13412_v60, %v12218_v61  ;;  %v13344_v27 = vld [vmem:[%s13825_s18 + $0x1c24] sm:$0xf]  ;;  %v7065_v58 = vpop.f32.mrf.mxu3  ;;  %v12507_v60 = vld [vmem:[%s13825_s18 + $0x1f4] sm:$0xf0]  ;;  %v8465_v19 = vor.u32 %v12475_v36, %v8464_v56 }
 0x224   : > { %7305 = vmatpush.bf16.msrb.mxu2 %v12237_v53  ;;  %v11946_v62 = vld [vmem:[%s13825_s18 + $0x1c30] sm:$0xf0]  ;;  %v13376_v30 = vld [vmem:[%s13825_s18 + $0x1d24] sm:$0xf]  ;;  %v12349_v33 = vor.u32 %v13444_v6, %v12346_v7  ;;  %v8720_v61 = vld [vmem:[%s13825_s18 + $0x2e8] sm:$0xf] }
 0x225   : > { %7318 = vmatpush.bf16.msrb.mxu3 %v12365_v57  ;;  %v12074_v34 = vld [vmem:[%s13825_s18 + $0x1d30] sm:$0xf0]  ;;  %v13408_v35 = vld [vmem:[%s13825_s18 + $0x1e24] sm:$0xf]  ;;  %v11949_v39 = vor.u32 %v13344_v27, %v11946_v62  ;;  %v8592_v57 = vld [vmem:[%s13825_s18 + $0x1e8] sm:$0xf] }
 0x226   : > { %v12202_v37 = vld [vmem:[%s13825_s18 + $0x1e30] sm:$0xf0]  ;;  %v13440_v14 = vld [vmem:[%s13825_s18 + $0x1f24] sm:$0xf]  ;;  %7280 = vmatpush.bf16.msrb.mxu0 %v11965_v18  ;;  %v12077_v43 = vor.u32 %v13376_v30, %v12074_v34  ;;  %v8848_v7 = vld [vmem:[%s13825_s18 + $0x3e8] sm:$0xf] }
 0x227   : > { %v12330_v28 = vld [vmem:[%s13825_s18 + $0x1f30] sm:$0xf0]  ;;  %v13340_v40 = vld [vmem:[%s13825_s18 + $0x1c04] sm:$0xf]  ;;  %7293 = vmatpush.bf16.msrb.mxu1 %v12093_v24  ;;  %v12205_v44 = vor.u32 %v13408_v35, %v12202_v37  ;;  %v8593_v24 = vor.u32 %v12507_v60, %v8592_v57  ;;  %v8448_v27 = vld [vmem:[%s13825_s18 + $0xc8] sm:$0xf] }
 0x228   : > { %v11930_v42 = vld [vmem:[%s13825_s18 + $0x1c10] sm:$0xf0]  ;;  %7306 = vmatpush.bf16.msrb.mxu2 %v12221_v25  ;;  %v13372_v45 = vld [vmem:[%s13825_s18 + $0x1d04] sm:$0xf]  ;;  %v12333_v51 = vor.u32 %v13440_v14, %v12330_v28  ;;  %v8721_v25 = vor.u32 %v12539_v1, %v8720_v61  ;;  %v12471_v62 = vld [vmem:[%s13825_s18 + $0xd4] sm:$0xf0] }
 0x229   : > { %v12058_v2 = vld [vmem:[%s13825_s18 + $0x1d10] sm:$0xf0]  ;;  %v13404_v50 = vld [vmem:[%s13825_s18 + $0x1e04] sm:$0xf]  ;;  %7319 = vmatpush.bf16.msrb.mxu3 %v12349_v33  ;;  %v11933_v59 = vor.u32 %v13340_v40, %v11930_v42  ;;  %v8576_v30 = vld [vmem:[%s13825_s18 + $0x1c8] sm:$0xf]  ;;  %v8849_v33 = vor.u32 %v12571_v16, %v8848_v7 }
 0x22a   : > { %v12186_v52 = vld [vmem:[%s13825_s18 + $0x1e10] sm:$0xf0]  ;;  %v13436_v41 = vld [vmem:[%s13825_s18 + $0x1f04] sm:$0xf]  ;;  %7281 = vmatpush.bf16.msrb.mxu0 %v11949_v39  ;;  %v12061_v55 = vor.u32 %v13372_v45, %v12058_v2  ;;  %v12503_v34 = vld [vmem:[%s13825_s18 + $0x1d4] sm:$0xf0]  ;;  %v8449_v39 = vor.u32 %v12471_v62, %v8448_v27 }
 0x22b   : > { %v12314_v53 = vld [vmem:[%s13825_s18 + $0x1f10] sm:$0xf0]  ;;  %7294 = vmatpush.bf16.msrb.mxu1 %v12077_v43  ;;  %v12189_v6 = vor.u32 %v13404_v50, %v12186_v52  ;;  %v8704_v35 = vld [vmem:[%s13825_s18 + $0x2c8] sm:$0xf]  ;;  %v12535_v37 = vld [vmem:[%s13825_s18 + $0x2d4] sm:$0xf0]  ;;  %v8577_v40 = vor.u32 %v12503_v34, %v8576_v30 }
 0x22c   : > { %7307 = vmatpush.bf16.msrb.mxu2 %v12205_v44  ;;  %v12317_v18 = vor.u32 %v13436_v41, %v12314_v53  ;;  %v8832_v14 = vld [vmem:[%s13825_s18 + $0x3c8] sm:$0xf]  ;;  %v12567_v28 = vld [vmem:[%s13825_s18 + $0x3d4] sm:$0xf0]  ;;  %v8705_v42 = vor.u32 %v12535_v37, %v8704_v35  ;;  %v13545_v2 = vld [vmem:[#allocation1 + $0x24] sm:$0xff] }
 0x22d   : > { %7320 = vmatpush.bf16.msrb.mxu3 %v12333_v51  ;;  %v8432_v43 = vld [vmem:[%s13825_s18 + $0xa8] sm:$0xf]  ;;  %v12467_v44 = vld [vmem:[%s13825_s18 + $0xb4] sm:$0xf0]  ;;  %v8833_v50 = vor.u32 %v12567_v28, %v8832_v14  ;;  %v13546_v53 = vld [vmem:[#allocation1 + $0x36] sm:$0xff] }
 0x22e   : > { %7282 = vmatpush.bf16.msrb.mxu0 %v11933_v59  ;;  %v8560_v45 = vld [vmem:[%s13825_s18 + $0x1a8] sm:$0xf]  ;;  %v12499_v51 = vld [vmem:[%s13825_s18 + $0x1b4] sm:$0xf0]  ;;  %v8433_v58 = vor.u32 %v12467_v44, %v8432_v43 }
 0x22f   : > { %7295 = vmatpush.bf16.msrb.mxu1 %v12061_v55  ;;  %v8688_v52 = vld [vmem:[%s13825_s18 + $0x2a8] sm:$0xf]  ;;  %v12531_v41 = vld [vmem:[%s13825_s18 + $0x2b4] sm:$0xf0]  ;;  %v8561_v59 = vor.u32 %v12499_v51, %v8560_v45  ;;  %v7089_v30 = vpop.f32.mrf.mxu1 }
 0x230   : > { %7308 = vmatpush.bf16.msrb.mxu2 %v12189_v6  ;;  %v13547_v54 = vld [vmem:[#allocation1 + $0x2d] sm:$0xff]  ;;  %v12563_v36 = vld [vmem:[%s13825_s18 + $0x3b4] sm:$0xf0]  ;;  %v8689_v60 = vor.u32 %v12531_v41, %v8688_v52 }
 0x231   : > { %7321 = vmatpush.bf16.msrb.mxu3 %v12317_v18  ;;  %7283 = vmatmul.bf16.vlgmr.msrb.gmra.mxu0 %v13545_v2  ;;  %v8816_v56 = vld [vmem:[%s13825_s18 + $0x3a8] sm:$0xf]  ;;  %v13548_v57 = vld [vmem:[#allocation1 + $0x3f] sm:$0xff] }
 0x232   : > { %7327 = vmatpush.bf16.msra.mxu0 %v8465_v19  ;;  %7296 = vmatmul.bf16.vlgmr.msrb.gmra.mxu1 %v13547_v54  ;;  %v8416_v61 = vld [vmem:[%s13825_s18 + $0x88] sm:$0xf]  ;;  %v12463_v1 = vld [vmem:[%s13825_s18 + $0x94] sm:$0xf0]  ;;  %v8817_v6 = vor.u32 %v12563_v36, %v8816_v56  ;;  %v7076_v19 = vpop.f32.mrf.mxu0 }
 0x233   : > { %7340 = vmatpush.bf16.msra.mxu1 %v8593_v24  ;;  %7309 = vmatmul.bf16.vlgmr.msrb.gmra.mxu2 %v13546_v53  ;;  %v8544_v55 = vld [vmem:[%s13825_s18 + $0x188] sm:$0xf]  ;;  %v12495_v7 = vld [vmem:[%s13825_s18 + $0x194] sm:$0xf0]  ;;  %v7077_v27 = vadd.f32 %v7076_v19, %v14984_v23  ;;  %v8417_v62 = vor.u32 %v12463_v1, %v8416_v61 }
 0x234   : > { %7353 = vmatpush.bf16.msra.mxu2 %v8721_v25  ;;  %7322 = vmatmul.bf16.vlgmr.msrb.gmra.mxu3 %v13548_v57  ;;  %v8672_v16 = vld [vmem:[%s13825_s18 + $0x288] sm:$0xf]  ;;  %v12527_v18 = vld [vmem:[%s13825_s18 + $0x294] sm:$0xf0] }
 0x235   : > { %7366 = vmatpush.bf16.msra.mxu3 %v8849_v33  ;;  %v8800_v24 = vld [vmem:[%s13825_s18 + $0x388] sm:$0xf]  ;;  %v12559_v25 = vld [vmem:[%s13825_s18 + $0x394] sm:$0xf0]  ;;  %v8545_v33 = vor.u32 %v12495_v7, %v8544_v55  ;;  %v8673_v34 = vor.u32 %v12527_v18, %v8672_v16 }
 0x236   : > { %7328 = vmatpush.bf16.msra.mxu0 %v8449_v39  ;;  %v8400_v35 = vld [vmem:[%s13825_s18 + $0x68] sm:$0xf]  ;;  %v12459_v37 = vld [vmem:[%s13825_s18 + $0x74] sm:$0xf0]  ;;  %v8801_v28 = vor.u32 %v12559_v25, %v8800_v24  ;;  %v7090_v39 = vadd.f32 %v7089_v30, %v7077_v27  ;;  %v7102_v54 = vpop.f32.mrf.mxu2 }
 0x237   : > { %7341 = vmatpush.bf16.msra.mxu1 %v8577_v40  ;;  %v8528_v14 = vld [vmem:[%s13825_s18 + $0x168] sm:$0xf]  ;;  %v12491_v40 = vld [vmem:[%s13825_s18 + $0x174] sm:$0xf0]  ;;  %v8401_v45 = vor.u32 %v12459_v37, %v8400_v35 }
 0x238   : > { %7354 = vmatpush.bf16.msra.mxu2 %v8705_v42  ;;  %v8656_v42 = vld [vmem:[%s13825_s18 + $0x268] sm:$0xf]  ;;  %v12523_v23 = vld [vmem:[%s13825_s18 + $0x274] sm:$0xf0]  ;;  %v8529_v2 = vor.u32 %v12491_v40, %v8528_v14 }
 0x239   : > { %7367 = vmatpush.bf16.msra.mxu3 %v8833_v50  ;;  %v8784_v43 = vld [vmem:[%s13825_s18 + $0x368] sm:$0xf]  ;;  %v12555_v44 = vld [vmem:[%s13825_s18 + $0x374] sm:$0xf0]  ;;  %v8657_v50 = vor.u32 %v12523_v23, %v8656_v42 }
 0x23a   : > { %7329 = vmatpush.bf16.msra.mxu0 %v8433_v58  ;;  %v8384_v51 = vld [vmem:[%s13825_s18 + $0x48] sm:$0xf]  ;;  %v12455_v52 = vld [vmem:[%s13825_s18 + $0x54] sm:$0xf0]  ;;  %v8785_v53 = vor.u32 %v12555_v44, %v8784_v43  ;;  %v7103_v58 = vadd.f32 %v7102_v54, %v7090_v39  ;;  %v7078_v1 = vpop.f32.mrf.mxu0 }
 0x23b   : > { %7342 = vmatpush.bf16.msra.mxu1 %v8561_v59  ;;  %v8512_v41 = vld [vmem:[%s13825_s18 + $0x148] sm:$0xf]  ;;  %v12487_v56 = vld [vmem:[%s13825_s18 + $0x154] sm:$0xf0]  ;;  %v7115_v59 = vpop.f32.mrf.mxu3  ;;  %v8385_v55 = vor.u32 %v12455_v52, %v8384_v51 }
 0x23c   : > { %7355 = vmatpush.bf16.msra.mxu2 %v8689_v60  ;;  %v8640_v36 = vld [vmem:[%s13825_s18 + $0x248] sm:$0xf]  ;;  %v12519_v57 = vld [vmem:[%s13825_s18 + $0x254] sm:$0xf0]  ;;  %v15051_v7 = vadd.f32 %v7115_v59, %v7103_v58  ;;  %v8513_v16 = vor.u32 %v12487_v56, %v8512_v41 }
 0x23d   : > { %7368 = vmatpush.bf16.msra.mxu3 %v8817_v6  ;;  %v8768_v60 = vld [vmem:[%s13825_s18 + $0x348] sm:$0xf]  ;;  %v12551_v61 = vld [vmem:[%s13825_s18 + $0x354] sm:$0xf0]  ;;  %v7091_v6 = vpop.f32.mrf.mxu1  ;;  %v8641_v18 = vor.u32 %v12519_v57, %v8640_v36 }
 0x23e   : > { %7330 = vmatpush.bf16.msra.mxu0 %v8417_v62  ;;  %v8368_v19 = vld [vmem:[%s13825_s18 + $0x28] sm:$0xf]  ;;  %v12451_v24 = vld [vmem:[%s13825_s18 + $0x34] sm:$0xf0]  ;;  %v8769_v27 = vor.u32 %v12551_v61, %v8768_v60  ;;  %v7104_v51 = vpop.f32.mrf.mxu2 }
 0x23f   : > { %7343 = vmatpush.bf16.msra.mxu1 %v8545_v33  ;;  %v8496_v25 = vld [vmem:[%s13825_s18 + $0x128] sm:$0xf]  ;;  %v12483_v62 = vld [vmem:[%s13825_s18 + $0x134] sm:$0xf0]  ;;  %v8369_v37 = vor.u32 %v12451_v24, %v8368_v19 }
 0x240   : > { %7356 = vmatpush.bf16.msra.mxu2 %v8673_v34  ;;  %v8624_v30 = vld [vmem:[%s13825_s18 + $0x228] sm:$0xf]  ;;  %v12515_v33 = vld [vmem:[%s13825_s18 + $0x234] sm:$0xf0]  ;;  %v8497_v39 = vor.u32 %v12483_v62, %v8496_v25 }
 0x241   : > { %7369 = vmatpush.bf16.msra.mxu3 %v8801_v28  ;;  %v8752_v34 = vld [vmem:[%s13825_s18 + $0x328] sm:$0xf]  ;;  %v12547_v35 = vld [vmem:[%s13825_s18 + $0x334] sm:$0xf0]  ;;  %v8625_v40 = vor.u32 %v12515_v33, %v8624_v30 }
 0x242   : > { %7331 = vmatpush.bf16.msra.mxu0 %v8401_v45  ;;  %v8352_v14 = vld [vmem:[%s13825_s18 + $0x8] sm:$0xf]  ;;  %v12447_v28 = vld [vmem:[%s13825_s18 + $0x14] sm:$0xf0]  ;;  %v8753_v44 = vor.u32 %v12547_v35, %v8752_v34 }
 0x243   : > { %7344 = vmatpush.bf16.msra.mxu1 %v8529_v2  ;;  %v8480_v42 = vld [vmem:[%s13825_s18 + $0x108] sm:$0xf]  ;;  %v12479_v23 = vld [vmem:[%s13825_s18 + $0x114] sm:$0xf0]  ;;  %v7117_v54 = vpop.f32.mrf.mxu3  ;;  %v8353_v56 = vor.u32 %v12447_v28, %v8352_v14 }
 0x244   : > { %7357 = vmatpush.bf16.msra.mxu2 %v8657_v50  ;;  %v8608_v43 = vld [vmem:[%s13825_s18 + $0x208] sm:$0xf]  ;;  %v12511_v45 = vld [vmem:[%s13825_s18 + $0x214] sm:$0xf0]  ;;  %v8481_v59 = vor.u32 %v12479_v23, %v8480_v42 }
 0x245   : > { %7370 = vmatpush.bf16.msra.mxu3 %v8785_v53  ;;  %v8736_v2 = vld [vmem:[%s13825_s18 + $0x308] sm:$0xf]  ;;  %v12543_v50 = vld [vmem:[%s13825_s18 + $0x314] sm:$0xf0]  ;;  %v8609_v60 = vor.u32 %v12511_v45, %v8608_v43 }
 0x246   : > { %7332 = vmatpush.bf16.msra.mxu0 %v8385_v55  ;;  %v8976_v52 = vld [vmem:[%s13825_s18 + $0x4e8] sm:$0xf]  ;;  %v12603_v41 = vld [vmem:[%s13825_s18 + $0x4f4] sm:$0xf0]  ;;  %v8737_v55 = vor.u32 %v12543_v50, %v8736_v2 }
 0x247   : > { %7345 = vmatpush.bf16.msra.mxu1 %v8513_v16  ;;  %v9104_v53 = vld [vmem:[%s13825_s18 + $0x5e8] sm:$0xf]  ;;  %v12635_v36 = vld [vmem:[%s13825_s18 + $0x5f4] sm:$0xf0]  ;;  %v8977_v6 = vor.u32 %v12603_v41, %v8976_v52 }
 0x248   : > { %7358 = vmatpush.bf16.msra.mxu2 %v8641_v18  ;;  %v9232_v57 = vld [vmem:[%s13825_s18 + $0x6e8] sm:$0xf]  ;;  %v12667_v58 = vld [vmem:[%s13825_s18 + $0x6f4] sm:$0xf0]  ;;  %v9105_v16 = vor.u32 %v12635_v36, %v9104_v53 }
 0x249   : > { %7371 = vmatpush.bf16.msra.mxu3 %v8769_v27  ;;  %v9360_v61 = vld [vmem:[%s13825_s18 + $0x7e8] sm:$0xf]  ;;  %v12699_v1 = vld [vmem:[%s13825_s18 + $0x7f4] sm:$0xf0]  ;;  %v9233_v18 = vor.u32 %v12667_v58, %v9232_v57 }
 0x24a   : > { %7333 = vmatpush.bf16.msra.mxu0 %v8369_v37  ;;  %v8960_v19 = vld [vmem:[%s13825_s18 + $0x4c8] sm:$0xf]  ;;  %v12599_v24 = vld [vmem:[%s13825_s18 + $0x4d4] sm:$0xf0]  ;;  %v9361_v27 = vor.u32 %v12699_v1, %v9360_v61 }
 0x24b   : > { %7346 = vmatpush.bf16.msra.mxu1 %v8497_v39  ;;  %v9088_v25 = vld [vmem:[%s13825_s18 + $0x5c8] sm:$0xf]  ;;  %v12631_v62 = vld [vmem:[%s13825_s18 + $0x5d4] sm:$0xf0]  ;;  %v8961_v37 = vor.u32 %v12599_v24, %v8960_v19 }
 0x24c   : > { %7359 = vmatpush.bf16.msra.mxu2 %v8625_v40  ;;  %v9216_v30 = vld [vmem:[%s13825_s18 + $0x6c8] sm:$0xf]  ;;  %v12663_v33 = vld [vmem:[%s13825_s18 + $0x6d4] sm:$0xf0]  ;;  %v9089_v14 = vor.u32 %v12631_v62, %v9088_v25 }
 0x24d   : > { %7372 = vmatpush.bf16.msra.mxu3 %v8753_v44  ;;  %v9344_v34 = vld [vmem:[%s13825_s18 + $0x7c8] sm:$0xf]  ;;  %v12695_v35 = vld [vmem:[%s13825_s18 + $0x7d4] sm:$0xf0]  ;;  %v9217_v28 = vor.u32 %v12663_v33, %v9216_v30 }
 0x24e   : > { %7334 = vmatpush.bf16.msra.mxu0 %v8353_v56  ;;  %v8944_v39 = vld [vmem:[%s13825_s18 + $0x4a8] sm:$0xf]  ;;  %v12595_v40 = vld [vmem:[%s13825_s18 + $0x4b4] sm:$0xf0]  ;;  %v9345_v23 = vor.u32 %v12695_v35, %v9344_v34 }
 0x24f   : > { %7347 = vmatpush.bf16.msra.mxu1 %v8481_v59  ;;  %v9072_v42 = vld [vmem:[%s13825_s18 + $0x5a8] sm:$0xf]  ;;  %v12627_v43 = vld [vmem:[%s13825_s18 + $0x5b4] sm:$0xf0]  ;;  %v8945_v51 = vor.u32 %v12595_v40, %v8944_v39 }
 0x250   : > { %7360 = vmatpush.bf16.msra.mxu2 %v8609_v60  ;;  %v9200_v44 = vld [vmem:[%s13825_s18 + $0x6a8] sm:$0xf]  ;;  %v12659_v45 = vld [vmem:[%s13825_s18 + $0x6b4] sm:$0xf0]  ;;  %v9073_v52 = vor.u32 %v12627_v43, %v9072_v42  ;;  %v7128_v60 = vpop.f32.mrf.mxu0 }
 0x251   : > { %7373 = vmatpush.bf16.msra.mxu3 %v8737_v55  ;;  %v9328_v2 = vld [vmem:[%s13825_s18 + $0x7a8] sm:$0xf]  ;;  %v12691_v50 = vld [vmem:[%s13825_s18 + $0x7b4] sm:$0xf0]  ;;  %7335 = vmatmul.bf16.vlgmr.msra.gmra.mxu0 %v13944_v21  ;;  %v9201_v41 = vor.u32 %v12659_v45, %v9200_v44  ;;  %v7129_v55 = vadd.f32 %v7128_v60, %v15051_v7 }
 0x252   : > { %7379 = vmatpush.bf16.msrb.mxu0 %v8977_v6  ;;  %7348 = vmatmul.bf16.vlgmr.msra.gmra.mxu1 %v13951_v26  ;;  %v8928_v53 = vld [vmem:[%s13825_s18 + $0x488] sm:$0xf]  ;;  %v12591_v54 = vld [vmem:[%s13825_s18 + $0x494] sm:$0xf0]  ;;  %v9329_v36 = vor.u32 %v12691_v50, %v9328_v2 }
 0x253   : > { %7392 = vmatpush.bf16.msrb.mxu1 %v9105_v16  ;;  %7361 = vmatmul.bf16.vlgmr.msra.gmra.mxu2 %v13942_v20  ;;  %v9056_v56 = vld [vmem:[%s13825_s18 + $0x588] sm:$0xf]  ;;  %v12623_v57 = vld [vmem:[%s13825_s18 + $0x594] sm:$0xf0]  ;;  %v8929_v6 = vor.u32 %v12591_v54, %v8928_v53  ;;  %v7141_v16 = vpop.f32.mrf.mxu1 }
 0x254   : > { %7405 = vmatpush.bf16.msrb.mxu2 %v9233_v18  ;;  %7374 = vmatmul.bf16.vlgmr.msra.gmra.mxu3 %v13946_v22  ;;  %v9184_v58 = vld [vmem:[%s13825_s18 + $0x688] sm:$0xf]  ;;  %v12655_v59 = vld [vmem:[%s13825_s18 + $0x694] sm:$0xf0]  ;;  %v9057_v18 = vor.u32 %v12623_v57, %v9056_v56  ;;  %v7142_v30 = vadd.f32 %v7141_v16, %v7129_v55 }
 0x255   : > { %7418 = vmatpush.bf16.msrb.mxu3 %v9361_v27  ;;  %v9312_v61 = vld [vmem:[%s13825_s18 + $0x788] sm:$0xf]  ;;  %v12687_v1 = vld [vmem:[%s13825_s18 + $0x794] sm:$0xf0]  ;;  %v9185_v19 = vor.u32 %v12655_v59, %v9184_v58 }
 0x256   : > { %7380 = vmatpush.bf16.msrb.mxu0 %v8961_v37  ;;  %v8912_v24 = vld [vmem:[%s13825_s18 + $0x468] sm:$0xf]  ;;  %v12587_v25 = vld [vmem:[%s13825_s18 + $0x474] sm:$0xf0]  ;;  %v9313_v62 = vor.u32 %v12687_v1, %v9312_v61  ;;  %v7154_v44 = vpop.f32.mrf.mxu2 }
 0x257   : > { %7393 = vmatpush.bf16.msrb.mxu1 %v9089_v14  ;;  %v9040_v27 = vld [vmem:[%s13825_s18 + $0x568] sm:$0xf]  ;;  %v12619_v33 = vld [vmem:[%s13825_s18 + $0x574] sm:$0xf0]  ;;  %v8913_v14 = vor.u32 %v12587_v25, %v8912_v24 }
 0x258   : > { %7406 = vmatpush.bf16.msrb.mxu2 %v9217_v28  ;;  %v9168_v34 = vld [vmem:[%s13825_s18 + $0x668] sm:$0xf]  ;;  %v12651_v7 = vld [vmem:[%s13825_s18 + $0x674] sm:$0xf0]  ;;  %v9041_v28 = vor.u32 %v12619_v33, %v9040_v27  ;;  %v7130_v54 = vpop.f32.mrf.mxu0 }
 0x259   : > { %7419 = vmatpush.bf16.msrb.mxu3 %v9345_v23  ;;  %v9296_v35 = vld [vmem:[%s13825_s18 + $0x768] sm:$0xf]  ;;  %v12683_v37 = vld [vmem:[%s13825_s18 + $0x774] sm:$0xf0]  ;;  %v9169_v39 = vor.u32 %v12651_v7, %v9168_v34 }
 0x25a   : > { %7381 = vmatpush.bf16.msrb.mxu0 %v8945_v51  ;;  %v8896_v40 = vld [vmem:[%s13825_s18 + $0x448] sm:$0xf]  ;;  %v12583_v42 = vld [vmem:[%s13825_s18 + $0x454] sm:$0xf0]  ;;  %v9297_v43 = vor.u32 %v12683_v37, %v9296_v35  ;;  %v7155_v51 = vadd.f32 %v7154_v44, %v7142_v30 }
 0x25b   : > { %7394 = vmatpush.bf16.msrb.mxu1 %v9073_v52  ;;  %v9024_v23 = vld [vmem:[%s13825_s18 + $0x548] sm:$0xf]  ;;  %v12615_v45 = vld [vmem:[%s13825_s18 + $0x554] sm:$0xf0]  ;;  %v7167_v52 = vpop.f32.mrf.mxu3  ;;  %v8897_v56 = vor.u32 %v12583_v42, %v8896_v40 }
 0x25c   : > { %7407 = vmatpush.bf16.msrb.mxu2 %v9201_v41  ;;  %v9152_v2 = vld [vmem:[%s13825_s18 + $0x648] sm:$0xf]  ;;  %v12647_v50 = vld [vmem:[%s13825_s18 + $0x654] sm:$0xf0]  ;;  %v15122_v57 = vadd.f32 %v7167_v52, %v7155_v51  ;;  %v9025_v58 = vor.u32 %v12615_v45, %v9024_v23 }
 0x25d   : > { %7420 = vmatpush.bf16.msrb.mxu3 %v9329_v36  ;;  %v9280_v41 = vld [vmem:[%s13825_s18 + $0x748] sm:$0xf]  ;;  %v12679_v53 = vld [vmem:[%s13825_s18 + $0x754] sm:$0xf0]  ;;  %v7143_v36 = vpop.f32.mrf.mxu1  ;;  %v9153_v59 = vor.u32 %v12647_v50, %v9152_v2 }
 0x25e   : > { %7382 = vmatpush.bf16.msrb.mxu0 %v8929_v6  ;;  %v8880_v60 = vld [vmem:[%s13825_s18 + $0x428] sm:$0xf]  ;;  %v12579_v61 = vld [vmem:[%s13825_s18 + $0x434] sm:$0xf0]  ;;  %v9281_v55 = vor.u32 %v12679_v53, %v9280_v41  ;;  %v7156_v40 = vpop.f32.mrf.mxu2 }
 0x25f   : > { %7395 = vmatpush.bf16.msrb.mxu1 %v9057_v18  ;;  %v9008_v1 = vld [vmem:[%s13825_s18 + $0x528] sm:$0xf]  ;;  %v12611_v6 = vld [vmem:[%s13825_s18 + $0x534] sm:$0xf0]  ;;  %v8881_v25 = vor.u32 %v12579_v61, %v8880_v60 }
 0x260   : > { %7408 = vmatpush.bf16.msrb.mxu2 %v9185_v19  ;;  %v9136_v16 = vld [vmem:[%s13825_s18 + $0x628] sm:$0xf]  ;;  %v12643_v18 = vld [vmem:[%s13825_s18 + $0x634] sm:$0xf0]  ;;  %v9009_v30 = vor.u32 %v12611_v6, %v9008_v1 }
 0x261   : > { %7421 = vmatpush.bf16.msrb.mxu3 %v9313_v62  ;;  %v9264_v19 = vld [vmem:[%s13825_s18 + $0x728] sm:$0xf]  ;;  %v12675_v24 = vld [vmem:[%s13825_s18 + $0x734] sm:$0xf0]  ;;  %v9137_v33 = vor.u32 %v12643_v18, %v9136_v16 }
 0x262   : > { %7383 = vmatpush.bf16.msrb.mxu0 %v8913_v14  ;;  %v8864_v27 = vld [vmem:[%s13825_s18 + $0x408] sm:$0xf]  ;;  %v12575_v62 = vld [vmem:[%s13825_s18 + $0x414] sm:$0xf0]  ;;  %v9265_v37 = vor.u32 %v12675_v24, %v9264_v19 }
 0x263   : > { %7396 = vmatpush.bf16.msrb.mxu1 %v9041_v28  ;;  %v8992_v34 = vld [vmem:[%s13825_s18 + $0x508] sm:$0xf]  ;;  %v12607_v7 = vld [vmem:[%s13825_s18 + $0x514] sm:$0xf0]  ;;  %v7169_v44 = vpop.f32.mrf.mxu3  ;;  %v8865_v45 = vor.u32 %v12575_v62, %v8864_v27 }
 0x264   : > { %7409 = vmatpush.bf16.msrb.mxu2 %v9169_v39  ;;  %v9120_v35 = vld [vmem:[%s13825_s18 + $0x608] sm:$0xf]  ;;  %v12639_v14 = vld [vmem:[%s13825_s18 + $0x614] sm:$0xf0]  ;;  %v8993_v52 = vor.u32 %v12607_v7, %v8992_v34 }
 0x265   : > { %7422 = vmatpush.bf16.msrb.mxu3 %v9297_v43  ;;  %v9248_v28 = vld [vmem:[%s13825_s18 + $0x708] sm:$0xf]  ;;  %v12671_v39 = vld [vmem:[%s13825_s18 + $0x714] sm:$0xf0]  ;;  %v9121_v41 = vor.u32 %v12639_v14, %v9120_v35 }
 0x266   : > { %7384 = vmatpush.bf16.msrb.mxu0 %v8897_v56  ;;  %v9488_v42 = vld [vmem:[%s13825_s18 + $0x8e8] sm:$0xf]  ;;  %v12731_v23 = vld [vmem:[%s13825_s18 + $0x8f4] sm:$0xf0]  ;;  %v9249_v56 = vor.u32 %v12671_v39, %v9248_v28 }
 0x267   : > { %7397 = vmatpush.bf16.msrb.mxu1 %v9025_v58  ;;  %v9616_v43 = vld [vmem:[%s13825_s18 + $0x9e8] sm:$0xf]  ;;  %v12763_v2 = vld [vmem:[%s13825_s18 + $0x9f4] sm:$0xf0]  ;;  %v9489_v36 = vor.u32 %v12731_v23, %v9488_v42 }
 0x268   : > { %7410 = vmatpush.bf16.msrb.mxu2 %v9153_v59  ;;  %v9744_v50 = vld [vmem:[%s13825_s18 + $0xae8] sm:$0xf]  ;;  %v12795_v51 = vld [vmem:[%s13825_s18 + $0xaf4] sm:$0xf0]  ;;  %v9617_v58 = vor.u32 %v12763_v2, %v9616_v43 }
 0x269   : > { %7423 = vmatpush.bf16.msrb.mxu3 %v9281_v55  ;;  %v9872_v53 = vld [vmem:[%s13825_s18 + $0xbe8] sm:$0xf]  ;;  %v12827_v54 = vld [vmem:[%s13825_s18 + $0xbf4] sm:$0xf0]  ;;  %v9745_v59 = vor.u32 %v12795_v51, %v9744_v50 }
 0x26a   : > { %7385 = vmatpush.bf16.msrb.mxu0 %v8881_v25  ;;  %v9472_v60 = vld [vmem:[%s13825_s18 + $0x8c8] sm:$0xf]  ;;  %v12727_v61 = vld [vmem:[%s13825_s18 + $0x8d4] sm:$0xf0]  ;;  %v9873_v55 = vor.u32 %v12827_v54, %v9872_v53 }
 0x26b   : > { %7398 = vmatpush.bf16.msrb.mxu1 %v9009_v30  ;;  %v9600_v1 = vld [vmem:[%s13825_s18 + $0x9c8] sm:$0xf]  ;;  %v12759_v6 = vld [vmem:[%s13825_s18 + $0x9d4] sm:$0xf0]  ;;  %v9473_v25 = vor.u32 %v12727_v61, %v9472_v60 }
 0x26c   : > { %7411 = vmatpush.bf16.msrb.mxu2 %v9137_v33  ;;  %v9728_v16 = vld [vmem:[%s13825_s18 + $0xac8] sm:$0xf]  ;;  %v12791_v18 = vld [vmem:[%s13825_s18 + $0xad4] sm:$0xf0]  ;;  %v9601_v27 = vor.u32 %v12759_v6, %v9600_v1 }
 0x26d   : > { %7424 = vmatpush.bf16.msrb.mxu3 %v9265_v37  ;;  %v9856_v19 = vld [vmem:[%s13825_s18 + $0xbc8] sm:$0xf]  ;;  %v12823_v24 = vld [vmem:[%s13825_s18 + $0xbd4] sm:$0xf0]  ;;  %v9729_v62 = vor.u32 %v12791_v18, %v9728_v16 }
 0x26e   : > { %7386 = vmatpush.bf16.msrb.mxu0 %v8865_v45  ;;  %v9456_v30 = vld [vmem:[%s13825_s18 + $0x8a8] sm:$0xf]  ;;  %v12723_v33 = vld [vmem:[%s13825_s18 + $0x8b4] sm:$0xf0]  ;;  %v9857_v7 = vor.u32 %v12823_v24, %v9856_v19 }
 0x26f   : > { %7399 = vmatpush.bf16.msrb.mxu1 %v8993_v52  ;;  %v9584_v34 = vld [vmem:[%s13825_s18 + $0x9a8] sm:$0xf]  ;;  %v12755_v35 = vld [vmem:[%s13825_s18 + $0x9b4] sm:$0xf0]  ;;  %v9457_v40 = vor.u32 %v12723_v33, %v9456_v30 }
 0x270   : > { %7412 = vmatpush.bf16.msrb.mxu2 %v9121_v41  ;;  %v9712_v37 = vld [vmem:[%s13825_s18 + $0xaa8] sm:$0xf]  ;;  %v12787_v14 = vld [vmem:[%s13825_s18 + $0xab4] sm:$0xf0]  ;;  %v9585_v42 = vor.u32 %v12755_v35, %v9584_v34  ;;  %v7180_v41 = vpop.f32.mrf.mxu0 }
 0x271   : > { %7425 = vmatpush.bf16.msrb.mxu3 %v9249_v56  ;;  %7387 = vmatmul.bf16.vlgmr.msrb.gmra.mxu0 %v14000_v31  ;;  %v9840_v28 = vld [vmem:[%s13825_s18 + $0xba8] sm:$0xf]  ;;  %v12819_v39 = vld [vmem:[%s13825_s18 + $0xbb4] sm:$0xf0]  ;;  %v9713_v23 = vor.u32 %v12787_v14, %v9712_v37  ;;  %v7181_v56 = vadd.f32 %v7180_v41, %v15122_v57 }
 0x272   : > { %7431 = vmatpush.bf16.msra.mxu0 %v9489_v36  ;;  %7400 = vmatmul.bf16.vlgmr.msrb.gmra.mxu1 %v14007_v38  ;;  %v9440_v43 = vld [vmem:[%s13825_s18 + $0x888] sm:$0xf]  ;;  %v12719_v44 = vld [vmem:[%s13825_s18 + $0x894] sm:$0xf0]  ;;  %v9841_v2 = vor.u32 %v12819_v39, %v9840_v28 }
 0x273   : > { %7444 = vmatpush.bf16.msra.mxu1 %v9617_v58  ;;  %7413 = vmatmul.bf16.vlgmr.msrb.gmra.mxu2 %v13998_v29  ;;  %v9568_v45 = vld [vmem:[%s13825_s18 + $0x988] sm:$0xf]  ;;  %v12751_v50 = vld [vmem:[%s13825_s18 + $0x994] sm:$0xf0]  ;;  %v9441_v36 = vor.u32 %v12719_v44, %v9440_v43  ;;  %v7193_v58 = vpop.f32.mrf.mxu1 }
 0x274   : > { %7457 = vmatpush.bf16.msra.mxu2 %v9745_v59  ;;  %7426 = vmatmul.bf16.vlgmr.msrb.gmra.mxu3 %v14002_v32  ;;  %v9696_v51 = vld [vmem:[%s13825_s18 + $0xa88] sm:$0xf]  ;;  %v12783_v52 = vld [vmem:[%s13825_s18 + $0xa94] sm:$0xf0]  ;;  %v9569_v59 = vor.u32 %v12751_v50, %v9568_v45  ;;  %v7194_v16 = vadd.f32 %v7193_v58, %v7181_v56 }
 0x275   : > { %7470 = vmatpush.bf16.msra.mxu3 %v9873_v55  ;;  %v9824_v53 = vld [vmem:[%s13825_s18 + $0xb88] sm:$0xf]  ;;  %v12815_v54 = vld [vmem:[%s13825_s18 + $0xb94] sm:$0xf0]  ;;  %v9697_v60 = vor.u32 %v12783_v52, %v9696_v51 }
 0x276   : > { %7432 = vmatpush.bf16.msra.mxu0 %v9473_v25  ;;  %v9424_v61 = vld [vmem:[%s13825_s18 + $0x868] sm:$0xf]  ;;  %v12715_v1 = vld [vmem:[%s13825_s18 + $0x874] sm:$0xf0]  ;;  %v9825_v6 = vor.u32 %v12815_v54, %v9824_v53  ;;  %v7206_v37 = vpop.f32.mrf.mxu2 }
 0x277   : > { %7445 = vmatpush.bf16.msra.mxu1 %v9601_v27  ;;  %v9552_v55 = vld [vmem:[%s13825_s18 + $0x968] sm:$0xf]  ;;  %v12747_v18 = vld [vmem:[%s13825_s18 + $0x974] sm:$0xf0]  ;;  %v9425_v27 = vor.u32 %v12715_v1, %v9424_v61 }
 0x278   : > { %7458 = vmatpush.bf16.msra.mxu2 %v9729_v62  ;;  %v9680_v19 = vld [vmem:[%s13825_s18 + $0xa68] sm:$0xf]  ;;  %v12779_v57 = vld [vmem:[%s13825_s18 + $0xa74] sm:$0xf0]  ;;  %v9553_v62 = vor.u32 %v12747_v18, %v9552_v55  ;;  %v7182_v44 = vpop.f32.mrf.mxu0 }
 0x279   : > { %7471 = vmatpush.bf16.msra.mxu3 %v9857_v7  ;;  %v9808_v24 = vld [vmem:[%s13825_s18 + $0xb68] sm:$0xf]  ;;  %v12811_v25 = vld [vmem:[%s13825_s18 + $0xb74] sm:$0xf0]  ;;  %v9681_v30 = vor.u32 %v12779_v57, %v9680_v19 }
 0x27a   : > { %7433 = vmatpush.bf16.msra.mxu0 %v9457_v40  ;;  %v9408_v33 = vld [vmem:[%s13825_s18 + $0x848] sm:$0xf]  ;;  %v12711_v34 = vld [vmem:[%s13825_s18 + $0x854] sm:$0xf0]  ;;  %v9809_v35 = vor.u32 %v12811_v25, %v9808_v24  ;;  %v7207_v40 = vadd.f32 %v7206_v37, %v7194_v16 }
 0x27b   : > { %7446 = vmatpush.bf16.msra.mxu1 %v9585_v42  ;;  %v9536_v7 = vld [vmem:[%s13825_s18 + $0x948] sm:$0xf]  ;;  %v12743_v14 = vld [vmem:[%s13825_s18 + $0x954] sm:$0xf0]  ;;  %v7219_v42 = vpop.f32.mrf.mxu3  ;;  %v9409_v45 = vor.u32 %v12711_v34, %v9408_v33 }
 0x27c   : > { %7459 = vmatpush.bf16.msra.mxu2 %v9713_v23  ;;  %v9664_v28 = vld [vmem:[%s13825_s18 + $0xa48] sm:$0xf]  ;;  %v12775_v39 = vld [vmem:[%s13825_s18 + $0xa54] sm:$0xf0]  ;;  %v15193_v50 = vadd.f32 %v7219_v42, %v7207_v40  ;;  %v9537_v51 = vor.u32 %v12743_v14, %v9536_v7 }
 0x27d   : > { %7472 = vmatpush.bf16.msra.mxu3 %v9841_v2  ;;  %v9792_v23 = vld [vmem:[%s13825_s18 + $0xb48] sm:$0xf]  ;;  %v12807_v43 = vld [vmem:[%s13825_s18 + $0xb54] sm:$0xf0]  ;;  %v7195_v2 = vpop.f32.mrf.mxu1  ;;  %v9665_v52 = vor.u32 %v12775_v39, %v9664_v28 }
 0x27e   : > { %7434 = vmatpush.bf16.msra.mxu0 %v9441_v36  ;;  %v9392_v41 = vld [vmem:[%s13825_s18 + $0x828] sm:$0xf]  ;;  %v12707_v53 = vld [vmem:[%s13825_s18 + $0x834] sm:$0xf0]  ;;  %v9793_v56 = vor.u32 %v12807_v43, %v9792_v23  ;;  %v7208_v33 = vpop.f32.mrf.mxu2 }
 0x27f   : > { %7447 = vmatpush.bf16.msra.mxu1 %v9569_v59  ;;  %v9520_v54 = vld [vmem:[%s13825_s18 + $0x928] sm:$0xf]  ;;  %v12739_v36 = vld [vmem:[%s13825_s18 + $0x934] sm:$0xf0]  ;;  %v9393_v1 = vor.u32 %v12707_v53, %v9392_v41 }
 0x280   : > { %7460 = vmatpush.bf16.msra.mxu2 %v9697_v60  ;;  %v9648_v58 = vld [vmem:[%s13825_s18 + $0xa28] sm:$0xf]  ;;  %v12771_v59 = vld [vmem:[%s13825_s18 + $0xa34] sm:$0xf0]  ;;  %v9521_v16 = vor.u32 %v12739_v36, %v9520_v54 }
 0x281   : > { %7473 = vmatpush.bf16.msra.mxu3 %v9825_v6  ;;  %v9776_v60 = vld [vmem:[%s13825_s18 + $0xb28] sm:$0xf]  ;;  %v12803_v61 = vld [vmem:[%s13825_s18 + $0xb34] sm:$0xf0]  ;;  %v9649_v18 = vor.u32 %v12771_v59, %v9648_v58 }
 0x282   : > { %7435 = vmatpush.bf16.msra.mxu0 %v9425_v27  ;;  %v9376_v55 = vld [vmem:[%s13825_s18 + $0x808] sm:$0xf]  ;;  %v12703_v6 = vld [vmem:[%s13825_s18 + $0x814] sm:$0xf0]  ;;  %v9777_v25 = vor.u32 %v12803_v61, %v9776_v60 }
 0x283   : > { %7448 = vmatpush.bf16.msra.mxu1 %v9553_v62  ;;  %v9504_v19 = vld [vmem:[%s13825_s18 + $0x908] sm:$0xf]  ;;  %v12735_v57 = vld [vmem:[%s13825_s18 + $0x914] sm:$0xf0]  ;;  %v7221_v37 = vpop.f32.mrf.mxu3  ;;  %v9377_v14 = vor.u32 %v12703_v6, %v9376_v55 }
 0x284   : > { %7461 = vmatpush.bf16.msra.mxu2 %v9681_v30  ;;  %v9632_v24 = vld [vmem:[%s13825_s18 + $0xa08] sm:$0xf]  ;;  %v12767_v27 = vld [vmem:[%s13825_s18 + $0xa14] sm:$0xf0]  ;;  %v9505_v42 = vor.u32 %v12735_v57, %v9504_v19 }
 0x285   : > { %7474 = vmatpush.bf16.msra.mxu3 %v9809_v35  ;;  %v9760_v62 = vld [vmem:[%s13825_s18 + $0xb08] sm:$0xf]  ;;  %v12799_v30 = vld [vmem:[%s13825_s18 + $0xb14] sm:$0xf0]  ;;  %v9633_v23 = vor.u32 %v12767_v27, %v9632_v24 }
 0x286   : > { %7436 = vmatpush.bf16.msra.mxu0 %v9409_v45  ;;  %v10000_v34 = vld [vmem:[%s13825_s18 + $0xce8] sm:$0xf]  ;;  %v12859_v7 = vld [vmem:[%s13825_s18 + $0xcf4] sm:$0xf0]  ;;  %v9761_v45 = vor.u32 %v12799_v30, %v9760_v62 }
 0x287   : > { %7449 = vmatpush.bf16.msra.mxu1 %v9537_v51  ;;  %v10128_v35 = vld [vmem:[%s13825_s18 + $0xde8] sm:$0xf]  ;;  %v12891_v28 = vld [vmem:[%s13825_s18 + $0xdf4] sm:$0xf0]  ;;  %v10001_v2 = vor.u32 %v12859_v7, %v10000_v34 }
 0x288   : > { %7462 = vmatpush.bf16.msra.mxu2 %v9665_v52  ;;  %v10256_v39 = vld [vmem:[%s13825_s18 + $0xee8] sm:$0xf]  ;;  %v12923_v40 = vld [vmem:[%s13825_s18 + $0xef4] sm:$0xf0]  ;;  %v10129_v51 = vor.u32 %v12891_v28, %v10128_v35 }
 0x289   : > { %7475 = vmatpush.bf16.msra.mxu3 %v9793_v56  ;;  %v10384_v43 = vld [vmem:[%s13825_s18 + $0xfe8] sm:$0xf]  ;;  %v12955_v44 = vld [vmem:[%s13825_s18 + $0xff4] sm:$0xf0]  ;;  %v10257_v52 = vor.u32 %v12923_v40, %v10256_v39 }
 0x28a   : > { %7437 = vmatpush.bf16.msra.mxu0 %v9393_v1  ;;  %v9984_v41 = vld [vmem:[%s13825_s18 + $0xcc8] sm:$0xf]  ;;  %v12855_v53 = vld [vmem:[%s13825_s18 + $0xcd4] sm:$0xf0]  ;;  %v10385_v56 = vor.u32 %v12955_v44, %v10384_v43 }
 0x28b   : > { %7450 = vmatpush.bf16.msra.mxu1 %v9521_v16  ;;  %v10112_v54 = vld [vmem:[%s13825_s18 + $0xdc8] sm:$0xf]  ;;  %v12887_v36 = vld [vmem:[%s13825_s18 + $0xdd4] sm:$0xf0]  ;;  %v9985_v1 = vor.u32 %v12855_v53, %v9984_v41 }
 0x28c   : > { %7463 = vmatpush.bf16.msra.mxu2 %v9649_v18  ;;  %v10240_v58 = vld [vmem:[%s13825_s18 + $0xec8] sm:$0xf]  ;;  %v12919_v59 = vld [vmem:[%s13825_s18 + $0xed4] sm:$0xf0]  ;;  %v10113_v55 = vor.u32 %v12887_v36, %v10112_v54 }
 0x28d   : > { %7476 = vmatpush.bf16.msra.mxu3 %v9777_v25  ;;  %v10368_v60 = vld [vmem:[%s13825_s18 + $0xfc8] sm:$0xf]  ;;  %v12951_v61 = vld [vmem:[%s13825_s18 + $0xfd4] sm:$0xf0]  ;;  %v10241_v6 = vor.u32 %v12919_v59, %v10240_v58 }
 0x28e   : > { %7438 = vmatpush.bf16.msra.mxu0 %v9377_v14  ;;  %v9968_v16 = vld [vmem:[%s13825_s18 + $0xca8] sm:$0xf]  ;;  %v12851_v18 = vld [vmem:[%s13825_s18 + $0xcb4] sm:$0xf0]  ;;  %v10369_v57 = vor.u32 %v12951_v61, %v10368_v60 }
 0x28f   : > { %7451 = vmatpush.bf16.msra.mxu1 %v9505_v42  ;;  %v10096_v19 = vld [vmem:[%s13825_s18 + $0xda8] sm:$0xf]  ;;  %v12883_v24 = vld [vmem:[%s13825_s18 + $0xdb4] sm:$0xf0]  ;;  %v9969_v33 = vor.u32 %v12851_v18, %v9968_v16 }
 0x290   : > { %7464 = vmatpush.bf16.msra.mxu2 %v9633_v23  ;;  %v10224_v25 = vld [vmem:[%s13825_s18 + $0xea8] sm:$0xf]  ;;  %v12915_v27 = vld [vmem:[%s13825_s18 + $0xeb4] sm:$0xf0]  ;;  %v10097_v34 = vor.u32 %v12883_v24, %v10096_v19  ;;  %v7232_v23 = vpop.f32.mrf.mxu0 }
 0x291   : > { %7477 = vmatpush.bf16.msra.mxu3 %v9761_v45  ;;  %7439 = vmatmul.bf16.vlgmr.msra.gmra.mxu0 %v14075_v8  ;;  %v10352_v62 = vld [vmem:[%s13825_s18 + $0xfa8] sm:$0xf]  ;;  %v12947_v30 = vld [vmem:[%s13825_s18 + $0xfb4] sm:$0xf0]  ;;  %v10225_v7 = vor.u32 %v12915_v27, %v10224_v25  ;;  %v7233_v45 = vadd.f32 %v7232_v23, %v15193_v50 }
 0x292   : > { %7483 = vmatpush.bf16.msrb.mxu0 %v10001_v2  ;;  %7452 = vmatmul.bf16.vlgmr.msra.gmra.mxu1 %v14081_v12  ;;  %v9952_v35 = vld [vmem:[%s13825_s18 + $0xc88] sm:$0xf]  ;;  %v12847_v37 = vld [vmem:[%s13825_s18 + $0xc94] sm:$0xf0]  ;;  %v10353_v28 = vor.u32 %v12947_v30, %v10352_v62 }
 0x293   : > { %7496 = vmatpush.bf16.msrb.mxu1 %v10129_v51  ;;  %7465 = vmatmul.bf16.vlgmr.msra.gmra.mxu2 %v14079_v11  ;;  %v10080_v14 = vld [vmem:[%s13825_s18 + $0xd88] sm:$0xf]  ;;  %v12879_v39 = vld [vmem:[%s13825_s18 + $0xd94] sm:$0xf0]  ;;  %v9953_v2 = vor.u32 %v12847_v37, %v9952_v35  ;;  %v7245_v51 = vpop.f32.mrf.mxu1 }
 0x294   : > { %7509 = vmatpush.bf16.msrb.mxu2 %v10257_v52  ;;  %7478 = vmatmul.bf16.vlgmr.msra.gmra.mxu3 %v14084_v15  ;;  %v10208_v40 = vld [vmem:[%s13825_s18 + $0xe88] sm:$0xf]  ;;  %v12911_v42 = vld [vmem:[%s13825_s18 + $0xe94] sm:$0xf0]  ;;  %v10081_v52 = vor.u32 %v12879_v39, %v10080_v14  ;;  %v7246_v58 = vadd.f32 %v7245_v51, %v7233_v45 }
 0x295   : > { %7522 = vmatpush.bf16.msrb.mxu3 %v10385_v56  ;;  %v10336_v43 = vld [vmem:[%s13825_s18 + $0xf88] sm:$0xf]  ;;  %v12943_v44 = vld [vmem:[%s13825_s18 + $0xf94] sm:$0xf0]  ;;  %v10209_v41 = vor.u32 %v12911_v42, %v10208_v40 }
 0x296   : > { %7484 = vmatpush.bf16.msrb.mxu0 %v9985_v1  ;;  %v9936_v53 = vld [vmem:[%s13825_s18 + $0xc68] sm:$0xf]  ;;  %v12843_v54 = vld [vmem:[%s13825_s18 + $0xc74] sm:$0xf0]  ;;  %v10337_v36 = vor.u32 %v12943_v44, %v10336_v43  ;;  %v7258_v25 = vpop.f32.mrf.mxu2 }
 0x297   : > { %7497 = vmatpush.bf16.msrb.mxu1 %v10113_v55  ;;  %v10064_v56 = vld [vmem:[%s13825_s18 + $0xd68] sm:$0xf]  ;;  %v12875_v59 = vld [vmem:[%s13825_s18 + $0xd74] sm:$0xf0]  ;;  %v9937_v55 = vor.u32 %v12843_v54, %v9936_v53 }
 0x298   : > { %7510 = vmatpush.bf16.msrb.mxu2 %v10241_v6  ;;  %v10192_v60 = vld [vmem:[%s13825_s18 + $0xe68] sm:$0xf]  ;;  %v12907_v50 = vld [vmem:[%s13825_s18 + $0xe74] sm:$0xf0]  ;;  %v10065_v6 = vor.u32 %v12875_v59, %v10064_v56  ;;  %v7234_v37 = vpop.f32.mrf.mxu0 }
 0x299   : > { %7523 = vmatpush.bf16.msrb.mxu3 %v10369_v57  ;;  %v10320_v61 = vld [vmem:[%s13825_s18 + $0xf68] sm:$0xf]  ;;  %v12939_v1 = vld [vmem:[%s13825_s18 + $0xf74] sm:$0xf0]  ;;  %v10193_v16 = vor.u32 %v12907_v50, %v10192_v60 }
 0x29a   : > { %7485 = vmatpush.bf16.msrb.mxu0 %v9969_v33  ;;  %v9920_v18 = vld [vmem:[%s13825_s18 + $0xc48] sm:$0xf]  ;;  %v12839_v19 = vld [vmem:[%s13825_s18 + $0xc54] sm:$0xf0]  ;;  %v10321_v24 = vor.u32 %v12939_v1, %v10320_v61  ;;  %v7259_v33 = vadd.f32 %v7258_v25, %v7246_v58 }
 0x29b   : > { %7498 = vmatpush.bf16.msrb.mxu1 %v10097_v34  ;;  %v10048_v57 = vld [vmem:[%s13825_s18 + $0xd48] sm:$0xf]  ;;  %v12871_v27 = vld [vmem:[%s13825_s18 + $0xd54] sm:$0xf0]  ;;  %v7271_v34 = vpop.f32.mrf.mxu3  ;;  %v9921_v14 = vor.u32 %v12839_v19, %v9920_v18 }
 0x29c   : > { %7511 = vmatpush.bf16.msrb.mxu2 %v10225_v7  ;;  %v10176_v62 = vld [vmem:[%s13825_s18 + $0xe48] sm:$0xf]  ;;  %v12903_v30 = vld [vmem:[%s13825_s18 + $0xe54] sm:$0xf0]  ;;  %v15264_v39 = vadd.f32 %v7271_v34, %v7259_v33  ;;  %v10049_v40 = vor.u32 %v12871_v27, %v10048_v57 }
 0x29d   : > { %7524 = vmatpush.bf16.msrb.mxu3 %v10353_v28  ;;  %v10304_v7 = vld [vmem:[%s13825_s18 + $0xf48] sm:$0xf]  ;;  %v12935_v35 = vld [vmem:[%s13825_s18 + $0xf54] sm:$0xf0]  ;;  %v7247_v28 = vpop.f32.mrf.mxu1  ;;  %v10177_v42 = vor.u32 %v12903_v30, %v10176_v62 }
 0x29e   : > { %7486 = vmatpush.bf16.msrb.mxu0 %v9953_v2  ;;  %v9904_v23 = vld [vmem:[%s13825_s18 + $0xc28] sm:$0xf]  ;;  %v12835_v43 = vld [vmem:[%s13825_s18 + $0xc34] sm:$0xf0]  ;;  %v10305_v45 = vor.u32 %v12935_v35, %v10304_v7  ;;  %v7260_v18 = vpop.f32.mrf.mxu2 }
 0x29f   : > { %7499 = vmatpush.bf16.msrb.mxu1 %v10081_v52  ;;  %v10032_v44 = vld [vmem:[%s13825_s18 + $0xd28] sm:$0xf]  ;;  %v12867_v2 = vld [vmem:[%s13825_s18 + $0xd34] sm:$0xf0]  ;;  %v9905_v54 = vor.u32 %v12835_v43, %v9904_v23 }
 0x2a0   : > { %7512 = vmatpush.bf16.msrb.mxu2 %v10209_v41  ;;  %v10160_v51 = vld [vmem:[%s13825_s18 + $0xe28] sm:$0xf]  ;;  %v12899_v52 = vld [vmem:[%s13825_s18 + $0xe34] sm:$0xf0]  ;;  %v10033_v58 = vor.u32 %v12867_v2, %v10032_v44 }
 0x2a1   : > { %7525 = vmatpush.bf16.msrb.mxu3 %v10337_v36  ;;  %v10288_v41 = vld [vmem:[%s13825_s18 + $0xf28] sm:$0xf]  ;;  %v12931_v53 = vld [vmem:[%s13825_s18 + $0xf34] sm:$0xf0]  ;;  %v10161_v59 = vor.u32 %v12899_v52, %v10160_v51 }
 0x2a2   : > { %7487 = vmatpush.bf16.msrb.mxu0 %v9937_v55  ;;  %v9888_v56 = vld [vmem:[%s13825_s18 + $0xc08] sm:$0xf]  ;;  %v12831_v36 = vld [vmem:[%s13825_s18 + $0xc14] sm:$0xf0]  ;;  %v10289_v1 = vor.u32 %v12931_v53, %v10288_v41 }
 0x2a3   : > { %7500 = vmatpush.bf16.msrb.mxu1 %v10065_v6  ;;  %v10016_v60 = vld [vmem:[%s13825_s18 + $0xd08] sm:$0xf]  ;;  %v12863_v50 = vld [vmem:[%s13825_s18 + $0xd14] sm:$0xf0]  ;;  %v7273_v25 = vpop.f32.mrf.mxu3  ;;  %v9889_v27 = vor.u32 %v12831_v36, %v9888_v56 }
 0x2a4   : > { %7513 = vmatpush.bf16.msrb.mxu2 %v10193_v16  ;;  %v10144_v61 = vld [vmem:[%s13825_s18 + $0xe08] sm:$0xf]  ;;  %v12895_v55 = vld [vmem:[%s13825_s18 + $0xe14] sm:$0xf0]  ;;  %v10017_v34 = vor.u32 %v12863_v50, %v10016_v60 }
 0x2a5   : > { %7526 = vmatpush.bf16.msrb.mxu3 %v10321_v24  ;;  %v10272_v6 = vld [vmem:[%s13825_s18 + $0xf08] sm:$0xf]  ;;  %v12927_v16 = vld [vmem:[%s13825_s18 + $0xf14] sm:$0xf0]  ;;  %v10145_v7 = vor.u32 %v12895_v55, %v10144_v61 }
 0x2a6   : > { %7488 = vmatpush.bf16.msrb.mxu0 %v9921_v14  ;;  %v10512_v19 = vld [vmem:[%s13825_s18 + $0x10e8] sm:$0xf]  ;;  %v12987_v57 = vld [vmem:[%s13825_s18 + $0x10f4] sm:$0xf0]  ;;  %v10273_v14 = vor.u32 %v12927_v16, %v10272_v6 }
 0x2a7   : > { %7501 = vmatpush.bf16.msrb.mxu1 %v10049_v40  ;;  %v10640_v24 = vld [vmem:[%s13825_s18 + $0x11e8] sm:$0xf]  ;;  %v13019_v62 = vld [vmem:[%s13825_s18 + $0x11f4] sm:$0xf0]  ;;  %v10513_v28 = vor.u32 %v12987_v57, %v10512_v19 }
 0x2a8   : > { %7514 = vmatpush.bf16.msrb.mxu2 %v10177_v42  ;;  %v10768_v30 = vld [vmem:[%s13825_s18 + $0x12e8] sm:$0xf]  ;;  %v13051_v33 = vld [vmem:[%s13825_s18 + $0x12f4] sm:$0xf0]  ;;  %v10641_v40 = vor.u32 %v13019_v62, %v10640_v24 }
 0x2a9   : > { %7527 = vmatpush.bf16.msrb.mxu3 %v10305_v45  ;;  %v10896_v35 = vld [vmem:[%s13825_s18 + $0x13e8] sm:$0xf]  ;;  %v13083_v37 = vld [vmem:[%s13825_s18 + $0x13f4] sm:$0xf0]  ;;  %v10769_v42 = vor.u32 %v13051_v33, %v10768_v30 }
 0x2aa   : > { %7489 = vmatpush.bf16.msrb.mxu0 %v9905_v54  ;;  %v10496_v23 = vld [vmem:[%s13825_s18 + $0x10c8] sm:$0xf]  ;;  %v12983_v43 = vld [vmem:[%s13825_s18 + $0x10d4] sm:$0xf0]  ;;  %v10897_v45 = vor.u32 %v13083_v37, %v10896_v35 }
 0x2ab   : > { %7502 = vmatpush.bf16.msrb.mxu1 %v10033_v58  ;;  %v10624_v44 = vld [vmem:[%s13825_s18 + $0x11c8] sm:$0xf]  ;;  %v13015_v2 = vld [vmem:[%s13825_s18 + $0x11d4] sm:$0xf0]  ;;  %v10497_v54 = vor.u32 %v12983_v43, %v10496_v23 }
 0x2ac   : > { %7515 = vmatpush.bf16.msrb.mxu2 %v10161_v59  ;;  %v10752_v51 = vld [vmem:[%s13825_s18 + $0x12c8] sm:$0xf]  ;;  %v13047_v52 = vld [vmem:[%s13825_s18 + $0x12d4] sm:$0xf0]  ;;  %v10625_v56 = vor.u32 %v13015_v2, %v10624_v44 }
 0x2ad   : > { %7528 = vmatpush.bf16.msrb.mxu3 %v10289_v1  ;;  %v10880_v41 = vld [vmem:[%s13825_s18 + $0x13c8] sm:$0xf]  ;;  %v13079_v53 = vld [vmem:[%s13825_s18 + $0x13d4] sm:$0xf0]  ;;  %v10753_v36 = vor.u32 %v13047_v52, %v10752_v51 }
 0x2ae   : > { %7490 = vmatpush.bf16.msrb.mxu0 %v9889_v27  ;;  %v10480_v58 = vld [vmem:[%s13825_s18 + $0x10a8] sm:$0xf]  ;;  %v12979_v59 = vld [vmem:[%s13825_s18 + $0x10b4] sm:$0xf0]  ;;  %v10881_v50 = vor.u32 %v13079_v53, %v10880_v41 }
 0x2af   : > { %7503 = vmatpush.bf16.msrb.mxu1 %v10017_v34  ;;  %v10608_v60 = vld [vmem:[%s13825_s18 + $0x11a8] sm:$0xf]  ;;  %v13011_v61 = vld [vmem:[%s13825_s18 + $0x11b4] sm:$0xf0]  ;;  %v10481_v18 = vor.u32 %v12979_v59, %v10480_v58 }
 0x2b0   : > { %7516 = vmatpush.bf16.msrb.mxu2 %v10145_v7  ;;  %v10736_v1 = vld [vmem:[%s13825_s18 + $0x12a8] sm:$0xf]  ;;  %v13043_v55 = vld [vmem:[%s13825_s18 + $0x12b4] sm:$0xf0]  ;;  %v10609_v19 = vor.u32 %v13011_v61, %v10608_v60  ;;  %v7284_v7 = vpop.f32.mrf.mxu0 }
 0x2b1   : > { %7529 = vmatpush.bf16.msrb.mxu3 %v10273_v14  ;;  %7491 = vmatmul.bf16.vlgmr.msrb.gmra.mxu0 %v14141_v46  ;;  %v10864_v6 = vld [vmem:[%s13825_s18 + $0x13a8] sm:$0xf]  ;;  %v13075_v16 = vld [vmem:[%s13825_s18 + $0x13b4] sm:$0xf0]  ;;  %v10737_v57 = vor.u32 %v13043_v55, %v10736_v1  ;;  %v7285_v14 = vadd.f32 %v7284_v7, %v15264_v39 }
 0x2b2   : > { %7535 = vmatpush.bf16.msra.mxu0 %v10513_v28  ;;  %7504 = vmatmul.bf16.vlgmr.msrb.gmra.mxu1 %v14145_v48  ;;  %v10464_v24 = vld [vmem:[%s13825_s18 + $0x1088] sm:$0xf]  ;;  %v12975_v25 = vld [vmem:[%s13825_s18 + $0x1094] sm:$0xf0]  ;;  %v10865_v62 = vor.u32 %v13075_v16, %v10864_v6 }
 0x2b3   : > { %7548 = vmatpush.bf16.msra.mxu1 %v10641_v40  ;;  %7517 = vmatmul.bf16.vlgmr.msrb.gmra.mxu2 %v14143_v47  ;;  %v10592_v27 = vld [vmem:[%s13825_s18 + $0x1188] sm:$0xf]  ;;  %v13007_v30 = vld [vmem:[%s13825_s18 + $0x1194] sm:$0xf0]  ;;  %v10465_v28 = vor.u32 %v12975_v25, %v10464_v24  ;;  %v7297_v40 = vpop.f32.mrf.mxu1 }
 0x2b4   : > { %7561 = vmatpush.bf16.msra.mxu2 %v10769_v42  ;;  %7530 = vmatmul.bf16.vlgmr.msrb.gmra.mxu3 %v14147_v49  ;;  %v10720_v33 = vld [vmem:[%s13825_s18 + $0x1288] sm:$0xf]  ;;  %v13039_v34 = vld [vmem:[%s13825_s18 + $0x1294] sm:$0xf0]  ;;  %v10593_v42 = vor.u32 %v13007_v30, %v10592_v27  ;;  %v7298_v51 = vadd.f32 %v7297_v40, %v7285_v14 }
 0x2b5   : > { %7574 = vmatpush.bf16.msra.mxu3 %v10897_v45  ;;  %v10848_v35 = vld [vmem:[%s13825_s18 + $0x1388] sm:$0xf]  ;;  %v13071_v37 = vld [vmem:[%s13825_s18 + $0x1394] sm:$0xf0]  ;;  %v10721_v23 = vor.u32 %v13039_v34, %v10720_v33 }
 0x2b6   : > { %7536 = vmatpush.bf16.msra.mxu0 %v10497_v54  ;;  %v10448_v43 = vld [vmem:[%s13825_s18 + $0x1068] sm:$0xf]  ;;  %v12971_v44 = vld [vmem:[%s13825_s18 + $0x1074] sm:$0xf0]  ;;  %v10849_v2 = vor.u32 %v13071_v37, %v10848_v35  ;;  %v7310_v1 = vpop.f32.mrf.mxu2 }
 0x2b7   : > { %7549 = vmatpush.bf16.msra.mxu1 %v10625_v56  ;;  %v10576_v45 = vld [vmem:[%s13825_s18 + $0x1168] sm:$0xf]  ;;  %v13003_v52 = vld [vmem:[%s13825_s18 + $0x1174] sm:$0xf0]  ;;  %v10449_v56 = vor.u32 %v12971_v44, %v10448_v43 }
 0x2b8   : > { %7562 = vmatpush.bf16.msra.mxu2 %v10753_v36  ;;  %v10704_v41 = vld [vmem:[%s13825_s18 + $0x1268] sm:$0xf]  ;;  %v13035_v39 = vld [vmem:[%s13825_s18 + $0x1274] sm:$0xf0]  ;;  %v10577_v36 = vor.u32 %v13003_v52, %v10576_v45  ;;  %v7286_v25 = vpop.f32.mrf.mxu0 }
 0x2b9   : > { %7575 = vmatpush.bf16.msra.mxu3 %v10881_v50  ;;  %v10832_v53 = vld [vmem:[%s13825_s18 + $0x1368] sm:$0xf]  ;;  %v13067_v54 = vld [vmem:[%s13825_s18 + $0x1374] sm:$0xf0]  ;;  %v10705_v58 = vor.u32 %v13035_v39, %v10704_v41 }
 0x2ba   : > { %7537 = vmatpush.bf16.msra.mxu0 %v10481_v18  ;;  %v10432_v59 = vld [vmem:[%s13825_s18 + $0x1048] sm:$0xf]  ;;  %v12967_v60 = vld [vmem:[%s13825_s18 + $0x1054] sm:$0xf0]  ;;  %v10833_v61 = vor.u32 %v13067_v54, %v10832_v53  ;;  %v7311_v18 = vadd.f32 %v7310_v1, %v7298_v51 }
 0x2bb   : > { %7550 = vmatpush.bf16.msra.mxu1 %v10609_v19  ;;  %v10560_v50 = vld [vmem:[%s13825_s18 + $0x1148] sm:$0xf]  ;;  %v12999_v55 = vld [vmem:[%s13825_s18 + $0x1154] sm:$0xf0]  ;;  %v7323_v19 = vpop.f32.mrf.mxu3  ;;  %v10433_v27 = vor.u32 %v12967_v60, %v10432_v59 }
 0x2bc   : > { %7563 = vmatpush.bf16.msra.mxu2 %v10737_v57  ;;  %v10688_v6 = vld [vmem:[%s13825_s18 + $0x1248] sm:$0xf]  ;;  %v13031_v16 = vld [vmem:[%s13825_s18 + $0x1254] sm:$0xf0]  ;;  %v7324_v30 = vadd.f32 %v7323_v19, %v7311_v18  ;;  %v10561_v33 = vor.u32 %v12999_v55, %v10560_v50 }
 0x2bd   : > { %7576 = vmatpush.bf16.msra.mxu3 %v10865_v62  ;;  %v10816_v57 = vld [vmem:[%s13825_s18 + $0x1348] sm:$0xf]  ;;  %v13063_v24 = vld [vmem:[%s13825_s18 + $0x1354] sm:$0xf0]  ;;  %v7299_v62 = vpop.f32.mrf.mxu1  ;;  %v10689_v34 = vor.u32 %v13031_v16, %v10688_v6 }
 0x2be   : > { %7538 = vmatpush.bf16.msra.mxu0 %v10465_v28  ;;  %v10416_v7 = vld [vmem:[%s13825_s18 + $0x1028] sm:$0xf]  ;;  %v12963_v35 = vld [vmem:[%s13825_s18 + $0x1034] sm:$0xf0]  ;;  %v10817_v14 = vor.u32 %v13063_v24, %v10816_v57 }
 0x2bf   : > { %7551 = vmatpush.bf16.msra.mxu1 %v10593_v42  ;;  %v10544_v37 = vld [vmem:[%s13825_s18 + $0x1128] sm:$0xf]  ;;  %v12995_v28 = vld [vmem:[%s13825_s18 + $0x1134] sm:$0xf0]  ;;  %v10417_v45 = vor.u32 %v12963_v35, %v10416_v7 }
 0x2c0   : > { %7564 = vmatpush.bf16.msra.mxu2 %v10721_v23  ;;  %v10672_v40 = vld [vmem:[%s13825_s18 + $0x1228] sm:$0xf]  ;;  %v13027_v42 = vld [vmem:[%s13825_s18 + $0x1234] sm:$0xf0]  ;;  %v8163_v23 = vrot.slane %v7324_v30, 6  ;;  %v10545_v41 = vor.u32 %v12995_v28, %v10544_v37 }
 0x2c1   : > { %7577 = vmatpush.bf16.msra.mxu3 %v10849_v2  ;;  %v10800_v43 = vld [vmem:[%s13825_s18 + $0x1328] sm:$0xf]  ;;  %v13059_v44 = vld [vmem:[%s13825_s18 + $0x1334] sm:$0xf0]  ;;  %v10673_v39 = vor.u32 %v13027_v42, %v10672_v40 }
 0x2c2   : > { %7539 = vmatpush.bf16.msra.mxu0 %v10449_v56  ;;  %v10400_v2 = vld [vmem:[%s13825_s18 + $0x1008] sm:$0xf]  ;;  %v12959_v51 = vld [vmem:[%s13825_s18 + $0x1014] sm:$0xf0]  ;;  %v15347_v52 = vsel %vm8166_vm0, %v14776_v17, %v8163_v23  ;;  %v7312_v17 = vpop.f32.mrf.mxu2 }
 0x2c3   : > { %7552 = vmatpush.bf16.msra.mxu1 %v10577_v36  ;;  %v10528_v53 = vld [vmem:[%s13825_s18 + $0x1108] sm:$0xf]  ;;  %v12991_v54 = vld [vmem:[%s13825_s18 + $0x1114] sm:$0xf0]  ;;  %v10801_v36 = vor.u32 %v13059_v44, %v10800_v43  ;;  %v7325_v55 = vpop.f32.mrf.mxu3  ;;  %v10401_v6 = vor.u32 %v12959_v51, %v10400_v2 }
 0x2c4   : > { %7565 = vmatpush.bf16.msra.mxu2 %v10705_v58  ;;  %v10656_v56 = vld [vmem:[%s13825_s18 + $0x1208] sm:$0xf]  ;;  %v13023_v58 = vld [vmem:[%s13825_s18 + $0x1214] sm:$0xf0]  ;;  %v10529_v57 = vor.u32 %v12991_v54, %v10528_v53 }
 0x2c5   : > { %7578 = vmatpush.bf16.msra.mxu3 %v10833_v61  ;;  %v10784_v59 = vld [vmem:[%s13825_s18 + $0x1308] sm:$0xf]  ;;  %v13055_v60 = vld [vmem:[%s13825_s18 + $0x1314] sm:$0xf0]  ;;  %v10657_v24 = vor.u32 %v13023_v58, %v10656_v56 }
 0x2c6   : > { %7540 = vmatpush.bf16.msra.mxu0 %v10433_v27  ;;  %v11024_v50 = vld [vmem:[%s13825_s18 + $0x14e8] sm:$0xf]  ;;  %v13115_v61 = vld [vmem:[%s13825_s18 + $0x14f4] sm:$0xf0]  ;;  %v10785_v62 = vor.u32 %v13055_v60, %v10784_v59 }
 0x2c7   : > { %7553 = vmatpush.bf16.msra.mxu1 %v10561_v33  ;;  %v11152_v1 = vld [vmem:[%s13825_s18 + $0x15e8] sm:$0xf]  ;;  %v13147_v16 = vld [vmem:[%s13825_s18 + $0x15f4] sm:$0xf0]  ;;  %v11025_v30 = vor.u32 %v13115_v61, %v11024_v50 }
 0x2c8   : > { %7566 = vmatpush.bf16.msra.mxu2 %v10689_v34  ;;  %v11280_v18 = vld [vmem:[%s13825_s18 + $0x16e8] sm:$0xf]  ;;  %v13179_v19 = vld [vmem:[%s13825_s18 + $0x16f4] sm:$0xf0]  ;;  %v11153_v33 = vor.u32 %v13147_v16, %v11152_v1 }
 0x2c9   : > { %7579 = vmatpush.bf16.msra.mxu3 %v10817_v14  ;;  %v11408_v25 = vld [vmem:[%s13825_s18 + $0x17e8] sm:$0xf]  ;;  %v13211_v27 = vld [vmem:[%s13825_s18 + $0x17f4] sm:$0xf0]  ;;  %v11281_v34 = vor.u32 %v13179_v19, %v11280_v18 }
 0x2ca   : > { %7541 = vmatpush.bf16.msra.mxu0 %v10417_v45  ;;  %v11008_v7 = vld [vmem:[%s13825_s18 + $0x14c8] sm:$0xf]  ;;  %v13111_v35 = vld [vmem:[%s13825_s18 + $0x14d4] sm:$0xf0]  ;;  %v11409_v14 = vor.u32 %v13211_v27, %v11408_v25 }
 0x2cb   : > { %7554 = vmatpush.bf16.msra.mxu1 %v10545_v41  ;;  %v11136_v37 = vld [vmem:[%s13825_s18 + $0x15c8] sm:$0xf]  ;;  %v13143_v28 = vld [vmem:[%s13825_s18 + $0x15d4] sm:$0xf0]  ;;  %v11009_v44 = vor.u32 %v13111_v35, %v11008_v7 }
 0x2cc   : > { %7567 = vmatpush.bf16.msra.mxu2 %v10673_v39  ;;  %v11264_v40 = vld [vmem:[%s13825_s18 + $0x16c8] sm:$0xf]  ;;  %v13175_v42 = vld [vmem:[%s13825_s18 + $0x16d4] sm:$0xf0]  ;;  %v11137_v45 = vor.u32 %v13143_v28, %v11136_v37 }
 0x2cd   : > { %7580 = vmatpush.bf16.msra.mxu3 %v10801_v36  ;;  %v11392_v23 = vld [vmem:[%s13825_s18 + $0x17c8] sm:$0xf]  ;;  %v13207_v43 = vld [vmem:[%s13825_s18 + $0x17d4] sm:$0xf0]  ;;  %v11265_v2 = vor.u32 %v13175_v42, %v11264_v40 }
 0x2ce   : > { %7542 = vmatpush.bf16.msra.mxu0 %v10401_v6  ;;  %v10992_v51 = vld [vmem:[%s13825_s18 + $0x14a8] sm:$0xf]  ;;  %v13107_v41 = vld [vmem:[%s13825_s18 + $0x14b4] sm:$0xf0]  ;;  %v11393_v53 = vor.u32 %v13207_v43, %v11392_v23  ;;  %v7336_v27 = vpop.f32.mrf.mxu0 }
 0x2cf   : > { %7555 = vmatpush.bf16.msra.mxu1 %v10529_v57  ;;  %v11120_v39 = vld [vmem:[%s13825_s18 + $0x15a8] sm:$0xf]  ;;  %v13139_v54 = vld [vmem:[%s13825_s18 + $0x15b4] sm:$0xf0]  ;;  %v10993_v60 = vor.u32 %v13107_v41, %v10992_v51  ;;  %v7349_v35 = vpop.f32.mrf.mxu1 }
 0x2d0   : > { %7568 = vmatpush.bf16.msra.mxu2 %v10657_v24  ;;  %v11248_v56 = vld [vmem:[%s13825_s18 + $0x16a8] sm:$0xf]  ;;  %v13171_v36 = vld [vmem:[%s13825_s18 + $0x16b4] sm:$0xf0]  ;;  %v11121_v17 = vor.u32 %v13139_v54, %v11120_v39  ;;  %v7350_v42 = vadd.f32 %v7349_v35, %v7336_v27 }
 0x2d1   : > { %7581 = vmatpush.bf16.msra.mxu3 %v10785_v62  ;;  %7543 = vmatmul.bf16.vlgmr.msra.gmra.mxu0 %v14230_v5  ;;  %v11376_v58 = vld [vmem:[%s13825_s18 + $0x17a8] sm:$0xf]  ;;  %v13203_v59 = vld [vmem:[%s13825_s18 + $0x17b4] sm:$0xf0]  ;;  %v11249_v50 = vor.u32 %v13171_v36, %v11248_v56 }
 0x2d2   : > { %7587 = vmatpush.bf16.msrb.mxu0 %v11025_v30  ;;  %7556 = vmatmul.bf16.vlgmr.msra.gmra.mxu1 %v14236_v10  ;;  %v10976_v61 = vld [vmem:[%s13825_s18 + $0x1488] sm:$0xf]  ;;  %v13103_v1 = vld [vmem:[%s13825_s18 + $0x1494] sm:$0xf0]  ;;  %v11377_v6 = vor.u32 %v13203_v59, %v11376_v58 }
 0x2d3   : > { %7600 = vmatpush.bf16.msrb.mxu1 %v11153_v33  ;;  %7569 = vmatmul.bf16.vlgmr.msra.gmra.mxu2 %v14234_v9  ;;  %v11104_v55 = vld [vmem:[%s13825_s18 + $0x1588] sm:$0xf]  ;;  %v13135_v16 = vld [vmem:[%s13825_s18 + $0x1594] sm:$0xf0]  ;;  %v10977_v25 = vor.u32 %v13103_v1, %v10976_v61 }
 0x2d4   : > { %7613 = vmatpush.bf16.msrb.mxu2 %v11281_v34  ;;  %7582 = vmatmul.bf16.vlgmr.msra.gmra.mxu3 %v14238_v13  ;;  %v11232_v18 = vld [vmem:[%s13825_s18 + $0x1688] sm:$0xf]  ;;  %v13167_v19 = vld [vmem:[%s13825_s18 + $0x1694] sm:$0xf0]  ;;  %v11105_v62 = vor.u32 %v13135_v16, %v11104_v55 }
 0x2d5   : > { %7626 = vmatpush.bf16.msrb.mxu3 %v11409_v14  ;;  %v11360_v57 = vld [vmem:[%s13825_s18 + $0x1788] sm:$0xf]  ;;  %v13199_v24 = vld [vmem:[%s13825_s18 + $0x1794] sm:$0xf0]  ;;  %v11233_v30 = vor.u32 %v13167_v19, %v11232_v18 }
 0x2d6   : > { %7588 = vmatpush.bf16.msrb.mxu0 %v11009_v44  ;;  %v10960_v33 = vld [vmem:[%s13825_s18 + $0x1468] sm:$0xf]  ;;  %v13099_v34 = vld [vmem:[%s13825_s18 + $0x1474] sm:$0xf0]  ;;  %v11361_v37 = vor.u32 %v13199_v24, %v11360_v57  ;;  %v7338_v55 = vpop.f32.mrf.mxu0 }
 0x2d7   : > { %7601 = vmatpush.bf16.msrb.mxu1 %v11137_v45  ;;  %v11088_v7 = vld [vmem:[%s13825_s18 + $0x1568] sm:$0xf]  ;;  %v13131_v14 = vld [vmem:[%s13825_s18 + $0x1574] sm:$0xf0]  ;;  %v10961_v44 = vor.u32 %v13099_v34, %v10960_v33  ;;  %v7351_v24 = vpop.f32.mrf.mxu1 }
 0x2d8   : > { %7614 = vmatpush.bf16.msrb.mxu2 %v11265_v2  ;;  %v11216_v28 = vld [vmem:[%s13825_s18 + $0x1668] sm:$0xf]  ;;  %v13163_v40 = vld [vmem:[%s13825_s18 + $0x1674] sm:$0xf0]  ;;  %v11089_v45 = vor.u32 %v13131_v14, %v11088_v7 }
 0x2d9   : > { %7627 = vmatpush.bf16.msrb.mxu3 %v11393_v53  ;;  %v11344_v23 = vld [vmem:[%s13825_s18 + $0x1768] sm:$0xf]  ;;  %v13195_v43 = vld [vmem:[%s13825_s18 + $0x1774] sm:$0xf0]  ;;  %v11217_v2 = vor.u32 %v13163_v40, %v11216_v28  ;;  %v7362_v53 = vpop.f32.mrf.mxu2 }
 0x2da   : > { %7589 = vmatpush.bf16.msrb.mxu0 %v10993_v60  ;;  %v10944_v51 = vld [vmem:[%s13825_s18 + $0x1448] sm:$0xf]  ;;  %v13095_v41 = vld [vmem:[%s13825_s18 + $0x1454] sm:$0xf0]  ;;  %v11345_v54 = vor.u32 %v13195_v43, %v11344_v23  ;;  %v7363_v59 = vadd.f32 %v7362_v53, %v7350_v42  ;;  %v7375_v60 = vpop.f32.mrf.mxu3 }
 0x2db   : > { %7602 = vmatpush.bf16.msrb.mxu1 %v11121_v17  ;;  %v11072_v39 = vld [vmem:[%s13825_s18 + $0x1548] sm:$0xf]  ;;  %v13127_v56 = vld [vmem:[%s13825_s18 + $0x1554] sm:$0xf0]  ;;  %v10945_v61 = vor.u32 %v13095_v41, %v10944_v51 }
 0x2dc   : > { %7615 = vmatpush.bf16.msrb.mxu2 %v11249_v50  ;;  %v11200_v36 = vld [vmem:[%s13825_s18 + $0x1648] sm:$0xf]  ;;  %v13159_v58 = vld [vmem:[%s13825_s18 + $0x1654] sm:$0xf0]  ;;  %v15407_v1 = vadd.f32 %v7375_v60, %v7363_v59 }
 0x2dd   : > { %7628 = vmatpush.bf16.msrb.mxu3 %v11377_v6  ;;  %v11328_v17 = vld [vmem:[%s13825_s18 + $0x1748] sm:$0xf]  ;;  %v13191_v50 = vld [vmem:[%s13825_s18 + $0x1754] sm:$0xf0]  ;;  %v11073_v6 = vor.u32 %v13127_v56, %v11072_v39  ;;  %v11201_v16 = vor.u32 %v13159_v58, %v11200_v36 }
 0x2de   : > { %7590 = vmatpush.bf16.msrb.mxu0 %v10977_v25  ;;  %v10928_v18 = vld [vmem:[%s13825_s18 + $0x1428] sm:$0xf]  ;;  %v13091_v19 = vld [vmem:[%s13825_s18 + $0x1434] sm:$0xf0]  ;;  %v11329_v25 = vor.u32 %v13191_v50, %v11328_v17 }
 0x2df   : > { %7603 = vmatpush.bf16.msrb.mxu1 %v11105_v62  ;;  %v11056_v57 = vld [vmem:[%s13825_s18 + $0x1528] sm:$0xf]  ;;  %v13123_v27 = vld [vmem:[%s13825_s18 + $0x1534] sm:$0xf0]  ;;  %v10929_v7 = vor.u32 %v13091_v19, %v10928_v18 }
 0x2e0   : > { %7616 = vmatpush.bf16.msrb.mxu2 %v11233_v30  ;;  %v11184_v62 = vld [vmem:[%s13825_s18 + $0x1628] sm:$0xf]  ;;  %v13155_v30 = vld [vmem:[%s13825_s18 + $0x1634] sm:$0xf0]  ;;  %v11057_v14 = vor.u32 %v13123_v27, %v11056_v57 }
 0x2e1   : > { %7629 = vmatpush.bf16.msrb.mxu3 %v11361_v37  ;;  %v11312_v33 = vld [vmem:[%s13825_s18 + $0x1728] sm:$0xf]  ;;  %v13187_v34 = vld [vmem:[%s13825_s18 + $0x1734] sm:$0xf0]  ;;  %v11185_v28 = vor.u32 %v13155_v30, %v11184_v62  ;;  %v7364_v43 = vpop.f32.mrf.mxu2 }
 0x2e2   : > { %7591 = vmatpush.bf16.msrb.mxu0 %v10961_v44  ;;  %v10912_v35 = vld [vmem:[%s13825_s18 + $0x1408] sm:$0xf]  ;;  %v13087_v37 = vld [vmem:[%s13825_s18 + $0x1414] sm:$0xf0]  ;;  %v11313_v44 = vor.u32 %v13187_v34, %v11312_v33  ;;  %v7377_v41 = vpop.f32.mrf.mxu3 }
 0x2e3   : > { %7604 = vmatpush.bf16.msrb.mxu1 %v11089_v45  ;;  %v11040_v40 = vld [vmem:[%s13825_s18 + $0x1508] sm:$0xf]  ;;  %v13119_v42 = vld [vmem:[%s13825_s18 + $0x1514] sm:$0xf0]  ;;  %v10913_v56 = vor.u32 %v13087_v37, %v10912_v35 }
 0x2e4   : > { %7617 = vmatpush.bf16.msrb.mxu2 %v11217_v2  ;;  %v11168_v23 = vld [vmem:[%s13825_s18 + $0x1608] sm:$0xf]  ;;  %v13151_v45 = vld [vmem:[%s13825_s18 + $0x1614] sm:$0xf0]  ;;  %v11041_v60 = vor.u32 %v13119_v42, %v11040_v40 }
 0x2e5   : > { %7630 = vmatpush.bf16.msrb.mxu3 %v11345_v54  ;;  %v11296_v2 = vld [vmem:[%s13825_s18 + $0x1708] sm:$0xf]  ;;  %v13183_v51 = vld [vmem:[%s13825_s18 + $0x1714] sm:$0xf0]  ;;  %v11169_v17 = vor.u32 %v13151_v45, %v11168_v23 }
 0x2e6   : > { %7592 = vmatpush.bf16.msrb.mxu0 %v10945_v61  ;;  %v11536_v39 = vld [vmem:[%s13825_s18 + $0x18e8] sm:$0xf]  ;;  %v13243_v53 = vld [vmem:[%s13825_s18 + $0x18f4] sm:$0xf0]  ;;  %v11297_v55 = vor.u32 %v13183_v51, %v11296_v2 }
 0x2e7   : > { %7605 = vmatpush.bf16.msrb.mxu1 %v11073_v6  ;;  %v11664_v54 = vld [vmem:[%s13825_s18 + $0x19e8] sm:$0xf]  ;;  %v13275_v36 = vld [vmem:[%s13825_s18 + $0x19f4] sm:$0xf0]  ;;  %v11537_v6 = vor.u32 %v13243_v53, %v11536_v39 }
 0x2e8   : > { %7618 = vmatpush.bf16.msrb.mxu2 %v11201_v16  ;;  %v11792_v58 = vld [vmem:[%s13825_s18 + $0x1ae8] sm:$0xf]  ;;  %v13307_v59 = vld [vmem:[%s13825_s18 + $0x1af4] sm:$0xf0]  ;;  %v11665_v16 = vor.u32 %v13275_v36, %v11664_v54 }
 0x2e9   : > { %7631 = vmatpush.bf16.msrb.mxu3 %v11329_v25  ;;  %v11920_v50 = vld [vmem:[%s13825_s18 + $0x1be8] sm:$0xf]  ;;  %v13339_v61 = vld [vmem:[%s13825_s18 + $0x1bf4] sm:$0xf0]  ;;  %v11793_v18 = vor.u32 %v13307_v59, %v11792_v58 }
 0x2ea   : > { %7593 = vmatpush.bf16.msrb.mxu0 %v10929_v7  ;;  %v11520_v19 = vld [vmem:[%s13825_s18 + $0x18c8] sm:$0xf]  ;;  %v13239_v57 = vld [vmem:[%s13825_s18 + $0x18d4] sm:$0xf0]  ;;  %v11921_v25 = vor.u32 %v13339_v61, %v11920_v50 }
 0x2eb   : > { %7606 = vmatpush.bf16.msrb.mxu1 %v11057_v14  ;;  %v11648_v24 = vld [vmem:[%s13825_s18 + $0x19c8] sm:$0xf]  ;;  %v13271_v27 = vld [vmem:[%s13825_s18 + $0x19d4] sm:$0xf0]  ;;  %v11521_v7 = vor.u32 %v13239_v57, %v11520_v19 }
 0x2ec   : > { %7619 = vmatpush.bf16.msrb.mxu2 %v11185_v28  ;;  %v11776_v62 = vld [vmem:[%s13825_s18 + $0x1ac8] sm:$0xf]  ;;  %v13303_v30 = vld [vmem:[%s13825_s18 + $0x1ad4] sm:$0xf0]  ;;  %v11649_v35 = vor.u32 %v13271_v27, %v11648_v24 }
 0x2ed   : > { %7632 = vmatpush.bf16.msrb.mxu3 %v11313_v44  ;;  %v11904_v33 = vld [vmem:[%s13825_s18 + $0x1bc8] sm:$0xf]  ;;  %v13335_v34 = vld [vmem:[%s13825_s18 + $0x1bd4] sm:$0xf0]  ;;  %v11777_v37 = vor.u32 %v13303_v30, %v11776_v62 }
 0x2ee   : > { %7594 = vmatpush.bf16.msrb.mxu0 %v10913_v56  ;;  %v11504_v14 = vld [vmem:[%s13825_s18 + $0x18a8] sm:$0xf]  ;;  %v13235_v28 = vld [vmem:[%s13825_s18 + $0x18b4] sm:$0xf0]  ;;  %v11905_v42 = vor.u32 %v13335_v34, %v11904_v33 }
 0x2ef   : > { %7607 = vmatpush.bf16.msrb.mxu1 %v11041_v60  ;;  %v11632_v40 = vld [vmem:[%s13825_s18 + $0x19a8] sm:$0xf]  ;;  %v13267_v23 = vld [vmem:[%s13825_s18 + $0x19b4] sm:$0xf0]  ;;  %v11505_v51 = vor.u32 %v13235_v28, %v11504_v14 }
 0x2f0   : > { %7620 = vmatpush.bf16.msrb.mxu2 %v11169_v17  ;;  %v11760_v43 = vld [vmem:[%s13825_s18 + $0x1aa8] sm:$0xf]  ;;  %v13299_v44 = vld [vmem:[%s13825_s18 + $0x1ab4] sm:$0xf0]  ;;  %v11633_v41 = vor.u32 %v13267_v23, %v11632_v40 }
 0x2f1   : > { %7633 = vmatpush.bf16.msrb.mxu3 %v11297_v55  ;;  %7595 = vmatmul.bf16.vlgmr.msrb.gmra.mxu0 %v14296_v63  ;;  %v11888_v45 = vld [vmem:[%s13825_s18 + $0x1ba8] sm:$0xf]  ;;  %v13331_v2 = vld [vmem:[%s13825_s18 + $0x1bb4] sm:$0xf0]  ;;  %v11761_v39 = vor.u32 %v13299_v44, %v11760_v43  ;;  %v7388_v55 = vpop.f32.mrf.mxu0 }
 0x2f2   : > { %7639 = vmatpush.bf16.msra.mxu0 %v11537_v6  ;;  %7608 = vmatmul.bf16.vlgmr.msrb.gmra.mxu1 %v14300_v3  ;;  %v11488_v53 = vld [vmem:[%s13825_s18 + $0x1888] sm:$0xf]  ;;  %v13231_v54 = vld [vmem:[%s13825_s18 + $0x1894] sm:$0xf0]  ;;  %v11889_v36 = vor.u32 %v13331_v2, %v11888_v45  ;;  %v7389_v24 = vadd.f32 %v7388_v55, %v15407_v1 }
 0x2f3   : > { %7652 = vmatpush.bf16.msra.mxu1 %v11665_v16  ;;  %7621 = vmatmul.bf16.vlgmr.msrb.gmra.mxu2 %v14298_v0  ;;  %v11616_v56 = vld [vmem:[%s13825_s18 + $0x1988] sm:$0xf]  ;;  %v13263_v58 = vld [vmem:[%s13825_s18 + $0x1994] sm:$0xf0]  ;;  %v11489_v61 = vor.u32 %v13231_v54, %v11488_v53 }
 0x2f4   : > { %7665 = vmatpush.bf16.msra.mxu2 %v11793_v18  ;;  %7634 = vmatmul.bf16.vlgmr.msrb.gmra.mxu3 %v14302_v4  ;;  %v11744_v59 = vld [vmem:[%s13825_s18 + $0x1a88] sm:$0xf]  ;;  %v13295_v60 = vld [vmem:[%s13825_s18 + $0x1a94] sm:$0xf0]  ;;  %v11617_v6 = vor.u32 %v13263_v58, %v11616_v56 }
 0x2f5   : > { %7678 = vmatpush.bf16.msra.mxu3 %v11921_v25  ;;  %v11872_v17 = vld [vmem:[%s13825_s18 + $0x1b88] sm:$0xf]  ;;  %v13327_v50 = vld [vmem:[%s13825_s18 + $0x1b94] sm:$0xf0]  ;;  %v11745_v16 = vor.u32 %v13295_v60, %v11744_v59  ;;  %v7401_v25 = vpop.f32.mrf.mxu1 }
 0x2f6   : > { %7640 = vmatpush.bf16.msra.mxu0 %v11521_v7  ;;  %v11472_v18 = vld [vmem:[%s13825_s18 + $0x1868] sm:$0xf]  ;;  %v13227_v19 = vld [vmem:[%s13825_s18 + $0x1874] sm:$0xf0]  ;;  %v11873_v27 = vor.u32 %v13327_v50, %v11872_v17  ;;  %v7414_v23 = vpop.f32.mrf.mxu2 }
 0x2f7   : > { %7653 = vmatpush.bf16.msra.mxu1 %v11649_v35  ;;  %v11600_v57 = vld [vmem:[%s13825_s18 + $0x1968] sm:$0xf]  ;;  %v13259_v62 = vld [vmem:[%s13825_s18 + $0x1974] sm:$0xf0]  ;;  %v7402_v35 = vadd.f32 %v7401_v25, %v7389_v24 }
 0x2f8   : > { %7666 = vmatpush.bf16.msra.mxu2 %v11777_v37  ;;  %v11728_v30 = vld [vmem:[%s13825_s18 + $0x1a68] sm:$0xf]  ;;  %v13291_v33 = vld [vmem:[%s13825_s18 + $0x1a74] sm:$0xf0]  ;;  %v11473_v37 = vor.u32 %v13227_v19, %v11472_v18  ;;  %v11601_v1 = vor.u32 %v13259_v62, %v11600_v57 }
 0x2f9   : > { %7679 = vmatpush.bf16.msra.mxu3 %v11905_v42  ;;  %v11856_v34 = vld [vmem:[%s13825_s18 + $0x1b68] sm:$0xf]  ;;  %v13323_v7 = vld [vmem:[%s13825_s18 + $0x1b74] sm:$0xf0]  ;;  %v11729_v14 = vor.u32 %v13291_v33, %v11728_v30 }
 0x2fa   : > { %7641 = vmatpush.bf16.msra.mxu0 %v11505_v51  ;;  %v11456_v28 = vld [vmem:[%s13825_s18 + $0x1848] sm:$0xf]  ;;  %v13223_v40 = vld [vmem:[%s13825_s18 + $0x1854] sm:$0xf0]  ;;  %v11857_v43 = vor.u32 %v13323_v7, %v11856_v34  ;;  %v7415_v51 = vadd.f32 %v7414_v23, %v7402_v35 }
 0x2fb   : > { %7654 = vmatpush.bf16.msra.mxu1 %v11633_v41  ;;  %v11584_v42 = vld [vmem:[%s13825_s18 + $0x1948] sm:$0xf]  ;;  %v13255_v44 = vld [vmem:[%s13825_s18 + $0x1954] sm:$0xf0]  ;;  %v7427_v41 = vpop.f32.mrf.mxu3  ;;  %v11457_v54 = vor.u32 %v13223_v40, %v11456_v28 }
 0x2fc   : > { %7667 = vmatpush.bf16.msra.mxu2 %v11761_v39  ;;  %v11712_v45 = vld [vmem:[%s13825_s18 + $0x1a48] sm:$0xf]  ;;  %v13287_v2 = vld [vmem:[%s13825_s18 + $0x1a54] sm:$0xf0]  ;;  %v15478_v56 = vadd.f32 %v7427_v41, %v7415_v51  ;;  %v11585_v58 = vor.u32 %v13255_v44, %v11584_v42 }
 0x2fd   : > { %7680 = vmatpush.bf16.msra.mxu3 %v11889_v36  ;;  %v11840_v39 = vld [vmem:[%s13825_s18 + $0x1b48] sm:$0xf]  ;;  %v13319_v53 = vld [vmem:[%s13825_s18 + $0x1b54] sm:$0xf0]  ;;  %v7390_v36 = vpop.f32.mrf.mxu0  ;;  %v11713_v59 = vor.u32 %v13287_v2, %v11712_v45 }
 0x2fe   : > { %7642 = vmatpush.bf16.msra.mxu0 %v11489_v61  ;;  %v11440_v60 = vld [vmem:[%s13825_s18 + $0x1828] sm:$0xf]  ;;  %v13219_v17 = vld [vmem:[%s13825_s18 + $0x1834] sm:$0xf0]  ;;  %v7403_v61 = vpop.f32.mrf.mxu1  ;;  %v11841_v55 = vor.u32 %v13319_v53, %v11840_v39  ;;  %v7416_v35 = vpop.f32.mrf.mxu2 }
 0x2ff   : > { %7655 = vmatpush.bf16.msra.mxu1 %v11617_v6  ;;  %v11568_v50 = vld [vmem:[%s13825_s18 + $0x1928] sm:$0xf]  ;;  %v13251_v6 = vld [vmem:[%s13825_s18 + $0x1934] sm:$0xf0]  ;;  %v11441_v24 = vor.u32 %v13219_v17, %v11440_v60 }
 0x300   : > { %7668 = vmatpush.bf16.msra.mxu2 %v11745_v16  ;;  %v11696_v16 = vld [vmem:[%s13825_s18 + $0x1a28] sm:$0xf]  ;;  %v13283_v18 = vld [vmem:[%s13825_s18 + $0x1a34] sm:$0xf0]  ;;  %v11569_v62 = vor.u32 %v13251_v6, %v11568_v50 }
 0x301   : > { %7681 = vmatpush.bf16.msra.mxu3 %v11873_v27  ;;  %v11824_v19 = vld [vmem:[%s13825_s18 + $0x1b28] sm:$0xf]  ;;  %v13315_v57 = vld [vmem:[%s13825_s18 + $0x1b34] sm:$0xf0]  ;;  %v11697_v30 = vor.u32 %v13283_v18, %v11696_v16 }
 0x302   : > { %7643 = vmatpush.bf16.msra.mxu0 %v11473_v37  ;;  %v11424_v25 = vld [vmem:[%s13825_s18 + $0x1808] sm:$0xf]  ;;  %v13215_v27 = vld [vmem:[%s13825_s18 + $0x1814] sm:$0xf0]  ;;  %v11825_v37 = vor.u32 %v13315_v57, %v11824_v19 }
 0x303   : > { %7656 = vmatpush.bf16.msra.mxu1 %v11601_v1  ;;  %v11552_v33 = vld [vmem:[%s13825_s18 + $0x1908] sm:$0xf]  ;;  %v13247_v34 = vld [vmem:[%s13825_s18 + $0x1914] sm:$0xf0]  ;;  %v7429_v40 = vpop.f32.mrf.mxu3  ;;  %v11425_v44 = vor.u32 %v13215_v27, %v11424_v25 }
 0x304   : > { %7669 = vmatpush.bf16.msra.mxu2 %v11729_v14  ;;  %v11680_v7 = vld [vmem:[%s13825_s18 + $0x1a08] sm:$0xf]  ;;  %v13279_v1 = vld [vmem:[%s13825_s18 + $0x1a14] sm:$0xf0]  ;;  %v11553_v41 = vor.u32 %v13247_v34, %v11552_v33 }
 0x305   : > { %7682 = vmatpush.bf16.msra.mxu3 %v11857_v43  ;;  %v11808_v14 = vld [vmem:[%s13825_s18 + $0x1b08] sm:$0xf]  ;;  %v13311_v28 = vld [vmem:[%s13825_s18 + $0x1b14] sm:$0xf0]  ;;  %v11681_v39 = vor.u32 %v13279_v1, %v11680_v7 }
 0x306   : > { %7644 = vmatpush.bf16.msra.mxu0 %v11457_v54  ;;  %v12048_v42 = vld [vmem:[%s13825_s18 + $0x1ce8] sm:$0xf]  ;;  %v13371_v23 = vld [vmem:[%s13825_s18 + $0x1cf4] sm:$0xf0]  ;;  %v11809_v36 = vor.u32 %v13311_v28, %v11808_v14 }
 0x307   : > { %7657 = vmatpush.bf16.msra.mxu1 %v11585_v58  ;;  %v12176_v43 = vld [vmem:[%s13825_s18 + $0x1de8] sm:$0xf]  ;;  %v13403_v45 = vld [vmem:[%s13825_s18 + $0x1df4] sm:$0xf0]  ;;  %v12049_v58 = vor.u32 %v13371_v23, %v12048_v42 }
 0x308   : > { %7670 = vmatpush.bf16.msra.mxu2 %v11713_v59  ;;  %v12304_v2 = vld [vmem:[%s13825_s18 + $0x1ee8] sm:$0xf]  ;;  %v13435_v51 = vld [vmem:[%s13825_s18 + $0x1ef4] sm:$0xf0]  ;;  %v12177_v59 = vor.u32 %v13403_v45, %v12176_v43 }
 0x309   : > { %7683 = vmatpush.bf16.msra.mxu3 %v11841_v55  ;;  %v12432_v53 = vld [vmem:[%s13825_s18 + $0x1fe8] sm:$0xf]  ;;  %v13467_v54 = vld [vmem:[%s13825_s18 + $0x1ff4] sm:$0xf0]  ;;  %v12305_v60 = vor.u32 %v13435_v51, %v12304_v2 }
 0x30a   : > { %7645 = vmatpush.bf16.msra.mxu0 %v11441_v24  ;;  %v12032_v17 = vld [vmem:[%s13825_s18 + $0x1cc8] sm:$0xf]  ;;  %v13367_v50 = vld [vmem:[%s13825_s18 + $0x1cd4] sm:$0xf0]  ;;  %v12433_v55 = vor.u32 %v13467_v54, %v12432_v53 }
 0x30b   : > { %7658 = vmatpush.bf16.msra.mxu1 %v11569_v62  ;;  %v12160_v61 = vld [vmem:[%s13825_s18 + $0x1dc8] sm:$0xf]  ;;  %v13399_v6 = vld [vmem:[%s13825_s18 + $0x1dd4] sm:$0xf0]  ;;  %v12033_v24 = vor.u32 %v13367_v50, %v12032_v17 }
 0x30c   : > { %7671 = vmatpush.bf16.msra.mxu2 %v11697_v30  ;;  %v12288_v16 = vld [vmem:[%s13825_s18 + $0x1ec8] sm:$0xf]  ;;  %v13431_v18 = vld [vmem:[%s13825_s18 + $0x1ed4] sm:$0xf0]  ;;  %v12161_v25 = vor.u32 %v13399_v6, %v12160_v61 }
 0x30d   : > { %7684 = vmatpush.bf16.msra.mxu3 %v11825_v37  ;;  %v12416_v19 = vld [vmem:[%s13825_s18 + $0x1fc8] sm:$0xf]  ;;  %v13463_v57 = vld [vmem:[%s13825_s18 + $0x1fd4] sm:$0xf0]  ;;  %v12289_v27 = vor.u32 %v13431_v18, %v12288_v16 }
 0x30e   : > { %7646 = vmatpush.bf16.msra.mxu0 %v11425_v44  ;;  %v12016_v62 = vld [vmem:[%s13825_s18 + $0x1ca8] sm:$0xf]  ;;  %v13363_v30 = vld [vmem:[%s13825_s18 + $0x1cb4] sm:$0xf0]  ;;  %v12417_v7 = vor.u32 %v13463_v57, %v12416_v19 }
 0x30f   : > { %7659 = vmatpush.bf16.msra.mxu1 %v11553_v41  ;;  %v12144_v33 = vld [vmem:[%s13825_s18 + $0x1da8] sm:$0xf]  ;;  %v13549_v34 = vld [vmem:[#allocation1] sm:$0xff]  ;;  %v12017_v43 = vor.u32 %v13363_v30, %v12016_v62  ;;  %v7453_v61 = vpop.f32.mrf.mxu1 }
 0x310   : > { %7672 = vmatpush.bf16.msra.mxu2 %v11681_v39  ;;  %v13395_v35 = vld [vmem:[%s13825_s18 + $0x1db4] sm:$0xf0]  ;;  %v12272_v37 = vld [vmem:[%s13825_s18 + $0x1ea8] sm:$0xf] }
 0x311   : > { %7685 = vmatpush.bf16.msra.mxu3 %v11809_v36  ;;  %7647 = vmatmul.bf16.vlgmr.msra.gmra.mxu0 %v13549_v34  ;;  %v13427_v1 = vld [vmem:[%s13825_s18 + $0x1eb4] sm:$0xf0]  ;;  %v13550_v14 = vld [vmem:[#allocation1 + $0x12] sm:$0xff]  ;;  %v13551_v28 = vld [vmem:[#allocation1 + $0x9] sm:$0xff]  ;;  %v12145_v44 = vor.u32 %v13395_v35, %v12144_v33 }
 0x312   : > { %7691 = vmatpush.bf16.msrb.mxu0 %v12049_v58  ;;  %7660 = vmatmul.bf16.vlgmr.msra.gmra.mxu1 %v13551_v28  ;;  %v12400_v40 = vld [vmem:[%s13825_s18 + $0x1fa8] sm:$0xf]  ;;  %v13459_v42 = vld [vmem:[%s13825_s18 + $0x1fb4] sm:$0xf0]  ;;  %v12273_v45 = vor.u32 %v13427_v1, %v12272_v37  ;;  %v7440_v58 = vpop.f32.mrf.mxu0 }
 0x313   : > { %7704 = vmatpush.bf16.msrb.mxu1 %v12177_v59  ;;  %7673 = vmatmul.bf16.vlgmr.msra.gmra.mxu2 %v13550_v14  ;;  %v13552_v23 = vld [vmem:[#allocation1 + $0x1b] sm:$0xff]  ;;  %v12000_v2 = vld [vmem:[%s13825_s18 + $0x1c88] sm:$0xf]  ;;  %v12401_v39 = vor.u32 %v13459_v42, %v12400_v40  ;;  %v7441_v17 = vadd.f32 %v7440_v58, %v15478_v56 }
 0x314   : > { %7717 = vmatpush.bf16.msrb.mxu2 %v12305_v60  ;;  %7686 = vmatmul.bf16.vlgmr.msra.gmra.mxu3 %v13552_v23  ;;  %v13359_v51 = vld [vmem:[%s13825_s18 + $0x1c94] sm:$0xf0]  ;;  %v12128_v41 = vld [vmem:[%s13825_s18 + $0x1d88] sm:$0xf] }
 0x315   : > { %7730 = vmatpush.bf16.msrb.mxu3 %v12433_v55  ;;  %v13391_v53 = vld [vmem:[%s13825_s18 + $0x1d94] sm:$0xf0]  ;;  %v12256_v54 = vld [vmem:[%s13825_s18 + $0x1e88] sm:$0xf]  ;;  %v12001_v50 = vor.u32 %v13359_v51, %v12000_v2 }
 0x316   : > { %7692 = vmatpush.bf16.msrb.mxu0 %v12033_v24  ;;  %v13423_v36 = vld [vmem:[%s13825_s18 + $0x1e94] sm:$0xf0]  ;;  %v12384_v59 = vld [vmem:[%s13825_s18 + $0x1f88] sm:$0xf]  ;;  %v12129_v55 = vor.u32 %v13391_v53, %v12128_v41  ;;  %v7454_v24 = vadd.f32 %v7453_v61, %v7441_v17  ;;  %v7466_v28 = vpop.f32.mrf.mxu2 }
 0x317   : > { %7705 = vmatpush.bf16.msrb.mxu1 %v12161_v25  ;;  %v13455_v60 = vld [vmem:[%s13825_s18 + $0x1f94] sm:$0xf0]  ;;  %v12257_v6 = vor.u32 %v13423_v36, %v12256_v54  ;;  %v11984_v16 = vld [vmem:[%s13825_s18 + $0x1c68] sm:$0xf] }
 0x318   : > { %7718 = vmatpush.bf16.msrb.mxu2 %v12289_v27  ;;  %v13355_v18 = vld [vmem:[%s13825_s18 + $0x1c74] sm:$0xf0]  ;;  %v12112_v19 = vld [vmem:[%s13825_s18 + $0x1d68] sm:$0xf]  ;;  %v12385_v57 = vor.u32 %v13455_v60, %v12384_v59 }
 0x319   : > { %7731 = vmatpush.bf16.msrb.mxu3 %v12417_v7  ;;  %v13387_v25 = vld [vmem:[%s13825_s18 + $0x1d74] sm:$0xf0]  ;;  %v12240_v27 = vld [vmem:[%s13825_s18 + $0x1e68] sm:$0xf]  ;;  %v11985_v33 = vor.u32 %v13355_v18, %v11984_v16 }
 0x31a   : > { %7693 = vmatpush.bf16.msrb.mxu0 %v12017_v43  ;;  %v13419_v56 = vld [vmem:[%s13825_s18 + $0x1e74] sm:$0xf0]  ;;  %v12368_v62 = vld [vmem:[%s13825_s18 + $0x1f68] sm:$0xf]  ;;  %v12113_v34 = vor.u32 %v13387_v25, %v12112_v19  ;;  %v7467_v43 = vadd.f32 %v7466_v28, %v7454_v24  ;;  %v7442_v51 = vpop.f32.mrf.mxu0 }
 0x31b   : > { %7706 = vmatpush.bf16.msrb.mxu1 %v12145_v44  ;;  %v13451_v30 = vld [vmem:[%s13825_s18 + $0x1f74] sm:$0xf0]  ;;  %v12241_v7 = vor.u32 %v13419_v56, %v12240_v27  ;;  %v11968_v35 = vld [vmem:[%s13825_s18 + $0x1c48] sm:$0xf]  ;;  %v7479_v44 = vpop.f32.mrf.mxu3  ;;  %v8850_v51 = vld [vmem:[%s13825_s18 + $0x3f8] sm:$0xf0] }
 0x31c   : > { %7719 = vmatpush.bf16.msrb.mxu2 %v12273_v45  ;;  %v13351_v37 = vld [vmem:[%s13825_s18 + $0x1c54] sm:$0xf0]  ;;  %v12096_v1 = vld [vmem:[%s13825_s18 + $0x1d48] sm:$0xf]  ;;  %v12369_v14 = vor.u32 %v13451_v30, %v12368_v62  ;;  %v15545_v53 = vadd.f32 %v7479_v44, %v7467_v43  ;;  %v8722_v43 = vld [vmem:[%s13825_s18 + $0x2f8] sm:$0xf0] }
 0x31d   : > { %7732 = vmatpush.bf16.msrb.mxu3 %v12401_v39  ;;  %v13383_v40 = vld [vmem:[%s13825_s18 + $0x1d54] sm:$0xf0]  ;;  %v12224_v42 = vld [vmem:[%s13825_s18 + $0x1e48] sm:$0xf]  ;;  %v11969_v41 = vor.u32 %v13351_v37, %v11968_v35  ;;  %v7455_v39 = vpop.f32.mrf.mxu1  ;;  %v12473_v37 = vld [vmem:[%s13825_s18 + $0xec] sm:$0xf] }
 0x31e   : > { %7694 = vmatpush.bf16.msrb.mxu0 %v12001_v50  ;;  %v13415_v23 = vld [vmem:[%s13825_s18 + $0x1e54] sm:$0xf0]  ;;  %v12352_v45 = vld [vmem:[%s13825_s18 + $0x1f48] sm:$0xf]  ;;  %v12097_v54 = vor.u32 %v13383_v40, %v12096_v1  ;;  %v7468_v35 = vpop.f32.mrf.mxu2  ;;  %v8466_v1 = vld [vmem:[%s13825_s18 + $0xf8] sm:$0xf0] }
 0x31f   : > { %7707 = vmatpush.bf16.msrb.mxu1 %v12129_v55  ;;  %v13447_v2 = vld [vmem:[%s13825_s18 + $0x1f54] sm:$0xf0]  ;;  %v12225_v36 = vor.u32 %v13415_v23, %v12224_v42  ;;  %v11952_v58 = vld [vmem:[%s13825_s18 + $0x1c28] sm:$0xf]  ;;  %v8594_v42 = vld [vmem:[%s13825_s18 + $0x1f8] sm:$0xf0]  ;;  %v8469_v39 = vor.u32 %v12473_v37, %v8466_v1 }
 0x320   : > { %7720 = vmatpush.bf16.msrb.mxu2 %v12257_v6  ;;  %v13347_v59 = vld [vmem:[%s13825_s18 + $0x1c34] sm:$0xf0]  ;;  %v12080_v60 = vld [vmem:[%s13825_s18 + $0x1d28] sm:$0xf]  ;;  %v12353_v17 = vor.u32 %v13447_v2, %v12352_v45  ;;  %v12537_v23 = vld [vmem:[%s13825_s18 + $0x2ec] sm:$0xf] }
 0x321   : > { %7733 = vmatpush.bf16.msrb.mxu3 %v12385_v57  ;;  %v13379_v50 = vld [vmem:[%s13825_s18 + $0x1d34] sm:$0xf0]  ;;  %v12208_v61 = vld [vmem:[%s13825_s18 + $0x1e28] sm:$0xf]  ;;  %v11953_v18 = vor.u32 %v13347_v59, %v11952_v58  ;;  %v12569_v2 = vld [vmem:[%s13825_s18 + $0x3ec] sm:$0xf] }
 0x322   : > { %7695 = vmatpush.bf16.msrb.mxu0 %v11985_v33  ;;  %v13411_v55 = vld [vmem:[%s13825_s18 + $0x1e34] sm:$0xf0]  ;;  %v12336_v6 = vld [vmem:[%s13825_s18 + $0x1f28] sm:$0xf]  ;;  %v12081_v24 = vor.u32 %v13379_v50, %v12080_v60  ;;  %v12469_v58 = vld [vmem:[%s13825_s18 + $0xcc] sm:$0xf] }
 0x323   : > { %7708 = vmatpush.bf16.msrb.mxu1 %v12113_v34  ;;  %v13443_v16 = vld [vmem:[%s13825_s18 + $0x1f34] sm:$0xf0]  ;;  %v11936_v19 = vld [vmem:[%s13825_s18 + $0x1c08] sm:$0xf]  ;;  %v12209_v25 = vor.u32 %v13411_v55, %v12208_v61  ;;  %v7481_v28 = vpop.f32.mrf.mxu3  ;;  %v8450_v59 = vld [vmem:[%s13825_s18 + $0xd8] sm:$0xf0] }
 0x324   : > { %7721 = vmatpush.bf16.msrb.mxu2 %v12241_v7  ;;  %v13343_v57 = vld [vmem:[%s13825_s18 + $0x1c14] sm:$0xf0]  ;;  %v12064_v27 = vld [vmem:[%s13825_s18 + $0x1d08] sm:$0xf]  ;;  %v12337_v30 = vor.u32 %v13443_v16, %v12336_v6  ;;  %v12501_v60 = vld [vmem:[%s13825_s18 + $0x1cc] sm:$0xf] }
 0x325   : > { %7734 = vmatpush.bf16.msrb.mxu3 %v12369_v14  ;;  %v13375_v56 = vld [vmem:[%s13825_s18 + $0x1d14] sm:$0xf0]  ;;  %v12192_v62 = vld [vmem:[%s13825_s18 + $0x1e08] sm:$0xf]  ;;  %v12505_v14 = vld [vmem:[%s13825_s18 + $0x1ec] sm:$0xf]  ;;  %v11937_v40 = vor.u32 %v13343_v57, %v11936_v19 }
 0x326   : > { %7696 = vmatpush.bf16.msrb.mxu0 %v11969_v41  ;;  %v13407_v33 = vld [vmem:[%s13825_s18 + $0x1e14] sm:$0xf0]  ;;  %v12320_v34 = vld [vmem:[%s13825_s18 + $0x1f08] sm:$0xf]  ;;  %v12065_v44 = vor.u32 %v13375_v56, %v12064_v27  ;;  %v8578_v50 = vld [vmem:[%s13825_s18 + $0x1d8] sm:$0xf0] }
 0x327   : > { %7709 = vmatpush.bf16.msrb.mxu1 %v12097_v54  ;;  %v13439_v7 = vld [vmem:[%s13825_s18 + $0x1f14] sm:$0xf0]  ;;  %v12193_v45 = vor.u32 %v13407_v33, %v12192_v62  ;;  %v8597_v54 = vor.u32 %v12505_v14, %v8594_v42  ;;  %v12533_v61 = vld [vmem:[%s13825_s18 + $0x2cc] sm:$0xf]  ;;  %v8706_v55 = vld [vmem:[%s13825_s18 + $0x2d8] sm:$0xf0]  ;;  %v8581_v19 = vor.u32 %v12501_v60, %v8578_v50 }
 0x328   : > { %7722 = vmatpush.bf16.msrb.mxu2 %v12225_v36  ;;  %v12321_v41 = vor.u32 %v13439_v7, %v12320_v34  ;;  %v8725_v36 = vor.u32 %v12537_v23, %v8722_v43  ;;  %v12565_v6 = vld [vmem:[%s13825_s18 + $0x3cc] sm:$0xf]  ;;  %v8834_v16 = vld [vmem:[%s13825_s18 + $0x3d8] sm:$0xf0]  ;;  %v8709_v57 = vor.u32 %v12533_v61, %v8706_v55 }
 0x329   : > { %7735 = vmatpush.bf16.msrb.mxu3 %v12353_v17  ;;  %v8853_v17 = vor.u32 %v12569_v2, %v8850_v51  ;;  %v12497_v27 = vld [vmem:[%s13825_s18 + $0x1ac] sm:$0xf]  ;;  %v13553_v56 = vld [vmem:[#allocation1 + $0x24] sm:$0xff]  ;;  %v8837_v62 = vor.u32 %v12565_v6, %v8834_v16 }
 0x32a   : > { %7697 = vmatpush.bf16.msrb.mxu0 %v11953_v18  ;;  %v8453_v18 = vor.u32 %v12469_v58, %v8450_v59  ;;  %v12529_v33 = vld [vmem:[%s13825_s18 + $0x2ac] sm:$0xf]  ;;  %v8690_v34 = vld [vmem:[%s13825_s18 + $0x2b8] sm:$0xf0] }
 0x32b   : > { %7710 = vmatpush.bf16.msrb.mxu1 %v12081_v24  ;;  %v12465_v24 = vld [vmem:[%s13825_s18 + $0xac] sm:$0xf]  ;;  %v8818_v1 = vld [vmem:[%s13825_s18 + $0x3b8] sm:$0xf0]  ;;  %v8693_v42 = vor.u32 %v12529_v33, %v8690_v34 }
 0x32c   : > { %7723 = vmatpush.bf16.msrb.mxu2 %v12209_v25  ;;  %v8434_v25 = vld [vmem:[%s13825_s18 + $0xb8] sm:$0xf0]  ;;  %v13554_v7 = vld [vmem:[#allocation1 + $0x36] sm:$0xff]  ;;  %v13555_v35 = vld [vmem:[#allocation1 + $0x2d] sm:$0xff] }
 0x32d   : > { %7736 = vmatpush.bf16.msrb.mxu3 %v12337_v30  ;;  %v8562_v30 = vld [vmem:[%s13825_s18 + $0x1b8] sm:$0xf0]  ;;  %v12561_v37 = vld [vmem:[%s13825_s18 + $0x3ac] sm:$0xf]  ;;  %v8437_v28 = vor.u32 %v12465_v24, %v8434_v25 }
 0x32e   : > { %7698 = vmatpush.bf16.msrb.mxu0 %v11937_v40  ;;  %v13556_v14 = vld [vmem:[#allocation1 + $0x3f] sm:$0xff]  ;;  %v8565_v40 = vor.u32 %v12497_v27, %v8562_v30  ;;  %v12461_v23 = vld [vmem:[%s13825_s18 + $0x8c] sm:$0xf] }
 0x32f   : > { %7711 = vmatpush.bf16.msrb.mxu1 %v12065_v44  ;;  %v8418_v43 = vld [vmem:[%s13825_s18 + $0x98] sm:$0xf0]  ;;  %v12493_v44 = vld [vmem:[%s13825_s18 + $0x18c] sm:$0xf]  ;;  %v7505_v60 = vpop.f32.mrf.mxu1 }
 0x330   : > { %7724 = vmatpush.bf16.msrb.mxu2 %v12193_v45  ;;  %v8821_v45 = vor.u32 %v12561_v37, %v8818_v1  ;;  %v8546_v2 = vld [vmem:[%s13825_s18 + $0x198] sm:$0xf0]  ;;  %v12525_v51 = vld [vmem:[%s13825_s18 + $0x28c] sm:$0xf]  ;;  %v8421_v59 = vor.u32 %v12461_v23, %v8418_v43 }
 0x331   : > { %7737 = vmatpush.bf16.msrb.mxu3 %v12321_v41  ;;  %7699 = vmatmul.bf16.vlgmr.msrb.gmra.mxu0 %v13553_v56  ;;  %v8674_v41 = vld [vmem:[%s13825_s18 + $0x298] sm:$0xf0]  ;;  %v12457_v61 = vld [vmem:[%s13825_s18 + $0x6c] sm:$0xf] }
 0x332   : > { %7743 = vmatpush.bf16.msra.mxu0 %v8469_v39  ;;  %7712 = vmatmul.bf16.vlgmr.msrb.gmra.mxu1 %v13555_v35  ;;  %v7492_v39 = vpop.f32.mrf.mxu0  ;;  %v8677_v50 = vor.u32 %v12525_v51, %v8674_v41  ;;  %v8402_v55 = vld [vmem:[%s13825_s18 + $0x78] sm:$0xf0]  ;;  %v12489_v6 = vld [vmem:[%s13825_s18 + $0x16c] sm:$0xf] }
 0x333   : > { %7756 = vmatpush.bf16.msra.mxu1 %v8597_v54  ;;  %7725 = vmatmul.bf16.vlgmr.msrb.gmra.mxu2 %v13554_v7  ;;  %v12557_v54 = vld [vmem:[%s13825_s18 + $0x38c] sm:$0xf]  ;;  %v7493_v58 = vadd.f32 %v7492_v39, %v15545_v53  ;;  %v8658_v53 = vld [vmem:[%s13825_s18 + $0x278] sm:$0xf0]  ;;  %v8405_v27 = vor.u32 %v12457_v61, %v8402_v55 }
 0x334   : > { %7769 = vmatpush.bf16.msra.mxu2 %v8725_v36  ;;  %7738 = vmatmul.bf16.vlgmr.msrb.gmra.mxu3 %v13556_v14  ;;  %v8802_v36 = vld [vmem:[%s13825_s18 + $0x398] sm:$0xf0]  ;;  %v12553_v24 = vld [vmem:[%s13825_s18 + $0x36c] sm:$0xf] }
 0x335   : > { %7782 = vmatpush.bf16.msra.mxu3 %v8853_v17  ;;  %v8549_v17 = vor.u32 %v12493_v44, %v8546_v2  ;;  %v8805_v16 = vor.u32 %v12557_v54, %v8802_v36  ;;  %v8786_v25 = vld [vmem:[%s13825_s18 + $0x378] sm:$0xf0]  ;;  %v12453_v30 = vld [vmem:[%s13825_s18 + $0x4c] sm:$0xf] }
 0x336   : > { %7744 = vmatpush.bf16.msra.mxu0 %v8453_v18  ;;  %v7506_v18 = vadd.f32 %v7505_v60, %v7493_v58  ;;  %v8386_v33 = vld [vmem:[%s13825_s18 + $0x58] sm:$0xf0]  ;;  %v12485_v34 = vld [vmem:[%s13825_s18 + $0x14c] sm:$0xf]  ;;  %v8789_v7 = vor.u32 %v12553_v24, %v8786_v25  ;;  %v7518_v35 = vpop.f32.mrf.mxu2 }
 0x337   : > { %7757 = vmatpush.bf16.msra.mxu1 %v8581_v19  ;;  %v8530_v19 = vld [vmem:[%s13825_s18 + $0x178] sm:$0xf0]  ;;  %v12517_v1 = vld [vmem:[%s13825_s18 + $0x24c] sm:$0xf]  ;;  %v8389_v44 = vor.u32 %v12453_v30, %v8386_v33 }
 0x338   : > { %7770 = vmatpush.bf16.msra.mxu2 %v8709_v57  ;;  %v12521_v57 = vld [vmem:[%s13825_s18 + $0x26c] sm:$0xf]  ;;  %v8533_v56 = vor.u32 %v12489_v6, %v8530_v19  ;;  %v8514_v37 = vld [vmem:[%s13825_s18 + $0x158] sm:$0xf0] }
 0x339   : > { %7783 = vmatpush.bf16.msra.mxu3 %v8837_v62  ;;  %v8661_v62 = vor.u32 %v12521_v57, %v8658_v53  ;;  %v8642_v14 = vld [vmem:[%s13825_s18 + $0x258] sm:$0xf0]  ;;  %v8517_v51 = vor.u32 %v12485_v34, %v8514_v37  ;;  %v12449_v39 = vld [vmem:[%s13825_s18 + $0x2c] sm:$0xf] }
 0x33a   : > { %7745 = vmatpush.bf16.msra.mxu0 %v8437_v28  ;;  %v7519_v28 = vadd.f32 %v7518_v35, %v7506_v18  ;;  %v8770_v23 = vld [vmem:[%s13825_s18 + $0x358] sm:$0xf0]  ;;  %v7494_v43 = vpop.f32.mrf.mxu0  ;;  %v8645_v41 = vor.u32 %v12517_v1, %v8642_v14  ;;  %v12481_v36 = vld [vmem:[%s13825_s18 + $0x12c] sm:$0xf] }
 0x33b   : > { %7758 = vmatpush.bf16.msra.mxu1 %v8565_v40  ;;  %v7531_v40 = vpop.f32.mrf.mxu3  ;;  %v8370_v54 = vld [vmem:[%s13825_s18 + $0x38] sm:$0xf0]  ;;  %v12513_v60 = vld [vmem:[%s13825_s18 + $0x22c] sm:$0xf] }
 0x33c   : > { %7771 = vmatpush.bf16.msra.mxu2 %v8693_v42  ;;  %v12549_v42 = vld [vmem:[%s13825_s18 + $0x34c] sm:$0xf]  ;;  %v15612_v2 = vadd.f32 %v7531_v40, %v7519_v28  ;;  %v8754_v61 = vld [vmem:[%s13825_s18 + $0x338] sm:$0xf0]  ;;  %v8373_v55 = vor.u32 %v12449_v39, %v8370_v54 }
 0x33d   : > { %7784 = vmatpush.bf16.msra.mxu3 %v8821_v45  ;;  %v7507_v45 = vpop.f32.mrf.mxu1  ;;  %v8773_v58 = vor.u32 %v12549_v42, %v8770_v23  ;;  %v12445_v6 = vld [vmem:[%s13825_s18 + $0xc] sm:$0xf]  ;;  %v8482_v53 = vld [vmem:[%s13825_s18 + $0x118] sm:$0xf0] }
 0x33e   : > { %7746 = vmatpush.bf16.msra.mxu0 %v8421_v59  ;;  %v8498_v59 = vld [vmem:[%s13825_s18 + $0x138] sm:$0xf0]  ;;  %v12477_v57 = vld [vmem:[%s13825_s18 + $0x10c] sm:$0xf]  ;;  %v7520_v30 = vpop.f32.mrf.mxu2 }
 0x33f   : > { %7759 = vmatpush.bf16.msra.mxu1 %v8549_v17  ;;  %v8626_v17 = vld [vmem:[%s13825_s18 + $0x238] sm:$0xf0]  ;;  %v8501_v18 = vor.u32 %v12481_v36, %v8498_v59  ;;  %v12509_v24 = vld [vmem:[%s13825_s18 + $0x20c] sm:$0xf]  ;;  %v8485_v40 = vor.u32 %v12477_v57, %v8482_v53 }
 0x340   : > { %7772 = vmatpush.bf16.msra.mxu2 %v8677_v50  ;;  %v12545_v50 = vld [vmem:[%s13825_s18 + $0x32c] sm:$0xf]  ;;  %v8629_v19 = vor.u32 %v12513_v60, %v8626_v17  ;;  %v8978_v34 = vld [vmem:[%s13825_s18 + $0x4f8] sm:$0xf0] }
 0x341   : > { %7785 = vmatpush.bf16.msra.mxu3 %v8805_v16  ;;  %v8354_v16 = vld [vmem:[%s13825_s18 + $0x18] sm:$0xf0]  ;;  %v8757_v25 = vor.u32 %v12545_v50, %v8754_v61  ;;  %v12601_v33 = vld [vmem:[%s13825_s18 + $0x4ec] sm:$0xf] }
 0x342   : > { %7747 = vmatpush.bf16.msra.mxu0 %v8405_v27  ;;  %v8610_v27 = vld [vmem:[%s13825_s18 + $0x218] sm:$0xf0]  ;;  %v8357_v37 = vor.u32 %v12445_v6, %v8354_v16  ;;  %v12665_v14 = vld [vmem:[%s13825_s18 + $0x6ec] sm:$0xf]  ;;  %v8981_v45 = vor.u32 %v12601_v33, %v8978_v34 }
 0x343   : > { %7760 = vmatpush.bf16.msra.mxu1 %v8533_v56  ;;  %v12541_v56 = vld [vmem:[%s13825_s18 + $0x30c] sm:$0xf]  ;;  %v7533_v35 = vpop.f32.mrf.mxu3  ;;  %v9106_v1 = vld [vmem:[%s13825_s18 + $0x5f8] sm:$0xf0]  ;;  %v8613_v42 = vor.u32 %v12509_v24, %v8610_v27 }
 0x344   : > { %7773 = vmatpush.bf16.msra.mxu2 %v8661_v62  ;;  %v8738_v62 = vld [vmem:[%s13825_s18 + $0x318] sm:$0xf0]  ;;  %v12697_v23 = vld [vmem:[%s13825_s18 + $0x7ec] sm:$0xf] }
 0x345   : > { %7786 = vmatpush.bf16.msra.mxu3 %v8789_v7  ;;  %v12633_v7 = vld [vmem:[%s13825_s18 + $0x5ec] sm:$0xf]  ;;  %v9234_v28 = vld [vmem:[%s13825_s18 + $0x6f8] sm:$0xf0] }
 0x346   : > { %7748 = vmatpush.bf16.msra.mxu0 %v8389_v44  ;;  %v9362_v43 = vld [vmem:[%s13825_s18 + $0x7f8] sm:$0xf0]  ;;  %v8741_v44 = vor.u32 %v12541_v56, %v8738_v62  ;;  %v12597_v39 = vld [vmem:[%s13825_s18 + $0x4cc] sm:$0xf] }
 0x347   : > { %7761 = vmatpush.bf16.msra.mxu1 %v8517_v51  ;;  %v9109_v51 = vor.u32 %v12633_v7, %v9106_v1  ;;  %v8962_v54 = vld [vmem:[%s13825_s18 + $0x4d8] sm:$0xf0]  ;;  %v12629_v36 = vld [vmem:[%s13825_s18 + $0x5cc] sm:$0xf] }
 0x348   : > { %7774 = vmatpush.bf16.msra.mxu2 %v8645_v41  ;;  %v9237_v41 = vor.u32 %v12665_v14, %v9234_v28  ;;  %v9090_v59 = vld [vmem:[%s13825_s18 + $0x5d8] sm:$0xf0]  ;;  %v12661_v60 = vld [vmem:[%s13825_s18 + $0x6cc] sm:$0xf] }
 0x349   : > { %7787 = vmatpush.bf16.msra.mxu3 %v8773_v58  ;;  %v9365_v58 = vor.u32 %v12697_v23, %v9362_v43  ;;  %v9218_v17 = vld [vmem:[%s13825_s18 + $0x6d8] sm:$0xf0]  ;;  %v12693_v50 = vld [vmem:[%s13825_s18 + $0x7cc] sm:$0xf]  ;;  %v9093_v6 = vor.u32 %v12629_v36, %v9090_v59 }
 0x34a   : > { %7749 = vmatpush.bf16.msra.mxu0 %v8373_v55  ;;  %v9346_v61 = vld [vmem:[%s13825_s18 + $0x7d8] sm:$0xf0]  ;;  %v8965_v55 = vor.u32 %v12597_v39, %v8962_v54  ;;  %v9221_v16 = vor.u32 %v12661_v60, %v9218_v17  ;;  %v12625_v57 = vld [vmem:[%s13825_s18 + $0x5ac] sm:$0xf] }
 0x34b   : > { %7762 = vmatpush.bf16.msra.mxu1 %v8501_v18  ;;  %v12593_v18 = vld [vmem:[%s13825_s18 + $0x4ac] sm:$0xf]  ;;  %v9349_v53 = vor.u32 %v12693_v50, %v9346_v61  ;;  %v9074_v24 = vld [vmem:[%s13825_s18 + $0x5b8] sm:$0xf0] }
 0x34c   : > { %7775 = vmatpush.bf16.msra.mxu2 %v8629_v19  ;;  %v8946_v19 = vld [vmem:[%s13825_s18 + $0x4b8] sm:$0xf0]  ;;  %v12689_v56 = vld [vmem:[%s13825_s18 + $0x7ac] sm:$0xf]  ;;  %v9077_v33 = vor.u32 %v12625_v57, %v9074_v24 }
 0x34d   : > { %7788 = vmatpush.bf16.msra.mxu3 %v8757_v25  ;;  %v12657_v25 = vld [vmem:[%s13825_s18 + $0x6ac] sm:$0xf]  ;;  %v9202_v27 = vld [vmem:[%s13825_s18 + $0x6b8] sm:$0xf0]  ;;  %v8949_v30 = vor.u32 %v12593_v18, %v8946_v19 }
 0x34e   : > { %7750 = vmatpush.bf16.msra.mxu0 %v8357_v37  ;;  %v9330_v62 = vld [vmem:[%s13825_s18 + $0x7b8] sm:$0xf0]  ;;  %v9205_v34 = vor.u32 %v12657_v25, %v9202_v27  ;;  %v12621_v35 = vld [vmem:[%s13825_s18 + $0x58c] sm:$0xf]  ;;  %v7544_v14 = vpop.f32.mrf.mxu0 }
 0x34f   : > { %7763 = vmatpush.bf16.msra.mxu1 %v8485_v40  ;;  %v8930_v7 = vld [vmem:[%s13825_s18 + $0x498] sm:$0xf0]  ;;  %v9333_v37 = vor.u32 %v12689_v56, %v9330_v62  ;;  %v12685_v28 = vld [vmem:[%s13825_s18 + $0x78c] sm:$0xf]  ;;  %v7557_v23 = vpop.f32.mrf.mxu1 }
 0x350   : > { %7776 = vmatpush.bf16.msra.mxu2 %v8613_v42  ;;  %v9186_v1 = vld [vmem:[%s13825_s18 + $0x698] sm:$0xf0]  ;;  %v12681_v59 = vld [vmem:[%s13825_s18 + $0x76c] sm:$0xf] }
 0x351   : > { %7789 = vmatpush.bf16.msra.mxu3 %v8741_v44  ;;  %7751 = vmatmul.bf16.vlgmr.msra.gmra.mxu0 %v13944_v21  ;;  %v9058_v21 = vld [vmem:[%s13825_s18 + $0x598] sm:$0xf0]  ;;  %v12677_v56 = vld [vmem:[%s13825_s18 + $0x74c] sm:$0xf] }
 0x352   : > { %7795 = vmatpush.bf16.msrb.mxu0 %v8981_v45  ;;  %7764 = vmatmul.bf16.vlgmr.msra.gmra.mxu1 %v13951_v26  ;;  %v9314_v40 = vld [vmem:[%s13825_s18 + $0x798] sm:$0xf0]  ;;  %v7545_v26 = vadd.f32 %v7544_v14, %v15612_v2  ;;  %v9061_v43 = vor.u32 %v12621_v35, %v9058_v21  ;;  %v12585_v45 = vld [vmem:[%s13825_s18 + $0x46c] sm:$0xf] }
 0x353   : > { %7808 = vmatpush.bf16.msrb.mxu1 %v9109_v51  ;;  %7777 = vmatmul.bf16.vlgmr.msra.gmra.mxu2 %v13942_v20  ;;  %v12589_v20 = vld [vmem:[%s13825_s18 + $0x48c] sm:$0xf]  ;;  %v8914_v51 = vld [vmem:[%s13825_s18 + $0x478] sm:$0xf0]  ;;  %v9317_v39 = vor.u32 %v12685_v28, %v9314_v40 }
 0x354   : > { %7821 = vmatpush.bf16.msrb.mxu2 %v9237_v41  ;;  %7790 = vmatmul.bf16.vlgmr.msra.gmra.mxu3 %v13946_v22  ;;  %v12653_v22 = vld [vmem:[%s13825_s18 + $0x68c] sm:$0xf]  ;;  %v8933_v42 = vor.u32 %v12589_v20, %v8930_v7  ;;  %v7558_v54 = vadd.f32 %v7557_v23, %v7545_v26  ;;  %v9042_v36 = vld [vmem:[%s13825_s18 + $0x578] sm:$0xf0]  ;;  %v8917_v17 = vor.u32 %v12585_v45, %v8914_v51 }
 0x355   : > { %7834 = vmatpush.bf16.msrb.mxu3 %v9365_v58  ;;  %v9189_v44 = vor.u32 %v12653_v22, %v9186_v1  ;;  %v12617_v41 = vld [vmem:[%s13825_s18 + $0x56c] sm:$0xf]  ;;  %v9170_v2 = vld [vmem:[%s13825_s18 + $0x678] sm:$0xf0] }
 0x356   : > { %7796 = vmatpush.bf16.msrb.mxu0 %v8965_v55  ;;  %v12649_v58 = vld [vmem:[%s13825_s18 + $0x66c] sm:$0xf]  ;;  %v9298_v60 = vld [vmem:[%s13825_s18 + $0x778] sm:$0xf0]  ;;  %v9045_v50 = vor.u32 %v12617_v41, %v9042_v36  ;;  %v7570_v19 = vpop.f32.mrf.mxu2 }
 0x357   : > { %7809 = vmatpush.bf16.msrb.mxu1 %v9093_v6  ;;  %v9173_v61 = vor.u32 %v12649_v58, %v9170_v2  ;;  %v12581_v55 = vld [vmem:[%s13825_s18 + $0x44c] sm:$0xf]  ;;  %v8898_v6 = vld [vmem:[%s13825_s18 + $0x458] sm:$0xf0]  ;;  %v9301_v18 = vor.u32 %v12681_v59, %v9298_v60  ;;  %v7571_v25 = vadd.f32 %v7570_v19, %v7558_v54  ;;  %v7583_v27 = vpop.f32.mrf.mxu3 }
 0x358   : > { %7822 = vmatpush.bf16.msrb.mxu2 %v9221_v16  ;;  %v12613_v16 = vld [vmem:[%s13825_s18 + $0x54c] sm:$0xf]  ;;  %v9026_v57 = vld [vmem:[%s13825_s18 + $0x558] sm:$0xf0] }
 0x359   : > { %7835 = vmatpush.bf16.msrb.mxu3 %v9349_v53  ;;  %v12645_v53 = vld [vmem:[%s13825_s18 + $0x64c] sm:$0xf]  ;;  %v9154_v24 = vld [vmem:[%s13825_s18 + $0x658] sm:$0xf0]  ;;  %v15683_v20 = vadd.f32 %v7583_v27, %v7571_v25  ;;  %v9029_v7 = vor.u32 %v12613_v16, %v9026_v57 }
 0x35a   : > { %7797 = vmatpush.bf16.msrb.mxu0 %v8949_v30  ;;  %v9282_v62 = vld [vmem:[%s13825_s18 + $0x758] sm:$0xf0]  ;;  %v7546_v30 = vpop.f32.mrf.mxu0  ;;  %v9157_v35 = vor.u32 %v12645_v53, %v9154_v24  ;;  %v12609_v22 = vld [vmem:[%s13825_s18 + $0x52c] sm:$0xf] }
 0x35b   : > { %7810 = vmatpush.bf16.msrb.mxu1 %v9077_v33  ;;  %v8901_v33 = vor.u32 %v12581_v55, %v8898_v6  ;;  %v8882_v21 = vld [vmem:[%s13825_s18 + $0x438] sm:$0xf0]  ;;  %v9285_v1 = vor.u32 %v12677_v56, %v9282_v62  ;;  %v12641_v28 = vld [vmem:[%s13825_s18 + $0x62c] sm:$0xf] }
 0x35c   : > { %7823 = vmatpush.bf16.msrb.mxu2 %v9205_v34  ;;  %v7559_v34 = vpop.f32.mrf.mxu1  ;;  %v9010_v14 = vld [vmem:[%s13825_s18 + $0x538] sm:$0xf0]  ;;  %v12673_v26 = vld [vmem:[%s13825_s18 + $0x72c] sm:$0xf] }
 0x35d   : > { %7836 = vmatpush.bf16.msrb.mxu3 %v9333_v37  ;;  %v12577_v37 = vld [vmem:[%s13825_s18 + $0x42c] sm:$0xf]  ;;  %v9138_v40 = vld [vmem:[%s13825_s18 + $0x638] sm:$0xf0]  ;;  %v9013_v45 = vor.u32 %v12609_v22, %v9010_v14 }
 0x35e   : > { %7798 = vmatpush.bf16.msrb.mxu0 %v8933_v42  ;;  %v9266_v42 = vld [vmem:[%s13825_s18 + $0x738] sm:$0xf0]  ;;  %v8885_v23 = vor.u32 %v12577_v37, %v8882_v21  ;;  %v9141_v51 = vor.u32 %v12641_v28, %v9138_v40  ;;  %v12605_v41 = vld [vmem:[%s13825_s18 + $0x50c] sm:$0xf]  ;;  %v7572_v60 = vpop.f32.mrf.mxu2 }
 0x35f   : > { %7811 = vmatpush.bf16.msrb.mxu1 %v9061_v43  ;;  %v12573_v43 = vld [vmem:[%s13825_s18 + $0x40c] sm:$0xf]  ;;  %v9269_v36 = vor.u32 %v12673_v26, %v9266_v42  ;;  %v9122_v58 = vld [vmem:[%s13825_s18 + $0x618] sm:$0xf0]  ;;  %v7585_v55 = vpop.f32.mrf.mxu3 }
 0x360   : > { %7824 = vmatpush.bf16.msrb.mxu2 %v9189_v44  ;;  %v8866_v44 = vld [vmem:[%s13825_s18 + $0x418] sm:$0xf0]  ;;  %v12637_v54 = vld [vmem:[%s13825_s18 + $0x60c] sm:$0xf] }
 0x361   : > { %7837 = vmatpush.bf16.msrb.mxu3 %v9317_v39  ;;  %v8994_v39 = vld [vmem:[%s13825_s18 + $0x518] sm:$0xf0]  ;;  %v12669_v2 = vld [vmem:[%s13825_s18 + $0x70c] sm:$0xf]  ;;  %v8869_v6 = vor.u32 %v12573_v43, %v8866_v44  ;;  %v9125_v53 = vor.u32 %v12637_v54, %v9122_v58 }
 0x362   : > { %7799 = vmatpush.bf16.msrb.mxu0 %v8917_v17  ;;  %v9250_v59 = vld [vmem:[%s13825_s18 + $0x718] sm:$0xf0]  ;;  %v12729_v17 = vld [vmem:[%s13825_s18 + $0x8ec] sm:$0xf]  ;;  %v8997_v57 = vor.u32 %v12605_v41, %v8994_v39 }
 0x363   : > { %7812 = vmatpush.bf16.msrb.mxu1 %v9045_v50  ;;  %v9490_v50 = vld [vmem:[%s13825_s18 + $0x8f8] sm:$0xf0]  ;;  %v12825_v24 = vld [vmem:[%s13825_s18 + $0xbec] sm:$0xf]  ;;  %v9253_v27 = vor.u32 %v12669_v2, %v9250_v59 }
 0x364   : > { %7825 = vmatpush.bf16.msrb.mxu2 %v9173_v61  ;;  %v12761_v61 = vld [vmem:[%s13825_s18 + $0x9ec] sm:$0xf]  ;;  %v9618_v16 = vld [vmem:[%s13825_s18 + $0x9f8] sm:$0xf0]  ;;  %v9493_v56 = vor.u32 %v12729_v17, %v9490_v50 }
 0x365   : > { %7838 = vmatpush.bf16.msrb.mxu3 %v9301_v18  ;;  %v12793_v18 = vld [vmem:[%s13825_s18 + $0xaec] sm:$0xf]  ;;  %v9746_v19 = vld [vmem:[%s13825_s18 + $0xaf8] sm:$0xf0]  ;;  %v9621_v62 = vor.u32 %v12761_v61, %v9618_v16 }
 0x366   : > { %7800 = vmatpush.bf16.msrb.mxu0 %v8901_v33  ;;  %v9874_v25 = vld [vmem:[%s13825_s18 + $0xbf8] sm:$0xf0]  ;;  %v9749_v30 = vor.u32 %v12793_v18, %v9746_v19  ;;  %v12725_v33 = vld [vmem:[%s13825_s18 + $0x8cc] sm:$0xf] }
 0x367   : > { %7813 = vmatpush.bf16.msrb.mxu1 %v9029_v7  ;;  %v9474_v34 = vld [vmem:[%s13825_s18 + $0x8d8] sm:$0xf0]  ;;  %v12757_v7 = vld [vmem:[%s13825_s18 + $0x9cc] sm:$0xf] }
 0x368   : > { %7826 = vmatpush.bf16.msrb.mxu2 %v9157_v35  ;;  %v9877_v35 = vor.u32 %v12825_v24, %v9874_v25  ;;  %v9602_v37 = vld [vmem:[%s13825_s18 + $0x9d8] sm:$0xf0]  ;;  %v12789_v21 = vld [vmem:[%s13825_s18 + $0xacc] sm:$0xf]  ;;  %v9477_v28 = vor.u32 %v12725_v33, %v9474_v34 }
 0x369   : > { %7839 = vmatpush.bf16.msrb.mxu3 %v9285_v1  ;;  %v9730_v22 = vld [vmem:[%s13825_s18 + $0xad8] sm:$0xf0]  ;;  %v12821_v1 = vld [vmem:[%s13825_s18 + $0xbcc] sm:$0xf]  ;;  %v9605_v40 = vor.u32 %v12757_v7, %v9602_v37 }
 0x36a   : > { %7801 = vmatpush.bf16.msrb.mxu0 %v8885_v23  ;;  %v9858_v14 = vld [vmem:[%s13825_s18 + $0xbd8] sm:$0xf0]  ;;  %v9733_v26 = vor.u32 %v12789_v21, %v9730_v22  ;;  %v12721_v42 = vld [vmem:[%s13825_s18 + $0x8ac] sm:$0xf] }
 0x36b   : > { %7814 = vmatpush.bf16.msrb.mxu1 %v9013_v45  ;;  %v9458_v23 = vld [vmem:[%s13825_s18 + $0x8b8] sm:$0xf0]  ;;  %v12753_v43 = vld [vmem:[%s13825_s18 + $0x9ac] sm:$0xf]  ;;  %v9861_v44 = vor.u32 %v12821_v1, %v9858_v14 }
 0x36c   : > { %7827 = vmatpush.bf16.msrb.mxu2 %v9141_v51  ;;  %v9586_v45 = vld [vmem:[%s13825_s18 + $0x9b8] sm:$0xf0]  ;;  %v12785_v51 = vld [vmem:[%s13825_s18 + $0xaac] sm:$0xf] }
 0x36d   : > { %7840 = vmatpush.bf16.msrb.mxu3 %v9269_v36  ;;  %v9714_v41 = vld [vmem:[%s13825_s18 + $0xab8] sm:$0xf0]  ;;  %v12817_v39 = vld [vmem:[%s13825_s18 + $0xbac] sm:$0xf]  ;;  %v9461_v36 = vor.u32 %v12721_v42, %v9458_v23 }
 0x36e   : > { %7802 = vmatpush.bf16.msrb.mxu0 %v8869_v6  ;;  %v9842_v54 = vld [vmem:[%s13825_s18 + $0xbb8] sm:$0xf0]  ;;  %v9717_v58 = vor.u32 %v12785_v51, %v9714_v41  ;;  %v12717_v2 = vld [vmem:[%s13825_s18 + $0x88c] sm:$0xf]  ;;  %v7596_v61 = vpop.f32.mrf.mxu0 }
 0x36f   : > { %7815 = vmatpush.bf16.msrb.mxu1 %v8997_v57  ;;  %v9442_v59 = vld [vmem:[%s13825_s18 + $0x898] sm:$0xf0]  ;;  %v12781_v17 = vld [vmem:[%s13825_s18 + $0xa8c] sm:$0xf]  ;;  %v7609_v18 = vpop.f32.mrf.mxu1 }
 0x370   : > { %7828 = vmatpush.bf16.msrb.mxu2 %v9125_v53  ;;  %v9570_v60 = vld [vmem:[%s13825_s18 + $0x998] sm:$0xf0]  ;;  %v12813_v55 = vld [vmem:[%s13825_s18 + $0xb8c] sm:$0xf]  ;;  %v9445_v16 = vor.u32 %v12717_v2, %v9442_v59 }
 0x371   : > { %7841 = vmatpush.bf16.msrb.mxu3 %v9253_v27  ;;  %7803 = vmatmul.bf16.vlgmr.msrb.gmra.mxu0 %v14000_v31  ;;  %v12749_v31 = vld [vmem:[%s13825_s18 + $0x98c] sm:$0xf]  ;;  %v9698_v50 = vld [vmem:[%s13825_s18 + $0xa98] sm:$0xf0] }
 0x372   : > { %7847 = vmatpush.bf16.msra.mxu0 %v9493_v56  ;;  %7816 = vmatmul.bf16.vlgmr.msrb.gmra.mxu1 %v14007_v38  ;;  %v9826_v6 = vld [vmem:[%s13825_s18 + $0xb98] sm:$0xf0]  ;;  %v7597_v38 = vadd.f32 %v7596_v61, %v15683_v20  ;;  %v9573_v19 = vor.u32 %v12749_v31, %v9570_v60  ;;  %v9701_v57 = vor.u32 %v12781_v17, %v9698_v50  ;;  %v12713_v53 = vld [vmem:[%s13825_s18 + $0x86c] sm:$0xf] }
 0x373   : > { %7860 = vmatpush.bf16.msra.mxu1 %v9621_v62  ;;  %7829 = vmatmul.bf16.vlgmr.msrb.gmra.mxu2 %v13998_v29  ;;  %v9589_v29 = vor.u32 %v12753_v43, %v9586_v45  ;;  %v9426_v24 = vld [vmem:[%s13825_s18 + $0x878] sm:$0xf0]  ;;  %v12745_v25 = vld [vmem:[%s13825_s18 + $0x96c] sm:$0xf]  ;;  %v9829_v27 = vor.u32 %v12813_v55, %v9826_v6 }
 0x374   : > { %7873 = vmatpush.bf16.msra.mxu2 %v9749_v30  ;;  %7842 = vmatmul.bf16.vlgmr.msrb.gmra.mxu3 %v14002_v32  ;;  %v9845_v32 = vor.u32 %v12817_v39, %v9842_v54  ;;  %v7610_v56 = vadd.f32 %v7609_v18, %v7597_v38  ;;  %v9554_v62 = vld [vmem:[%s13825_s18 + $0x978] sm:$0xf0]  ;;  %v12777_v30 = vld [vmem:[%s13825_s18 + $0xa6c] sm:$0xf]  ;;  %v9429_v7 = vor.u32 %v12713_v53, %v9426_v24 }
 0x375   : > { %7886 = vmatpush.bf16.msra.mxu3 %v9877_v35  ;;  %v9682_v20 = vld [vmem:[%s13825_s18 + $0xa78] sm:$0xf0]  ;;  %v12809_v33 = vld [vmem:[%s13825_s18 + $0xb6c] sm:$0xf]  ;;  %v9557_v35 = vor.u32 %v12745_v25, %v9554_v62 }
 0x376   : > { %7848 = vmatpush.bf16.msra.mxu0 %v9477_v28  ;;  %v9810_v34 = vld [vmem:[%s13825_s18 + $0xb78] sm:$0xf0]  ;;  %v9685_v37 = vor.u32 %v12777_v30, %v9682_v20  ;;  %v12709_v21 = vld [vmem:[%s13825_s18 + $0x84c] sm:$0xf]  ;;  %v7622_v28 = vpop.f32.mrf.mxu2  ;;  %v7598_v51 = vpop.f32.mrf.mxu0 }
 0x377   : > { %7861 = vmatpush.bf16.msra.mxu1 %v9605_v40  ;;  %v9410_v22 = vld [vmem:[%s13825_s18 + $0x858] sm:$0xf0]  ;;  %v12741_v1 = vld [vmem:[%s13825_s18 + $0x94c] sm:$0xf]  ;;  %v9813_v14 = vor.u32 %v12809_v33, %v9810_v34  ;;  %v7623_v23 = vadd.f32 %v7622_v28, %v7610_v56  ;;  %v7635_v43 = vpop.f32.mrf.mxu3  ;;  %v7611_v39 = vpop.f32.mrf.mxu1 }
 0x378   : > { %7874 = vmatpush.bf16.msra.mxu2 %v9733_v26  ;;  %v9538_v40 = vld [vmem:[%s13825_s18 + $0x958] sm:$0xf0]  ;;  %v12773_v26 = vld [vmem:[%s13825_s18 + $0xa4c] sm:$0xf]  ;;  %v9413_v41 = vor.u32 %v12709_v21, %v9410_v22 }
 0x379   : > { %7887 = vmatpush.bf16.msra.mxu3 %v9861_v44  ;;  %v9666_v42 = vld [vmem:[%s13825_s18 + $0xa58] sm:$0xf0]  ;;  %v12805_v44 = vld [vmem:[%s13825_s18 + $0xb4c] sm:$0xf]  ;;  %v15754_v54 = vadd.f32 %v7635_v43, %v7623_v23 }
 0x37a   : > { %7849 = vmatpush.bf16.msra.mxu0 %v9461_v36  ;;  %v9794_v45 = vld [vmem:[%s13825_s18 + $0xb58] sm:$0xf0]  ;;  %v9541_v36 = vor.u32 %v12741_v1, %v9538_v40  ;;  %v12737_v59 = vld [vmem:[%s13825_s18 + $0x92c] sm:$0xf] }
 0x37b   : > { %7862 = vmatpush.bf16.msra.mxu1 %v9589_v29  ;;  %v9669_v29 = vor.u32 %v12773_v26, %v9666_v42  ;;  %v9394_v2 = vld [vmem:[%s13825_s18 + $0x838] sm:$0xf0]  ;;  %v9797_v31 = vor.u32 %v12805_v44, %v9794_v45  ;;  %v12769_v60 = vld [vmem:[%s13825_s18 + $0xa2c] sm:$0xf] }
 0x37c   : > { %7875 = vmatpush.bf16.msra.mxu2 %v9717_v58  ;;  %v12705_v58 = vld [vmem:[%s13825_s18 + $0x82c] sm:$0xf]  ;;  %v9650_v17 = vld [vmem:[%s13825_s18 + $0xa38] sm:$0xf0] }
 0x37d   : > { %7888 = vmatpush.bf16.msra.mxu3 %v9845_v32  ;;  %v9522_v32 = vld [vmem:[%s13825_s18 + $0x938] sm:$0xf0]  ;;  %v12801_v50 = vld [vmem:[%s13825_s18 + $0xb2c] sm:$0xf]  ;;  %v9397_v55 = vor.u32 %v12705_v58, %v9394_v2  ;;  %v9653_v18 = vor.u32 %v12769_v60, %v9650_v17 }
 0x37e   : > { %7850 = vmatpush.bf16.msra.mxu0 %v9445_v16  ;;  %v9778_v61 = vld [vmem:[%s13825_s18 + $0xb38] sm:$0xf0]  ;;  %v12701_v6 = vld [vmem:[%s13825_s18 + $0x80c] sm:$0xf]  ;;  %v9525_v16 = vor.u32 %v12737_v59, %v9522_v32  ;;  %v7624_v62 = vpop.f32.mrf.mxu2 }
 0x37f   : > { %7863 = vmatpush.bf16.msra.mxu1 %v9573_v19  ;;  %v9378_v38 = vld [vmem:[%s13825_s18 + $0x818] sm:$0xf0]  ;;  %v12733_v19 = vld [vmem:[%s13825_s18 + $0x90c] sm:$0xf]  ;;  %v9781_v24 = vor.u32 %v12801_v50, %v9778_v61  ;;  %v7637_v34 = vpop.f32.mrf.mxu3 }
 0x380   : > { %7876 = vmatpush.bf16.msra.mxu2 %v9701_v57  ;;  %v9506_v57 = vld [vmem:[%s13825_s18 + $0x918] sm:$0xf0]  ;;  %v12765_v53 = vld [vmem:[%s13825_s18 + $0xa0c] sm:$0xf] }
 0x381   : > { %7889 = vmatpush.bf16.msra.mxu3 %v9829_v27  ;;  %v9634_v25 = vld [vmem:[%s13825_s18 + $0xa18] sm:$0xf0]  ;;  %v12797_v27 = vld [vmem:[%s13825_s18 + $0xb0c] sm:$0xf]  ;;  %v9509_v22 = vor.u32 %v12733_v19, %v9506_v57 }
 0x382   : > { %7851 = vmatpush.bf16.msra.mxu0 %v9429_v7  ;;  %v9762_v56 = vld [vmem:[%s13825_s18 + $0xb18] sm:$0xf0]  ;;  %v12857_v30 = vld [vmem:[%s13825_s18 + $0xcec] sm:$0xf]  ;;  %v9381_v7 = vor.u32 %v12701_v6, %v9378_v38  ;;  %v9637_v1 = vor.u32 %v12765_v53, %v9634_v25 }
 0x383   : > { %7864 = vmatpush.bf16.msra.mxu1 %v9557_v35  ;;  %v10002_v20 = vld [vmem:[%s13825_s18 + $0xcf8] sm:$0xf0]  ;;  %v12889_v33 = vld [vmem:[%s13825_s18 + $0xdec] sm:$0xf]  ;;  %v9765_v40 = vor.u32 %v12797_v27, %v9762_v56 }
 0x384   : > { %7877 = vmatpush.bf16.msra.mxu2 %v9685_v37  ;;  %v10130_v35 = vld [vmem:[%s13825_s18 + $0xdf8] sm:$0xf0]  ;;  %v12921_v37 = vld [vmem:[%s13825_s18 + $0xeec] sm:$0xf]  ;;  %v10005_v26 = vor.u32 %v12857_v30, %v10002_v20 }
 0x385   : > { %7890 = vmatpush.bf16.msra.mxu3 %v9813_v14  ;;  %v10258_v21 = vld [vmem:[%s13825_s18 + $0xef8] sm:$0xf0]  ;;  %v12953_v14 = vld [vmem:[%s13825_s18 + $0xfec] sm:$0xf]  ;;  %v10133_v42 = vor.u32 %v12889_v33, %v10130_v35 }
 0x386   : > { %7852 = vmatpush.bf16.msra.mxu0 %v9413_v41  ;;  %v10386_v28 = vld [vmem:[%s13825_s18 + $0xff8] sm:$0xf0]  ;;  %v10261_v23 = vor.u32 %v12921_v37, %v10258_v21  ;;  %v12853_v43 = vld [vmem:[%s13825_s18 + $0xccc] sm:$0xf] }
 0x387   : > { %7865 = vmatpush.bf16.msra.mxu1 %v9541_v36  ;;  %v9986_v44 = vld [vmem:[%s13825_s18 + $0xcd8] sm:$0xf0]  ;;  %v12885_v45 = vld [vmem:[%s13825_s18 + $0xdcc] sm:$0xf]  ;;  %v10389_v51 = vor.u32 %v12953_v14, %v10386_v28 }
 0x388   : > { %7878 = vmatpush.bf16.msra.mxu2 %v9669_v29  ;;  %v10114_v41 = vld [vmem:[%s13825_s18 + $0xdd8] sm:$0xf0]  ;;  %v12917_v39 = vld [vmem:[%s13825_s18 + $0xecc] sm:$0xf]  ;;  %v9989_v2 = vor.u32 %v12853_v43, %v9986_v44 }
 0x389   : > { %7891 = vmatpush.bf16.msra.mxu3 %v9797_v31  ;;  %v10242_v36 = vld [vmem:[%s13825_s18 + $0xed8] sm:$0xf0]  ;;  %v12949_v29 = vld [vmem:[%s13825_s18 + $0xfcc] sm:$0xf]  ;;  %v10117_v59 = vor.u32 %v12885_v45, %v10114_v41 }
 0x38a   : > { %7853 = vmatpush.bf16.msra.mxu0 %v9397_v55  ;;  %v10370_v58 = vld [vmem:[%s13825_s18 + $0xfd8] sm:$0xf0]  ;;  %v10245_v31 = vor.u32 %v12917_v39, %v10242_v36  ;;  %v12849_v32 = vld [vmem:[%s13825_s18 + $0xcac] sm:$0xf] }
 0x38b   : > { %7866 = vmatpush.bf16.msra.mxu1 %v9525_v16  ;;  %v9970_v60 = vld [vmem:[%s13825_s18 + $0xcb8] sm:$0xf0]  ;;  %v12881_v17 = vld [vmem:[%s13825_s18 + $0xdac] sm:$0xf]  ;;  %v10373_v50 = vor.u32 %v12949_v29, %v10370_v58 }
 0x38c   : > { %7879 = vmatpush.bf16.msra.mxu2 %v9653_v18  ;;  %v10098_v61 = vld [vmem:[%s13825_s18 + $0xdb8] sm:$0xf0]  ;;  %v12913_v55 = vld [vmem:[%s13825_s18 + $0xeac] sm:$0xf] }
 0x38d   : > { %7892 = vmatpush.bf16.msra.mxu3 %v9781_v24  ;;  %v10226_v6 = vld [vmem:[%s13825_s18 + $0xeb8] sm:$0xf0]  ;;  %v12945_v38 = vld [vmem:[%s13825_s18 + $0xfac] sm:$0xf]  ;;  %v10101_v18 = vor.u32 %v12881_v17, %v10098_v61 }
 0x38e   : > { %7854 = vmatpush.bf16.msra.mxu0 %v9381_v7  ;;  %v10354_v16 = vld [vmem:[%s13825_s18 + $0xfb8] sm:$0xf0]  ;;  %v10229_v19 = vor.u32 %v12913_v55, %v10226_v6  ;;  %v12845_v57 = vld [vmem:[%s13825_s18 + $0xc8c] sm:$0xf] }
 0x38f   : > { %7867 = vmatpush.bf16.msra.mxu1 %v9509_v22  ;;  %v9954_v53 = vld [vmem:[%s13825_s18 + $0xc98] sm:$0xf0]  ;;  %v12909_v25 = vld [vmem:[%s13825_s18 + $0xe8c] sm:$0xf]  ;;  %v7661_v33 = vpop.f32.mrf.mxu1 }
 0x390   : > { %7880 = vmatpush.bf16.msra.mxu2 %v9637_v1  ;;  %v10082_v24 = vld [vmem:[%s13825_s18 + $0xd98] sm:$0xf0]  ;;  %v12941_v56 = vld [vmem:[%s13825_s18 + $0xf8c] sm:$0xf]  ;;  %v9957_v20 = vor.u32 %v12845_v57, %v9954_v53 }
 0x391   : > { %7893 = vmatpush.bf16.msra.mxu3 %v9765_v40  ;;  %7855 = vmatmul.bf16.vlgmr.msra.gmra.mxu0 %v14075_v8  ;;  %v9973_v8 = vor.u32 %v12849_v32, %v9970_v60  ;;  %v10210_v27 = vld [vmem:[%s13825_s18 + $0xe98] sm:$0xf0]  ;;  %v12841_v35 = vld [vmem:[%s13825_s18 + $0xc6c] sm:$0xf] }
 0x392   : > { %7899 = vmatpush.bf16.msrb.mxu0 %v10005_v26  ;;  %7868 = vmatmul.bf16.vlgmr.msra.gmra.mxu1 %v14081_v12  ;;  %v10357_v12 = vor.u32 %v12945_v38, %v10354_v16  ;;  %v10338_v62 = vld [vmem:[%s13825_s18 + $0xf98] sm:$0xf0]  ;;  %v10213_v7 = vor.u32 %v12909_v25, %v10210_v27  ;;  %v12873_v21 = vld [vmem:[%s13825_s18 + $0xd6c] sm:$0xf] }
 0x393   : > { %7912 = vmatpush.bf16.msrb.mxu1 %v10133_v42  ;;  %7881 = vmatmul.bf16.vlgmr.msra.gmra.mxu2 %v14079_v11  ;;  %v12877_v11 = vld [vmem:[%s13825_s18 + $0xd8c] sm:$0xf]  ;;  %v9938_v37 = vld [vmem:[%s13825_s18 + $0xc78] sm:$0xf0]  ;;  %v10341_v22 = vor.u32 %v12941_v56, %v10338_v62 }
 0x394   : > { %7925 = vmatpush.bf16.msrb.mxu2 %v10261_v23  ;;  %7894 = vmatmul.bf16.vlgmr.msra.gmra.mxu3 %v14084_v15  ;;  %v7648_v15 = vpop.f32.mrf.mxu0  ;;  %v10085_v34 = vor.u32 %v12877_v11, %v10082_v24  ;;  %v10066_v14 = vld [vmem:[%s13825_s18 + $0xd78] sm:$0xf0]  ;;  %v12905_v28 = vld [vmem:[%s13825_s18 + $0xe6c] sm:$0xf]  ;;  %v9941_v42 = vor.u32 %v12841_v35, %v9938_v37 }
 0x395   : > { %7938 = vmatpush.bf16.msrb.mxu3 %v10389_v51  ;;  %v7649_v30 = vadd.f32 %v7648_v15, %v15754_v54  ;;  %v10194_v54 = vld [vmem:[%s13825_s18 + $0xe78] sm:$0xf0]  ;;  %v12937_v40 = vld [vmem:[%s13825_s18 + $0xf6c] sm:$0xf]  ;;  %v10069_v23 = vor.u32 %v12873_v21, %v10066_v14 }
 0x396   : > { %7900 = vmatpush.bf16.msrb.mxu0 %v9989_v2  ;;  %v10322_v26 = vld [vmem:[%s13825_s18 + $0xf78] sm:$0xf0]  ;;  %v10197_v43 = vor.u32 %v12905_v28, %v10194_v54  ;;  %v12837_v44 = vld [vmem:[%s13825_s18 + $0xc4c] sm:$0xf]  ;;  %v7674_v39 = vpop.f32.mrf.mxu2 }
 0x397   : > { %7913 = vmatpush.bf16.msrb.mxu1 %v10117_v59  ;;  %v7662_v1 = vadd.f32 %v7661_v33, %v7649_v30  ;;  %v9922_v45 = vld [vmem:[%s13825_s18 + $0xc58] sm:$0xf0]  ;;  %v12869_v51 = vld [vmem:[%s13825_s18 + $0xd4c] sm:$0xf]  ;;  %v10325_v41 = vor.u32 %v12937_v40, %v10322_v26  ;;  %v7687_v59 = vpop.f32.mrf.mxu3 }
 0x398   : > { %7926 = vmatpush.bf16.msrb.mxu2 %v10245_v31  ;;  %v10050_v36 = vld [vmem:[%s13825_s18 + $0xd58] sm:$0xf0]  ;;  %v12901_v29 = vld [vmem:[%s13825_s18 + $0xe4c] sm:$0xf]  ;;  %v9925_v17 = vor.u32 %v12837_v44, %v9922_v45 }
 0x399   : > { %7939 = vmatpush.bf16.msrb.mxu3 %v10373_v50  ;;  %v10178_v58 = vld [vmem:[%s13825_s18 + $0xe58] sm:$0xf0]  ;;  %v7675_v2 = vadd.f32 %v7674_v39, %v7662_v1  ;;  %v12933_v31 = vld [vmem:[%s13825_s18 + $0xf4c] sm:$0xf]  ;;  %v7663_v50 = vpop.f32.mrf.mxu1  ;;  %v10053_v55 = vor.u32 %v12869_v51, %v10050_v36 }
 0x39a   : > { %7901 = vmatpush.bf16.msrb.mxu0 %v9973_v8  ;;  %v10306_v32 = vld [vmem:[%s13825_s18 + $0xf58] sm:$0xf0]  ;;  %v10181_v6 = vor.u32 %v12901_v29, %v10178_v58  ;;  %v12833_v38 = vld [vmem:[%s13825_s18 + $0xc2c] sm:$0xf] }
 0x39b   : > { %7914 = vmatpush.bf16.msrb.mxu1 %v10101_v18  ;;  %v15825_v61 = vadd.f32 %v7687_v59, %v7675_v2  ;;  %v9906_v16 = vld [vmem:[%s13825_s18 + $0xc38] sm:$0xf0]  ;;  %v12865_v8 = vld [vmem:[%s13825_s18 + $0xd2c] sm:$0xf]  ;;  %v10309_v18 = vor.u32 %v12933_v31, %v10306_v32 }
 0x39c   : > { %7927 = vmatpush.bf16.msrb.mxu2 %v10229_v19  ;;  %v7650_v60 = vpop.f32.mrf.mxu0  ;;  %v10034_v19 = vld [vmem:[%s13825_s18 + $0xd38] sm:$0xf0]  ;;  %v12897_v57 = vld [vmem:[%s13825_s18 + $0xe2c] sm:$0xf]  ;;  %v9909_v24 = vor.u32 %v12833_v38, %v9906_v16 }
 0x39d   : > { %7940 = vmatpush.bf16.msrb.mxu3 %v10357_v12  ;;  %v10162_v53 = vld [vmem:[%s13825_s18 + $0xe38] sm:$0xf0]  ;;  %v12929_v11 = vld [vmem:[%s13825_s18 + $0xf2c] sm:$0xf]  ;;  %v10037_v15 = vor.u32 %v12865_v8, %v10034_v19 }
 0x39e   : > { %7902 = vmatpush.bf16.msrb.mxu0 %v9957_v20  ;;  %v10290_v12 = vld [vmem:[%s13825_s18 + $0xf38] sm:$0xf0]  ;;  %v12829_v25 = vld [vmem:[%s13825_s18 + $0xc0c] sm:$0xf]  ;;  %v10165_v56 = vor.u32 %v12897_v57, %v10162_v53  ;;  %v7676_v37 = vpop.f32.mrf.mxu2 }
 0x39f   : > { %7915 = vmatpush.bf16.msrb.mxu1 %v10085_v34  ;;  %v9890_v27 = vld [vmem:[%s13825_s18 + $0xc18] sm:$0xf0]  ;;  %v12861_v62 = vld [vmem:[%s13825_s18 + $0xd0c] sm:$0xf]  ;;  %v10293_v33 = vor.u32 %v12929_v11, %v10290_v12  ;;  %v7689_v14 = vpop.f32.mrf.mxu3 }
 0x3a0   : > { %7928 = vmatpush.bf16.msrb.mxu2 %v10213_v7  ;;  %v10018_v30 = vld [vmem:[%s13825_s18 + $0xd18] sm:$0xf0]  ;;  %v12893_v20 = vld [vmem:[%s13825_s18 + $0xe0c] sm:$0xf]  ;;  %v9893_v28 = vor.u32 %v12829_v25, %v9890_v27 }
 0x3a1   : > { %7941 = vmatpush.bf16.msrb.mxu3 %v10341_v22  ;;  %v10146_v34 = vld [vmem:[%s13825_s18 + $0xe18] sm:$0xf0]  ;;  %v12925_v7 = vld [vmem:[%s13825_s18 + $0xf0c] sm:$0xf] }
 0x3a2   : > { %7903 = vmatpush.bf16.msrb.mxu0 %v9941_v42  ;;  %v10274_v35 = vld [vmem:[%s13825_s18 + $0xf18] sm:$0xf0]  ;;  %v12985_v21 = vld [vmem:[%s13825_s18 + $0x10ec] sm:$0xf]  ;;  %v10021_v42 = vor.u32 %v12861_v62, %v10018_v30 }
 0x3a3   : > { %7916 = vmatpush.bf16.msrb.mxu1 %v10069_v23  ;;  %v10514_v22 = vld [vmem:[%s13825_s18 + $0x10f8] sm:$0xf0]  ;;  %v13017_v1 = vld [vmem:[%s13825_s18 + $0x11ec] sm:$0xf]  ;;  %v10149_v23 = vor.u32 %v12893_v20, %v10146_v34  ;;  %v10277_v45 = vor.u32 %v12925_v7, %v10274_v35 }
 0x3a4   : > { %7929 = vmatpush.bf16.msrb.mxu2 %v10197_v43  ;;  %v10642_v54 = vld [vmem:[%s13825_s18 + $0x11f8] sm:$0xf0]  ;;  %v13049_v40 = vld [vmem:[%s13825_s18 + $0x12ec] sm:$0xf]  ;;  %v10517_v51 = vor.u32 %v12985_v21, %v10514_v22 }
 0x3a5   : > { %7942 = vmatpush.bf16.msrb.mxu3 %v10325_v41  ;;  %v10770_v26 = vld [vmem:[%s13825_s18 + $0x12f8] sm:$0xf0]  ;;  %v13081_v43 = vld [vmem:[%s13825_s18 + $0x13ec] sm:$0xf]  ;;  %v10645_v41 = vor.u32 %v13017_v1, %v10642_v54 }
 0x3a6   : > { %7904 = vmatpush.bf16.msrb.mxu0 %v9925_v17  ;;  %v10898_v44 = vld [vmem:[%s13825_s18 + $0x13f8] sm:$0xf0]  ;;  %v10773_v39 = vor.u32 %v13049_v40, %v10770_v26  ;;  %v12981_v36 = vld [vmem:[%s13825_s18 + $0x10cc] sm:$0xf] }
 0x3a7   : > { %7917 = vmatpush.bf16.msrb.mxu1 %v10053_v55  ;;  %v10498_v29 = vld [vmem:[%s13825_s18 + $0x10d8] sm:$0xf0]  ;;  %v13013_v58 = vld [vmem:[%s13825_s18 + $0x11cc] sm:$0xf]  ;;  %v10901_v2 = vor.u32 %v13081_v43, %v10898_v44 }
 0x3a8   : > { %7930 = vmatpush.bf16.msrb.mxu2 %v10181_v6  ;;  %v10626_v59 = vld [vmem:[%s13825_s18 + $0x11d8] sm:$0xf0]  ;;  %v13045_v31 = vld [vmem:[%s13825_s18 + $0x12cc] sm:$0xf]  ;;  %v10501_v50 = vor.u32 %v12981_v36, %v10498_v29 }
 0x3a9   : > { %7943 = vmatpush.bf16.msrb.mxu3 %v10309_v18  ;;  %v10754_v32 = vld [vmem:[%s13825_s18 + $0x12d8] sm:$0xf0]  ;;  %v13077_v60 = vld [vmem:[%s13825_s18 + $0x13cc] sm:$0xf]  ;;  %v10629_v55 = vor.u32 %v13013_v58, %v10626_v59 }
 0x3aa   : > { %7905 = vmatpush.bf16.msrb.mxu0 %v9909_v24  ;;  %v10882_v17 = vld [vmem:[%s13825_s18 + $0x13d8] sm:$0xf0]  ;;  %v10757_v6 = vor.u32 %v13045_v31, %v10754_v32  ;;  %v12977_v38 = vld [vmem:[%s13825_s18 + $0x10ac] sm:$0xf] }
 0x3ab   : > { %7918 = vmatpush.bf16.msrb.mxu1 %v10037_v15  ;;  %v10482_v16 = vld [vmem:[%s13825_s18 + $0x10b8] sm:$0xf0]  ;;  %v13009_v8 = vld [vmem:[%s13825_s18 + $0x11ac] sm:$0xf]  ;;  %v10885_v18 = vor.u32 %v13077_v60, %v10882_v17 }
 0x3ac   : > { %7931 = vmatpush.bf16.msrb.mxu2 %v10165_v56  ;;  %v10610_v19 = vld [vmem:[%s13825_s18 + $0x11b8] sm:$0xf0]  ;;  %v13041_v57 = vld [vmem:[%s13825_s18 + $0x12ac] sm:$0xf] }
 0x3ad   : > { %7944 = vmatpush.bf16.msrb.mxu3 %v10293_v33  ;;  %v10738_v53 = vld [vmem:[%s13825_s18 + $0x12b8] sm:$0xf0]  ;;  %v13073_v11 = vld [vmem:[%s13825_s18 + $0x13ac] sm:$0xf]  ;;  %v10613_v24 = vor.u32 %v13009_v8, %v10610_v19 }
 0x3ae   : > { %7906 = vmatpush.bf16.msrb.mxu0 %v9893_v28  ;;  %v10866_v12 = vld [vmem:[%s13825_s18 + $0x13b8] sm:$0xf0]  ;;  %v10741_v25 = vor.u32 %v13041_v57, %v10738_v53  ;;  %v12973_v27 = vld [vmem:[%s13825_s18 + $0x108c] sm:$0xf] }
 0x3af   : > { %7919 = vmatpush.bf16.msrb.mxu1 %v10021_v42  ;;  %v10466_v15 = vld [vmem:[%s13825_s18 + $0x1098] sm:$0xf0]  ;;  %v13037_v62 = vld [vmem:[%s13825_s18 + $0x128c] sm:$0xf]  ;;  %v7713_v35 = vpop.f32.mrf.mxu1 }
 0x3b0   : > { %7932 = vmatpush.bf16.msrb.mxu2 %v10149_v23  ;;  %v10594_v56 = vld [vmem:[%s13825_s18 + $0x1198] sm:$0xf0]  ;;  %v13069_v20 = vld [vmem:[%s13825_s18 + $0x138c] sm:$0xf]  ;;  %v10469_v7 = vor.u32 %v12973_v27, %v10466_v15 }
 0x3b1   : > { %7945 = vmatpush.bf16.msrb.mxu3 %v10277_v45  ;;  %7907 = vmatmul.bf16.vlgmr.msrb.gmra.mxu0 %v14141_v46  ;;  %v10485_v46 = vor.u32 %v12977_v38, %v10482_v16  ;;  %v10722_v30 = vld [vmem:[%s13825_s18 + $0x1298] sm:$0xf0]  ;;  %v12969_v22 = vld [vmem:[%s13825_s18 + $0x106c] sm:$0xf] }
 0x3b2   : > { %7951 = vmatpush.bf16.msra.mxu0 %v10517_v51  ;;  %7920 = vmatmul.bf16.vlgmr.msrb.gmra.mxu1 %v14145_v48  ;;  %v10869_v48 = vor.u32 %v13073_v11, %v10866_v12  ;;  %v10850_v33 = vld [vmem:[%s13825_s18 + $0x1398] sm:$0xf0]  ;;  %v10725_v21 = vor.u32 %v13037_v62, %v10722_v30  ;;  %v13001_v14 = vld [vmem:[%s13825_s18 + $0x116c] sm:$0xf] }
 0x3b3   : > { %7964 = vmatpush.bf16.msra.mxu1 %v10645_v41  ;;  %7933 = vmatmul.bf16.vlgmr.msrb.gmra.mxu2 %v14143_v47  ;;  %v13005_v47 = vld [vmem:[%s13825_s18 + $0x118c] sm:$0xf]  ;;  %v10450_v1 = vld [vmem:[%s13825_s18 + $0x1078] sm:$0xf0]  ;;  %v10853_v28 = vor.u32 %v13069_v20, %v10850_v33 }
 0x3b4   : > { %7977 = vmatpush.bf16.msra.mxu2 %v10773_v39  ;;  %7946 = vmatmul.bf16.vlgmr.msrb.gmra.mxu3 %v14147_v49  ;;  %v7700_v49 = vpop.f32.mrf.mxu0  ;;  %v10597_v37 = vor.u32 %v13005_v47, %v10594_v56  ;;  %v10578_v40 = vld [vmem:[%s13825_s18 + $0x1178] sm:$0xf0]  ;;  %v13033_v26 = vld [vmem:[%s13825_s18 + $0x126c] sm:$0xf]  ;;  %v10453_v43 = vor.u32 %v12969_v22, %v10450_v1 }
 0x3b5   : > { %7990 = vmatpush.bf16.msra.mxu3 %v10901_v2  ;;  %v7701_v34 = vadd.f32 %v7700_v49, %v15825_v61  ;;  %v10706_v61 = vld [vmem:[%s13825_s18 + $0x1278] sm:$0xf0]  ;;  %v13065_v42 = vld [vmem:[%s13825_s18 + $0x136c] sm:$0xf]  ;;  %v10581_v44 = vor.u32 %v13001_v14, %v10578_v40 }
 0x3b6   : > { %7952 = vmatpush.bf16.msra.mxu0 %v10501_v50  ;;  %v10834_v23 = vld [vmem:[%s13825_s18 + $0x1378] sm:$0xf0]  ;;  %v10709_v45 = vor.u32 %v13033_v26, %v10706_v61  ;;  %v12965_v51 = vld [vmem:[%s13825_s18 + $0x104c] sm:$0xf]  ;;  %v7726_v29 = vpop.f32.mrf.mxu2 }
 0x3b7   : > { %7965 = vmatpush.bf16.msra.mxu1 %v10629_v55  ;;  %v7714_v54 = vadd.f32 %v7713_v35, %v7701_v34  ;;  %v10434_v41 = vld [vmem:[%s13825_s18 + $0x1058] sm:$0xf0]  ;;  %v12997_v39 = vld [vmem:[%s13825_s18 + $0x114c] sm:$0xf]  ;;  %v10837_v36 = vor.u32 %v13065_v42, %v10834_v23  ;;  %v7739_v32 = vpop.f32.mrf.mxu3 }
 0x3b8   : > { %7978 = vmatpush.bf16.msra.mxu2 %v10757_v6  ;;  %v10562_v58 = vld [vmem:[%s13825_s18 + $0x1158] sm:$0xf0]  ;;  %v13029_v2 = vld [vmem:[%s13825_s18 + $0x124c] sm:$0xf]  ;;  %v10437_v55 = vor.u32 %v12965_v51, %v10434_v41  ;;  %v7715_v6 = vpop.f32.mrf.mxu1 }
 0x3b9   : > { %7991 = vmatpush.bf16.msra.mxu3 %v10885_v18  ;;  %v10690_v59 = vld [vmem:[%s13825_s18 + $0x1258] sm:$0xf0]  ;;  %v7727_v31 = vadd.f32 %v7726_v29, %v7714_v54  ;;  %v13061_v60 = vld [vmem:[%s13825_s18 + $0x134c] sm:$0xf]  ;;  %v10565_v16 = vor.u32 %v12997_v39, %v10562_v58 }
 0x3ba   : > { %7953 = vmatpush.bf16.msra.mxu0 %v10485_v46  ;;  %v10818_v17 = vld [vmem:[%s13825_s18 + $0x1358] sm:$0xf0]  ;;  %v10693_v8 = vor.u32 %v13029_v2, %v10690_v59  ;;  %v12961_v18 = vld [vmem:[%s13825_s18 + $0x102c] sm:$0xf] }
 0x3bb   : > { %7966 = vmatpush.bf16.msra.mxu1 %v10613_v24  ;;  %v15896_v38 = vadd.f32 %v7739_v32, %v7727_v31  ;;  %v10418_v19 = vld [vmem:[%s13825_s18 + $0x1038] sm:$0xf0]  ;;  %v12993_v57 = vld [vmem:[%s13825_s18 + $0x112c] sm:$0xf]  ;;  %v10821_v53 = vor.u32 %v13061_v60, %v10818_v17 }
 0x3bc   : > { %7979 = vmatpush.bf16.msra.mxu2 %v10741_v25  ;;  %v7702_v50 = vpop.f32.mrf.mxu0  ;;  %v10546_v11 = vld [vmem:[%s13825_s18 + $0x1138] sm:$0xf0]  ;;  %v13025_v12 = vld [vmem:[%s13825_s18 + $0x122c] sm:$0xf]  ;;  %v10421_v27 = vor.u32 %v12961_v18, %v10418_v19 }
 0x3bd   : > { %7992 = vmatpush.bf16.msra.mxu3 %v10869_v48  ;;  %v10674_v46 = vld [vmem:[%s13825_s18 + $0x1238] sm:$0xf0]  ;;  %v13057_v24 = vld [vmem:[%s13825_s18 + $0x132c] sm:$0xf]  ;;  %v10549_v48 = vor.u32 %v12993_v57, %v10546_v11 }
 0x3be   : > { %7954 = vmatpush.bf16.msra.mxu0 %v10469_v7  ;;  %v10802_v25 = vld [vmem:[%s13825_s18 + $0x1338] sm:$0xf0]  ;;  %v12957_v15 = vld [vmem:[%s13825_s18 + $0x100c] sm:$0xf]  ;;  %v10677_v56 = vor.u32 %v13025_v12, %v10674_v46  ;;  %v7728_v35 = vpop.f32.mrf.mxu2 }
 0x3bf   : > { %7967 = vmatpush.bf16.msra.mxu1 %v10597_v37  ;;  %v10402_v47 = vld [vmem:[%s13825_s18 + $0x1018] sm:$0xf0]  ;;  %v12989_v62 = vld [vmem:[%s13825_s18 + $0x110c] sm:$0xf]  ;;  %v10805_v20 = vor.u32 %v13057_v24, %v10802_v25  ;;  %v7741_v1 = vpop.f32.mrf.mxu3 }
 0x3c0   : > { %7980 = vmatpush.bf16.msra.mxu2 %v10725_v21  ;;  %v10530_v30 = vld [vmem:[%s13825_s18 + $0x1118] sm:$0xf0]  ;;  %v13021_v49 = vld [vmem:[%s13825_s18 + $0x120c] sm:$0xf]  ;;  %v10405_v14 = vor.u32 %v12957_v15, %v10402_v47 }
 0x3c1   : > { %7993 = vmatpush.bf16.msra.mxu3 %v10853_v28  ;;  %v10658_v33 = vld [vmem:[%s13825_s18 + $0x1218] sm:$0xf0]  ;;  %v13053_v34 = vld [vmem:[%s13825_s18 + $0x130c] sm:$0xf]  ;;  %v10533_v26 = vor.u32 %v12989_v62, %v10530_v30 }
 0x3c2   : > { %7955 = vmatpush.bf16.msra.mxu0 %v10453_v43  ;;  %v10786_v7 = vld [vmem:[%s13825_s18 + $0x1318] sm:$0xf0]  ;;  %v13113_v37 = vld [vmem:[%s13825_s18 + $0x14ec] sm:$0xf]  ;;  %v10661_v61 = vor.u32 %v13021_v49, %v10658_v33 }
 0x3c3   : > { %7968 = vmatpush.bf16.msra.mxu1 %v10581_v44  ;;  %v11026_v21 = vld [vmem:[%s13825_s18 + $0x14f8] sm:$0xf0]  ;;  %v13145_v22 = vld [vmem:[%s13825_s18 + $0x15ec] sm:$0xf]  ;;  %v10789_v43 = vor.u32 %v13053_v34, %v10786_v7 }
 0x3c4   : > { %7981 = vmatpush.bf16.msra.mxu2 %v10709_v45  ;;  %v11154_v28 = vld [vmem:[%s13825_s18 + $0x15f8] sm:$0xf0]  ;;  %v13177_v54 = vld [vmem:[%s13825_s18 + $0x16ec] sm:$0xf]  ;;  %v11029_v44 = vor.u32 %v13113_v37, %v11026_v21 }
 0x3c5   : > { %7994 = vmatpush.bf16.msra.mxu3 %v10837_v36  ;;  %v11282_v40 = vld [vmem:[%s13825_s18 + $0x16f8] sm:$0xf0]  ;;  %v13209_v42 = vld [vmem:[%s13825_s18 + $0x17ec] sm:$0xf]  ;;  %v11157_v45 = vor.u32 %v13145_v22, %v11154_v28 }
 0x3c6   : > { %7956 = vmatpush.bf16.msra.mxu0 %v10437_v55  ;;  %v11410_v23 = vld [vmem:[%s13825_s18 + $0x17f8] sm:$0xf0]  ;;  %v11285_v51 = vor.u32 %v13177_v54, %v11282_v40  ;;  %v13109_v41 = vld [vmem:[%s13825_s18 + $0x14cc] sm:$0xf] }
 0x3c7   : > { %7969 = vmatpush.bf16.msra.mxu1 %v10565_v16  ;;  %v11010_v39 = vld [vmem:[%s13825_s18 + $0x14d8] sm:$0xf0]  ;;  %v13141_v36 = vld [vmem:[%s13825_s18 + $0x15cc] sm:$0xf]  ;;  %v11413_v29 = vor.u32 %v13209_v42, %v11410_v23 }
 0x3c8   : > { %7982 = vmatpush.bf16.msra.mxu2 %v10693_v8  ;;  %v11138_v58 = vld [vmem:[%s13825_s18 + $0x15d8] sm:$0xf0]  ;;  %v13173_v2 = vld [vmem:[%s13825_s18 + $0x16cc] sm:$0xf]  ;;  %v11013_v60 = vor.u32 %v13109_v41, %v11010_v39 }
 0x3c9   : > { %7995 = vmatpush.bf16.msra.mxu3 %v10821_v53  ;;  %v11266_v59 = vld [vmem:[%s13825_s18 + $0x16d8] sm:$0xf0]  ;;  %v13205_v31 = vld [vmem:[%s13825_s18 + $0x17cc] sm:$0xf]  ;;  %v11141_v17 = vor.u32 %v13141_v36, %v11138_v58 }
 0x3ca   : > { %7957 = vmatpush.bf16.msra.mxu0 %v10421_v27  ;;  %v11394_v32 = vld [vmem:[%s13825_s18 + $0x17d8] sm:$0xf0]  ;;  %v11269_v50 = vor.u32 %v13173_v2, %v11266_v59  ;;  %v13105_v55 = vld [vmem:[%s13825_s18 + $0x14ac] sm:$0xf] }
 0x3cb   : > { %7970 = vmatpush.bf16.msra.mxu1 %v10549_v48  ;;  %v10994_v6 = vld [vmem:[%s13825_s18 + $0x14b8] sm:$0xf0]  ;;  %v13137_v16 = vld [vmem:[%s13825_s18 + $0x15ac] sm:$0xf]  ;;  %v11397_v8 = vor.u32 %v13205_v31, %v11394_v32 }
 0x3cc   : > { %7983 = vmatpush.bf16.msra.mxu2 %v10677_v56  ;;  %v11122_v18 = vld [vmem:[%s13825_s18 + $0x15b8] sm:$0xf0]  ;;  %v13169_v19 = vld [vmem:[%s13825_s18 + $0x16ac] sm:$0xf] }
 0x3cd   : > { %7996 = vmatpush.bf16.msra.mxu3 %v10805_v20  ;;  %v11250_v57 = vld [vmem:[%s13825_s18 + $0x16b8] sm:$0xf0]  ;;  %v13201_v53 = vld [vmem:[%s13825_s18 + $0x17ac] sm:$0xf]  ;;  %v11125_v12 = vor.u32 %v13137_v16, %v11122_v18 }
 0x3ce   : > { %7958 = vmatpush.bf16.msra.mxu0 %v10405_v14  ;;  %v11378_v11 = vld [vmem:[%s13825_s18 + $0x17b8] sm:$0xf0]  ;;  %v11253_v46 = vor.u32 %v13169_v19, %v11250_v57  ;;  %v13101_v24 = vld [vmem:[%s13825_s18 + $0x148c] sm:$0xf]  ;;  %v7752_v62 = vpop.f32.mrf.mxu0 }
 0x3cf   : > { %7971 = vmatpush.bf16.msra.mxu1 %v10533_v26  ;;  %v10978_v25 = vld [vmem:[%s13825_s18 + $0x1498] sm:$0xf0]  ;;  %v13165_v15 = vld [vmem:[%s13825_s18 + $0x168c] sm:$0xf]  ;;  %v7765_v7 = vpop.f32.mrf.mxu1 }
 0x3d0   : > { %7984 = vmatpush.bf16.msra.mxu2 %v10661_v61  ;;  %v11106_v27 = vld [vmem:[%s13825_s18 + $0x1598] sm:$0xf0]  ;;  %v10981_v56 = vor.u32 %v13101_v24, %v10978_v25  ;;  %v13097_v20 = vld [vmem:[%s13825_s18 + $0x146c] sm:$0xf]  ;;  %v7766_v1 = vadd.f32 %v7765_v7, %v7752_v62 }
 0x3d1   : > { %7997 = vmatpush.bf16.msra.mxu3 %v10789_v43  ;;  %7959 = vmatmul.bf16.vlgmr.msra.gmra.mxu0 %v14230_v5  ;;  %v10997_v5 = vor.u32 %v13105_v55, %v10994_v6  ;;  %v11234_v47 = vld [vmem:[%s13825_s18 + $0x1698] sm:$0xf0]  ;;  %v13129_v34 = vld [vmem:[%s13825_s18 + $0x156c] sm:$0xf] }
 0x3d2   : > { %8003 = vmatpush.bf16.msrb.mxu0 %v11029_v44  ;;  %7972 = vmatmul.bf16.vlgmr.msra.gmra.mxu1 %v14236_v10  ;;  %v11381_v10 = vor.u32 %v13201_v53, %v11378_v11  ;;  %v11362_v48 = vld [vmem:[%s13825_s18 + $0x1798] sm:$0xf0]  ;;  %v11237_v49 = vor.u32 %v13165_v15, %v11234_v47  ;;  %v13161_v21 = vld [vmem:[%s13825_s18 + $0x166c] sm:$0xf] }
 0x3d3   : > { %8016 = vmatpush.bf16.msrb.mxu1 %v11157_v45  ;;  %7985 = vmatmul.bf16.vlgmr.msra.gmra.mxu2 %v14234_v9  ;;  %v13133_v9 = vld [vmem:[%s13825_s18 + $0x158c] sm:$0xf]  ;;  %v10962_v33 = vld [vmem:[%s13825_s18 + $0x1478] sm:$0xf0] }
 0x3d4   : > { %8029 = vmatpush.bf16.msrb.mxu2 %v11285_v51  ;;  %7998 = vmatmul.bf16.vlgmr.msra.gmra.mxu3 %v14238_v13  ;;  %v13197_v13 = vld [vmem:[%s13825_s18 + $0x178c] sm:$0xf]  ;;  %v11109_v30 = vor.u32 %v13133_v9, %v11106_v27  ;;  %v11090_v37 = vld [vmem:[%s13825_s18 + $0x1578] sm:$0xf0]  ;;  %v10965_v54 = vor.u32 %v13097_v20, %v10962_v33 }
 0x3d5   : > { %8042 = vmatpush.bf16.msrb.mxu3 %v11413_v29  ;;  %v11365_v35 = vor.u32 %v13197_v13, %v11362_v48  ;;  %v11218_v22 = vld [vmem:[%s13825_s18 + $0x1678] sm:$0xf0]  ;;  %v13193_v14 = vld [vmem:[%s13825_s18 + $0x176c] sm:$0xf]  ;;  %v11093_v40 = vor.u32 %v13129_v34, %v11090_v37 }
 0x3d6   : > { %8004 = vmatpush.bf16.msrb.mxu0 %v11013_v60  ;;  %v11346_v28 = vld [vmem:[%s13825_s18 + $0x1778] sm:$0xf0]  ;;  %v11221_v26 = vor.u32 %v13161_v21, %v11218_v22  ;;  %v13093_v61 = vld [vmem:[%s13825_s18 + $0x144c] sm:$0xf]  ;;  %v7778_v43 = vpop.f32.mrf.mxu2  ;;  %v7754_v31 = vpop.f32.mrf.mxu0 }
 0x3d7   : > { %8017 = vmatpush.bf16.msrb.mxu1 %v11141_v17  ;;  %v10946_v42 = vld [vmem:[%s13825_s18 + $0x1458] sm:$0xf0]  ;;  %v13125_v23 = vld [vmem:[%s13825_s18 + $0x154c] sm:$0xf]  ;;  %v11349_v44 = vor.u32 %v13193_v14, %v11346_v28  ;;  %v7779_v39 = vadd.f32 %v7778_v43, %v7766_v1  ;;  %v7791_v36 = vpop.f32.mrf.mxu3  ;;  %v7767_v6 = vpop.f32.mrf.mxu1 }
 0x3d8   : > { %8030 = vmatpush.bf16.msrb.mxu2 %v11269_v50  ;;  %v11074_v45 = vld [vmem:[%s13825_s18 + $0x1558] sm:$0xf0]  ;;  %v13157_v51 = vld [vmem:[%s13825_s18 + $0x164c] sm:$0xf]  ;;  %v10949_v2 = vor.u32 %v13093_v61, %v10946_v42 }
 0x3d9   : > { %8043 = vmatpush.bf16.msrb.mxu3 %v11397_v8  ;;  %v11202_v41 = vld [vmem:[%s13825_s18 + $0x1658] sm:$0xf0]  ;;  %v13189_v29 = vld [vmem:[%s13825_s18 + $0x174c] sm:$0xf]  ;;  %v15966_v59 = vadd.f32 %v7791_v36, %v7779_v39  ;;  %v11077_v32 = vor.u32 %v13125_v23, %v11074_v45 }
 0x3da   : > { %8005 = vmatpush.bf16.msrb.mxu0 %v10997_v5  ;;  %v11330_v58 = vld [vmem:[%s13825_s18 + $0x1758] sm:$0xf0]  ;;  %v11205_v60 = vor.u32 %v13157_v51, %v11202_v41  ;;  %v13089_v17 = vld [vmem:[%s13825_s18 + $0x142c] sm:$0xf] }
 0x3db   : > { %8018 = vmatpush.bf16.msrb.mxu1 %v11125_v12  ;;  %v10930_v50 = vld [vmem:[%s13825_s18 + $0x1438] sm:$0xf0]  ;;  %v13121_v55 = vld [vmem:[%s13825_s18 + $0x152c] sm:$0xf]  ;;  %v11333_v16 = vor.u32 %v13189_v29, %v11330_v58 }
 0x3dc   : > { %8031 = vmatpush.bf16.msrb.mxu2 %v11253_v46  ;;  %v11058_v8 = vld [vmem:[%s13825_s18 + $0x1538] sm:$0xf0]  ;;  %v13153_v18 = vld [vmem:[%s13825_s18 + $0x162c] sm:$0xf]  ;;  %v10933_v11 = vor.u32 %v13089_v17, %v10930_v50 }
 0x3dd   : > { %8044 = vmatpush.bf16.msrb.mxu3 %v11381_v10  ;;  %v11186_v19 = vld [vmem:[%s13825_s18 + $0x1638] sm:$0xf0]  ;;  %v13185_v57 = vld [vmem:[%s13825_s18 + $0x172c] sm:$0xf]  ;;  %v11061_v46 = vor.u32 %v13121_v55, %v11058_v8 }
 0x3de   : > { %8006 = vmatpush.bf16.msrb.mxu0 %v10981_v56  ;;  %v11314_v53 = vld [vmem:[%s13825_s18 + $0x1738] sm:$0xf0]  ;;  %v13085_v5 = vld [vmem:[%s13825_s18 + $0x140c] sm:$0xf]  ;;  %v11189_v24 = vor.u32 %v13153_v18, %v11186_v19  ;;  %v7780_v27 = vpop.f32.mrf.mxu2 }
 0x3df   : > { %8019 = vmatpush.bf16.msrb.mxu1 %v11109_v30  ;;  %v10914_v12 = vld [vmem:[%s13825_s18 + $0x1418] sm:$0xf0]  ;;  %v13117_v25 = vld [vmem:[%s13825_s18 + $0x150c] sm:$0xf]  ;;  %v11317_v15 = vor.u32 %v13185_v57, %v11314_v53  ;;  %v7793_v56 = vpop.f32.mrf.mxu3 }
 0x3e0   : > { %8032 = vmatpush.bf16.msrb.mxu2 %v11237_v49  ;;  %v11042_v9 = vld [vmem:[%s13825_s18 + $0x1518] sm:$0xf0]  ;;  %v13149_v10 = vld [vmem:[%s13825_s18 + $0x160c] sm:$0xf]  ;;  %v10917_v20 = vor.u32 %v13085_v5, %v10914_v12 }
 0x3e1   : > { %8045 = vmatpush.bf16.msrb.mxu3 %v11365_v35  ;;  %v11170_v47 = vld [vmem:[%s13825_s18 + $0x1618] sm:$0xf0]  ;;  %v13181_v13 = vld [vmem:[%s13825_s18 + $0x170c] sm:$0xf]  ;;  %v11045_v35 = vor.u32 %v13117_v25, %v11042_v9 }
 0x3e2   : > { %8007 = vmatpush.bf16.msrb.mxu0 %v10965_v54  ;;  %v11298_v48 = vld [vmem:[%s13825_s18 + $0x1718] sm:$0xf0]  ;;  %v13241_v62 = vld [vmem:[%s13825_s18 + $0x18ec] sm:$0xf]  ;;  %v11173_v37 = vor.u32 %v13149_v10, %v11170_v47 }
 0x3e3   : > { %8020 = vmatpush.bf16.msrb.mxu1 %v11093_v40  ;;  %v11538_v30 = vld [vmem:[%s13825_s18 + $0x18f8] sm:$0xf0]  ;;  %v13273_v49 = vld [vmem:[%s13825_s18 + $0x19ec] sm:$0xf]  ;;  %v11301_v1 = vor.u32 %v13181_v13, %v11298_v48 }
 0x3e4   : > { %8033 = vmatpush.bf16.msrb.mxu2 %v11221_v26  ;;  %v11666_v33 = vld [vmem:[%s13825_s18 + $0x19f8] sm:$0xf0]  ;;  %v13305_v34 = vld [vmem:[%s13825_s18 + $0x1aec] sm:$0xf]  ;;  %v11541_v14 = vor.u32 %v13241_v62, %v11538_v30 }
 0x3e5   : > { %8046 = vmatpush.bf16.msrb.mxu3 %v11349_v44  ;;  %v11794_v7 = vld [vmem:[%s13825_s18 + $0x1af8] sm:$0xf0]  ;;  %v13337_v21 = vld [vmem:[%s13825_s18 + $0x1bec] sm:$0xf]  ;;  %v11669_v28 = vor.u32 %v13273_v49, %v11666_v33 }
 0x3e6   : > { %8008 = vmatpush.bf16.msrb.mxu0 %v10949_v2  ;;  %v11922_v22 = vld [vmem:[%s13825_s18 + $0x1bf8] sm:$0xf0]  ;;  %v11797_v54 = vor.u32 %v13305_v34, %v11794_v7  ;;  %v13237_v40 = vld [vmem:[%s13825_s18 + $0x18cc] sm:$0xf] }
 0x3e7   : > { %8021 = vmatpush.bf16.msrb.mxu1 %v11077_v32  ;;  %v11522_v26 = vld [vmem:[%s13825_s18 + $0x18d8] sm:$0xf0]  ;;  %v13269_v61 = vld [vmem:[%s13825_s18 + $0x19cc] sm:$0xf]  ;;  %v11925_v42 = vor.u32 %v13337_v21, %v11922_v22 }
 0x3e8   : > { %8034 = vmatpush.bf16.msrb.mxu2 %v11205_v60  ;;  %v11650_v23 = vld [vmem:[%s13825_s18 + $0x19d8] sm:$0xf0]  ;;  %v13301_v43 = vld [vmem:[%s13825_s18 + $0x1acc] sm:$0xf]  ;;  %v11525_v41 = vor.u32 %v13237_v40, %v11522_v26 }
 0x3e9   : > { %8047 = vmatpush.bf16.msrb.mxu3 %v11333_v16  ;;  %v11778_v44 = vld [vmem:[%s13825_s18 + $0x1ad8] sm:$0xf0]  ;;  %v13333_v45 = vld [vmem:[%s13825_s18 + $0x1bcc] sm:$0xf]  ;;  %v11653_v39 = vor.u32 %v13269_v61, %v11650_v23 }
 0x3ea   : > { %8009 = vmatpush.bf16.msrb.mxu0 %v10933_v11  ;;  %v11906_v51 = vld [vmem:[%s13825_s18 + $0x1bd8] sm:$0xf0]  ;;  %v11781_v36 = vor.u32 %v13301_v43, %v11778_v44  ;;  %v13233_v29 = vld [vmem:[%s13825_s18 + $0x18ac] sm:$0xf] }
 0x3eb   : > { %8022 = vmatpush.bf16.msrb.mxu1 %v11061_v46  ;;  %v11506_v58 = vld [vmem:[%s13825_s18 + $0x18b8] sm:$0xf0]  ;;  %v13265_v2 = vld [vmem:[%s13825_s18 + $0x19ac] sm:$0xf]  ;;  %v11909_v31 = vor.u32 %v13333_v45, %v11906_v51 }
 0x3ec   : > { %8035 = vmatpush.bf16.msrb.mxu2 %v11189_v24  ;;  %v11634_v32 = vld [vmem:[%s13825_s18 + $0x19b8] sm:$0xf0]  ;;  %v13297_v60 = vld [vmem:[%s13825_s18 + $0x1aac] sm:$0xf] }
 0x3ed   : > { %8048 = vmatpush.bf16.msrb.mxu3 %v11317_v15  ;;  %v11762_v17 = vld [vmem:[%s13825_s18 + $0x1ab8] sm:$0xf0]  ;;  %v13329_v50 = vld [vmem:[%s13825_s18 + $0x1bac] sm:$0xf]  ;;  %v11637_v6 = vor.u32 %v13265_v2, %v11634_v32 }
 0x3ee   : > { %8010 = vmatpush.bf16.msrb.mxu0 %v10917_v20  ;;  %v11890_v55 = vld [vmem:[%s13825_s18 + $0x1bb8] sm:$0xf0]  ;;  %v11765_v16 = vor.u32 %v13297_v60, %v11762_v17  ;;  %v13229_v8 = vld [vmem:[%s13825_s18 + $0x188c] sm:$0xf]  ;;  %v7804_v12 = vpop.f32.mrf.mxu0 }
 0x3ef   : > { %8023 = vmatpush.bf16.msrb.mxu1 %v11045_v35  ;;  %v11490_v18 = vld [vmem:[%s13825_s18 + $0x1898] sm:$0xf0]  ;;  %v13293_v57 = vld [vmem:[%s13825_s18 + $0x1a8c] sm:$0xf]  ;;  %v7805_v27 = vadd.f32 %v7804_v12, %v15966_v59  ;;  %v7817_v15 = vpop.f32.mrf.mxu1 }
 0x3f0   : > { %8036 = vmatpush.bf16.msrb.mxu2 %v11173_v37  ;;  %v11618_v19 = vld [vmem:[%s13825_s18 + $0x1998] sm:$0xf0]  ;;  %v13325_v11 = vld [vmem:[%s13825_s18 + $0x1b8c] sm:$0xf]  ;;  %v11493_v5 = vor.u32 %v13229_v8, %v11490_v18 }
 0x3f1   : > { %8049 = vmatpush.bf16.msrb.mxu3 %v11301_v1  ;;  %8011 = vmatmul.bf16.vlgmr.msrb.gmra.mxu0 %v14296_v63  ;;  %v11509_v63 = vor.u32 %v13233_v29, %v11506_v58  ;;  %v11746_v53 = vld [vmem:[%s13825_s18 + $0x1a98] sm:$0xf0]  ;;  %v13225_v25 = vld [vmem:[%s13825_s18 + $0x186c] sm:$0xf]  ;;  %v7818_v49 = vadd.f32 %v7817_v15, %v7805_v27 }
 0x3f2   : > { %8055 = vmatpush.bf16.msra.mxu0 %v11541_v14  ;;  %8024 = vmatmul.bf16.vlgmr.msrb.gmra.mxu1 %v14300_v3  ;;  %v11893_v3 = vor.u32 %v13329_v50, %v11890_v55  ;;  %v11749_v24 = vor.u32 %v13293_v57, %v11746_v53  ;;  %v11474_v9 = vld [vmem:[%s13825_s18 + $0x1878] sm:$0xf0]  ;;  %v13257_v10 = vld [vmem:[%s13825_s18 + $0x196c] sm:$0xf] }
 0x3f3   : > { %8068 = vmatpush.bf16.msra.mxu1 %v11669_v28  ;;  %8037 = vmatmul.bf16.vlgmr.msrb.gmra.mxu2 %v14298_v0  ;;  %v13261_v0 = vld [vmem:[%s13825_s18 + $0x198c] sm:$0xf]  ;;  %v11602_v13 = vld [vmem:[%s13825_s18 + $0x1978] sm:$0xf0]  ;;  %v11477_v20 = vor.u32 %v13225_v25, %v11474_v9 }
 0x3f4   : > { %8081 = vmatpush.bf16.msra.mxu2 %v11797_v54  ;;  %8050 = vmatmul.bf16.vlgmr.msrb.gmra.mxu3 %v14302_v4  ;;  %v11874_v4 = vld [vmem:[%s13825_s18 + $0x1b98] sm:$0xf0]  ;;  %v11621_v46 = vor.u32 %v13261_v0, %v11618_v19  ;;  %v13289_v48 = vld [vmem:[%s13825_s18 + $0x1a6c] sm:$0xf]  ;;  %v11605_v59 = vor.u32 %v13257_v10, %v11602_v13 }
 0x3f5   : > { %8094 = vmatpush.bf16.msra.mxu3 %v11925_v42  ;;  %v11877_v47 = vor.u32 %v13325_v11, %v11874_v4  ;;  %v11730_v56 = vld [vmem:[%s13825_s18 + $0x1a78] sm:$0xf0]  ;;  %v13321_v62 = vld [vmem:[%s13825_s18 + $0x1b6c] sm:$0xf] }
 0x3f6   : > { %8056 = vmatpush.bf16.msra.mxu0 %v11525_v41  ;;  %v11858_v30 = vld [vmem:[%s13825_s18 + $0x1b78] sm:$0xf0]  ;;  %v11733_v33 = vor.u32 %v13289_v48, %v11730_v56  ;;  %v13221_v34 = vld [vmem:[%s13825_s18 + $0x184c] sm:$0xf]  ;;  %v7830_v37 = vpop.f32.mrf.mxu2  ;;  %v7806_v23 = vpop.f32.mrf.mxu0 }
 0x3f7   : > { %8069 = vmatpush.bf16.msra.mxu1 %v11653_v39  ;;  %v11458_v7 = vld [vmem:[%s13825_s18 + $0x1858] sm:$0xf0]  ;;  %v13253_v35 = vld [vmem:[%s13825_s18 + $0x194c] sm:$0xf]  ;;  %v11861_v21 = vor.u32 %v13321_v62, %v11858_v30  ;;  %v7831_v28 = vadd.f32 %v7830_v37, %v7818_v49  ;;  %v7843_v54 = vpop.f32.mrf.mxu3  ;;  %v7819_v39 = vpop.f32.mrf.mxu1 }
 0x3f8   : > { %8082 = vmatpush.bf16.msra.mxu2 %v11781_v36  ;;  %v11586_v22 = vld [vmem:[%s13825_s18 + $0x1958] sm:$0xf0]  ;;  %v13285_v1 = vld [vmem:[%s13825_s18 + $0x1a4c] sm:$0xf]  ;;  %v11461_v61 = vor.u32 %v13221_v34, %v11458_v7 }
 0x3f9   : > { %8095 = vmatpush.bf16.msra.mxu3 %v11909_v31  ;;  %v11714_v14 = vld [vmem:[%s13825_s18 + $0x1a58] sm:$0xf0]  ;;  %v13317_v40 = vld [vmem:[%s13825_s18 + $0x1b4c] sm:$0xf]  ;;  %v16037_v42 = vadd.f32 %v7843_v54, %v7831_v28  ;;  %v11589_v43 = vor.u32 %v13253_v35, %v11586_v22 }
 0x3fa   : > { %8057 = vmatpush.bf16.msra.mxu0 %v11509_v63  ;;  %v11842_v26 = vld [vmem:[%s13825_s18 + $0x1b58] sm:$0xf0]  ;;  %v11717_v44 = vor.u32 %v13285_v1, %v11714_v14  ;;  %v13217_v45 = vld [vmem:[%s13825_s18 + $0x182c] sm:$0xf] }
 0x3fb   : > { %8070 = vmatpush.bf16.msra.mxu1 %v11637_v6  ;;  %v11442_v51 = vld [vmem:[%s13825_s18 + $0x1838] sm:$0xf0]  ;;  %v13249_v41 = vld [vmem:[%s13825_s18 + $0x192c] sm:$0xf]  ;;  %v11845_v36 = vor.u32 %v13317_v40, %v11842_v26 }
 0x3fc   : > { %8083 = vmatpush.bf16.msra.mxu2 %v11765_v16  ;;  %v11570_v29 = vld [vmem:[%s13825_s18 + $0x1938] sm:$0xf0]  ;;  %v13281_v58 = vld [vmem:[%s13825_s18 + $0x1a2c] sm:$0xf]  ;;  %v11445_v60 = vor.u32 %v13217_v45, %v11442_v51 }
 0x3fd   : > { %8096 = vmatpush.bf16.msra.mxu3 %v11893_v3  ;;  %v11698_v2 = vld [vmem:[%s13825_s18 + $0x1a38] sm:$0xf0]  ;;  %v13313_v31 = vld [vmem:[%s13825_s18 + $0x1b2c] sm:$0xf]  ;;  %v11573_v55 = vor.u32 %v13249_v41, %v11570_v29  ;;  %v13560_v41 = vld [vmem:[#allocation1 + $0x1b] sm:$0xff] }
 0x3fe   : > { %8058 = vmatpush.bf16.msra.mxu0 %v11493_v5  ;;  %v11826_v32 = vld [vmem:[%s13825_s18 + $0x1b38] sm:$0xf0]  ;;  %v13213_v17 = vld [vmem:[%s13825_s18 + $0x180c] sm:$0xf]  ;;  %v11701_v63 = vor.u32 %v13281_v58, %v11698_v2  ;;  %v7832_v18 = vpop.f32.mrf.mxu2 }
 0x3ff   : > { %8071 = vmatpush.bf16.msra.mxu1 %v11621_v46  ;;  %v11426_v50 = vld [vmem:[%s13825_s18 + $0x1818] sm:$0xf0]  ;;  %v13245_v6 = vld [vmem:[%s13825_s18 + $0x190c] sm:$0xf]  ;;  %v11829_v0 = vor.u32 %v13313_v31, %v11826_v32  ;;  %v7845_v53 = vpop.f32.mrf.mxu3 }
 0x400   : > { %8084 = vmatpush.bf16.msra.mxu2 %v11749_v24  ;;  %v11554_v16 = vld [vmem:[%s13825_s18 + $0x1918] sm:$0xf0]  ;;  %v13277_v8 = vld [vmem:[%s13825_s18 + $0x1a0c] sm:$0xf]  ;;  %v11429_v12 = vor.u32 %v13213_v17, %v11426_v50 }
 0x401   : > { %8097 = vmatpush.bf16.msra.mxu3 %v11877_v47  ;;  %v11682_v3 = vld [vmem:[%s13825_s18 + $0x1a18] sm:$0xf0]  ;;  %v13309_v19 = vld [vmem:[%s13825_s18 + $0x1b0c] sm:$0xf]  ;;  %v11557_v9 = vor.u32 %v13245_v6, %v11554_v16 }
 0x402   : > { %8059 = vmatpush.bf16.msra.mxu0 %v11477_v20  ;;  %v11810_v57 = vld [vmem:[%s13825_s18 + $0x1b18] sm:$0xf0]  ;;  %v13369_v11 = vld [vmem:[%s13825_s18 + $0x1cec] sm:$0xf]  ;;  %v11685_v10 = vor.u32 %v13277_v8, %v11682_v3 }
 0x403   : > { %8072 = vmatpush.bf16.msra.mxu1 %v11605_v59  ;;  %v12050_v4 = vld [vmem:[%s13825_s18 + $0x1cf8] sm:$0xf0]  ;;  %v13401_v5 = vld [vmem:[%s13825_s18 + $0x1dec] sm:$0xf]  ;;  %v11813_v47 = vor.u32 %v13309_v19, %v11810_v57 }
 0x404   : > { %8085 = vmatpush.bf16.msra.mxu2 %v11733_v33  ;;  %v12178_v46 = vld [vmem:[%s13825_s18 + $0x1df8] sm:$0xf0]  ;;  %v13433_v24 = vld [vmem:[%s13825_s18 + $0x1eec] sm:$0xf]  ;;  %v12053_v13 = vor.u32 %v13369_v11, %v12050_v4 }
 0x405   : > { %8098 = vmatpush.bf16.msra.mxu3 %v11861_v21  ;;  %v12306_v25 = vld [vmem:[%s13825_s18 + $0x1ef8] sm:$0xf0]  ;;  %v13465_v27 = vld [vmem:[%s13825_s18 + $0x1fec] sm:$0xf]  ;;  %v12181_v48 = vor.u32 %v13401_v5, %v12178_v46 }
 0x406   : > { %8060 = vmatpush.bf16.msra.mxu0 %v11461_v61  ;;  %v12434_v15 = vld [vmem:[%s13825_s18 + $0x1ff8] sm:$0xf0]  ;;  %v12309_v56 = vor.u32 %v13433_v24, %v12306_v25  ;;  %v13365_v62 = vld [vmem:[%s13825_s18 + $0x1ccc] sm:$0xf] }
 0x407   : > { %8073 = vmatpush.bf16.msra.mxu1 %v11589_v43  ;;  %v12034_v30 = vld [vmem:[%s13825_s18 + $0x1cd8] sm:$0xf0]  ;;  %v13397_v49 = vld [vmem:[%s13825_s18 + $0x1dcc] sm:$0xf]  ;;  %v12437_v20 = vor.u32 %v13465_v27, %v12434_v15 }
 0x408   : > { %8086 = vmatpush.bf16.msra.mxu2 %v11717_v44  ;;  %v12162_v59 = vld [vmem:[%s13825_s18 + $0x1dd8] sm:$0xf0]  ;;  %v13429_v33 = vld [vmem:[%s13825_s18 + $0x1ecc] sm:$0xf]  ;;  %v12037_v37 = vor.u32 %v13365_v62, %v12034_v30  ;;  %v13559_v44 = vld [vmem:[#allocation1 + $0x9] sm:$0xff] }
 0x409   : > { %8099 = vmatpush.bf16.msra.mxu3 %v11845_v36  ;;  %v12290_v34 = vld [vmem:[%s13825_s18 + $0x1ed8] sm:$0xf0]  ;;  %v13461_v7 = vld [vmem:[%s13825_s18 + $0x1fcc] sm:$0xf]  ;;  %v12165_v21 = vor.u32 %v13397_v49, %v12162_v59 }
 0x40a   : > { %8061 = vmatpush.bf16.msra.mxu0 %v11445_v60  ;;  %v12418_v35 = vld [vmem:[%s13825_s18 + $0x1fd8] sm:$0xf0]  ;;  %v12293_v22 = vor.u32 %v13429_v33, %v12290_v34  ;;  %v13361_v1 = vld [vmem:[%s13825_s18 + $0x1cac] sm:$0xf] }
 0x40b   : > { %8074 = vmatpush.bf16.msra.mxu1 %v11573_v55  ;;  %v12018_v14 = vld [vmem:[%s13825_s18 + $0x1cb8] sm:$0xf0]  ;;  %v13393_v28 = vld [vmem:[%s13825_s18 + $0x1dac] sm:$0xf]  ;;  %v12421_v40 = vor.u32 %v13461_v7, %v12418_v35 }
 0x40c   : > { %8087 = vmatpush.bf16.msra.mxu2 %v11701_v63  ;;  %v13557_v54 = vld [vmem:[#allocation1] sm:$0xff]  ;;  %v13425_v61 = vld [vmem:[%s13825_s18 + $0x1eac] sm:$0xf]  ;;  %v12021_v39 = vor.u32 %v13361_v1, %v12018_v14 }
 0x40d   : > { %8100 = vmatpush.bf16.msra.mxu3 %v11829_v0  ;;  %v12146_v26 = vld [vmem:[%s13825_s18 + $0x1db8] sm:$0xf0]  ;;  %v13558_v43 = vld [vmem:[#allocation1 + $0x12] sm:$0xff] }
 0x40e   : > { %8062 = vmatpush.bf16.msra.mxu0 %v11429_v12  ;;  %v12274_v23 = vld [vmem:[%s13825_s18 + $0x1eb8] sm:$0xf0]  ;;  %v13457_v45 = vld [vmem:[%s13825_s18 + $0x1fac] sm:$0xf]  ;;  %v12149_v36 = vor.u32 %v13393_v28, %v12146_v26  ;;  %v7856_v55 = vpop.f32.mrf.mxu0 }
 0x40f   : > { %8075 = vmatpush.bf16.msra.mxu1 %v11557_v9  ;;  %v12402_v51 = vld [vmem:[%s13825_s18 + $0x1fb8] sm:$0xf0]  ;;  %v12277_v29 = vor.u32 %v13425_v61, %v12274_v23  ;;  %v13357_v58 = vld [vmem:[%s13825_s18 + $0x1c8c] sm:$0xf]  ;;  %v7857_v16 = vadd.f32 %v7856_v55, %v16037_v42  ;;  %v7869_v18 = vpop.f32.mrf.mxu1 }
 0x410   : > { %8088 = vmatpush.bf16.msra.mxu2 %v11685_v10  ;;  %v12002_v2 = vld [vmem:[%s13825_s18 + $0x1c98] sm:$0xf0]  ;;  %v13389_v31 = vld [vmem:[%s13825_s18 + $0x1d8c] sm:$0xf]  ;;  %v12405_v32 = vor.u32 %v13457_v45, %v12402_v51 }
 0x411   : > { %8101 = vmatpush.bf16.msra.mxu3 %v11813_v47  ;;  %8063 = vmatmul.bf16.vlgmr.msra.gmra.mxu0 %v13557_v54  ;;  %v12130_v60 = vld [vmem:[%s13825_s18 + $0x1d98] sm:$0xf0]  ;;  %v13421_v17 = vld [vmem:[%s13825_s18 + $0x1e8c] sm:$0xf]  ;;  %v12005_v8 = vor.u32 %v13357_v58, %v12002_v2  ;;  %v7870_v4 = vadd.f32 %v7869_v18, %v7857_v16 }
 0x412   : > { %8107 = vmatpush.bf16.msrb.mxu0 %v12053_v13  ;;  %8076 = vmatmul.bf16.vlgmr.msra.gmra.mxu1 %v13559_v44  ;;  %v12258_v50 = vld [vmem:[%s13825_s18 + $0x1e98] sm:$0xf0]  ;;  %v13453_v63 = vld [vmem:[%s13825_s18 + $0x1f8c] sm:$0xf]  ;;  %v12133_v0 = vor.u32 %v13389_v31, %v12130_v60 }
 0x413   : > { %8120 = vmatpush.bf16.msrb.mxu1 %v12181_v48  ;;  %8089 = vmatmul.bf16.vlgmr.msra.gmra.mxu2 %v13558_v43  ;;  %v12386_v6 = vld [vmem:[%s13825_s18 + $0x1f98] sm:$0xf0]  ;;  %v12261_v3 = vor.u32 %v13421_v17, %v12258_v50  ;;  %v13353_v19 = vld [vmem:[%s13825_s18 + $0x1c6c] sm:$0xf] }
 0x414   : > { %8133 = vmatpush.bf16.msrb.mxu2 %v12309_v56  ;;  %8102 = vmatmul.bf16.vlgmr.msra.gmra.mxu3 %v13560_v41  ;;  %v11986_v57 = vld [vmem:[%s13825_s18 + $0x1c78] sm:$0xf0]  ;;  %v13385_v53 = vld [vmem:[%s13825_s18 + $0x1d6c] sm:$0xf]  ;;  %v12389_v11 = vor.u32 %v13453_v63, %v12386_v6 }
 0x415   : > { %8146 = vmatpush.bf16.msrb.mxu3 %v12437_v20  ;;  %v12114_v5 = vld [vmem:[%s13825_s18 + $0x1d78] sm:$0xf0]  ;;  %v13417_v12 = vld [vmem:[%s13825_s18 + $0x1e6c] sm:$0xf]  ;;  %v11989_v25 = vor.u32 %v13353_v19, %v11986_v57 }
 0x416   : > { %8108 = vmatpush.bf16.msrb.mxu0 %v12037_v37  ;;  %v12242_v42 = vld [vmem:[%s13825_s18 + $0x1e78] sm:$0xf0]  ;;  %v13449_v46 = vld [vmem:[%s13825_s18 + $0x1f6c] sm:$0xf]  ;;  %v12117_v9 = vor.u32 %v13385_v53, %v12114_v5  ;;  %v7882_v48 = vpop.f32.mrf.mxu2  ;;  %v7858_v34 = vpop.f32.mrf.mxu0 }
 0x417   : > { %8121 = vmatpush.bf16.msrb.mxu1 %v12165_v21  ;;  %v12370_v24 = vld [vmem:[%s13825_s18 + $0x1f78] sm:$0xf0]  ;;  %v12245_v10 = vor.u32 %v13417_v12, %v12242_v42  ;;  %v13349_v27 = vld [vmem:[%s13825_s18 + $0x1c4c] sm:$0xf]  ;;  %v7883_v49 = vadd.f32 %v7882_v48, %v7870_v4  ;;  %v7895_v20 = vpop.f32.mrf.mxu3  ;;  %v7871_v35 = vpop.f32.mrf.mxu1 }
 0x418   : > { %8134 = vmatpush.bf16.msrb.mxu2 %v12293_v22  ;;  %v11970_v15 = vld [vmem:[%s13825_s18 + $0x1c58] sm:$0xf0]  ;;  %v13381_v47 = vld [vmem:[%s13825_s18 + $0x1d4c] sm:$0xf]  ;;  %v12373_v13 = vor.u32 %v13449_v46, %v12370_v24 }
 0x419   : > { %8147 = vmatpush.bf16.msrb.mxu3 %v12421_v40  ;;  %v12098_v56 = vld [vmem:[%s13825_s18 + $0x1d58] sm:$0xf0]  ;;  %v13413_v62 = vld [vmem:[%s13825_s18 + $0x1e4c] sm:$0xf]  ;;  %v11973_v7 = vor.u32 %v13349_v27, %v11970_v15  ;;  %v7896_v37 = vadd.f32 %v7895_v20, %v7883_v49 }
 0x41a   : > { %8109 = vmatpush.bf16.msrb.mxu0 %v12021_v39  ;;  %v12226_v30 = vld [vmem:[%s13825_s18 + $0x1e58] sm:$0xf0]  ;;  %v13445_v59 = vld [vmem:[%s13825_s18 + $0x1f4c] sm:$0xf]  ;;  %v12101_v21 = vor.u32 %v13381_v47, %v12098_v56 }
 0x41b   : > { %8122 = vmatpush.bf16.msrb.mxu1 %v12149_v36  ;;  %v12354_v33 = vld [vmem:[%s13825_s18 + $0x1f58] sm:$0xf0]  ;;  %v12229_v22 = vor.u32 %v13413_v62, %v12226_v30  ;;  %v13345_v1 = vld [vmem:[%s13825_s18 + $0x1c2c] sm:$0xf] }
 0x41c   : > { %8135 = vmatpush.bf16.msrb.mxu2 %v12277_v29  ;;  %v11954_v14 = vld [vmem:[%s13825_s18 + $0x1c38] sm:$0xf0]  ;;  %v13377_v28 = vld [vmem:[%s13825_s18 + $0x1d2c] sm:$0xf]  ;;  %v12357_v54 = vor.u32 %v13445_v59, %v12354_v33 }
 0x41d   : > { %8148 = vmatpush.bf16.msrb.mxu3 %v12405_v32  ;;  %v12082_v40 = vld [vmem:[%s13825_s18 + $0x1d38] sm:$0xf0]  ;;  %v13409_v26 = vld [vmem:[%s13825_s18 + $0x1e2c] sm:$0xf]  ;;  %v11957_v44 = vor.u32 %v13345_v1, %v11954_v14 }
 0x41e   : > { %8110 = vmatpush.bf16.msrb.mxu0 %v12005_v8  ;;  %v12210_v61 = vld [vmem:[%s13825_s18 + $0x1e38] sm:$0xf0]  ;;  %v13441_v23 = vld [vmem:[%s13825_s18 + $0x1f2c] sm:$0xf]  ;;  %v12085_v45 = vor.u32 %v13377_v28, %v12082_v40  ;;  %v7884_v32 = vpop.f32.mrf.mxu2 }
 0x41f   : > { %8123 = vmatpush.bf16.msrb.mxu1 %v12133_v0  ;;  %v12338_v43 = vld [vmem:[%s13825_s18 + $0x1f38] sm:$0xf0]  ;;  %v12213_v51 = vor.u32 %v13409_v26, %v12210_v61  ;;  %v13341_v41 = vld [vmem:[%s13825_s18 + $0x1c0c] sm:$0xf]  ;;  %v7897_v50 = vpop.f32.mrf.mxu3 }
 0x420   : > { %8136 = vmatpush.bf16.msrb.mxu2 %v12261_v3  ;;  %v11938_v39 = vld [vmem:[%s13825_s18 + $0x1c18] sm:$0xf0]  ;;  %v13373_v36 = vld [vmem:[%s13825_s18 + $0x1d0c] sm:$0xf]  ;;  %v12341_v29 = vor.u32 %v13441_v23, %v12338_v43 }
 0x421   : > { %8149 = vmatpush.bf16.msrb.mxu3 %v12389_v11  ;;  %v12066_v58 = vld [vmem:[%s13825_s18 + $0x1d18] sm:$0xf0]  ;;  %v13405_v2 = vld [vmem:[%s13825_s18 + $0x1e0c] sm:$0xf]  ;;  %v11941_v55 = vor.u32 %v13341_v41, %v11938_v39 }
 0x422   : > { %8111 = vmatpush.bf16.msrb.mxu0 %v11989_v25  ;;  %v12194_v31 = vld [vmem:[%s13825_s18 + $0x1e18] sm:$0xf0]  ;;  %v13437_v60 = vld [vmem:[%s13825_s18 + $0x1f0c] sm:$0xf]  ;;  %v12069_v63 = vor.u32 %v13373_v36, %v12066_v58  ;;  %v8179_v58 = vld [vmem:[%s13833_s19] sm:$0xf] }
 0x423   : > { %8124 = vmatpush.bf16.msrb.mxu1 %v12117_v9  ;;  %v12322_v17 = vld [vmem:[%s13825_s18 + $0x1f18] sm:$0xf0]  ;;  %v12197_v6 = vor.u32 %v13405_v2, %v12194_v31  ;;  %v13562_v18 = vld [vmem:[#allocation1 + $0x2d] sm:$0xff]  ;;  %v13563_v0 = vld [vmem:[#allocation1 + $0x36] sm:$0xff]  ;;  %v8183_v50 = vperm.slane %v8179_v58, 2  ;;  %s8207_s18 = scalar_lea.hbm %s16166_s3, %s13468_s7 }
 0x424   : > { %8137 = vmatpush.bf16.msrb.mxu2 %v12245_v10  ;;  %v12325_v16 = vor.u32 %v13437_v60, %v12322_v17  ;;  %v13561_v8 = vld [vmem:[#allocation1 + $0x24] sm:$0xff]  ;;  %v8182_v17 = vperm.slane %v8179_v58, 1  ;;  %s8211_s19 = sshll.u32 %s8207_s18, 4  ;;  %s8212_s19 = int_to_ptr.hbm [resolvable:$true] %s8211_s19 }
 0x425   : > { %8150 = vmatpush.bf16.msrb.mxu3 %v12373_v13  ;;  %v13564_v3 = vld [vmem:[#allocation1 + $0x3f] sm:$0xff]  ;;  %s13639_s21 = sshra.s32 %s8212_s19, 4  ;;  %s13640_s21 = int_to_ptr.hbm [resolvable:$true] %s13639_s21 }
 0x426   : > { %8112 = vmatpush.bf16.msrb.mxu0 %v11973_v7  ;;  %s13641_s23 = scalar_lea.hbm %s13640_s21, 8  ;;  %p13646_p7 = scmp.lt.s32.totalorder %s13640_s21, %s16166_s3 }
 0x427   : > { %8125 = vmatpush.bf16.msrb.mxu1 %v12101_v21  ;;  %p13642_p4 = scmp.ne.s32.totalorder %s13640_s21, %s13641_s23  ;;  %p13647_p8 = scmp.lt.s32.totalorder %s13645_s30, %s13641_s23 }
 0x428   : > { %8138 = vmatpush.bf16.msrb.mxu2 %v12229_v22 }
 0x429   : > { %8151 = vmatpush.bf16.msrb.mxu3 %v12357_v54  ;;  %p13643_p5 = pnand %p13642_p4, %p13786_p9  ;;  %p13648_p10 = por %p13647_p8, %p13646_p7 }
 0x42a   : > { %8113 = vmatpush.bf16.msrb.mxu0 %v11957_v44 }
 0x42b   : > { %8126 = vmatpush.bf16.msrb.mxu1 %v12085_v45  ;;  %p13644_p6 = pneg %p13643_p5 }
 0x42c   : > { %8139 = vmatpush.bf16.msrb.mxu2 %v12213_v51 }
 0x42d   : > { %8152 = vmatpush.bf16.msrb.mxu3 %v12341_v29  ;;  %p13649_p13 = pnand %p13648_p10, %p13644_p6 }
 0x42e   : > { %8114 = vmatpush.bf16.msrb.mxu0 %v11941_v55  ;;  %v7908_v19 = vpop.f32.mrf.mxu0  ;;  %v8184_v55 = vperm.slane %v8179_v58, 3 }
 0x42f   : > { %8127 = vmatpush.bf16.msrb.mxu1 %v12069_v63  ;;  %v7909_v57 = vadd.f32 %v7908_v19, %v7896_v37  ;;  %v7921_v53 = vpop.f32.mrf.mxu1 }
 0x430   : > { %8140 = vmatpush.bf16.msrb.mxu2 %v12197_v6  ;;  %v8181_v6 = vperm.slane %v8179_v58, 0  ;;  %v8187_v19 = vrot.slane %v8184_v55, 2 }
 0x431   : > { %8153 = vmatpush.bf16.msrb.mxu3 %v12325_v16  ;;  %8115 = vmatmul.bf16.vlgmr.msrb.gmra.mxu0 %v13561_v8  ;;  %v7922_v11 = vadd.f32 %v7921_v53, %v7909_v57  ;;  %v8185_v16 = vrot.slane %v8182_v17, 6 }
 0x432   : > { %8128 = vmatmul.bf16.vlgmr.msrb.gmra.mxu1 %v13562_v18 }
 0x433   : > { %8141 = vmatmul.bf16.vlgmr.msrb.gmra.mxu2 %v13563_v0 }
 0x434   : > { %8154 = vmatmul.bf16.vlgmr.msrb.gmra.mxu3 %v13564_v3  ;;  %v8186_v3 = vrot.slane %v8183_v50, 4 }
 0x436   : > { %v7934_v4 = vpop.f32.mrf.mxu2  ;;  %v7910_v42 = vpop.f32.mrf.mxu0 }
 0x437   : > { %v7935_v5 = vadd.f32 %v7934_v4, %v7922_v11  ;;  %v7947_v12 = vpop.f32.mrf.mxu3  ;;  %v7923_v46 = vpop.f32.mrf.mxu1  ;;  %v8188_v4 = vsel %vm8166_vm0, %v8181_v6, %v8185_v16  ;;  %v8189_v42 = vsel %vm8168_vm1, %v8186_v3, %v8187_v19 }
 0x439   : > { %v7948_v24 = vadd.f32 %v7947_v12, %v7935_v5  ;;  %v8164_v5 = vrot.slane %v15896_v38, 4 }
 0x43e   : > { %v7936_v25 = vpop.f32.mrf.mxu2 }
 0x43f   : > { %v7949_v9 = vpop.f32.mrf.mxu3  ;;  %v8190_v25 = vsel %vm8170_vm2, %v8188_v4, %v8189_v42 }
 0x44e   : > { %v7960_v10 = vpop.f32.mrf.mxu0 }
 0x44f   : > { %v7961_v27 = vadd.f32 %v7960_v10, %v7948_v24  ;;  %v7973_v15 = vpop.f32.mrf.mxu1 }
 0x451   : > { %v7974_v47 = vadd.f32 %v7973_v15, %v7961_v27 }
 0x456   : > { %v7986_v13 = vpop.f32.mrf.mxu2  ;;  %v7962_v62 = vpop.f32.mrf.mxu0 }
 0x457   : > { %v7987_v48 = vadd.f32 %v7986_v13, %v7974_v47  ;;  %v7999_v56 = vpop.f32.mrf.mxu3  ;;  %v7975_v30 = vpop.f32.mrf.mxu1 }
 0x459   : > { %v8000_v49 = vadd.f32 %v7999_v56, %v7987_v48 }
 0x45e   : > { %v7988_v20 = vpop.f32.mrf.mxu2 }
 0x45f   : > { %v8001_v59 = vpop.f32.mrf.mxu3 }
 0x46e   : > { %v8012_v33 = vpop.f32.mrf.mxu0 }
 0x46f   : > { %v8025_v34 = vpop.f32.mrf.mxu1  ;;  %v8013_v54 = vadd.f32 %v8012_v33, %v8000_v49 }
 0x471   : > { %v8026_v43 = vadd.f32 %v8025_v34, %v8013_v54 }
 0x476   : > { %v8038_v7 = vpop.f32.mrf.mxu2  ;;  %v8014_v37 = vpop.f32.mrf.mxu0 }
 0x477   : > { %v8051_v35 = vpop.f32.mrf.mxu3  ;;  %v8027_v21 = vpop.f32.mrf.mxu1  ;;  %v8039_v44 = vadd.f32 %v8038_v7, %v8026_v43 }
 0x479   : > { %v8052_v41 = vadd.f32 %v8051_v35, %v8039_v44 }
 0x47e   : > { %v8040_v22 = vpop.f32.mrf.mxu2 }
 0x47f   : > { %v8053_v1 = vpop.f32.mrf.mxu3 }
 0x48e   : > { %v8064_v14 = vpop.f32.mrf.mxu0 }
 0x48f   : > { %v8077_v28 = vpop.f32.mrf.mxu1  ;;  %v8065_v39 = vadd.f32 %v8064_v14, %v8052_v41 }
 0x491   : > { %v8078_v36 = vadd.f32 %v8077_v28, %v8065_v39 }
 0x496   : > { %v8090_v40 = vpop.f32.mrf.mxu2  ;;  %v8066_v61 = vpop.f32.mrf.mxu0 }
 0x497   : > { %v8103_v26 = vpop.f32.mrf.mxu3  ;;  %v8079_v23 = vpop.f32.mrf.mxu1  ;;  %v8091_v29 = vadd.f32 %v8090_v40, %v8078_v36 }
 0x499   : > { %v8104_v2 = vadd.f32 %v8103_v26, %v8091_v29 }
 0x49e   : > { %v8092_v45 = vpop.f32.mrf.mxu2 }
 0x49f   : > { %v8105_v51 = vpop.f32.mrf.mxu3 }
 0x4ae   : > { %v8116_v31 = vpop.f32.mrf.mxu0 }
 0x4af   : > { %v8129_v32 = vpop.f32.mrf.mxu1  ;;  %v8117_v60 = vadd.f32 %v8116_v31, %v8104_v2 }
 0x4b1   : > { %v8130_v63 = vadd.f32 %v8129_v32, %v8117_v60 }
 0x4b6   : > { %v8142_v8 = vpop.f32.mrf.mxu2  ;;  %v8118_v57 = vpop.f32.mrf.mxu0 }
 0x4b7   : > { %v8143_v18 = vadd.f32 %v8142_v8, %v8130_v63  ;;  %v8155_v0 = vpop.f32.mrf.mxu3  ;;  %v8131_v53 = vpop.f32.mrf.mxu1 }
 0x4b9   : > { %v8156_v11 = vadd.f32 %v8155_v0, %v8143_v18 }
 0x4bb   : > { %v8165_v12 = vrot.slane %v8156_v11, 2 }
 0x4bd   : > { %v8169_v46 = vsel %vm8168_vm1, %v8164_v5, %v8165_v12 }
 0x4be   : > { %v8171_v24 = vsel %vm8170_vm2, %v15347_v52, %v8169_v46  ;;  %v8144_v9 = vpop.f32.mrf.mxu2 }
 0x4bf   : > { %v8157_v10 = vpop.f32.mrf.mxu3  ;;  %v8192_v27 = vadd.f32 %v8190_v25, %v8171_v24 }
 0x4c1   : > { %13539 = vtanh.f32 %v8192_v27 }
 0x4c7   : > { %v13540_v38 = vpop.eup %13539 }
 0x4c8   : > { %8194 = vst [vmem:[%s260_s28] sm:$0xff] %v13540_v38 }
 0x4c9   : > { %13652 = shalt.err (!%p13649_p13)
}
 0x4ca   : > { %13473 = dma.vmem_to_hbm [thread:$0]  (%p13786_p9), %s8210_s10, 128, %s8212_s19, %s8196_s24  }
 0x4cb PF: > { %s8223_s8 = sand.u32 1, %s13691_s12   ;;  %p13483_p0 = pnand %p8332_p12, %p13793_p11 }
 0x4cc   : > { %s8224_s5 = scalar_lea.sflag [#allocation4], %s8223_s8 }
 0x4cd   : > { %p13484_p1 = pneg %p13483_p0 }
 0x4cf   : > { %13686 = dma.done.wait (%p13484_p1), %s8224_s5, 128  }
 0x4d0   : > { %13688 = vsyncadd (%p13484_p1), %s8224_s5, 4294967168  ;;  %s22_s17 = sadd.s32 1, %s13711_s17   ;;  %s16172_s12 = smov %s13695_s13 }
 0x4d1   : > { %p19_p2 = scmp.ge.s32.totalorder %s22_s17, 4   ;;  %s16173_s13 = smov %s13699_s14 }
 0x4d2   : > { %s16174_s14 = smov %s13791_s26  ;;  %s16175_s15 = smov %s13707_s16 }
 0x4d3   : > { %s16176_s16 = smov %s16178_s20  ;;  %21 = sbr.rel (!%p19_p2) target bundleno = 8 (0x8), region = 101 }
 0x4d8   :  { %8230 = vsyncpa [#allocation3], 1 }
 0x4d9   :  { %8232 = vsyncpa [#allocation3 + $0x1], 1 }
 0x4da   :  { %8233 = vsyncpa [#allocation6], 1 }
 0x4db   :  { %8235 = vsyncpa [#allocation6 + $0x1], 1 }
 0x4dc   :  { %8236 = vsyncpa [#allocation4], 1 }
 0x4dd   :  { %8238 = vsyncpa [#allocation4 + $0x1], 1 }

</bundles_post_ra>
